<compile_context>
chip_gen: v6e
topology: v6e:2x2x1
jax: 0.10.0
libtpu: 0.0.40
codegen_flags: <defaults>
</compile_context>

<pallas_src>
import jax
import jax.numpy as jnp
from jax import lax
from jax.experimental import pallas as pl
from jax.experimental.pallas import tpu as pltpu

EMBED_DIM = 16                    # embedding_dim (small, even)
NUM_ENTITIES = 3
NUM_RELATIONS = 2
BATCH = 2
OUT_CH = 32
KH = KW = 3
H = W = EMBED_DIM                 # conv input spatial size (D, D)
HO, WO = H - KH + 1, W - KW + 1   # 14, 14
FC_IN = OUT_CH * HO * WO          # 32 * 14 * 14 = 6272
P_PAD = H * W                     # 256: per-channel padded spatial window (2 lane tiles)
FC_IN_PAD = OUT_CH * P_PAD        # 8192: padded FC reduction dim
X_COLS = 3 * 128                  # 384 >= H*W + max tap offset (34); zero padded


# --------------------------- fused Pallas kernel ------------------------------

def conve_fused_kernel(x_ref, cw_ref, cb_ref, fcw_ref, fcb_ref, tail_ref,
                       score_ref):
    # x_ref    : (B, X_COLS)        f32 VMEM  flattened, zero-padded images
    # cw_ref   : (OUT_CH, KH*KW)    f32 SMEM  conv taps, t = di*KW + dj
    # cb_ref   : (OUT_CH,)          f32 SMEM  conv bias
    # fcw_ref  : (FC_IN_PAD, D)     f32 VMEM  fc weight, rows ordered (c, i*W+j),
    #                                          junk rows (i>=HO or j>=WO) are zero
    # fcb_ref  : (1, D)             f32 VMEM
    # tail_ref : (B, D)             f32 VMEM
    # score_ref: (B, 1)             f32 VMEM

    # Hoist the 9 shifted image windows once (shared by all 32 channels).
    # Window t covers flat positions p + di*W + dj for p in [0, P_PAD).
    patches = [x_ref[:, pl.ds(di * W + dj, P_PAD)]            # (B, P_PAD)
               for di in range(KH) for dj in range(KW)]

    fc_acc = jnp.zeros((BATCH, EMBED_DIM), jnp.float32)

    for c in range(OUT_CH):                                   # static unroll
        # conv for channel c on the flat (lane-dense) spatial window: VPU FMAs
        acc = patches[0] * cw_ref[c, 0]
        for t in range(1, KH * KW):
            acc = acc + patches[t] * cw_ref[c, t]
        feat_c = jnp.maximum(acc + cb_ref[c], 0.0)            # (B, P_PAD), ReLU
        # FC partial contraction for this channel's 256-wide slab (MXU).
        w_c = fcw_ref[pl.ds(c * P_PAD, P_PAD), :]             # (P_PAD, D)
        fc_acc = fc_acc + jnp.dot(feat_c, w_c,
                                  preferred_element_type=jnp.float32)

    z = fc_acc + fcb_ref[...]                                 # (B, D)
    diff = z - tail_ref[...]
    score_ref[...] = jnp.sqrt(jnp.sum(diff * diff, axis=1, keepdims=True))


def conve_pallas(x_flat, conv_w_s, conv_b_s, fc_wr, fc_b2, tail_e):
    flops = (2 * BATCH * OUT_CH * KH * KW * HO * WO          # conv
             + 2 * BATCH * FC_IN * EMBED_DIM)                # fc
    bytes_accessed = 4 * (x_flat.size + fc_wr.size + fc_b2.size
                          + tail_e.size + conv_w_s.size + conv_b_s.size + BATCH)
    return pl.pallas_call(
        conve_fused_kernel,
        out_shape=jax.ShapeDtypeStruct((BATCH, 1), jnp.float32),
        in_specs=[
            pl.BlockSpec(memory_space=pltpu.MemorySpace.VMEM),   # x_flat
            pl.BlockSpec(memory_space=pltpu.MemorySpace.SMEM),   # conv taps
            pl.BlockSpec(memory_space=pltpu.MemorySpace.SMEM),   # conv bias
            pl.BlockSpec(memory_space=pltpu.MemorySpace.VMEM),   # fc weight
            pl.BlockSpec(memory_space=pltpu.MemorySpace.VMEM),   # fc bias
            pl.BlockSpec(memory_space=pltpu.MemorySpace.VMEM),   # tail emb
        ],
        out_specs=pl.BlockSpec(memory_space=pltpu.MemorySpace.VMEM),
        compiler_params=pltpu.CompilerParams(vmem_limit_bytes=32 * 1024 * 1024),
        cost_estimate=pl.CostEstimate(flops=flops, transcendentals=0,
                                      bytes_accessed=bytes_accessed),
    )(x_flat, conv_w_s, conv_b_s, fc_wr, fc_b2, tail_e)


# --------------------------- forward wrapper ----------------------------------

@jax.jit
def conve_forward(params, head, relation, tail):
    # Embedding lookups + image assembly are tiny XLA glue.
    head_e = jnp.take(params["entity_emb"], head, axis=0)        # (B, D)
    rel_e = jnp.take(params["relation_emb"], relation, axis=0)   # (B, D)
    tail_e = jnp.take(params["entity_emb"], tail, axis=0)        # (B, D)
    h_img = jnp.broadcast_to(head_e[:, None, :], (BATCH, H // 2, W))
    r_img = jnp.broadcast_to(rel_e[:, None, :], (BATCH, H // 2, W))
    x_img = jnp.concatenate([h_img, r_img], axis=1)              # (B, H, W)
    x_flat = x_img.reshape(BATCH, H * W)
    x_flat = jnp.pad(x_flat, ((0, 0), (0, X_COLS - H * W)))      # (B, 384)
    score = conve_pallas(x_flat, params["conv_w_s"], params["conv_b_s"],
                         params["fc_wr"], params["fc_b2"], tail_e)
    return score[:, 0]                                           # (B,)


# --------------------------- plain-JAX reference ------------------------------

def conve_reference(params, head, relation, tail):
    head_e = params["entity_emb"][head]
    rel_e = params["relation_emb"][relation]
    tail_e = params["entity_emb"][tail]
    h_img = jnp.broadcast_to(head_e[:, None, :], (BATCH, H // 2, W))
    r_img = jnp.broadcast_to(rel_e[:, None, :], (BATCH, H // 2, W))
    x = jnp.concatenate([h_img, r_img], axis=1)[:, None, :, :]   # NCHW
    y = lax.conv_general_dilated(x, params["conv_w"], (1, 1), "VALID",
                                 dimension_numbers=("NCHW", "OIHW", "NCHW"),
                                 precision=lax.Precision.HIGHEST)
    y = y + params["conv_b"][None, :, None, None]
    y = jnp.maximum(y, 0.0).reshape(BATCH, -1)                   # NCHW flatten
    z = jnp.matmul(y, params["fc_w"].T,
                   precision=lax.Precision.HIGHEST) + params["fc_b"]
    return jnp.sqrt(jnp.sum((z - tail_e) ** 2, axis=1))


# --------------------------- main ---------------------------------------------

if __name__ == "__main__":
    key = jax.random.PRNGKey(0)
    ks = jax.random.split(key, 6)

    def xavier(k, shape):
        fan_out, fan_in = shape
        bound = (6.0 / (fan_in + fan_out)) ** 0.5
        return jax.random.uniform(k, shape, jnp.float32, -bound, bound)

    entity_emb = xavier(ks[0], (NUM_ENTITIES, EMBED_DIM))
    relation_emb = xavier(ks[1], (NUM_RELATIONS, EMBED_DIM))
    cw_bound = 1.0 / (KH * KW) ** 0.5
    conv_w = jax.random.uniform(ks[2], (OUT_CH, 1, KH, KW), jnp.float32,
                                -cw_bound, cw_bound)
    conv_b = jax.random.uniform(ks[3], (OUT_CH,), jnp.float32,
                                -cw_bound, cw_bound)
    fc_w = xavier(ks[4], (EMBED_DIM, FC_IN))
    fb_bound = 1.0 / FC_IN ** 0.5
    fc_b = jax.random.uniform(ks[5], (EMBED_DIM,), jnp.float32,
                              -fb_bound, fb_bound)

    # Kernel-friendly repacks (host-side, one-time, same values).
    # FC weight: (D, C*HO*WO) -> (C, H, W, D) with the spatial window padded to
    # (H, W) = (16, 16); padded (junk) positions get exactly-zero rows so the
    # kernel's lane-dense conv layout contributes nothing spurious.
    fc_w4 = fc_w.reshape(EMBED_DIM, OUT_CH, HO, WO)
    fc_w4 = jnp.pad(fc_w4, ((0, 0), (0, 0), (0, H - HO), (0, W - WO)))
    fc_wr = jnp.transpose(fc_w4, (1, 2, 3, 0)).reshape(FC_IN_PAD, EMBED_DIM)

    params = {
        "entity_emb": entity_emb,
        "relation_emb": relation_emb,
        "conv_w": conv_w,
        "conv_b": conv_b,
        "fc_w": fc_w,
        "fc_b": fc_b,
        # kernel repacks
        "conv_w_s": conv_w.reshape(OUT_CH, KH * KW),     # (32, 9) SMEM taps
        "conv_b_s": conv_b,                              # (32,)   SMEM bias
        "fc_wr": fc_wr,                                  # (8192, 16)
        "fc_b2": fc_b.reshape(1, EMBED_DIM),             # (1, 16)
    }

    head = jnp.array([0, 1], dtype=jnp.int32)
    relation = jnp.array([0, 1], dtype=jnp.int32)
    tail = jnp.array([2, 0], dtype=jnp.int32)

    score = jax.block_until_ready(conve_forward(params, head, relation, tail))
    ref = jax.block_until_ready(conve_reference(params, head, relation, tail))

    assert score.shape == (BATCH,)
    assert bool(jnp.all(jnp.isfinite(score)))
    assert bool(jnp.allclose(score, ref, atol=1e-3, rtol=1e-3)), (score, ref)
    print("KERNEL_OK")
</pallas_src>

<mosaic_0001>
module attributes {stable_mosaic.version = 11 : i64} {
  func.func @conve_fused_kernel(%arg0: memref<2x384xf32, #tpu.memory_space<vmem>>, %arg1: memref<32x9xf32, #tpu.memory_space<smem>>, %arg2: memref<32xf32, #tpu.memory_space<smem>>, %arg3: memref<8192x16xf32, #tpu.memory_space<vmem>>, %arg4: memref<1x16xf32, #tpu.memory_space<vmem>>, %arg5: memref<2x16xf32, #tpu.memory_space<vmem>>, %arg6: memref<2x1xf32, #tpu.memory_space<vmem>>) attributes {dimension_semantics = [], scalar_prefetch = 0 : i64, scratch_operands = 0 : i64, tpu.core_type = #tpu.core_type<tc>} {
    %c0 = arith.constant 0 : index
    %c0_0 = arith.constant 0 : index
    %0 = vector.load %arg0[%c0, %c0_0] : memref<2x384xf32, #tpu.memory_space<vmem>>, vector<2x256xf32>
    %c0_1 = arith.constant 0 : index
    %c1 = arith.constant 1 : index
    %1 = vector.load %arg0[%c0_1, %c1] : memref<2x384xf32, #tpu.memory_space<vmem>>, vector<2x256xf32>
    %c0_2 = arith.constant 0 : index
    %c2 = arith.constant 2 : index
    %2 = vector.load %arg0[%c0_2, %c2] : memref<2x384xf32, #tpu.memory_space<vmem>>, vector<2x256xf32>
    %c0_3 = arith.constant 0 : index
    %c16 = arith.constant 16 : index
    %3 = vector.load %arg0[%c0_3, %c16] : memref<2x384xf32, #tpu.memory_space<vmem>>, vector<2x256xf32>
    %c0_4 = arith.constant 0 : index
    %c17 = arith.constant 17 : index
    %4 = vector.load %arg0[%c0_4, %c17] : memref<2x384xf32, #tpu.memory_space<vmem>>, vector<2x256xf32>
    %c0_5 = arith.constant 0 : index
    %c18 = arith.constant 18 : index
    %5 = vector.load %arg0[%c0_5, %c18] : memref<2x384xf32, #tpu.memory_space<vmem>>, vector<2x256xf32>
    %c0_6 = arith.constant 0 : index
    %c32 = arith.constant 32 : index
    %6 = vector.load %arg0[%c0_6, %c32] : memref<2x384xf32, #tpu.memory_space<vmem>>, vector<2x256xf32>
    %c0_7 = arith.constant 0 : index
    %c33 = arith.constant 33 : index
    %7 = vector.load %arg0[%c0_7, %c33] : memref<2x384xf32, #tpu.memory_space<vmem>>, vector<2x256xf32>
    %c0_8 = arith.constant 0 : index
    %c34 = arith.constant 34 : index
    %8 = vector.load %arg0[%c0_8, %c34] : memref<2x384xf32, #tpu.memory_space<vmem>>, vector<2x256xf32>
    %cst = arith.constant 0.000000e+00 : f32
    %9 = vector.broadcast %cst : f32 to vector<2x16xf32>
    %c0_9 = arith.constant 0 : index
    %c0_10 = arith.constant 0 : index
    %10 = memref.load %arg1[%c0_9, %c0_10] : memref<32x9xf32, #tpu.memory_space<smem>>
    %11 = vector.broadcast %10 : f32 to vector<2x256xf32>
    %12 = arith.mulf %0, %11 : vector<2x256xf32>
    %c0_11 = arith.constant 0 : index
    %c1_12 = arith.constant 1 : index
    %13 = memref.load %arg1[%c0_11, %c1_12] : memref<32x9xf32, #tpu.memory_space<smem>>
    %14 = vector.broadcast %13 : f32 to vector<2x256xf32>
    %15 = arith.mulf %1, %14 : vector<2x256xf32>
    %16 = arith.addf %12, %15 : vector<2x256xf32>
    %c0_13 = arith.constant 0 : index
    %c2_14 = arith.constant 2 : index
    %17 = memref.load %arg1[%c0_13, %c2_14] : memref<32x9xf32, #tpu.memory_space<smem>>
    %18 = vector.broadcast %17 : f32 to vector<2x256xf32>
    %19 = arith.mulf %2, %18 : vector<2x256xf32>
    %20 = arith.addf %16, %19 : vector<2x256xf32>
    %c0_15 = arith.constant 0 : index
    %c3 = arith.constant 3 : index
    %21 = memref.load %arg1[%c0_15, %c3] : memref<32x9xf32, #tpu.memory_space<smem>>
    %22 = vector.broadcast %21 : f32 to vector<2x256xf32>
    %23 = arith.mulf %3, %22 : vector<2x256xf32>
    %24 = arith.addf %20, %23 : vector<2x256xf32>
    %c0_16 = arith.constant 0 : index
    %c4 = arith.constant 4 : index
    %25 = memref.load %arg1[%c0_16, %c4] : memref<32x9xf32, #tpu.memory_space<smem>>
    %26 = vector.broadcast %25 : f32 to vector<2x256xf32>
    %27 = arith.mulf %4, %26 : vector<2x256xf32>
    %28 = arith.addf %24, %27 : vector<2x256xf32>
    %c0_17 = arith.constant 0 : index
    %c5 = arith.constant 5 : index
    %29 = memref.load %arg1[%c0_17, %c5] : memref<32x9xf32, #tpu.memory_space<smem>>
    %30 = vector.broadcast %29 : f32 to vector<2x256xf32>
    %31 = arith.mulf %5, %30 : vector<2x256xf32>
    %32 = arith.addf %28, %31 : vector<2x256xf32>
    %c0_18 = arith.constant 0 : index
    %c6 = arith.constant 6 : index
    %33 = memref.load %arg1[%c0_18, %c6] : memref<32x9xf32, #tpu.memory_space<smem>>
    %34 = vector.broadcast %33 : f32 to vector<2x256xf32>
    %35 = arith.mulf %6, %34 : vector<2x256xf32>
    %36 = arith.addf %32, %35 : vector<2x256xf32>
    %c0_19 = arith.constant 0 : index
    %c7 = arith.constant 7 : index
    %37 = memref.load %arg1[%c0_19, %c7] : memref<32x9xf32, #tpu.memory_space<smem>>
    %38 = vector.broadcast %37 : f32 to vector<2x256xf32>
    %39 = arith.mulf %7, %38 : vector<2x256xf32>
    %40 = arith.addf %36, %39 : vector<2x256xf32>
    %c0_20 = arith.constant 0 : index
    %c8 = arith.constant 8 : index
    %41 = memref.load %arg1[%c0_20, %c8] : memref<32x9xf32, #tpu.memory_space<smem>>
    %42 = vector.broadcast %41 : f32 to vector<2x256xf32>
    %43 = arith.mulf %8, %42 : vector<2x256xf32>
    %44 = arith.addf %40, %43 : vector<2x256xf32>
    %c0_21 = arith.constant 0 : index
    %45 = memref.load %arg2[%c0_21] : memref<32xf32, #tpu.memory_space<smem>>
    %46 = vector.broadcast %45 : f32 to vector<2x256xf32>
    %47 = arith.addf %44, %46 : vector<2x256xf32>
    %cst_22 = arith.constant 0.000000e+00 : f32
    %48 = vector.broadcast %cst_22 : f32 to vector<2x256xf32>
    %49 = arith.maximumf %47, %48 : vector<2x256xf32>
    %c0_23 = arith.constant 0 : index
    %c0_24 = arith.constant 0 : index
    %50 = vector.load %arg3[%c0_23, %c0_24] : memref<8192x16xf32, #tpu.memory_space<vmem>>, vector<256x16xf32>
    %cst_25 = arith.constant dense<0.000000e+00> : vector<2x16xf32>
    %51 = tpu.matmul %49, %50, %cst_25 {dimension_numbers = #tpu.dot_dimension_numbers<[1], [0], [0], [1], [0, 0, 1, 1], [], []>} : vector<2x256xf32>, vector<256x16xf32>, vector<2x16xf32> -> vector<2x16xf32>
    %52 = arith.addf %9, %51 : vector<2x16xf32>
    %c1_26 = arith.constant 1 : index
    %c0_27 = arith.constant 0 : index
    %53 = memref.load %arg1[%c1_26, %c0_27] : memref<32x9xf32, #tpu.memory_space<smem>>
    %54 = vector.broadcast %53 : f32 to vector<2x256xf32>
    %55 = arith.mulf %0, %54 : vector<2x256xf32>
    %c1_28 = arith.constant 1 : index
    %c1_29 = arith.constant 1 : index
    %56 = memref.load %arg1[%c1_28, %c1_29] : memref<32x9xf32, #tpu.memory_space<smem>>
    %57 = vector.broadcast %56 : f32 to vector<2x256xf32>
    %58 = arith.mulf %1, %57 : vector<2x256xf32>
    %59 = arith.addf %55, %58 : vector<2x256xf32>
    %c1_30 = arith.constant 1 : index
    %c2_31 = arith.constant 2 : index
    %60 = memref.load %arg1[%c1_30, %c2_31] : memref<32x9xf32, #tpu.memory_space<smem>>
    %61 = vector.broadcast %60 : f32 to vector<2x256xf32>
    %62 = arith.mulf %2, %61 : vector<2x256xf32>
    %63 = arith.addf %59, %62 : vector<2x256xf32>
    %c1_32 = arith.constant 1 : index
    %c3_33 = arith.constant 3 : index
    %64 = memref.load %arg1[%c1_32, %c3_33] : memref<32x9xf32, #tpu.memory_space<smem>>
    %65 = vector.broadcast %64 : f32 to vector<2x256xf32>
    %66 = arith.mulf %3, %65 : vector<2x256xf32>
    %67 = arith.addf %63, %66 : vector<2x256xf32>
    %c1_34 = arith.constant 1 : index
    %c4_35 = arith.constant 4 : index
    %68 = memref.load %arg1[%c1_34, %c4_35] : memref<32x9xf32, #tpu.memory_space<smem>>
    %69 = vector.broadcast %68 : f32 to vector<2x256xf32>
    %70 = arith.mulf %4, %69 : vector<2x256xf32>
    %71 = arith.addf %67, %70 : vector<2x256xf32>
    %c1_36 = arith.constant 1 : index
    %c5_37 = arith.constant 5 : index
    %72 = memref.load %arg1[%c1_36, %c5_37] : memref<32x9xf32, #tpu.memory_space<smem>>
    %73 = vector.broadcast %72 : f32 to vector<2x256xf32>
    %74 = arith.mulf %5, %73 : vector<2x256xf32>
    %75 = arith.addf %71, %74 : vector<2x256xf32>
    %c1_38 = arith.constant 1 : index
    %c6_39 = arith.constant 6 : index
    %76 = memref.load %arg1[%c1_38, %c6_39] : memref<32x9xf32, #tpu.memory_space<smem>>
    %77 = vector.broadcast %76 : f32 to vector<2x256xf32>
    %78 = arith.mulf %6, %77 : vector<2x256xf32>
    %79 = arith.addf %75, %78 : vector<2x256xf32>
    %c1_40 = arith.constant 1 : index
    %c7_41 = arith.constant 7 : index
    %80 = memref.load %arg1[%c1_40, %c7_41] : memref<32x9xf32, #tpu.memory_space<smem>>
    %81 = vector.broadcast %80 : f32 to vector<2x256xf32>
    %82 = arith.mulf %7, %81 : vector<2x256xf32>
    %83 = arith.addf %79, %82 : vector<2x256xf32>
    %c1_42 = arith.constant 1 : index
    %c8_43 = arith.constant 8 : index
    %84 = memref.load %arg1[%c1_42, %c8_43] : memref<32x9xf32, #tpu.memory_space<smem>>
    %85 = vector.broadcast %84 : f32 to vector<2x256xf32>
    %86 = arith.mulf %8, %85 : vector<2x256xf32>
    %87 = arith.addf %83, %86 : vector<2x256xf32>
    %c1_44 = arith.constant 1 : index
    %88 = memref.load %arg2[%c1_44] : memref<32xf32, #tpu.memory_space<smem>>
    %89 = vector.broadcast %88 : f32 to vector<2x256xf32>
    %90 = arith.addf %87, %89 : vector<2x256xf32>
    %cst_45 = arith.constant 0.000000e+00 : f32
    %91 = vector.broadcast %cst_45 : f32 to vector<2x256xf32>
    %92 = arith.maximumf %90, %91 : vector<2x256xf32>
    %c256 = arith.constant 256 : index
    %c0_46 = arith.constant 0 : index
    %93 = vector.load %arg3[%c256, %c0_46] : memref<8192x16xf32, #tpu.memory_space<vmem>>, vector<256x16xf32>
    %cst_47 = arith.constant dense<0.000000e+00> : vector<2x16xf32>
    %94 = tpu.matmul %92, %93, %cst_47 {dimension_numbers = #tpu.dot_dimension_numbers<[1], [0], [0], [1], [0, 0, 1, 1], [], []>} : vector<2x256xf32>, vector<256x16xf32>, vector<2x16xf32> -> vector<2x16xf32>
    %95 = arith.addf %52, %94 : vector<2x16xf32>
    %c2_48 = arith.constant 2 : index
    %c0_49 = arith.constant 0 : index
    %96 = memref.load %arg1[%c2_48, %c0_49] : memref<32x9xf32, #tpu.memory_space<smem>>
    %97 = vector.broadcast %96 : f32 to vector<2x256xf32>
    %98 = arith.mulf %0, %97 : vector<2x256xf32>
    %c2_50 = arith.constant 2 : index
    %c1_51 = arith.constant 1 : index
    %99 = memref.load %arg1[%c2_50, %c1_51] : memref<32x9xf32, #tpu.memory_space<smem>>
    %100 = vector.broadcast %99 : f32 to vector<2x256xf32>
    %101 = arith.mulf %1, %100 : vector<2x256xf32>
    %102 = arith.addf %98, %101 : vector<2x256xf32>
    %c2_52 = arith.constant 2 : index
    %c2_53 = arith.constant 2 : index
    %103 = memref.load %arg1[%c2_52, %c2_53] : memref<32x9xf32, #tpu.memory_space<smem>>
    %104 = vector.broadcast %103 : f32 to vector<2x256xf32>
    %105 = arith.mulf %2, %104 : vector<2x256xf32>
    %106 = arith.addf %102, %105 : vector<2x256xf32>
    %c2_54 = arith.constant 2 : index
    %c3_55 = arith.constant 3 : index
    %107 = memref.load %arg1[%c2_54, %c3_55] : memref<32x9xf32, #tpu.memory_space<smem>>
    %108 = vector.broadcast %107 : f32 to vector<2x256xf32>
    %109 = arith.mulf %3, %108 : vector<2x256xf32>
    %110 = arith.addf %106, %109 : vector<2x256xf32>
    %c2_56 = arith.constant 2 : index
    %c4_57 = arith.constant 4 : index
    %111 = memref.load %arg1[%c2_56, %c4_57] : memref<32x9xf32, #tpu.memory_space<smem>>
    %112 = vector.broadcast %111 : f32 to vector<2x256xf32>
    %113 = arith.mulf %4, %112 : vector<2x256xf32>
    %114 = arith.addf %110, %113 : vector<2x256xf32>
    %c2_58 = arith.constant 2 : index
    %c5_59 = arith.constant 5 : index
    %115 = memref.load %arg1[%c2_58, %c5_59] : memref<32x9xf32, #tpu.memory_space<smem>>
    %116 = vector.broadcast %115 : f32 to vector<2x256xf32>
    %117 = arith.mulf %5, %116 : vector<2x256xf32>
    %118 = arith.addf %114, %117 : vector<2x256xf32>
    %c2_60 = arith.constant 2 : index
    %c6_61 = arith.constant 6 : index
    %119 = memref.load %arg1[%c2_60, %c6_61] : memref<32x9xf32, #tpu.memory_space<smem>>
    %120 = vector.broadcast %119 : f32 to vector<2x256xf32>
    %121 = arith.mulf %6, %120 : vector<2x256xf32>
    %122 = arith.addf %118, %121 : vector<2x256xf32>
    %c2_62 = arith.constant 2 : index
    %c7_63 = arith.constant 7 : index
    %123 = memref.load %arg1[%c2_62, %c7_63] : memref<32x9xf32, #tpu.memory_space<smem>>
    %124 = vector.broadcast %123 : f32 to vector<2x256xf32>
    %125 = arith.mulf %7, %124 : vector<2x256xf32>
    %126 = arith.addf %122, %125 : vector<2x256xf32>
    %c2_64 = arith.constant 2 : index
    %c8_65 = arith.constant 8 : index
    %127 = memref.load %arg1[%c2_64, %c8_65] : memref<32x9xf32, #tpu.memory_space<smem>>
    %128 = vector.broadcast %127 : f32 to vector<2x256xf32>
    %129 = arith.mulf %8, %128 : vector<2x256xf32>
    %130 = arith.addf %126, %129 : vector<2x256xf32>
    %c2_66 = arith.constant 2 : index
    %131 = memref.load %arg2[%c2_66] : memref<32xf32, #tpu.memory_space<smem>>
    %132 = vector.broadcast %131 : f32 to vector<2x256xf32>
    %133 = arith.addf %130, %132 : vector<2x256xf32>
    %cst_67 = arith.constant 0.000000e+00 : f32
    %134 = vector.broadcast %cst_67 : f32 to vector<2x256xf32>
    %135 = arith.maximumf %133, %134 : vector<2x256xf32>
    %c512 = arith.constant 512 : index
    %c0_68 = arith.constant 0 : index
    %136 = vector.load %arg3[%c512, %c0_68] : memref<8192x16xf32, #tpu.memory_space<vmem>>, vector<256x16xf32>
    %cst_69 = arith.constant dense<0.000000e+00> : vector<2x16xf32>
    %137 = tpu.matmul %135, %136, %cst_69 {dimension_numbers = #tpu.dot_dimension_numbers<[1], [0], [0], [1], [0, 0, 1, 1], [], []>} : vector<2x256xf32>, vector<256x16xf32>, vector<2x16xf32> -> vector<2x16xf32>
    %138 = arith.addf %95, %137 : vector<2x16xf32>
    %c3_70 = arith.constant 3 : index
    %c0_71 = arith.constant 0 : index
    %139 = memref.load %arg1[%c3_70, %c0_71] : memref<32x9xf32, #tpu.memory_space<smem>>
    %140 = vector.broadcast %139 : f32 to vector<2x256xf32>
    %141 = arith.mulf %0, %140 : vector<2x256xf32>
    %c3_72 = arith.constant 3 : index
    %c1_73 = arith.constant 1 : index
    %142 = memref.load %arg1[%c3_72, %c1_73] : memref<32x9xf32, #tpu.memory_space<smem>>
    %143 = vector.broadcast %142 : f32 to vector<2x256xf32>
    %144 = arith.mulf %1, %143 : vector<2x256xf32>
    %145 = arith.addf %141, %144 : vector<2x256xf32>
    %c3_74 = arith.constant 3 : index
    %c2_75 = arith.constant 2 : index
    %146 = memref.load %arg1[%c3_74, %c2_75] : memref<32x9xf32, #tpu.memory_space<smem>>
    %147 = vector.broadcast %146 : f32 to vector<2x256xf32>
    %148 = arith.mulf %2, %147 : vector<2x256xf32>
    %149 = arith.addf %145, %148 : vector<2x256xf32>
    %c3_76 = arith.constant 3 : index
    %c3_77 = arith.constant 3 : index
    %150 = memref.load %arg1[%c3_76, %c3_77] : memref<32x9xf32, #tpu.memory_space<smem>>
    %151 = vector.broadcast %150 : f32 to vector<2x256xf32>
    %152 = arith.mulf %3, %151 : vector<2x256xf32>
    %153 = arith.addf %149, %152 : vector<2x256xf32>
    %c3_78 = arith.constant 3 : index
    %c4_79 = arith.constant 4 : index
    %154 = memref.load %arg1[%c3_78, %c4_79] : memref<32x9xf32, #tpu.memory_space<smem>>
    %155 = vector.broadcast %154 : f32 to vector<2x256xf32>
    %156 = arith.mulf %4, %155 : vector<2x256xf32>
    %157 = arith.addf %153, %156 : vector<2x256xf32>
    %c3_80 = arith.constant 3 : index
    %c5_81 = arith.constant 5 : index
    %158 = memref.load %arg1[%c3_80, %c5_81] : memref<32x9xf32, #tpu.memory_space<smem>>
    %159 = vector.broadcast %158 : f32 to vector<2x256xf32>
    %160 = arith.mulf %5, %159 : vector<2x256xf32>
    %161 = arith.addf %157, %160 : vector<2x256xf32>
    %c3_82 = arith.constant 3 : index
    %c6_83 = arith.constant 6 : index
    %162 = memref.load %arg1[%c3_82, %c6_83] : memref<32x9xf32, #tpu.memory_space<smem>>
    %163 = vector.broadcast %162 : f32 to vector<2x256xf32>
    %164 = arith.mulf %6, %163 : vector<2x256xf32>
    %165 = arith.addf %161, %164 : vector<2x256xf32>
    %c3_84 = arith.constant 3 : index
    %c7_85 = arith.constant 7 : index
    %166 = memref.load %arg1[%c3_84, %c7_85] : memref<32x9xf32, #tpu.memory_space<smem>>
    %167 = vector.broadcast %166 : f32 to vector<2x256xf32>
    %168 = arith.mulf %7, %167 : vector<2x256xf32>
    %169 = arith.addf %165, %168 : vector<2x256xf32>
    %c3_86 = arith.constant 3 : index
    %c8_87 = arith.constant 8 : index
    %170 = memref.load %arg1[%c3_86, %c8_87] : memref<32x9xf32, #tpu.memory_space<smem>>
    %171 = vector.broadcast %170 : f32 to vector<2x256xf32>
    %172 = arith.mulf %8, %171 : vector<2x256xf32>
    %173 = arith.addf %169, %172 : vector<2x256xf32>
    %c3_88 = arith.constant 3 : index
    %174 = memref.load %arg2[%c3_88] : memref<32xf32, #tpu.memory_space<smem>>
    %175 = vector.broadcast %174 : f32 to vector<2x256xf32>
    %176 = arith.addf %173, %175 : vector<2x256xf32>
    %cst_89 = arith.constant 0.000000e+00 : f32
    %177 = vector.broadcast %cst_89 : f32 to vector<2x256xf32>
    %178 = arith.maximumf %176, %177 : vector<2x256xf32>
    %c768 = arith.constant 768 : index
    %c0_90 = arith.constant 0 : index
    %179 = vector.load %arg3[%c768, %c0_90] : memref<8192x16xf32, #tpu.memory_space<vmem>>, vector<256x16xf32>
    %cst_91 = arith.constant dense<0.000000e+00> : vector<2x16xf32>
    %180 = tpu.matmul %178, %179, %cst_91 {dimension_numbers = #tpu.dot_dimension_numbers<[1], [0], [0], [1], [0, 0, 1, 1], [], []>} : vector<2x256xf32>, vector<256x16xf32>, vector<2x16xf32> -> vector<2x16xf32>
    %181 = arith.addf %138, %180 : vector<2x16xf32>
    %c4_92 = arith.constant 4 : index
    %c0_93 = arith.constant 0 : index
    %182 = memref.load %arg1[%c4_92, %c0_93] : memref<32x9xf32, #tpu.memory_space<smem>>
    %183 = vector.broadcast %182 : f32 to vector<2x256xf32>
    %184 = arith.mulf %0, %183 : vector<2x256xf32>
    %c4_94 = arith.constant 4 : index
    %c1_95 = arith.constant 1 : index
    %185 = memref.load %arg1[%c4_94, %c1_95] : memref<32x9xf32, #tpu.memory_space<smem>>
    %186 = vector.broadcast %185 : f32 to vector<2x256xf32>
    %187 = arith.mulf %1, %186 : vector<2x256xf32>
    %188 = arith.addf %184, %187 : vector<2x256xf32>
    %c4_96 = arith.constant 4 : index
    %c2_97 = arith.constant 2 : index
    %189 = memref.load %arg1[%c4_96, %c2_97] : memref<32x9xf32, #tpu.memory_space<smem>>
    %190 = vector.broadcast %189 : f32 to vector<2x256xf32>
    %191 = arith.mulf %2, %190 : vector<2x256xf32>
    %192 = arith.addf %188, %191 : vector<2x256xf32>
    %c4_98 = arith.constant 4 : index
    %c3_99 = arith.constant 3 : index
    %193 = memref.load %arg1[%c4_98, %c3_99] : memref<32x9xf32, #tpu.memory_space<smem>>
    %194 = vector.broadcast %193 : f32 to vector<2x256xf32>
    %195 = arith.mulf %3, %194 : vector<2x256xf32>
    %196 = arith.addf %192, %195 : vector<2x256xf32>
    %c4_100 = arith.constant 4 : index
    %c4_101 = arith.constant 4 : index
    %197 = memref.load %arg1[%c4_100, %c4_101] : memref<32x9xf32, #tpu.memory_space<smem>>
    %198 = vector.broadcast %197 : f32 to vector<2x256xf32>
    %199 = arith.mulf %4, %198 : vector<2x256xf32>
    %200 = arith.addf %196, %199 : vector<2x256xf32>
    %c4_102 = arith.constant 4 : index
    %c5_103 = arith.constant 5 : index
    %201 = memref.load %arg1[%c4_102, %c5_103] : memref<32x9xf32, #tpu.memory_space<smem>>
    %202 = vector.broadcast %201 : f32 to vector<2x256xf32>
    %203 = arith.mulf %5, %202 : vector<2x256xf32>
    %204 = arith.addf %200, %203 : vector<2x256xf32>
    %c4_104 = arith.constant 4 : index
    %c6_105 = arith.constant 6 : index
    %205 = memref.load %arg1[%c4_104, %c6_105] : memref<32x9xf32, #tpu.memory_space<smem>>
    %206 = vector.broadcast %205 : f32 to vector<2x256xf32>
    %207 = arith.mulf %6, %206 : vector<2x256xf32>
    %208 = arith.addf %204, %207 : vector<2x256xf32>
    %c4_106 = arith.constant 4 : index
    %c7_107 = arith.constant 7 : index
    %209 = memref.load %arg1[%c4_106, %c7_107] : memref<32x9xf32, #tpu.memory_space<smem>>
    %210 = vector.broadcast %209 : f32 to vector<2x256xf32>
    %211 = arith.mulf %7, %210 : vector<2x256xf32>
    %212 = arith.addf %208, %211 : vector<2x256xf32>
    %c4_108 = arith.constant 4 : index
    %c8_109 = arith.constant 8 : index
    %213 = memref.load %arg1[%c4_108, %c8_109] : memref<32x9xf32, #tpu.memory_space<smem>>
    %214 = vector.broadcast %213 : f32 to vector<2x256xf32>
    %215 = arith.mulf %8, %214 : vector<2x256xf32>
    %216 = arith.addf %212, %215 : vector<2x256xf32>
    %c4_110 = arith.constant 4 : index
    %217 = memref.load %arg2[%c4_110] : memref<32xf32, #tpu.memory_space<smem>>
    %218 = vector.broadcast %217 : f32 to vector<2x256xf32>
    %219 = arith.addf %216, %218 : vector<2x256xf32>
    %cst_111 = arith.constant 0.000000e+00 : f32
    %220 = vector.broadcast %cst_111 : f32 to vector<2x256xf32>
    %221 = arith.maximumf %219, %220 : vector<2x256xf32>
    %c1024 = arith.constant 1024 : index
    %c0_112 = arith.constant 0 : index
    %222 = vector.load %arg3[%c1024, %c0_112] : memref<8192x16xf32, #tpu.memory_space<vmem>>, vector<256x16xf32>
    %cst_113 = arith.constant dense<0.000000e+00> : vector<2x16xf32>
    %223 = tpu.matmul %221, %222, %cst_113 {dimension_numbers = #tpu.dot_dimension_numbers<[1], [0], [0], [1], [0, 0, 1, 1], [], []>} : vector<2x256xf32>, vector<256x16xf32>, vector<2x16xf32> -> vector<2x16xf32>
    %224 = arith.addf %181, %223 : vector<2x16xf32>
    %c5_114 = arith.constant 5 : index
    %c0_115 = arith.constant 0 : index
    %225 = memref.load %arg1[%c5_114, %c0_115] : memref<32x9xf32, #tpu.memory_space<smem>>
    %226 = vector.broadcast %225 : f32 to vector<2x256xf32>
    %227 = arith.mulf %0, %226 : vector<2x256xf32>
    %c5_116 = arith.constant 5 : index
    %c1_117 = arith.constant 1 : index
    %228 = memref.load %arg1[%c5_116, %c1_117] : memref<32x9xf32, #tpu.memory_space<smem>>
    %229 = vector.broadcast %228 : f32 to vector<2x256xf32>
    %230 = arith.mulf %1, %229 : vector<2x256xf32>
    %231 = arith.addf %227, %230 : vector<2x256xf32>
    %c5_118 = arith.constant 5 : index
    %c2_119 = arith.constant 2 : index
    %232 = memref.load %arg1[%c5_118, %c2_119] : memref<32x9xf32, #tpu.memory_space<smem>>
    %233 = vector.broadcast %232 : f32 to vector<2x256xf32>
    %234 = arith.mulf %2, %233 : vector<2x256xf32>
    %235 = arith.addf %231, %234 : vector<2x256xf32>
    %c5_120 = arith.constant 5 : index
    %c3_121 = arith.constant 3 : index
    %236 = memref.load %arg1[%c5_120, %c3_121] : memref<32x9xf32, #tpu.memory_space<smem>>
    %237 = vector.broadcast %236 : f32 to vector<2x256xf32>
    %238 = arith.mulf %3, %237 : vector<2x256xf32>
    %239 = arith.addf %235, %238 : vector<2x256xf32>
    %c5_122 = arith.constant 5 : index
    %c4_123 = arith.constant 4 : index
    %240 = memref.load %arg1[%c5_122, %c4_123] : memref<32x9xf32, #tpu.memory_space<smem>>
    %241 = vector.broadcast %240 : f32 to vector<2x256xf32>
    %242 = arith.mulf %4, %241 : vector<2x256xf32>
    %243 = arith.addf %239, %242 : vector<2x256xf32>
    %c5_124 = arith.constant 5 : index
    %c5_125 = arith.constant 5 : index
    %244 = memref.load %arg1[%c5_124, %c5_125] : memref<32x9xf32, #tpu.memory_space<smem>>
    %245 = vector.broadcast %244 : f32 to vector<2x256xf32>
    %246 = arith.mulf %5, %245 : vector<2x256xf32>
    %247 = arith.addf %243, %246 : vector<2x256xf32>
    %c5_126 = arith.constant 5 : index
    %c6_127 = arith.constant 6 : index
    %248 = memref.load %arg1[%c5_126, %c6_127] : memref<32x9xf32, #tpu.memory_space<smem>>
    %249 = vector.broadcast %248 : f32 to vector<2x256xf32>
    %250 = arith.mulf %6, %249 : vector<2x256xf32>
    %251 = arith.addf %247, %250 : vector<2x256xf32>
    %c5_128 = arith.constant 5 : index
    %c7_129 = arith.constant 7 : index
    %252 = memref.load %arg1[%c5_128, %c7_129] : memref<32x9xf32, #tpu.memory_space<smem>>
    %253 = vector.broadcast %252 : f32 to vector<2x256xf32>
    %254 = arith.mulf %7, %253 : vector<2x256xf32>
    %255 = arith.addf %251, %254 : vector<2x256xf32>
    %c5_130 = arith.constant 5 : index
    %c8_131 = arith.constant 8 : index
    %256 = memref.load %arg1[%c5_130, %c8_131] : memref<32x9xf32, #tpu.memory_space<smem>>
    %257 = vector.broadcast %256 : f32 to vector<2x256xf32>
    %258 = arith.mulf %8, %257 : vector<2x256xf32>
    %259 = arith.addf %255, %258 : vector<2x256xf32>
    %c5_132 = arith.constant 5 : index
    %260 = memref.load %arg2[%c5_132] : memref<32xf32, #tpu.memory_space<smem>>
    %261 = vector.broadcast %260 : f32 to vector<2x256xf32>
    %262 = arith.addf %259, %261 : vector<2x256xf32>
    %cst_133 = arith.constant 0.000000e+00 : f32
    %263 = vector.broadcast %cst_133 : f32 to vector<2x256xf32>
    %264 = arith.maximumf %262, %263 : vector<2x256xf32>
    %c1280 = arith.constant 1280 : index
    %c0_134 = arith.constant 0 : index
    %265 = vector.load %arg3[%c1280, %c0_134] : memref<8192x16xf32, #tpu.memory_space<vmem>>, vector<256x16xf32>
    %cst_135 = arith.constant dense<0.000000e+00> : vector<2x16xf32>
    %266 = tpu.matmul %264, %265, %cst_135 {dimension_numbers = #tpu.dot_dimension_numbers<[1], [0], [0], [1], [0, 0, 1, 1], [], []>} : vector<2x256xf32>, vector<256x16xf32>, vector<2x16xf32> -> vector<2x16xf32>
    %267 = arith.addf %224, %266 : vector<2x16xf32>
    %c6_136 = arith.constant 6 : index
    %c0_137 = arith.constant 0 : index
    %268 = memref.load %arg1[%c6_136, %c0_137] : memref<32x9xf32, #tpu.memory_space<smem>>
    %269 = vector.broadcast %268 : f32 to vector<2x256xf32>
    %270 = arith.mulf %0, %269 : vector<2x256xf32>
    %c6_138 = arith.constant 6 : index
    %c1_139 = arith.constant 1 : index
    %271 = memref.load %arg1[%c6_138, %c1_139] : memref<32x9xf32, #tpu.memory_space<smem>>
    %272 = vector.broadcast %271 : f32 to vector<2x256xf32>
    %273 = arith.mulf %1, %272 : vector<2x256xf32>
    %274 = arith.addf %270, %273 : vector<2x256xf32>
    %c6_140 = arith.constant 6 : index
    %c2_141 = arith.constant 2 : index
    %275 = memref.load %arg1[%c6_140, %c2_141] : memref<32x9xf32, #tpu.memory_space<smem>>
    %276 = vector.broadcast %275 : f32 to vector<2x256xf32>
    %277 = arith.mulf %2, %276 : vector<2x256xf32>
    %278 = arith.addf %274, %277 : vector<2x256xf32>
    %c6_142 = arith.constant 6 : index
    %c3_143 = arith.constant 3 : index
    %279 = memref.load %arg1[%c6_142, %c3_143] : memref<32x9xf32, #tpu.memory_space<smem>>
    %280 = vector.broadcast %279 : f32 to vector<2x256xf32>
    %281 = arith.mulf %3, %280 : vector<2x256xf32>
    %282 = arith.addf %278, %281 : vector<2x256xf32>
    %c6_144 = arith.constant 6 : index
    %c4_145 = arith.constant 4 : index
    %283 = memref.load %arg1[%c6_144, %c4_145] : memref<32x9xf32, #tpu.memory_space<smem>>
    %284 = vector.broadcast %283 : f32 to vector<2x256xf32>
    %285 = arith.mulf %4, %284 : vector<2x256xf32>
    %286 = arith.addf %282, %285 : vector<2x256xf32>
    %c6_146 = arith.constant 6 : index
    %c5_147 = arith.constant 5 : index
    %287 = memref.load %arg1[%c6_146, %c5_147] : memref<32x9xf32, #tpu.memory_space<smem>>
    %288 = vector.broadcast %287 : f32 to vector<2x256xf32>
    %289 = arith.mulf %5, %288 : vector<2x256xf32>
    %290 = arith.addf %286, %289 : vector<2x256xf32>
    %c6_148 = arith.constant 6 : index
    %c6_149 = arith.constant 6 : index
    %291 = memref.load %arg1[%c6_148, %c6_149] : memref<32x9xf32, #tpu.memory_space<smem>>
    %292 = vector.broadcast %291 : f32 to vector<2x256xf32>
    %293 = arith.mulf %6, %292 : vector<2x256xf32>
    %294 = arith.addf %290, %293 : vector<2x256xf32>
    %c6_150 = arith.constant 6 : index
    %c7_151 = arith.constant 7 : index
    %295 = memref.load %arg1[%c6_150, %c7_151] : memref<32x9xf32, #tpu.memory_space<smem>>
    %296 = vector.broadcast %295 : f32 to vector<2x256xf32>
    %297 = arith.mulf %7, %296 : vector<2x256xf32>
    %298 = arith.addf %294, %297 : vector<2x256xf32>
    %c6_152 = arith.constant 6 : index
    %c8_153 = arith.constant 8 : index
    %299 = memref.load %arg1[%c6_152, %c8_153] : memref<32x9xf32, #tpu.memory_space<smem>>
    %300 = vector.broadcast %299 : f32 to vector<2x256xf32>
    %301 = arith.mulf %8, %300 : vector<2x256xf32>
    %302 = arith.addf %298, %301 : vector<2x256xf32>
    %c6_154 = arith.constant 6 : index
    %303 = memref.load %arg2[%c6_154] : memref<32xf32, #tpu.memory_space<smem>>
    %304 = vector.broadcast %303 : f32 to vector<2x256xf32>
    %305 = arith.addf %302, %304 : vector<2x256xf32>
    %cst_155 = arith.constant 0.000000e+00 : f32
    %306 = vector.broadcast %cst_155 : f32 to vector<2x256xf32>
    %307 = arith.maximumf %305, %306 : vector<2x256xf32>
    %c1536 = arith.constant 1536 : index
    %c0_156 = arith.constant 0 : index
    %308 = vector.load %arg3[%c1536, %c0_156] : memref<8192x16xf32, #tpu.memory_space<vmem>>, vector<256x16xf32>
    %cst_157 = arith.constant dense<0.000000e+00> : vector<2x16xf32>
    %309 = tpu.matmul %307, %308, %cst_157 {dimension_numbers = #tpu.dot_dimension_numbers<[1], [0], [0], [1], [0, 0, 1, 1], [], []>} : vector<2x256xf32>, vector<256x16xf32>, vector<2x16xf32> -> vector<2x16xf32>
    %310 = arith.addf %267, %309 : vector<2x16xf32>
    %c7_158 = arith.constant 7 : index
    %c0_159 = arith.constant 0 : index
    %311 = memref.load %arg1[%c7_158, %c0_159] : memref<32x9xf32, #tpu.memory_space<smem>>
    %312 = vector.broadcast %311 : f32 to vector<2x256xf32>
    %313 = arith.mulf %0, %312 : vector<2x256xf32>
    %c7_160 = arith.constant 7 : index
    %c1_161 = arith.constant 1 : index
    %314 = memref.load %arg1[%c7_160, %c1_161] : memref<32x9xf32, #tpu.memory_space<smem>>
    %315 = vector.broadcast %314 : f32 to vector<2x256xf32>
    %316 = arith.mulf %1, %315 : vector<2x256xf32>
    %317 = arith.addf %313, %316 : vector<2x256xf32>
    %c7_162 = arith.constant 7 : index
    %c2_163 = arith.constant 2 : index
    %318 = memref.load %arg1[%c7_162, %c2_163] : memref<32x9xf32, #tpu.memory_space<smem>>
    %319 = vector.broadcast %318 : f32 to vector<2x256xf32>
    %320 = arith.mulf %2, %319 : vector<2x256xf32>
    %321 = arith.addf %317, %320 : vector<2x256xf32>
    %c7_164 = arith.constant 7 : index
    %c3_165 = arith.constant 3 : index
    %322 = memref.load %arg1[%c7_164, %c3_165] : memref<32x9xf32, #tpu.memory_space<smem>>
    %323 = vector.broadcast %322 : f32 to vector<2x256xf32>
    %324 = arith.mulf %3, %323 : vector<2x256xf32>
    %325 = arith.addf %321, %324 : vector<2x256xf32>
    %c7_166 = arith.constant 7 : index
    %c4_167 = arith.constant 4 : index
    %326 = memref.load %arg1[%c7_166, %c4_167] : memref<32x9xf32, #tpu.memory_space<smem>>
    %327 = vector.broadcast %326 : f32 to vector<2x256xf32>
    %328 = arith.mulf %4, %327 : vector<2x256xf32>
    %329 = arith.addf %325, %328 : vector<2x256xf32>
    %c7_168 = arith.constant 7 : index
    %c5_169 = arith.constant 5 : index
    %330 = memref.load %arg1[%c7_168, %c5_169] : memref<32x9xf32, #tpu.memory_space<smem>>
    %331 = vector.broadcast %330 : f32 to vector<2x256xf32>
    %332 = arith.mulf %5, %331 : vector<2x256xf32>
    %333 = arith.addf %329, %332 : vector<2x256xf32>
    %c7_170 = arith.constant 7 : index
    %c6_171 = arith.constant 6 : index
    %334 = memref.load %arg1[%c7_170, %c6_171] : memref<32x9xf32, #tpu.memory_space<smem>>
    %335 = vector.broadcast %334 : f32 to vector<2x256xf32>
    %336 = arith.mulf %6, %335 : vector<2x256xf32>
    %337 = arith.addf %333, %336 : vector<2x256xf32>
    %c7_172 = arith.constant 7 : index
    %c7_173 = arith.constant 7 : index
    %338 = memref.load %arg1[%c7_172, %c7_173] : memref<32x9xf32, #tpu.memory_space<smem>>
    %339 = vector.broadcast %338 : f32 to vector<2x256xf32>
    %340 = arith.mulf %7, %339 : vector<2x256xf32>
    %341 = arith.addf %337, %340 : vector<2x256xf32>
    %c7_174 = arith.constant 7 : index
    %c8_175 = arith.constant 8 : index
    %342 = memref.load %arg1[%c7_174, %c8_175] : memref<32x9xf32, #tpu.memory_space<smem>>
    %343 = vector.broadcast %342 : f32 to vector<2x256xf32>
    %344 = arith.mulf %8, %343 : vector<2x256xf32>
    %345 = arith.addf %341, %344 : vector<2x256xf32>
    %c7_176 = arith.constant 7 : index
    %346 = memref.load %arg2[%c7_176] : memref<32xf32, #tpu.memory_space<smem>>
    %347 = vector.broadcast %346 : f32 to vector<2x256xf32>
    %348 = arith.addf %345, %347 : vector<2x256xf32>
    %cst_177 = arith.constant 0.000000e+00 : f32
    %349 = vector.broadcast %cst_177 : f32 to vector<2x256xf32>
    %350 = arith.maximumf %348, %349 : vector<2x256xf32>
    %c1792 = arith.constant 1792 : index
    %c0_178 = arith.constant 0 : index
    %351 = vector.load %arg3[%c1792, %c0_178] : memref<8192x16xf32, #tpu.memory_space<vmem>>, vector<256x16xf32>
    %cst_179 = arith.constant dense<0.000000e+00> : vector<2x16xf32>
    %352 = tpu.matmul %350, %351, %cst_179 {dimension_numbers = #tpu.dot_dimension_numbers<[1], [0], [0], [1], [0, 0, 1, 1], [], []>} : vector<2x256xf32>, vector<256x16xf32>, vector<2x16xf32> -> vector<2x16xf32>
    %353 = arith.addf %310, %352 : vector<2x16xf32>
    %c8_180 = arith.constant 8 : index
    %c0_181 = arith.constant 0 : index
    %354 = memref.load %arg1[%c8_180, %c0_181] : memref<32x9xf32, #tpu.memory_space<smem>>
    %355 = vector.broadcast %354 : f32 to vector<2x256xf32>
    %356 = arith.mulf %0, %355 : vector<2x256xf32>
    %c8_182 = arith.constant 8 : index
    %c1_183 = arith.constant 1 : index
    %357 = memref.load %arg1[%c8_182, %c1_183] : memref<32x9xf32, #tpu.memory_space<smem>>
    %358 = vector.broadcast %357 : f32 to vector<2x256xf32>
    %359 = arith.mulf %1, %358 : vector<2x256xf32>
    %360 = arith.addf %356, %359 : vector<2x256xf32>
    %c8_184 = arith.constant 8 : index
    %c2_185 = arith.constant 2 : index
    %361 = memref.load %arg1[%c8_184, %c2_185] : memref<32x9xf32, #tpu.memory_space<smem>>
    %362 = vector.broadcast %361 : f32 to vector<2x256xf32>
    %363 = arith.mulf %2, %362 : vector<2x256xf32>
    %364 = arith.addf %360, %363 : vector<2x256xf32>
    %c8_186 = arith.constant 8 : index
    %c3_187 = arith.constant 3 : index
    %365 = memref.load %arg1[%c8_186, %c3_187] : memref<32x9xf32, #tpu.memory_space<smem>>
    %366 = vector.broadcast %365 : f32 to vector<2x256xf32>
    %367 = arith.mulf %3, %366 : vector<2x256xf32>
    %368 = arith.addf %364, %367 : vector<2x256xf32>
    %c8_188 = arith.constant 8 : index
    %c4_189 = arith.constant 4 : index
    %369 = memref.load %arg1[%c8_188, %c4_189] : memref<32x9xf32, #tpu.memory_space<smem>>
    %370 = vector.broadcast %369 : f32 to vector<2x256xf32>
    %371 = arith.mulf %4, %370 : vector<2x256xf32>
    %372 = arith.addf %368, %371 : vector<2x256xf32>
    %c8_190 = arith.constant 8 : index
    %c5_191 = arith.constant 5 : index
    %373 = memref.load %arg1[%c8_190, %c5_191] : memref<32x9xf32, #tpu.memory_space<smem>>
    %374 = vector.broadcast %373 : f32 to vector<2x256xf32>
    %375 = arith.mulf %5, %374 : vector<2x256xf32>
    %376 = arith.addf %372, %375 : vector<2x256xf32>
    %c8_192 = arith.constant 8 : index
    %c6_193 = arith.constant 6 : index
    %377 = memref.load %arg1[%c8_192, %c6_193] : memref<32x9xf32, #tpu.memory_space<smem>>
    %378 = vector.broadcast %377 : f32 to vector<2x256xf32>
    %379 = arith.mulf %6, %378 : vector<2x256xf32>
    %380 = arith.addf %376, %379 : vector<2x256xf32>
    %c8_194 = arith.constant 8 : index
    %c7_195 = arith.constant 7 : index
    %381 = memref.load %arg1[%c8_194, %c7_195] : memref<32x9xf32, #tpu.memory_space<smem>>
    %382 = vector.broadcast %381 : f32 to vector<2x256xf32>
    %383 = arith.mulf %7, %382 : vector<2x256xf32>
    %384 = arith.addf %380, %383 : vector<2x256xf32>
    %c8_196 = arith.constant 8 : index
    %c8_197 = arith.constant 8 : index
    %385 = memref.load %arg1[%c8_196, %c8_197] : memref<32x9xf32, #tpu.memory_space<smem>>
    %386 = vector.broadcast %385 : f32 to vector<2x256xf32>
    %387 = arith.mulf %8, %386 : vector<2x256xf32>
    %388 = arith.addf %384, %387 : vector<2x256xf32>
    %c8_198 = arith.constant 8 : index
    %389 = memref.load %arg2[%c8_198] : memref<32xf32, #tpu.memory_space<smem>>
    %390 = vector.broadcast %389 : f32 to vector<2x256xf32>
    %391 = arith.addf %388, %390 : vector<2x256xf32>
    %cst_199 = arith.constant 0.000000e+00 : f32
    %392 = vector.broadcast %cst_199 : f32 to vector<2x256xf32>
    %393 = arith.maximumf %391, %392 : vector<2x256xf32>
    %c2048 = arith.constant 2048 : index
    %c0_200 = arith.constant 0 : index
    %394 = vector.load %arg3[%c2048, %c0_200] : memref<8192x16xf32, #tpu.memory_space<vmem>>, vector<256x16xf32>
    %cst_201 = arith.constant dense<0.000000e+00> : vector<2x16xf32>
    %395 = tpu.matmul %393, %394, %cst_201 {dimension_numbers = #tpu.dot_dimension_numbers<[1], [0], [0], [1], [0, 0, 1, 1], [], []>} : vector<2x256xf32>, vector<256x16xf32>, vector<2x16xf32> -> vector<2x16xf32>
    %396 = arith.addf %353, %395 : vector<2x16xf32>
    %c9 = arith.constant 9 : index
    %c0_202 = arith.constant 0 : index
    %397 = memref.load %arg1[%c9, %c0_202] : memref<32x9xf32, #tpu.memory_space<smem>>
    %398 = vector.broadcast %397 : f32 to vector<2x256xf32>
    %399 = arith.mulf %0, %398 : vector<2x256xf32>
    %c9_203 = arith.constant 9 : index
    %c1_204 = arith.constant 1 : index
    %400 = memref.load %arg1[%c9_203, %c1_204] : memref<32x9xf32, #tpu.memory_space<smem>>
    %401 = vector.broadcast %400 : f32 to vector<2x256xf32>
    %402 = arith.mulf %1, %401 : vector<2x256xf32>
    %403 = arith.addf %399, %402 : vector<2x256xf32>
    %c9_205 = arith.constant 9 : index
    %c2_206 = arith.constant 2 : index
    %404 = memref.load %arg1[%c9_205, %c2_206] : memref<32x9xf32, #tpu.memory_space<smem>>
    %405 = vector.broadcast %404 : f32 to vector<2x256xf32>
    %406 = arith.mulf %2, %405 : vector<2x256xf32>
    %407 = arith.addf %403, %406 : vector<2x256xf32>
    %c9_207 = arith.constant 9 : index
    %c3_208 = arith.constant 3 : index
    %408 = memref.load %arg1[%c9_207, %c3_208] : memref<32x9xf32, #tpu.memory_space<smem>>
    %409 = vector.broadcast %408 : f32 to vector<2x256xf32>
    %410 = arith.mulf %3, %409 : vector<2x256xf32>
    %411 = arith.addf %407, %410 : vector<2x256xf32>
    %c9_209 = arith.constant 9 : index
    %c4_210 = arith.constant 4 : index
    %412 = memref.load %arg1[%c9_209, %c4_210] : memref<32x9xf32, #tpu.memory_space<smem>>
    %413 = vector.broadcast %412 : f32 to vector<2x256xf32>
    %414 = arith.mulf %4, %413 : vector<2x256xf32>
    %415 = arith.addf %411, %414 : vector<2x256xf32>
    %c9_211 = arith.constant 9 : index
    %c5_212 = arith.constant 5 : index
    %416 = memref.load %arg1[%c9_211, %c5_212] : memref<32x9xf32, #tpu.memory_space<smem>>
    %417 = vector.broadcast %416 : f32 to vector<2x256xf32>
    %418 = arith.mulf %5, %417 : vector<2x256xf32>
    %419 = arith.addf %415, %418 : vector<2x256xf32>
    %c9_213 = arith.constant 9 : index
    %c6_214 = arith.constant 6 : index
    %420 = memref.load %arg1[%c9_213, %c6_214] : memref<32x9xf32, #tpu.memory_space<smem>>
    %421 = vector.broadcast %420 : f32 to vector<2x256xf32>
    %422 = arith.mulf %6, %421 : vector<2x256xf32>
    %423 = arith.addf %419, %422 : vector<2x256xf32>
    %c9_215 = arith.constant 9 : index
    %c7_216 = arith.constant 7 : index
    %424 = memref.load %arg1[%c9_215, %c7_216] : memref<32x9xf32, #tpu.memory_space<smem>>
    %425 = vector.broadcast %424 : f32 to vector<2x256xf32>
    %426 = arith.mulf %7, %425 : vector<2x256xf32>
    %427 = arith.addf %423, %426 : vector<2x256xf32>
    %c9_217 = arith.constant 9 : index
    %c8_218 = arith.constant 8 : index
    %428 = memref.load %arg1[%c9_217, %c8_218] : memref<32x9xf32, #tpu.memory_space<smem>>
    %429 = vector.broadcast %428 : f32 to vector<2x256xf32>
    %430 = arith.mulf %8, %429 : vector<2x256xf32>
    %431 = arith.addf %427, %430 : vector<2x256xf32>
    %c9_219 = arith.constant 9 : index
    %432 = memref.load %arg2[%c9_219] : memref<32xf32, #tpu.memory_space<smem>>
    %433 = vector.broadcast %432 : f32 to vector<2x256xf32>
    %434 = arith.addf %431, %433 : vector<2x256xf32>
    %cst_220 = arith.constant 0.000000e+00 : f32
    %435 = vector.broadcast %cst_220 : f32 to vector<2x256xf32>
    %436 = arith.maximumf %434, %435 : vector<2x256xf32>
    %c2304 = arith.constant 2304 : index
    %c0_221 = arith.constant 0 : index
    %437 = vector.load %arg3[%c2304, %c0_221] : memref<8192x16xf32, #tpu.memory_space<vmem>>, vector<256x16xf32>
    %cst_222 = arith.constant dense<0.000000e+00> : vector<2x16xf32>
    %438 = tpu.matmul %436, %437, %cst_222 {dimension_numbers = #tpu.dot_dimension_numbers<[1], [0], [0], [1], [0, 0, 1, 1], [], []>} : vector<2x256xf32>, vector<256x16xf32>, vector<2x16xf32> -> vector<2x16xf32>
    %439 = arith.addf %396, %438 : vector<2x16xf32>
    %c10 = arith.constant 10 : index
    %c0_223 = arith.constant 0 : index
    %440 = memref.load %arg1[%c10, %c0_223] : memref<32x9xf32, #tpu.memory_space<smem>>
    %441 = vector.broadcast %440 : f32 to vector<2x256xf32>
    %442 = arith.mulf %0, %441 : vector<2x256xf32>
    %c10_224 = arith.constant 10 : index
    %c1_225 = arith.constant 1 : index
    %443 = memref.load %arg1[%c10_224, %c1_225] : memref<32x9xf32, #tpu.memory_space<smem>>
    %444 = vector.broadcast %443 : f32 to vector<2x256xf32>
    %445 = arith.mulf %1, %444 : vector<2x256xf32>
    %446 = arith.addf %442, %445 : vector<2x256xf32>
    %c10_226 = arith.constant 10 : index
    %c2_227 = arith.constant 2 : index
    %447 = memref.load %arg1[%c10_226, %c2_227] : memref<32x9xf32, #tpu.memory_space<smem>>
    %448 = vector.broadcast %447 : f32 to vector<2x256xf32>
    %449 = arith.mulf %2, %448 : vector<2x256xf32>
    %450 = arith.addf %446, %449 : vector<2x256xf32>
    %c10_228 = arith.constant 10 : index
    %c3_229 = arith.constant 3 : index
    %451 = memref.load %arg1[%c10_228, %c3_229] : memref<32x9xf32, #tpu.memory_space<smem>>
    %452 = vector.broadcast %451 : f32 to vector<2x256xf32>
    %453 = arith.mulf %3, %452 : vector<2x256xf32>
    %454 = arith.addf %450, %453 : vector<2x256xf32>
    %c10_230 = arith.constant 10 : index
    %c4_231 = arith.constant 4 : index
    %455 = memref.load %arg1[%c10_230, %c4_231] : memref<32x9xf32, #tpu.memory_space<smem>>
    %456 = vector.broadcast %455 : f32 to vector<2x256xf32>
    %457 = arith.mulf %4, %456 : vector<2x256xf32>
    %458 = arith.addf %454, %457 : vector<2x256xf32>
    %c10_232 = arith.constant 10 : index
    %c5_233 = arith.constant 5 : index
    %459 = memref.load %arg1[%c10_232, %c5_233] : memref<32x9xf32, #tpu.memory_space<smem>>
    %460 = vector.broadcast %459 : f32 to vector<2x256xf32>
    %461 = arith.mulf %5, %460 : vector<2x256xf32>
    %462 = arith.addf %458, %461 : vector<2x256xf32>
    %c10_234 = arith.constant 10 : index
    %c6_235 = arith.constant 6 : index
    %463 = memref.load %arg1[%c10_234, %c6_235] : memref<32x9xf32, #tpu.memory_space<smem>>
    %464 = vector.broadcast %463 : f32 to vector<2x256xf32>
    %465 = arith.mulf %6, %464 : vector<2x256xf32>
    %466 = arith.addf %462, %465 : vector<2x256xf32>
    %c10_236 = arith.constant 10 : index
    %c7_237 = arith.constant 7 : index
    %467 = memref.load %arg1[%c10_236, %c7_237] : memref<32x9xf32, #tpu.memory_space<smem>>
    %468 = vector.broadcast %467 : f32 to vector<2x256xf32>
    %469 = arith.mulf %7, %468 : vector<2x256xf32>
    %470 = arith.addf %466, %469 : vector<2x256xf32>
    %c10_238 = arith.constant 10 : index
    %c8_239 = arith.constant 8 : index
    %471 = memref.load %arg1[%c10_238, %c8_239] : memref<32x9xf32, #tpu.memory_space<smem>>
    %472 = vector.broadcast %471 : f32 to vector<2x256xf32>
    %473 = arith.mulf %8, %472 : vector<2x256xf32>
    %474 = arith.addf %470, %473 : vector<2x256xf32>
    %c10_240 = arith.constant 10 : index
    %475 = memref.load %arg2[%c10_240] : memref<32xf32, #tpu.memory_space<smem>>
    %476 = vector.broadcast %475 : f32 to vector<2x256xf32>
    %477 = arith.addf %474, %476 : vector<2x256xf32>
    %cst_241 = arith.constant 0.000000e+00 : f32
    %478 = vector.broadcast %cst_241 : f32 to vector<2x256xf32>
    %479 = arith.maximumf %477, %478 : vector<2x256xf32>
    %c2560 = arith.constant 2560 : index
    %c0_242 = arith.constant 0 : index
    %480 = vector.load %arg3[%c2560, %c0_242] : memref<8192x16xf32, #tpu.memory_space<vmem>>, vector<256x16xf32>
    %cst_243 = arith.constant dense<0.000000e+00> : vector<2x16xf32>
    %481 = tpu.matmul %479, %480, %cst_243 {dimension_numbers = #tpu.dot_dimension_numbers<[1], [0], [0], [1], [0, 0, 1, 1], [], []>} : vector<2x256xf32>, vector<256x16xf32>, vector<2x16xf32> -> vector<2x16xf32>
    %482 = arith.addf %439, %481 : vector<2x16xf32>
    %c11 = arith.constant 11 : index
    %c0_244 = arith.constant 0 : index
    %483 = memref.load %arg1[%c11, %c0_244] : memref<32x9xf32, #tpu.memory_space<smem>>
    %484 = vector.broadcast %483 : f32 to vector<2x256xf32>
    %485 = arith.mulf %0, %484 : vector<2x256xf32>
    %c11_245 = arith.constant 11 : index
    %c1_246 = arith.constant 1 : index
    %486 = memref.load %arg1[%c11_245, %c1_246] : memref<32x9xf32, #tpu.memory_space<smem>>
    %487 = vector.broadcast %486 : f32 to vector<2x256xf32>
    %488 = arith.mulf %1, %487 : vector<2x256xf32>
    %489 = arith.addf %485, %488 : vector<2x256xf32>
    %c11_247 = arith.constant 11 : index
    %c2_248 = arith.constant 2 : index
    %490 = memref.load %arg1[%c11_247, %c2_248] : memref<32x9xf32, #tpu.memory_space<smem>>
    %491 = vector.broadcast %490 : f32 to vector<2x256xf32>
    %492 = arith.mulf %2, %491 : vector<2x256xf32>
    %493 = arith.addf %489, %492 : vector<2x256xf32>
    %c11_249 = arith.constant 11 : index
    %c3_250 = arith.constant 3 : index
    %494 = memref.load %arg1[%c11_249, %c3_250] : memref<32x9xf32, #tpu.memory_space<smem>>
    %495 = vector.broadcast %494 : f32 to vector<2x256xf32>
    %496 = arith.mulf %3, %495 : vector<2x256xf32>
    %497 = arith.addf %493, %496 : vector<2x256xf32>
    %c11_251 = arith.constant 11 : index
    %c4_252 = arith.constant 4 : index
    %498 = memref.load %arg1[%c11_251, %c4_252] : memref<32x9xf32, #tpu.memory_space<smem>>
    %499 = vector.broadcast %498 : f32 to vector<2x256xf32>
    %500 = arith.mulf %4, %499 : vector<2x256xf32>
    %501 = arith.addf %497, %500 : vector<2x256xf32>
    %c11_253 = arith.constant 11 : index
    %c5_254 = arith.constant 5 : index
    %502 = memref.load %arg1[%c11_253, %c5_254] : memref<32x9xf32, #tpu.memory_space<smem>>
    %503 = vector.broadcast %502 : f32 to vector<2x256xf32>
    %504 = arith.mulf %5, %503 : vector<2x256xf32>
    %505 = arith.addf %501, %504 : vector<2x256xf32>
    %c11_255 = arith.constant 11 : index
    %c6_256 = arith.constant 6 : index
    %506 = memref.load %arg1[%c11_255, %c6_256] : memref<32x9xf32, #tpu.memory_space<smem>>
    %507 = vector.broadcast %506 : f32 to vector<2x256xf32>
    %508 = arith.mulf %6, %507 : vector<2x256xf32>
    %509 = arith.addf %505, %508 : vector<2x256xf32>
    %c11_257 = arith.constant 11 : index
    %c7_258 = arith.constant 7 : index
    %510 = memref.load %arg1[%c11_257, %c7_258] : memref<32x9xf32, #tpu.memory_space<smem>>
    %511 = vector.broadcast %510 : f32 to vector<2x256xf32>
    %512 = arith.mulf %7, %511 : vector<2x256xf32>
    %513 = arith.addf %509, %512 : vector<2x256xf32>
    %c11_259 = arith.constant 11 : index
    %c8_260 = arith.constant 8 : index
    %514 = memref.load %arg1[%c11_259, %c8_260] : memref<32x9xf32, #tpu.memory_space<smem>>
    %515 = vector.broadcast %514 : f32 to vector<2x256xf32>
    %516 = arith.mulf %8, %515 : vector<2x256xf32>
    %517 = arith.addf %513, %516 : vector<2x256xf32>
    %c11_261 = arith.constant 11 : index
    %518 = memref.load %arg2[%c11_261] : memref<32xf32, #tpu.memory_space<smem>>
    %519 = vector.broadcast %518 : f32 to vector<2x256xf32>
    %520 = arith.addf %517, %519 : vector<2x256xf32>
    %cst_262 = arith.constant 0.000000e+00 : f32
    %521 = vector.broadcast %cst_262 : f32 to vector<2x256xf32>
    %522 = arith.maximumf %520, %521 : vector<2x256xf32>
    %c2816 = arith.constant 2816 : index
    %c0_263 = arith.constant 0 : index
    %523 = vector.load %arg3[%c2816, %c0_263] : memref<8192x16xf32, #tpu.memory_space<vmem>>, vector<256x16xf32>
    %cst_264 = arith.constant dense<0.000000e+00> : vector<2x16xf32>
    %524 = tpu.matmul %522, %523, %cst_264 {dimension_numbers = #tpu.dot_dimension_numbers<[1], [0], [0], [1], [0, 0, 1, 1], [], []>} : vector<2x256xf32>, vector<256x16xf32>, vector<2x16xf32> -> vector<2x16xf32>
    %525 = arith.addf %482, %524 : vector<2x16xf32>
    %c12 = arith.constant 12 : index
    %c0_265 = arith.constant 0 : index
    %526 = memref.load %arg1[%c12, %c0_265] : memref<32x9xf32, #tpu.memory_space<smem>>
    %527 = vector.broadcast %526 : f32 to vector<2x256xf32>
    %528 = arith.mulf %0, %527 : vector<2x256xf32>
    %c12_266 = arith.constant 12 : index
    %c1_267 = arith.constant 1 : index
    %529 = memref.load %arg1[%c12_266, %c1_267] : memref<32x9xf32, #tpu.memory_space<smem>>
    %530 = vector.broadcast %529 : f32 to vector<2x256xf32>
    %531 = arith.mulf %1, %530 : vector<2x256xf32>
    %532 = arith.addf %528, %531 : vector<2x256xf32>
    %c12_268 = arith.constant 12 : index
    %c2_269 = arith.constant 2 : index
    %533 = memref.load %arg1[%c12_268, %c2_269] : memref<32x9xf32, #tpu.memory_space<smem>>
    %534 = vector.broadcast %533 : f32 to vector<2x256xf32>
    %535 = arith.mulf %2, %534 : vector<2x256xf32>
    %536 = arith.addf %532, %535 : vector<2x256xf32>
    %c12_270 = arith.constant 12 : index
    %c3_271 = arith.constant 3 : index
    %537 = memref.load %arg1[%c12_270, %c3_271] : memref<32x9xf32, #tpu.memory_space<smem>>
    %538 = vector.broadcast %537 : f32 to vector<2x256xf32>
    %539 = arith.mulf %3, %538 : vector<2x256xf32>
    %540 = arith.addf %536, %539 : vector<2x256xf32>
    %c12_272 = arith.constant 12 : index
    %c4_273 = arith.constant 4 : index
    %541 = memref.load %arg1[%c12_272, %c4_273] : memref<32x9xf32, #tpu.memory_space<smem>>
    %542 = vector.broadcast %541 : f32 to vector<2x256xf32>
    %543 = arith.mulf %4, %542 : vector<2x256xf32>
    %544 = arith.addf %540, %543 : vector<2x256xf32>
    %c12_274 = arith.constant 12 : index
    %c5_275 = arith.constant 5 : index
    %545 = memref.load %arg1[%c12_274, %c5_275] : memref<32x9xf32, #tpu.memory_space<smem>>
    %546 = vector.broadcast %545 : f32 to vector<2x256xf32>
    %547 = arith.mulf %5, %546 : vector<2x256xf32>
    %548 = arith.addf %544, %547 : vector<2x256xf32>
    %c12_276 = arith.constant 12 : index
    %c6_277 = arith.constant 6 : index
    %549 = memref.load %arg1[%c12_276, %c6_277] : memref<32x9xf32, #tpu.memory_space<smem>>
    %550 = vector.broadcast %549 : f32 to vector<2x256xf32>
    %551 = arith.mulf %6, %550 : vector<2x256xf32>
    %552 = arith.addf %548, %551 : vector<2x256xf32>
    %c12_278 = arith.constant 12 : index
    %c7_279 = arith.constant 7 : index
    %553 = memref.load %arg1[%c12_278, %c7_279] : memref<32x9xf32, #tpu.memory_space<smem>>
    %554 = vector.broadcast %553 : f32 to vector<2x256xf32>
    %555 = arith.mulf %7, %554 : vector<2x256xf32>
    %556 = arith.addf %552, %555 : vector<2x256xf32>
    %c12_280 = arith.constant 12 : index
    %c8_281 = arith.constant 8 : index
    %557 = memref.load %arg1[%c12_280, %c8_281] : memref<32x9xf32, #tpu.memory_space<smem>>
    %558 = vector.broadcast %557 : f32 to vector<2x256xf32>
    %559 = arith.mulf %8, %558 : vector<2x256xf32>
    %560 = arith.addf %556, %559 : vector<2x256xf32>
    %c12_282 = arith.constant 12 : index
    %561 = memref.load %arg2[%c12_282] : memref<32xf32, #tpu.memory_space<smem>>
    %562 = vector.broadcast %561 : f32 to vector<2x256xf32>
    %563 = arith.addf %560, %562 : vector<2x256xf32>
    %cst_283 = arith.constant 0.000000e+00 : f32
    %564 = vector.broadcast %cst_283 : f32 to vector<2x256xf32>
    %565 = arith.maximumf %563, %564 : vector<2x256xf32>
    %c3072 = arith.constant 3072 : index
    %c0_284 = arith.constant 0 : index
    %566 = vector.load %arg3[%c3072, %c0_284] : memref<8192x16xf32, #tpu.memory_space<vmem>>, vector<256x16xf32>
    %cst_285 = arith.constant dense<0.000000e+00> : vector<2x16xf32>
    %567 = tpu.matmul %565, %566, %cst_285 {dimension_numbers = #tpu.dot_dimension_numbers<[1], [0], [0], [1], [0, 0, 1, 1], [], []>} : vector<2x256xf32>, vector<256x16xf32>, vector<2x16xf32> -> vector<2x16xf32>
    %568 = arith.addf %525, %567 : vector<2x16xf32>
    %c13 = arith.constant 13 : index
    %c0_286 = arith.constant 0 : index
    %569 = memref.load %arg1[%c13, %c0_286] : memref<32x9xf32, #tpu.memory_space<smem>>
    %570 = vector.broadcast %569 : f32 to vector<2x256xf32>
    %571 = arith.mulf %0, %570 : vector<2x256xf32>
    %c13_287 = arith.constant 13 : index
    %c1_288 = arith.constant 1 : index
    %572 = memref.load %arg1[%c13_287, %c1_288] : memref<32x9xf32, #tpu.memory_space<smem>>
    %573 = vector.broadcast %572 : f32 to vector<2x256xf32>
    %574 = arith.mulf %1, %573 : vector<2x256xf32>
    %575 = arith.addf %571, %574 : vector<2x256xf32>
    %c13_289 = arith.constant 13 : index
    %c2_290 = arith.constant 2 : index
    %576 = memref.load %arg1[%c13_289, %c2_290] : memref<32x9xf32, #tpu.memory_space<smem>>
    %577 = vector.broadcast %576 : f32 to vector<2x256xf32>
    %578 = arith.mulf %2, %577 : vector<2x256xf32>
    %579 = arith.addf %575, %578 : vector<2x256xf32>
    %c13_291 = arith.constant 13 : index
    %c3_292 = arith.constant 3 : index
    %580 = memref.load %arg1[%c13_291, %c3_292] : memref<32x9xf32, #tpu.memory_space<smem>>
    %581 = vector.broadcast %580 : f32 to vector<2x256xf32>
    %582 = arith.mulf %3, %581 : vector<2x256xf32>
    %583 = arith.addf %579, %582 : vector<2x256xf32>
    %c13_293 = arith.constant 13 : index
    %c4_294 = arith.constant 4 : index
    %584 = memref.load %arg1[%c13_293, %c4_294] : memref<32x9xf32, #tpu.memory_space<smem>>
    %585 = vector.broadcast %584 : f32 to vector<2x256xf32>
    %586 = arith.mulf %4, %585 : vector<2x256xf32>
    %587 = arith.addf %583, %586 : vector<2x256xf32>
    %c13_295 = arith.constant 13 : index
    %c5_296 = arith.constant 5 : index
    %588 = memref.load %arg1[%c13_295, %c5_296] : memref<32x9xf32, #tpu.memory_space<smem>>
    %589 = vector.broadcast %588 : f32 to vector<2x256xf32>
    %590 = arith.mulf %5, %589 : vector<2x256xf32>
    %591 = arith.addf %587, %590 : vector<2x256xf32>
    %c13_297 = arith.constant 13 : index
    %c6_298 = arith.constant 6 : index
    %592 = memref.load %arg1[%c13_297, %c6_298] : memref<32x9xf32, #tpu.memory_space<smem>>
    %593 = vector.broadcast %592 : f32 to vector<2x256xf32>
    %594 = arith.mulf %6, %593 : vector<2x256xf32>
    %595 = arith.addf %591, %594 : vector<2x256xf32>
    %c13_299 = arith.constant 13 : index
    %c7_300 = arith.constant 7 : index
    %596 = memref.load %arg1[%c13_299, %c7_300] : memref<32x9xf32, #tpu.memory_space<smem>>
    %597 = vector.broadcast %596 : f32 to vector<2x256xf32>
    %598 = arith.mulf %7, %597 : vector<2x256xf32>
    %599 = arith.addf %595, %598 : vector<2x256xf32>
    %c13_301 = arith.constant 13 : index
    %c8_302 = arith.constant 8 : index
    %600 = memref.load %arg1[%c13_301, %c8_302] : memref<32x9xf32, #tpu.memory_space<smem>>
    %601 = vector.broadcast %600 : f32 to vector<2x256xf32>
    %602 = arith.mulf %8, %601 : vector<2x256xf32>
    %603 = arith.addf %599, %602 : vector<2x256xf32>
    %c13_303 = arith.constant 13 : index
    %604 = memref.load %arg2[%c13_303] : memref<32xf32, #tpu.memory_space<smem>>
    %605 = vector.broadcast %604 : f32 to vector<2x256xf32>
    %606 = arith.addf %603, %605 : vector<2x256xf32>
    %cst_304 = arith.constant 0.000000e+00 : f32
    %607 = vector.broadcast %cst_304 : f32 to vector<2x256xf32>
    %608 = arith.maximumf %606, %607 : vector<2x256xf32>
    %c3328 = arith.constant 3328 : index
    %c0_305 = arith.constant 0 : index
    %609 = vector.load %arg3[%c3328, %c0_305] : memref<8192x16xf32, #tpu.memory_space<vmem>>, vector<256x16xf32>
    %cst_306 = arith.constant dense<0.000000e+00> : vector<2x16xf32>
    %610 = tpu.matmul %608, %609, %cst_306 {dimension_numbers = #tpu.dot_dimension_numbers<[1], [0], [0], [1], [0, 0, 1, 1], [], []>} : vector<2x256xf32>, vector<256x16xf32>, vector<2x16xf32> -> vector<2x16xf32>
    %611 = arith.addf %568, %610 : vector<2x16xf32>
    %c14 = arith.constant 14 : index
    %c0_307 = arith.constant 0 : index
    %612 = memref.load %arg1[%c14, %c0_307] : memref<32x9xf32, #tpu.memory_space<smem>>
    %613 = vector.broadcast %612 : f32 to vector<2x256xf32>
    %614 = arith.mulf %0, %613 : vector<2x256xf32>
    %c14_308 = arith.constant 14 : index
    %c1_309 = arith.constant 1 : index
    %615 = memref.load %arg1[%c14_308, %c1_309] : memref<32x9xf32, #tpu.memory_space<smem>>
    %616 = vector.broadcast %615 : f32 to vector<2x256xf32>
    %617 = arith.mulf %1, %616 : vector<2x256xf32>
    %618 = arith.addf %614, %617 : vector<2x256xf32>
    %c14_310 = arith.constant 14 : index
    %c2_311 = arith.constant 2 : index
    %619 = memref.load %arg1[%c14_310, %c2_311] : memref<32x9xf32, #tpu.memory_space<smem>>
    %620 = vector.broadcast %619 : f32 to vector<2x256xf32>
    %621 = arith.mulf %2, %620 : vector<2x256xf32>
    %622 = arith.addf %618, %621 : vector<2x256xf32>
    %c14_312 = arith.constant 14 : index
    %c3_313 = arith.constant 3 : index
    %623 = memref.load %arg1[%c14_312, %c3_313] : memref<32x9xf32, #tpu.memory_space<smem>>
    %624 = vector.broadcast %623 : f32 to vector<2x256xf32>
    %625 = arith.mulf %3, %624 : vector<2x256xf32>
    %626 = arith.addf %622, %625 : vector<2x256xf32>
    %c14_314 = arith.constant 14 : index
    %c4_315 = arith.constant 4 : index
    %627 = memref.load %arg1[%c14_314, %c4_315] : memref<32x9xf32, #tpu.memory_space<smem>>
    %628 = vector.broadcast %627 : f32 to vector<2x256xf32>
    %629 = arith.mulf %4, %628 : vector<2x256xf32>
    %630 = arith.addf %626, %629 : vector<2x256xf32>
    %c14_316 = arith.constant 14 : index
    %c5_317 = arith.constant 5 : index
    %631 = memref.load %arg1[%c14_316, %c5_317] : memref<32x9xf32, #tpu.memory_space<smem>>
    %632 = vector.broadcast %631 : f32 to vector<2x256xf32>
    %633 = arith.mulf %5, %632 : vector<2x256xf32>
    %634 = arith.addf %630, %633 : vector<2x256xf32>
    %c14_318 = arith.constant 14 : index
    %c6_319 = arith.constant 6 : index
    %635 = memref.load %arg1[%c14_318, %c6_319] : memref<32x9xf32, #tpu.memory_space<smem>>
    %636 = vector.broadcast %635 : f32 to vector<2x256xf32>
    %637 = arith.mulf %6, %636 : vector<2x256xf32>
    %638 = arith.addf %634, %637 : vector<2x256xf32>
    %c14_320 = arith.constant 14 : index
    %c7_321 = arith.constant 7 : index
    %639 = memref.load %arg1[%c14_320, %c7_321] : memref<32x9xf32, #tpu.memory_space<smem>>
    %640 = vector.broadcast %639 : f32 to vector<2x256xf32>
    %641 = arith.mulf %7, %640 : vector<2x256xf32>
    %642 = arith.addf %638, %641 : vector<2x256xf32>
    %c14_322 = arith.constant 14 : index
    %c8_323 = arith.constant 8 : index
    %643 = memref.load %arg1[%c14_322, %c8_323] : memref<32x9xf32, #tpu.memory_space<smem>>
    %644 = vector.broadcast %643 : f32 to vector<2x256xf32>
    %645 = arith.mulf %8, %644 : vector<2x256xf32>
    %646 = arith.addf %642, %645 : vector<2x256xf32>
    %c14_324 = arith.constant 14 : index
    %647 = memref.load %arg2[%c14_324] : memref<32xf32, #tpu.memory_space<smem>>
    %648 = vector.broadcast %647 : f32 to vector<2x256xf32>
    %649 = arith.addf %646, %648 : vector<2x256xf32>
    %cst_325 = arith.constant 0.000000e+00 : f32
    %650 = vector.broadcast %cst_325 : f32 to vector<2x256xf32>
    %651 = arith.maximumf %649, %650 : vector<2x256xf32>
    %c3584 = arith.constant 3584 : index
    %c0_326 = arith.constant 0 : index
    %652 = vector.load %arg3[%c3584, %c0_326] : memref<8192x16xf32, #tpu.memory_space<vmem>>, vector<256x16xf32>
    %cst_327 = arith.constant dense<0.000000e+00> : vector<2x16xf32>
    %653 = tpu.matmul %651, %652, %cst_327 {dimension_numbers = #tpu.dot_dimension_numbers<[1], [0], [0], [1], [0, 0, 1, 1], [], []>} : vector<2x256xf32>, vector<256x16xf32>, vector<2x16xf32> -> vector<2x16xf32>
    %654 = arith.addf %611, %653 : vector<2x16xf32>
    %c15 = arith.constant 15 : index
    %c0_328 = arith.constant 0 : index
    %655 = memref.load %arg1[%c15, %c0_328] : memref<32x9xf32, #tpu.memory_space<smem>>
    %656 = vector.broadcast %655 : f32 to vector<2x256xf32>
    %657 = arith.mulf %0, %656 : vector<2x256xf32>
    %c15_329 = arith.constant 15 : index
    %c1_330 = arith.constant 1 : index
    %658 = memref.load %arg1[%c15_329, %c1_330] : memref<32x9xf32, #tpu.memory_space<smem>>
    %659 = vector.broadcast %658 : f32 to vector<2x256xf32>
    %660 = arith.mulf %1, %659 : vector<2x256xf32>
    %661 = arith.addf %657, %660 : vector<2x256xf32>
    %c15_331 = arith.constant 15 : index
    %c2_332 = arith.constant 2 : index
    %662 = memref.load %arg1[%c15_331, %c2_332] : memref<32x9xf32, #tpu.memory_space<smem>>
    %663 = vector.broadcast %662 : f32 to vector<2x256xf32>
    %664 = arith.mulf %2, %663 : vector<2x256xf32>
    %665 = arith.addf %661, %664 : vector<2x256xf32>
    %c15_333 = arith.constant 15 : index
    %c3_334 = arith.constant 3 : index
    %666 = memref.load %arg1[%c15_333, %c3_334] : memref<32x9xf32, #tpu.memory_space<smem>>
    %667 = vector.broadcast %666 : f32 to vector<2x256xf32>
    %668 = arith.mulf %3, %667 : vector<2x256xf32>
    %669 = arith.addf %665, %668 : vector<2x256xf32>
    %c15_335 = arith.constant 15 : index
    %c4_336 = arith.constant 4 : index
    %670 = memref.load %arg1[%c15_335, %c4_336] : memref<32x9xf32, #tpu.memory_space<smem>>
    %671 = vector.broadcast %670 : f32 to vector<2x256xf32>
    %672 = arith.mulf %4, %671 : vector<2x256xf32>
    %673 = arith.addf %669, %672 : vector<2x256xf32>
    %c15_337 = arith.constant 15 : index
    %c5_338 = arith.constant 5 : index
    %674 = memref.load %arg1[%c15_337, %c5_338] : memref<32x9xf32, #tpu.memory_space<smem>>
    %675 = vector.broadcast %674 : f32 to vector<2x256xf32>
    %676 = arith.mulf %5, %675 : vector<2x256xf32>
    %677 = arith.addf %673, %676 : vector<2x256xf32>
    %c15_339 = arith.constant 15 : index
    %c6_340 = arith.constant 6 : index
    %678 = memref.load %arg1[%c15_339, %c6_340] : memref<32x9xf32, #tpu.memory_space<smem>>
    %679 = vector.broadcast %678 : f32 to vector<2x256xf32>
    %680 = arith.mulf %6, %679 : vector<2x256xf32>
    %681 = arith.addf %677, %680 : vector<2x256xf32>
    %c15_341 = arith.constant 15 : index
    %c7_342 = arith.constant 7 : index
    %682 = memref.load %arg1[%c15_341, %c7_342] : memref<32x9xf32, #tpu.memory_space<smem>>
    %683 = vector.broadcast %682 : f32 to vector<2x256xf32>
    %684 = arith.mulf %7, %683 : vector<2x256xf32>
    %685 = arith.addf %681, %684 : vector<2x256xf32>
    %c15_343 = arith.constant 15 : index
    %c8_344 = arith.constant 8 : index
    %686 = memref.load %arg1[%c15_343, %c8_344] : memref<32x9xf32, #tpu.memory_space<smem>>
    %687 = vector.broadcast %686 : f32 to vector<2x256xf32>
    %688 = arith.mulf %8, %687 : vector<2x256xf32>
    %689 = arith.addf %685, %688 : vector<2x256xf32>
    %c15_345 = arith.constant 15 : index
    %690 = memref.load %arg2[%c15_345] : memref<32xf32, #tpu.memory_space<smem>>
    %691 = vector.broadcast %690 : f32 to vector<2x256xf32>
    %692 = arith.addf %689, %691 : vector<2x256xf32>
    %cst_346 = arith.constant 0.000000e+00 : f32
    %693 = vector.broadcast %cst_346 : f32 to vector<2x256xf32>
    %694 = arith.maximumf %692, %693 : vector<2x256xf32>
    %c3840 = arith.constant 3840 : index
    %c0_347 = arith.constant 0 : index
    %695 = vector.load %arg3[%c3840, %c0_347] : memref<8192x16xf32, #tpu.memory_space<vmem>>, vector<256x16xf32>
    %cst_348 = arith.constant dense<0.000000e+00> : vector<2x16xf32>
    %696 = tpu.matmul %694, %695, %cst_348 {dimension_numbers = #tpu.dot_dimension_numbers<[1], [0], [0], [1], [0, 0, 1, 1], [], []>} : vector<2x256xf32>, vector<256x16xf32>, vector<2x16xf32> -> vector<2x16xf32>
    %697 = arith.addf %654, %696 : vector<2x16xf32>
    %c16_349 = arith.constant 16 : index
    %c0_350 = arith.constant 0 : index
    %698 = memref.load %arg1[%c16_349, %c0_350] : memref<32x9xf32, #tpu.memory_space<smem>>
    %699 = vector.broadcast %698 : f32 to vector<2x256xf32>
    %700 = arith.mulf %0, %699 : vector<2x256xf32>
    %c16_351 = arith.constant 16 : index
    %c1_352 = arith.constant 1 : index
    %701 = memref.load %arg1[%c16_351, %c1_352] : memref<32x9xf32, #tpu.memory_space<smem>>
    %702 = vector.broadcast %701 : f32 to vector<2x256xf32>
    %703 = arith.mulf %1, %702 : vector<2x256xf32>
    %704 = arith.addf %700, %703 : vector<2x256xf32>
    %c16_353 = arith.constant 16 : index
    %c2_354 = arith.constant 2 : index
    %705 = memref.load %arg1[%c16_353, %c2_354] : memref<32x9xf32, #tpu.memory_space<smem>>
    %706 = vector.broadcast %705 : f32 to vector<2x256xf32>
    %707 = arith.mulf %2, %706 : vector<2x256xf32>
    %708 = arith.addf %704, %707 : vector<2x256xf32>
    %c16_355 = arith.constant 16 : index
    %c3_356 = arith.constant 3 : index
    %709 = memref.load %arg1[%c16_355, %c3_356] : memref<32x9xf32, #tpu.memory_space<smem>>
    %710 = vector.broadcast %709 : f32 to vector<2x256xf32>
    %711 = arith.mulf %3, %710 : vector<2x256xf32>
    %712 = arith.addf %708, %711 : vector<2x256xf32>
    %c16_357 = arith.constant 16 : index
    %c4_358 = arith.constant 4 : index
    %713 = memref.load %arg1[%c16_357, %c4_358] : memref<32x9xf32, #tpu.memory_space<smem>>
    %714 = vector.broadcast %713 : f32 to vector<2x256xf32>
    %715 = arith.mulf %4, %714 : vector<2x256xf32>
    %716 = arith.addf %712, %715 : vector<2x256xf32>
    %c16_359 = arith.constant 16 : index
    %c5_360 = arith.constant 5 : index
    %717 = memref.load %arg1[%c16_359, %c5_360] : memref<32x9xf32, #tpu.memory_space<smem>>
    %718 = vector.broadcast %717 : f32 to vector<2x256xf32>
    %719 = arith.mulf %5, %718 : vector<2x256xf32>
    %720 = arith.addf %716, %719 : vector<2x256xf32>
    %c16_361 = arith.constant 16 : index
    %c6_362 = arith.constant 6 : index
    %721 = memref.load %arg1[%c16_361, %c6_362] : memref<32x9xf32, #tpu.memory_space<smem>>
    %722 = vector.broadcast %721 : f32 to vector<2x256xf32>
    %723 = arith.mulf %6, %722 : vector<2x256xf32>
    %724 = arith.addf %720, %723 : vector<2x256xf32>
    %c16_363 = arith.constant 16 : index
    %c7_364 = arith.constant 7 : index
    %725 = memref.load %arg1[%c16_363, %c7_364] : memref<32x9xf32, #tpu.memory_space<smem>>
    %726 = vector.broadcast %725 : f32 to vector<2x256xf32>
    %727 = arith.mulf %7, %726 : vector<2x256xf32>
    %728 = arith.addf %724, %727 : vector<2x256xf32>
    %c16_365 = arith.constant 16 : index
    %c8_366 = arith.constant 8 : index
    %729 = memref.load %arg1[%c16_365, %c8_366] : memref<32x9xf32, #tpu.memory_space<smem>>
    %730 = vector.broadcast %729 : f32 to vector<2x256xf32>
    %731 = arith.mulf %8, %730 : vector<2x256xf32>
    %732 = arith.addf %728, %731 : vector<2x256xf32>
    %c16_367 = arith.constant 16 : index
    %733 = memref.load %arg2[%c16_367] : memref<32xf32, #tpu.memory_space<smem>>
    %734 = vector.broadcast %733 : f32 to vector<2x256xf32>
    %735 = arith.addf %732, %734 : vector<2x256xf32>
    %cst_368 = arith.constant 0.000000e+00 : f32
    %736 = vector.broadcast %cst_368 : f32 to vector<2x256xf32>
    %737 = arith.maximumf %735, %736 : vector<2x256xf32>
    %c4096 = arith.constant 4096 : index
    %c0_369 = arith.constant 0 : index
    %738 = vector.load %arg3[%c4096, %c0_369] : memref<8192x16xf32, #tpu.memory_space<vmem>>, vector<256x16xf32>
    %cst_370 = arith.constant dense<0.000000e+00> : vector<2x16xf32>
    %739 = tpu.matmul %737, %738, %cst_370 {dimension_numbers = #tpu.dot_dimension_numbers<[1], [0], [0], [1], [0, 0, 1, 1], [], []>} : vector<2x256xf32>, vector<256x16xf32>, vector<2x16xf32> -> vector<2x16xf32>
    %740 = arith.addf %697, %739 : vector<2x16xf32>
    %c17_371 = arith.constant 17 : index
    %c0_372 = arith.constant 0 : index
    %741 = memref.load %arg1[%c17_371, %c0_372] : memref<32x9xf32, #tpu.memory_space<smem>>
    %742 = vector.broadcast %741 : f32 to vector<2x256xf32>
    %743 = arith.mulf %0, %742 : vector<2x256xf32>
    %c17_373 = arith.constant 17 : index
    %c1_374 = arith.constant 1 : index
    %744 = memref.load %arg1[%c17_373, %c1_374] : memref<32x9xf32, #tpu.memory_space<smem>>
    %745 = vector.broadcast %744 : f32 to vector<2x256xf32>
    %746 = arith.mulf %1, %745 : vector<2x256xf32>
    %747 = arith.addf %743, %746 : vector<2x256xf32>
    %c17_375 = arith.constant 17 : index
    %c2_376 = arith.constant 2 : index
    %748 = memref.load %arg1[%c17_375, %c2_376] : memref<32x9xf32, #tpu.memory_space<smem>>
    %749 = vector.broadcast %748 : f32 to vector<2x256xf32>
    %750 = arith.mulf %2, %749 : vector<2x256xf32>
    %751 = arith.addf %747, %750 : vector<2x256xf32>
    %c17_377 = arith.constant 17 : index
    %c3_378 = arith.constant 3 : index
    %752 = memref.load %arg1[%c17_377, %c3_378] : memref<32x9xf32, #tpu.memory_space<smem>>
    %753 = vector.broadcast %752 : f32 to vector<2x256xf32>
    %754 = arith.mulf %3, %753 : vector<2x256xf32>
    %755 = arith.addf %751, %754 : vector<2x256xf32>
    %c17_379 = arith.constant 17 : index
    %c4_380 = arith.constant 4 : index
    %756 = memref.load %arg1[%c17_379, %c4_380] : memref<32x9xf32, #tpu.memory_space<smem>>
    %757 = vector.broadcast %756 : f32 to vector<2x256xf32>
    %758 = arith.mulf %4, %757 : vector<2x256xf32>
    %759 = arith.addf %755, %758 : vector<2x256xf32>
    %c17_381 = arith.constant 17 : index
    %c5_382 = arith.constant 5 : index
    %760 = memref.load %arg1[%c17_381, %c5_382] : memref<32x9xf32, #tpu.memory_space<smem>>
    %761 = vector.broadcast %760 : f32 to vector<2x256xf32>
    %762 = arith.mulf %5, %761 : vector<2x256xf32>
    %763 = arith.addf %759, %762 : vector<2x256xf32>
    %c17_383 = arith.constant 17 : index
    %c6_384 = arith.constant 6 : index
    %764 = memref.load %arg1[%c17_383, %c6_384] : memref<32x9xf32, #tpu.memory_space<smem>>
    %765 = vector.broadcast %764 : f32 to vector<2x256xf32>
    %766 = arith.mulf %6, %765 : vector<2x256xf32>
    %767 = arith.addf %763, %766 : vector<2x256xf32>
    %c17_385 = arith.constant 17 : index
    %c7_386 = arith.constant 7 : index
    %768 = memref.load %arg1[%c17_385, %c7_386] : memref<32x9xf32, #tpu.memory_space<smem>>
    %769 = vector.broadcast %768 : f32 to vector<2x256xf32>
    %770 = arith.mulf %7, %769 : vector<2x256xf32>
    %771 = arith.addf %767, %770 : vector<2x256xf32>
    %c17_387 = arith.constant 17 : index
    %c8_388 = arith.constant 8 : index
    %772 = memref.load %arg1[%c17_387, %c8_388] : memref<32x9xf32, #tpu.memory_space<smem>>
    %773 = vector.broadcast %772 : f32 to vector<2x256xf32>
    %774 = arith.mulf %8, %773 : vector<2x256xf32>
    %775 = arith.addf %771, %774 : vector<2x256xf32>
    %c17_389 = arith.constant 17 : index
    %776 = memref.load %arg2[%c17_389] : memref<32xf32, #tpu.memory_space<smem>>
    %777 = vector.broadcast %776 : f32 to vector<2x256xf32>
    %778 = arith.addf %775, %777 : vector<2x256xf32>
    %cst_390 = arith.constant 0.000000e+00 : f32
    %779 = vector.broadcast %cst_390 : f32 to vector<2x256xf32>
    %780 = arith.maximumf %778, %779 : vector<2x256xf32>
    %c4352 = arith.constant 4352 : index
    %c0_391 = arith.constant 0 : index
    %781 = vector.load %arg3[%c4352, %c0_391] : memref<8192x16xf32, #tpu.memory_space<vmem>>, vector<256x16xf32>
    %cst_392 = arith.constant dense<0.000000e+00> : vector<2x16xf32>
    %782 = tpu.matmul %780, %781, %cst_392 {dimension_numbers = #tpu.dot_dimension_numbers<[1], [0], [0], [1], [0, 0, 1, 1], [], []>} : vector<2x256xf32>, vector<256x16xf32>, vector<2x16xf32> -> vector<2x16xf32>
    %783 = arith.addf %740, %782 : vector<2x16xf32>
    %c18_393 = arith.constant 18 : index
    %c0_394 = arith.constant 0 : index
    %784 = memref.load %arg1[%c18_393, %c0_394] : memref<32x9xf32, #tpu.memory_space<smem>>
    %785 = vector.broadcast %784 : f32 to vector<2x256xf32>
    %786 = arith.mulf %0, %785 : vector<2x256xf32>
    %c18_395 = arith.constant 18 : index
    %c1_396 = arith.constant 1 : index
    %787 = memref.load %arg1[%c18_395, %c1_396] : memref<32x9xf32, #tpu.memory_space<smem>>
    %788 = vector.broadcast %787 : f32 to vector<2x256xf32>
    %789 = arith.mulf %1, %788 : vector<2x256xf32>
    %790 = arith.addf %786, %789 : vector<2x256xf32>
    %c18_397 = arith.constant 18 : index
    %c2_398 = arith.constant 2 : index
    %791 = memref.load %arg1[%c18_397, %c2_398] : memref<32x9xf32, #tpu.memory_space<smem>>
    %792 = vector.broadcast %791 : f32 to vector<2x256xf32>
    %793 = arith.mulf %2, %792 : vector<2x256xf32>
    %794 = arith.addf %790, %793 : vector<2x256xf32>
    %c18_399 = arith.constant 18 : index
    %c3_400 = arith.constant 3 : index
    %795 = memref.load %arg1[%c18_399, %c3_400] : memref<32x9xf32, #tpu.memory_space<smem>>
    %796 = vector.broadcast %795 : f32 to vector<2x256xf32>
    %797 = arith.mulf %3, %796 : vector<2x256xf32>
    %798 = arith.addf %794, %797 : vector<2x256xf32>
    %c18_401 = arith.constant 18 : index
    %c4_402 = arith.constant 4 : index
    %799 = memref.load %arg1[%c18_401, %c4_402] : memref<32x9xf32, #tpu.memory_space<smem>>
    %800 = vector.broadcast %799 : f32 to vector<2x256xf32>
    %801 = arith.mulf %4, %800 : vector<2x256xf32>
    %802 = arith.addf %798, %801 : vector<2x256xf32>
    %c18_403 = arith.constant 18 : index
    %c5_404 = arith.constant 5 : index
    %803 = memref.load %arg1[%c18_403, %c5_404] : memref<32x9xf32, #tpu.memory_space<smem>>
    %804 = vector.broadcast %803 : f32 to vector<2x256xf32>
    %805 = arith.mulf %5, %804 : vector<2x256xf32>
    %806 = arith.addf %802, %805 : vector<2x256xf32>
    %c18_405 = arith.constant 18 : index
    %c6_406 = arith.constant 6 : index
    %807 = memref.load %arg1[%c18_405, %c6_406] : memref<32x9xf32, #tpu.memory_space<smem>>
    %808 = vector.broadcast %807 : f32 to vector<2x256xf32>
    %809 = arith.mulf %6, %808 : vector<2x256xf32>
    %810 = arith.addf %806, %809 : vector<2x256xf32>
    %c18_407 = arith.constant 18 : index
    %c7_408 = arith.constant 7 : index
    %811 = memref.load %arg1[%c18_407, %c7_408] : memref<32x9xf32, #tpu.memory_space<smem>>
    %812 = vector.broadcast %811 : f32 to vector<2x256xf32>
    %813 = arith.mulf %7, %812 : vector<2x256xf32>
    %814 = arith.addf %810, %813 : vector<2x256xf32>
    %c18_409 = arith.constant 18 : index
    %c8_410 = arith.constant 8 : index
    %815 = memref.load %arg1[%c18_409, %c8_410] : memref<32x9xf32, #tpu.memory_space<smem>>
    %816 = vector.broadcast %815 : f32 to vector<2x256xf32>
    %817 = arith.mulf %8, %816 : vector<2x256xf32>
    %818 = arith.addf %814, %817 : vector<2x256xf32>
    %c18_411 = arith.constant 18 : index
    %819 = memref.load %arg2[%c18_411] : memref<32xf32, #tpu.memory_space<smem>>
    %820 = vector.broadcast %819 : f32 to vector<2x256xf32>
    %821 = arith.addf %818, %820 : vector<2x256xf32>
    %cst_412 = arith.constant 0.000000e+00 : f32
    %822 = vector.broadcast %cst_412 : f32 to vector<2x256xf32>
    %823 = arith.maximumf %821, %822 : vector<2x256xf32>
    %c4608 = arith.constant 4608 : index
    %c0_413 = arith.constant 0 : index
    %824 = vector.load %arg3[%c4608, %c0_413] : memref<8192x16xf32, #tpu.memory_space<vmem>>, vector<256x16xf32>
    %cst_414 = arith.constant dense<0.000000e+00> : vector<2x16xf32>
    %825 = tpu.matmul %823, %824, %cst_414 {dimension_numbers = #tpu.dot_dimension_numbers<[1], [0], [0], [1], [0, 0, 1, 1], [], []>} : vector<2x256xf32>, vector<256x16xf32>, vector<2x16xf32> -> vector<2x16xf32>
    %826 = arith.addf %783, %825 : vector<2x16xf32>
    %c19 = arith.constant 19 : index
    %c0_415 = arith.constant 0 : index
    %827 = memref.load %arg1[%c19, %c0_415] : memref<32x9xf32, #tpu.memory_space<smem>>
    %828 = vector.broadcast %827 : f32 to vector<2x256xf32>
    %829 = arith.mulf %0, %828 : vector<2x256xf32>
    %c19_416 = arith.constant 19 : index
    %c1_417 = arith.constant 1 : index
    %830 = memref.load %arg1[%c19_416, %c1_417] : memref<32x9xf32, #tpu.memory_space<smem>>
    %831 = vector.broadcast %830 : f32 to vector<2x256xf32>
    %832 = arith.mulf %1, %831 : vector<2x256xf32>
    %833 = arith.addf %829, %832 : vector<2x256xf32>
    %c19_418 = arith.constant 19 : index
    %c2_419 = arith.constant 2 : index
    %834 = memref.load %arg1[%c19_418, %c2_419] : memref<32x9xf32, #tpu.memory_space<smem>>
    %835 = vector.broadcast %834 : f32 to vector<2x256xf32>
    %836 = arith.mulf %2, %835 : vector<2x256xf32>
    %837 = arith.addf %833, %836 : vector<2x256xf32>
    %c19_420 = arith.constant 19 : index
    %c3_421 = arith.constant 3 : index
    %838 = memref.load %arg1[%c19_420, %c3_421] : memref<32x9xf32, #tpu.memory_space<smem>>
    %839 = vector.broadcast %838 : f32 to vector<2x256xf32>
    %840 = arith.mulf %3, %839 : vector<2x256xf32>
    %841 = arith.addf %837, %840 : vector<2x256xf32>
    %c19_422 = arith.constant 19 : index
    %c4_423 = arith.constant 4 : index
    %842 = memref.load %arg1[%c19_422, %c4_423] : memref<32x9xf32, #tpu.memory_space<smem>>
    %843 = vector.broadcast %842 : f32 to vector<2x256xf32>
    %844 = arith.mulf %4, %843 : vector<2x256xf32>
    %845 = arith.addf %841, %844 : vector<2x256xf32>
    %c19_424 = arith.constant 19 : index
    %c5_425 = arith.constant 5 : index
    %846 = memref.load %arg1[%c19_424, %c5_425] : memref<32x9xf32, #tpu.memory_space<smem>>
    %847 = vector.broadcast %846 : f32 to vector<2x256xf32>
    %848 = arith.mulf %5, %847 : vector<2x256xf32>
    %849 = arith.addf %845, %848 : vector<2x256xf32>
    %c19_426 = arith.constant 19 : index
    %c6_427 = arith.constant 6 : index
    %850 = memref.load %arg1[%c19_426, %c6_427] : memref<32x9xf32, #tpu.memory_space<smem>>
    %851 = vector.broadcast %850 : f32 to vector<2x256xf32>
    %852 = arith.mulf %6, %851 : vector<2x256xf32>
    %853 = arith.addf %849, %852 : vector<2x256xf32>
    %c19_428 = arith.constant 19 : index
    %c7_429 = arith.constant 7 : index
    %854 = memref.load %arg1[%c19_428, %c7_429] : memref<32x9xf32, #tpu.memory_space<smem>>
    %855 = vector.broadcast %854 : f32 to vector<2x256xf32>
    %856 = arith.mulf %7, %855 : vector<2x256xf32>
    %857 = arith.addf %853, %856 : vector<2x256xf32>
    %c19_430 = arith.constant 19 : index
    %c8_431 = arith.constant 8 : index
    %858 = memref.load %arg1[%c19_430, %c8_431] : memref<32x9xf32, #tpu.memory_space<smem>>
    %859 = vector.broadcast %858 : f32 to vector<2x256xf32>
    %860 = arith.mulf %8, %859 : vector<2x256xf32>
    %861 = arith.addf %857, %860 : vector<2x256xf32>
    %c19_432 = arith.constant 19 : index
    %862 = memref.load %arg2[%c19_432] : memref<32xf32, #tpu.memory_space<smem>>
    %863 = vector.broadcast %862 : f32 to vector<2x256xf32>
    %864 = arith.addf %861, %863 : vector<2x256xf32>
    %cst_433 = arith.constant 0.000000e+00 : f32
    %865 = vector.broadcast %cst_433 : f32 to vector<2x256xf32>
    %866 = arith.maximumf %864, %865 : vector<2x256xf32>
    %c4864 = arith.constant 4864 : index
    %c0_434 = arith.constant 0 : index
    %867 = vector.load %arg3[%c4864, %c0_434] : memref<8192x16xf32, #tpu.memory_space<vmem>>, vector<256x16xf32>
    %cst_435 = arith.constant dense<0.000000e+00> : vector<2x16xf32>
    %868 = tpu.matmul %866, %867, %cst_435 {dimension_numbers = #tpu.dot_dimension_numbers<[1], [0], [0], [1], [0, 0, 1, 1], [], []>} : vector<2x256xf32>, vector<256x16xf32>, vector<2x16xf32> -> vector<2x16xf32>
    %869 = arith.addf %826, %868 : vector<2x16xf32>
    %c20 = arith.constant 20 : index
    %c0_436 = arith.constant 0 : index
    %870 = memref.load %arg1[%c20, %c0_436] : memref<32x9xf32, #tpu.memory_space<smem>>
    %871 = vector.broadcast %870 : f32 to vector<2x256xf32>
    %872 = arith.mulf %0, %871 : vector<2x256xf32>
    %c20_437 = arith.constant 20 : index
    %c1_438 = arith.constant 1 : index
    %873 = memref.load %arg1[%c20_437, %c1_438] : memref<32x9xf32, #tpu.memory_space<smem>>
    %874 = vector.broadcast %873 : f32 to vector<2x256xf32>
    %875 = arith.mulf %1, %874 : vector<2x256xf32>
    %876 = arith.addf %872, %875 : vector<2x256xf32>
    %c20_439 = arith.constant 20 : index
    %c2_440 = arith.constant 2 : index
    %877 = memref.load %arg1[%c20_439, %c2_440] : memref<32x9xf32, #tpu.memory_space<smem>>
    %878 = vector.broadcast %877 : f32 to vector<2x256xf32>
    %879 = arith.mulf %2, %878 : vector<2x256xf32>
    %880 = arith.addf %876, %879 : vector<2x256xf32>
    %c20_441 = arith.constant 20 : index
    %c3_442 = arith.constant 3 : index
    %881 = memref.load %arg1[%c20_441, %c3_442] : memref<32x9xf32, #tpu.memory_space<smem>>
    %882 = vector.broadcast %881 : f32 to vector<2x256xf32>
    %883 = arith.mulf %3, %882 : vector<2x256xf32>
    %884 = arith.addf %880, %883 : vector<2x256xf32>
    %c20_443 = arith.constant 20 : index
    %c4_444 = arith.constant 4 : index
    %885 = memref.load %arg1[%c20_443, %c4_444] : memref<32x9xf32, #tpu.memory_space<smem>>
    %886 = vector.broadcast %885 : f32 to vector<2x256xf32>
    %887 = arith.mulf %4, %886 : vector<2x256xf32>
    %888 = arith.addf %884, %887 : vector<2x256xf32>
    %c20_445 = arith.constant 20 : index
    %c5_446 = arith.constant 5 : index
    %889 = memref.load %arg1[%c20_445, %c5_446] : memref<32x9xf32, #tpu.memory_space<smem>>
    %890 = vector.broadcast %889 : f32 to vector<2x256xf32>
    %891 = arith.mulf %5, %890 : vector<2x256xf32>
    %892 = arith.addf %888, %891 : vector<2x256xf32>
    %c20_447 = arith.constant 20 : index
    %c6_448 = arith.constant 6 : index
    %893 = memref.load %arg1[%c20_447, %c6_448] : memref<32x9xf32, #tpu.memory_space<smem>>
    %894 = vector.broadcast %893 : f32 to vector<2x256xf32>
    %895 = arith.mulf %6, %894 : vector<2x256xf32>
    %896 = arith.addf %892, %895 : vector<2x256xf32>
    %c20_449 = arith.constant 20 : index
    %c7_450 = arith.constant 7 : index
    %897 = memref.load %arg1[%c20_449, %c7_450] : memref<32x9xf32, #tpu.memory_space<smem>>
    %898 = vector.broadcast %897 : f32 to vector<2x256xf32>
    %899 = arith.mulf %7, %898 : vector<2x256xf32>
    %900 = arith.addf %896, %899 : vector<2x256xf32>
    %c20_451 = arith.constant 20 : index
    %c8_452 = arith.constant 8 : index
    %901 = memref.load %arg1[%c20_451, %c8_452] : memref<32x9xf32, #tpu.memory_space<smem>>
    %902 = vector.broadcast %901 : f32 to vector<2x256xf32>
    %903 = arith.mulf %8, %902 : vector<2x256xf32>
    %904 = arith.addf %900, %903 : vector<2x256xf32>
    %c20_453 = arith.constant 20 : index
    %905 = memref.load %arg2[%c20_453] : memref<32xf32, #tpu.memory_space<smem>>
    %906 = vector.broadcast %905 : f32 to vector<2x256xf32>
    %907 = arith.addf %904, %906 : vector<2x256xf32>
    %cst_454 = arith.constant 0.000000e+00 : f32
    %908 = vector.broadcast %cst_454 : f32 to vector<2x256xf32>
    %909 = arith.maximumf %907, %908 : vector<2x256xf32>
    %c5120 = arith.constant 5120 : index
    %c0_455 = arith.constant 0 : index
    %910 = vector.load %arg3[%c5120, %c0_455] : memref<8192x16xf32, #tpu.memory_space<vmem>>, vector<256x16xf32>
    %cst_456 = arith.constant dense<0.000000e+00> : vector<2x16xf32>
    %911 = tpu.matmul %909, %910, %cst_456 {dimension_numbers = #tpu.dot_dimension_numbers<[1], [0], [0], [1], [0, 0, 1, 1], [], []>} : vector<2x256xf32>, vector<256x16xf32>, vector<2x16xf32> -> vector<2x16xf32>
    %912 = arith.addf %869, %911 : vector<2x16xf32>
    %c21 = arith.constant 21 : index
    %c0_457 = arith.constant 0 : index
    %913 = memref.load %arg1[%c21, %c0_457] : memref<32x9xf32, #tpu.memory_space<smem>>
    %914 = vector.broadcast %913 : f32 to vector<2x256xf32>
    %915 = arith.mulf %0, %914 : vector<2x256xf32>
    %c21_458 = arith.constant 21 : index
    %c1_459 = arith.constant 1 : index
    %916 = memref.load %arg1[%c21_458, %c1_459] : memref<32x9xf32, #tpu.memory_space<smem>>
    %917 = vector.broadcast %916 : f32 to vector<2x256xf32>
    %918 = arith.mulf %1, %917 : vector<2x256xf32>
    %919 = arith.addf %915, %918 : vector<2x256xf32>
    %c21_460 = arith.constant 21 : index
    %c2_461 = arith.constant 2 : index
    %920 = memref.load %arg1[%c21_460, %c2_461] : memref<32x9xf32, #tpu.memory_space<smem>>
    %921 = vector.broadcast %920 : f32 to vector<2x256xf32>
    %922 = arith.mulf %2, %921 : vector<2x256xf32>
    %923 = arith.addf %919, %922 : vector<2x256xf32>
    %c21_462 = arith.constant 21 : index
    %c3_463 = arith.constant 3 : index
    %924 = memref.load %arg1[%c21_462, %c3_463] : memref<32x9xf32, #tpu.memory_space<smem>>
    %925 = vector.broadcast %924 : f32 to vector<2x256xf32>
    %926 = arith.mulf %3, %925 : vector<2x256xf32>
    %927 = arith.addf %923, %926 : vector<2x256xf32>
    %c21_464 = arith.constant 21 : index
    %c4_465 = arith.constant 4 : index
    %928 = memref.load %arg1[%c21_464, %c4_465] : memref<32x9xf32, #tpu.memory_space<smem>>
    %929 = vector.broadcast %928 : f32 to vector<2x256xf32>
    %930 = arith.mulf %4, %929 : vector<2x256xf32>
    %931 = arith.addf %927, %930 : vector<2x256xf32>
    %c21_466 = arith.constant 21 : index
    %c5_467 = arith.constant 5 : index
    %932 = memref.load %arg1[%c21_466, %c5_467] : memref<32x9xf32, #tpu.memory_space<smem>>
    %933 = vector.broadcast %932 : f32 to vector<2x256xf32>
    %934 = arith.mulf %5, %933 : vector<2x256xf32>
    %935 = arith.addf %931, %934 : vector<2x256xf32>
    %c21_468 = arith.constant 21 : index
    %c6_469 = arith.constant 6 : index
    %936 = memref.load %arg1[%c21_468, %c6_469] : memref<32x9xf32, #tpu.memory_space<smem>>
    %937 = vector.broadcast %936 : f32 to vector<2x256xf32>
    %938 = arith.mulf %6, %937 : vector<2x256xf32>
    %939 = arith.addf %935, %938 : vector<2x256xf32>
    %c21_470 = arith.constant 21 : index
    %c7_471 = arith.constant 7 : index
    %940 = memref.load %arg1[%c21_470, %c7_471] : memref<32x9xf32, #tpu.memory_space<smem>>
    %941 = vector.broadcast %940 : f32 to vector<2x256xf32>
    %942 = arith.mulf %7, %941 : vector<2x256xf32>
    %943 = arith.addf %939, %942 : vector<2x256xf32>
    %c21_472 = arith.constant 21 : index
    %c8_473 = arith.constant 8 : index
    %944 = memref.load %arg1[%c21_472, %c8_473] : memref<32x9xf32, #tpu.memory_space<smem>>
    %945 = vector.broadcast %944 : f32 to vector<2x256xf32>
    %946 = arith.mulf %8, %945 : vector<2x256xf32>
    %947 = arith.addf %943, %946 : vector<2x256xf32>
    %c21_474 = arith.constant 21 : index
    %948 = memref.load %arg2[%c21_474] : memref<32xf32, #tpu.memory_space<smem>>
    %949 = vector.broadcast %948 : f32 to vector<2x256xf32>
    %950 = arith.addf %947, %949 : vector<2x256xf32>
    %cst_475 = arith.constant 0.000000e+00 : f32
    %951 = vector.broadcast %cst_475 : f32 to vector<2x256xf32>
    %952 = arith.maximumf %950, %951 : vector<2x256xf32>
    %c5376 = arith.constant 5376 : index
    %c0_476 = arith.constant 0 : index
    %953 = vector.load %arg3[%c5376, %c0_476] : memref<8192x16xf32, #tpu.memory_space<vmem>>, vector<256x16xf32>
    %cst_477 = arith.constant dense<0.000000e+00> : vector<2x16xf32>
    %954 = tpu.matmul %952, %953, %cst_477 {dimension_numbers = #tpu.dot_dimension_numbers<[1], [0], [0], [1], [0, 0, 1, 1], [], []>} : vector<2x256xf32>, vector<256x16xf32>, vector<2x16xf32> -> vector<2x16xf32>
    %955 = arith.addf %912, %954 : vector<2x16xf32>
    %c22 = arith.constant 22 : index
    %c0_478 = arith.constant 0 : index
    %956 = memref.load %arg1[%c22, %c0_478] : memref<32x9xf32, #tpu.memory_space<smem>>
    %957 = vector.broadcast %956 : f32 to vector<2x256xf32>
    %958 = arith.mulf %0, %957 : vector<2x256xf32>
    %c22_479 = arith.constant 22 : index
    %c1_480 = arith.constant 1 : index
    %959 = memref.load %arg1[%c22_479, %c1_480] : memref<32x9xf32, #tpu.memory_space<smem>>
    %960 = vector.broadcast %959 : f32 to vector<2x256xf32>
    %961 = arith.mulf %1, %960 : vector<2x256xf32>
    %962 = arith.addf %958, %961 : vector<2x256xf32>
    %c22_481 = arith.constant 22 : index
    %c2_482 = arith.constant 2 : index
    %963 = memref.load %arg1[%c22_481, %c2_482] : memref<32x9xf32, #tpu.memory_space<smem>>
    %964 = vector.broadcast %963 : f32 to vector<2x256xf32>
    %965 = arith.mulf %2, %964 : vector<2x256xf32>
    %966 = arith.addf %962, %965 : vector<2x256xf32>
    %c22_483 = arith.constant 22 : index
    %c3_484 = arith.constant 3 : index
    %967 = memref.load %arg1[%c22_483, %c3_484] : memref<32x9xf32, #tpu.memory_space<smem>>
    %968 = vector.broadcast %967 : f32 to vector<2x256xf32>
    %969 = arith.mulf %3, %968 : vector<2x256xf32>
    %970 = arith.addf %966, %969 : vector<2x256xf32>
    %c22_485 = arith.constant 22 : index
    %c4_486 = arith.constant 4 : index
    %971 = memref.load %arg1[%c22_485, %c4_486] : memref<32x9xf32, #tpu.memory_space<smem>>
    %972 = vector.broadcast %971 : f32 to vector<2x256xf32>
    %973 = arith.mulf %4, %972 : vector<2x256xf32>
    %974 = arith.addf %970, %973 : vector<2x256xf32>
    %c22_487 = arith.constant 22 : index
    %c5_488 = arith.constant 5 : index
    %975 = memref.load %arg1[%c22_487, %c5_488] : memref<32x9xf32, #tpu.memory_space<smem>>
    %976 = vector.broadcast %975 : f32 to vector<2x256xf32>
    %977 = arith.mulf %5, %976 : vector<2x256xf32>
    %978 = arith.addf %974, %977 : vector<2x256xf32>
    %c22_489 = arith.constant 22 : index
    %c6_490 = arith.constant 6 : index
    %979 = memref.load %arg1[%c22_489, %c6_490] : memref<32x9xf32, #tpu.memory_space<smem>>
    %980 = vector.broadcast %979 : f32 to vector<2x256xf32>
    %981 = arith.mulf %6, %980 : vector<2x256xf32>
    %982 = arith.addf %978, %981 : vector<2x256xf32>
    %c22_491 = arith.constant 22 : index
    %c7_492 = arith.constant 7 : index
    %983 = memref.load %arg1[%c22_491, %c7_492] : memref<32x9xf32, #tpu.memory_space<smem>>
    %984 = vector.broadcast %983 : f32 to vector<2x256xf32>
    %985 = arith.mulf %7, %984 : vector<2x256xf32>
    %986 = arith.addf %982, %985 : vector<2x256xf32>
    %c22_493 = arith.constant 22 : index
    %c8_494 = arith.constant 8 : index
    %987 = memref.load %arg1[%c22_493, %c8_494] : memref<32x9xf32, #tpu.memory_space<smem>>
    %988 = vector.broadcast %987 : f32 to vector<2x256xf32>
    %989 = arith.mulf %8, %988 : vector<2x256xf32>
    %990 = arith.addf %986, %989 : vector<2x256xf32>
    %c22_495 = arith.constant 22 : index
    %991 = memref.load %arg2[%c22_495] : memref<32xf32, #tpu.memory_space<smem>>
    %992 = vector.broadcast %991 : f32 to vector<2x256xf32>
    %993 = arith.addf %990, %992 : vector<2x256xf32>
    %cst_496 = arith.constant 0.000000e+00 : f32
    %994 = vector.broadcast %cst_496 : f32 to vector<2x256xf32>
    %995 = arith.maximumf %993, %994 : vector<2x256xf32>
    %c5632 = arith.constant 5632 : index
    %c0_497 = arith.constant 0 : index
    %996 = vector.load %arg3[%c5632, %c0_497] : memref<8192x16xf32, #tpu.memory_space<vmem>>, vector<256x16xf32>
    %cst_498 = arith.constant dense<0.000000e+00> : vector<2x16xf32>
    %997 = tpu.matmul %995, %996, %cst_498 {dimension_numbers = #tpu.dot_dimension_numbers<[1], [0], [0], [1], [0, 0, 1, 1], [], []>} : vector<2x256xf32>, vector<256x16xf32>, vector<2x16xf32> -> vector<2x16xf32>
    %998 = arith.addf %955, %997 : vector<2x16xf32>
    %c23 = arith.constant 23 : index
    %c0_499 = arith.constant 0 : index
    %999 = memref.load %arg1[%c23, %c0_499] : memref<32x9xf32, #tpu.memory_space<smem>>
    %1000 = vector.broadcast %999 : f32 to vector<2x256xf32>
    %1001 = arith.mulf %0, %1000 : vector<2x256xf32>
    %c23_500 = arith.constant 23 : index
    %c1_501 = arith.constant 1 : index
    %1002 = memref.load %arg1[%c23_500, %c1_501] : memref<32x9xf32, #tpu.memory_space<smem>>
    %1003 = vector.broadcast %1002 : f32 to vector<2x256xf32>
    %1004 = arith.mulf %1, %1003 : vector<2x256xf32>
    %1005 = arith.addf %1001, %1004 : vector<2x256xf32>
    %c23_502 = arith.constant 23 : index
    %c2_503 = arith.constant 2 : index
    %1006 = memref.load %arg1[%c23_502, %c2_503] : memref<32x9xf32, #tpu.memory_space<smem>>
    %1007 = vector.broadcast %1006 : f32 to vector<2x256xf32>
    %1008 = arith.mulf %2, %1007 : vector<2x256xf32>
    %1009 = arith.addf %1005, %1008 : vector<2x256xf32>
    %c23_504 = arith.constant 23 : index
    %c3_505 = arith.constant 3 : index
    %1010 = memref.load %arg1[%c23_504, %c3_505] : memref<32x9xf32, #tpu.memory_space<smem>>
    %1011 = vector.broadcast %1010 : f32 to vector<2x256xf32>
    %1012 = arith.mulf %3, %1011 : vector<2x256xf32>
    %1013 = arith.addf %1009, %1012 : vector<2x256xf32>
    %c23_506 = arith.constant 23 : index
    %c4_507 = arith.constant 4 : index
    %1014 = memref.load %arg1[%c23_506, %c4_507] : memref<32x9xf32, #tpu.memory_space<smem>>
    %1015 = vector.broadcast %1014 : f32 to vector<2x256xf32>
    %1016 = arith.mulf %4, %1015 : vector<2x256xf32>
    %1017 = arith.addf %1013, %1016 : vector<2x256xf32>
    %c23_508 = arith.constant 23 : index
    %c5_509 = arith.constant 5 : index
    %1018 = memref.load %arg1[%c23_508, %c5_509] : memref<32x9xf32, #tpu.memory_space<smem>>
    %1019 = vector.broadcast %1018 : f32 to vector<2x256xf32>
    %1020 = arith.mulf %5, %1019 : vector<2x256xf32>
    %1021 = arith.addf %1017, %1020 : vector<2x256xf32>
    %c23_510 = arith.constant 23 : index
    %c6_511 = arith.constant 6 : index
    %1022 = memref.load %arg1[%c23_510, %c6_511] : memref<32x9xf32, #tpu.memory_space<smem>>
    %1023 = vector.broadcast %1022 : f32 to vector<2x256xf32>
    %1024 = arith.mulf %6, %1023 : vector<2x256xf32>
    %1025 = arith.addf %1021, %1024 : vector<2x256xf32>
    %c23_512 = arith.constant 23 : index
    %c7_513 = arith.constant 7 : index
    %1026 = memref.load %arg1[%c23_512, %c7_513] : memref<32x9xf32, #tpu.memory_space<smem>>
    %1027 = vector.broadcast %1026 : f32 to vector<2x256xf32>
    %1028 = arith.mulf %7, %1027 : vector<2x256xf32>
    %1029 = arith.addf %1025, %1028 : vector<2x256xf32>
    %c23_514 = arith.constant 23 : index
    %c8_515 = arith.constant 8 : index
    %1030 = memref.load %arg1[%c23_514, %c8_515] : memref<32x9xf32, #tpu.memory_space<smem>>
    %1031 = vector.broadcast %1030 : f32 to vector<2x256xf32>
    %1032 = arith.mulf %8, %1031 : vector<2x256xf32>
    %1033 = arith.addf %1029, %1032 : vector<2x256xf32>
    %c23_516 = arith.constant 23 : index
    %1034 = memref.load %arg2[%c23_516] : memref<32xf32, #tpu.memory_space<smem>>
    %1035 = vector.broadcast %1034 : f32 to vector<2x256xf32>
    %1036 = arith.addf %1033, %1035 : vector<2x256xf32>
    %cst_517 = arith.constant 0.000000e+00 : f32
    %1037 = vector.broadcast %cst_517 : f32 to vector<2x256xf32>
    %1038 = arith.maximumf %1036, %1037 : vector<2x256xf32>
    %c5888 = arith.constant 5888 : index
    %c0_518 = arith.constant 0 : index
    %1039 = vector.load %arg3[%c5888, %c0_518] : memref<8192x16xf32, #tpu.memory_space<vmem>>, vector<256x16xf32>
    %cst_519 = arith.constant dense<0.000000e+00> : vector<2x16xf32>
    %1040 = tpu.matmul %1038, %1039, %cst_519 {dimension_numbers = #tpu.dot_dimension_numbers<[1], [0], [0], [1], [0, 0, 1, 1], [], []>} : vector<2x256xf32>, vector<256x16xf32>, vector<2x16xf32> -> vector<2x16xf32>
    %1041 = arith.addf %998, %1040 : vector<2x16xf32>
    %c24 = arith.constant 24 : index
    %c0_520 = arith.constant 0 : index
    %1042 = memref.load %arg1[%c24, %c0_520] : memref<32x9xf32, #tpu.memory_space<smem>>
    %1043 = vector.broadcast %1042 : f32 to vector<2x256xf32>
    %1044 = arith.mulf %0, %1043 : vector<2x256xf32>
    %c24_521 = arith.constant 24 : index
    %c1_522 = arith.constant 1 : index
    %1045 = memref.load %arg1[%c24_521, %c1_522] : memref<32x9xf32, #tpu.memory_space<smem>>
    %1046 = vector.broadcast %1045 : f32 to vector<2x256xf32>
    %1047 = arith.mulf %1, %1046 : vector<2x256xf32>
    %1048 = arith.addf %1044, %1047 : vector<2x256xf32>
    %c24_523 = arith.constant 24 : index
    %c2_524 = arith.constant 2 : index
    %1049 = memref.load %arg1[%c24_523, %c2_524] : memref<32x9xf32, #tpu.memory_space<smem>>
    %1050 = vector.broadcast %1049 : f32 to vector<2x256xf32>
    %1051 = arith.mulf %2, %1050 : vector<2x256xf32>
    %1052 = arith.addf %1048, %1051 : vector<2x256xf32>
    %c24_525 = arith.constant 24 : index
    %c3_526 = arith.constant 3 : index
    %1053 = memref.load %arg1[%c24_525, %c3_526] : memref<32x9xf32, #tpu.memory_space<smem>>
    %1054 = vector.broadcast %1053 : f32 to vector<2x256xf32>
    %1055 = arith.mulf %3, %1054 : vector<2x256xf32>
    %1056 = arith.addf %1052, %1055 : vector<2x256xf32>
    %c24_527 = arith.constant 24 : index
    %c4_528 = arith.constant 4 : index
    %1057 = memref.load %arg1[%c24_527, %c4_528] : memref<32x9xf32, #tpu.memory_space<smem>>
    %1058 = vector.broadcast %1057 : f32 to vector<2x256xf32>
    %1059 = arith.mulf %4, %1058 : vector<2x256xf32>
    %1060 = arith.addf %1056, %1059 : vector<2x256xf32>
    %c24_529 = arith.constant 24 : index
    %c5_530 = arith.constant 5 : index
    %1061 = memref.load %arg1[%c24_529, %c5_530] : memref<32x9xf32, #tpu.memory_space<smem>>
    %1062 = vector.broadcast %1061 : f32 to vector<2x256xf32>
    %1063 = arith.mulf %5, %1062 : vector<2x256xf32>
    %1064 = arith.addf %1060, %1063 : vector<2x256xf32>
    %c24_531 = arith.constant 24 : index
    %c6_532 = arith.constant 6 : index
    %1065 = memref.load %arg1[%c24_531, %c6_532] : memref<32x9xf32, #tpu.memory_space<smem>>
    %1066 = vector.broadcast %1065 : f32 to vector<2x256xf32>
    %1067 = arith.mulf %6, %1066 : vector<2x256xf32>
    %1068 = arith.addf %1064, %1067 : vector<2x256xf32>
    %c24_533 = arith.constant 24 : index
    %c7_534 = arith.constant 7 : index
    %1069 = memref.load %arg1[%c24_533, %c7_534] : memref<32x9xf32, #tpu.memory_space<smem>>
    %1070 = vector.broadcast %1069 : f32 to vector<2x256xf32>
    %1071 = arith.mulf %7, %1070 : vector<2x256xf32>
    %1072 = arith.addf %1068, %1071 : vector<2x256xf32>
    %c24_535 = arith.constant 24 : index
    %c8_536 = arith.constant 8 : index
    %1073 = memref.load %arg1[%c24_535, %c8_536] : memref<32x9xf32, #tpu.memory_space<smem>>
    %1074 = vector.broadcast %1073 : f32 to vector<2x256xf32>
    %1075 = arith.mulf %8, %1074 : vector<2x256xf32>
    %1076 = arith.addf %1072, %1075 : vector<2x256xf32>
    %c24_537 = arith.constant 24 : index
    %1077 = memref.load %arg2[%c24_537] : memref<32xf32, #tpu.memory_space<smem>>
    %1078 = vector.broadcast %1077 : f32 to vector<2x256xf32>
    %1079 = arith.addf %1076, %1078 : vector<2x256xf32>
    %cst_538 = arith.constant 0.000000e+00 : f32
    %1080 = vector.broadcast %cst_538 : f32 to vector<2x256xf32>
    %1081 = arith.maximumf %1079, %1080 : vector<2x256xf32>
    %c6144 = arith.constant 6144 : index
    %c0_539 = arith.constant 0 : index
    %1082 = vector.load %arg3[%c6144, %c0_539] : memref<8192x16xf32, #tpu.memory_space<vmem>>, vector<256x16xf32>
    %cst_540 = arith.constant dense<0.000000e+00> : vector<2x16xf32>
    %1083 = tpu.matmul %1081, %1082, %cst_540 {dimension_numbers = #tpu.dot_dimension_numbers<[1], [0], [0], [1], [0, 0, 1, 1], [], []>} : vector<2x256xf32>, vector<256x16xf32>, vector<2x16xf32> -> vector<2x16xf32>
    %1084 = arith.addf %1041, %1083 : vector<2x16xf32>
    %c25 = arith.constant 25 : index
    %c0_541 = arith.constant 0 : index
    %1085 = memref.load %arg1[%c25, %c0_541] : memref<32x9xf32, #tpu.memory_space<smem>>
    %1086 = vector.broadcast %1085 : f32 to vector<2x256xf32>
    %1087 = arith.mulf %0, %1086 : vector<2x256xf32>
    %c25_542 = arith.constant 25 : index
    %c1_543 = arith.constant 1 : index
    %1088 = memref.load %arg1[%c25_542, %c1_543] : memref<32x9xf32, #tpu.memory_space<smem>>
    %1089 = vector.broadcast %1088 : f32 to vector<2x256xf32>
    %1090 = arith.mulf %1, %1089 : vector<2x256xf32>
    %1091 = arith.addf %1087, %1090 : vector<2x256xf32>
    %c25_544 = arith.constant 25 : index
    %c2_545 = arith.constant 2 : index
    %1092 = memref.load %arg1[%c25_544, %c2_545] : memref<32x9xf32, #tpu.memory_space<smem>>
    %1093 = vector.broadcast %1092 : f32 to vector<2x256xf32>
    %1094 = arith.mulf %2, %1093 : vector<2x256xf32>
    %1095 = arith.addf %1091, %1094 : vector<2x256xf32>
    %c25_546 = arith.constant 25 : index
    %c3_547 = arith.constant 3 : index
    %1096 = memref.load %arg1[%c25_546, %c3_547] : memref<32x9xf32, #tpu.memory_space<smem>>
    %1097 = vector.broadcast %1096 : f32 to vector<2x256xf32>
    %1098 = arith.mulf %3, %1097 : vector<2x256xf32>
    %1099 = arith.addf %1095, %1098 : vector<2x256xf32>
    %c25_548 = arith.constant 25 : index
    %c4_549 = arith.constant 4 : index
    %1100 = memref.load %arg1[%c25_548, %c4_549] : memref<32x9xf32, #tpu.memory_space<smem>>
    %1101 = vector.broadcast %1100 : f32 to vector<2x256xf32>
    %1102 = arith.mulf %4, %1101 : vector<2x256xf32>
    %1103 = arith.addf %1099, %1102 : vector<2x256xf32>
    %c25_550 = arith.constant 25 : index
    %c5_551 = arith.constant 5 : index
    %1104 = memref.load %arg1[%c25_550, %c5_551] : memref<32x9xf32, #tpu.memory_space<smem>>
    %1105 = vector.broadcast %1104 : f32 to vector<2x256xf32>
    %1106 = arith.mulf %5, %1105 : vector<2x256xf32>
    %1107 = arith.addf %1103, %1106 : vector<2x256xf32>
    %c25_552 = arith.constant 25 : index
    %c6_553 = arith.constant 6 : index
    %1108 = memref.load %arg1[%c25_552, %c6_553] : memref<32x9xf32, #tpu.memory_space<smem>>
    %1109 = vector.broadcast %1108 : f32 to vector<2x256xf32>
    %1110 = arith.mulf %6, %1109 : vector<2x256xf32>
    %1111 = arith.addf %1107, %1110 : vector<2x256xf32>
    %c25_554 = arith.constant 25 : index
    %c7_555 = arith.constant 7 : index
    %1112 = memref.load %arg1[%c25_554, %c7_555] : memref<32x9xf32, #tpu.memory_space<smem>>
    %1113 = vector.broadcast %1112 : f32 to vector<2x256xf32>
    %1114 = arith.mulf %7, %1113 : vector<2x256xf32>
    %1115 = arith.addf %1111, %1114 : vector<2x256xf32>
    %c25_556 = arith.constant 25 : index
    %c8_557 = arith.constant 8 : index
    %1116 = memref.load %arg1[%c25_556, %c8_557] : memref<32x9xf32, #tpu.memory_space<smem>>
    %1117 = vector.broadcast %1116 : f32 to vector<2x256xf32>
    %1118 = arith.mulf %8, %1117 : vector<2x256xf32>
    %1119 = arith.addf %1115, %1118 : vector<2x256xf32>
    %c25_558 = arith.constant 25 : index
    %1120 = memref.load %arg2[%c25_558] : memref<32xf32, #tpu.memory_space<smem>>
    %1121 = vector.broadcast %1120 : f32 to vector<2x256xf32>
    %1122 = arith.addf %1119, %1121 : vector<2x256xf32>
    %cst_559 = arith.constant 0.000000e+00 : f32
    %1123 = vector.broadcast %cst_559 : f32 to vector<2x256xf32>
    %1124 = arith.maximumf %1122, %1123 : vector<2x256xf32>
    %c6400 = arith.constant 6400 : index
    %c0_560 = arith.constant 0 : index
    %1125 = vector.load %arg3[%c6400, %c0_560] : memref<8192x16xf32, #tpu.memory_space<vmem>>, vector<256x16xf32>
    %cst_561 = arith.constant dense<0.000000e+00> : vector<2x16xf32>
    %1126 = tpu.matmul %1124, %1125, %cst_561 {dimension_numbers = #tpu.dot_dimension_numbers<[1], [0], [0], [1], [0, 0, 1, 1], [], []>} : vector<2x256xf32>, vector<256x16xf32>, vector<2x16xf32> -> vector<2x16xf32>
    %1127 = arith.addf %1084, %1126 : vector<2x16xf32>
    %c26 = arith.constant 26 : index
    %c0_562 = arith.constant 0 : index
    %1128 = memref.load %arg1[%c26, %c0_562] : memref<32x9xf32, #tpu.memory_space<smem>>
    %1129 = vector.broadcast %1128 : f32 to vector<2x256xf32>
    %1130 = arith.mulf %0, %1129 : vector<2x256xf32>
    %c26_563 = arith.constant 26 : index
    %c1_564 = arith.constant 1 : index
    %1131 = memref.load %arg1[%c26_563, %c1_564] : memref<32x9xf32, #tpu.memory_space<smem>>
    %1132 = vector.broadcast %1131 : f32 to vector<2x256xf32>
    %1133 = arith.mulf %1, %1132 : vector<2x256xf32>
    %1134 = arith.addf %1130, %1133 : vector<2x256xf32>
    %c26_565 = arith.constant 26 : index
    %c2_566 = arith.constant 2 : index
    %1135 = memref.load %arg1[%c26_565, %c2_566] : memref<32x9xf32, #tpu.memory_space<smem>>
    %1136 = vector.broadcast %1135 : f32 to vector<2x256xf32>
    %1137 = arith.mulf %2, %1136 : vector<2x256xf32>
    %1138 = arith.addf %1134, %1137 : vector<2x256xf32>
    %c26_567 = arith.constant 26 : index
    %c3_568 = arith.constant 3 : index
    %1139 = memref.load %arg1[%c26_567, %c3_568] : memref<32x9xf32, #tpu.memory_space<smem>>
    %1140 = vector.broadcast %1139 : f32 to vector<2x256xf32>
    %1141 = arith.mulf %3, %1140 : vector<2x256xf32>
    %1142 = arith.addf %1138, %1141 : vector<2x256xf32>
    %c26_569 = arith.constant 26 : index
    %c4_570 = arith.constant 4 : index
    %1143 = memref.load %arg1[%c26_569, %c4_570] : memref<32x9xf32, #tpu.memory_space<smem>>
    %1144 = vector.broadcast %1143 : f32 to vector<2x256xf32>
    %1145 = arith.mulf %4, %1144 : vector<2x256xf32>
    %1146 = arith.addf %1142, %1145 : vector<2x256xf32>
    %c26_571 = arith.constant 26 : index
    %c5_572 = arith.constant 5 : index
    %1147 = memref.load %arg1[%c26_571, %c5_572] : memref<32x9xf32, #tpu.memory_space<smem>>
    %1148 = vector.broadcast %1147 : f32 to vector<2x256xf32>
    %1149 = arith.mulf %5, %1148 : vector<2x256xf32>
    %1150 = arith.addf %1146, %1149 : vector<2x256xf32>
    %c26_573 = arith.constant 26 : index
    %c6_574 = arith.constant 6 : index
    %1151 = memref.load %arg1[%c26_573, %c6_574] : memref<32x9xf32, #tpu.memory_space<smem>>
    %1152 = vector.broadcast %1151 : f32 to vector<2x256xf32>
    %1153 = arith.mulf %6, %1152 : vector<2x256xf32>
    %1154 = arith.addf %1150, %1153 : vector<2x256xf32>
    %c26_575 = arith.constant 26 : index
    %c7_576 = arith.constant 7 : index
    %1155 = memref.load %arg1[%c26_575, %c7_576] : memref<32x9xf32, #tpu.memory_space<smem>>
    %1156 = vector.broadcast %1155 : f32 to vector<2x256xf32>
    %1157 = arith.mulf %7, %1156 : vector<2x256xf32>
    %1158 = arith.addf %1154, %1157 : vector<2x256xf32>
    %c26_577 = arith.constant 26 : index
    %c8_578 = arith.constant 8 : index
    %1159 = memref.load %arg1[%c26_577, %c8_578] : memref<32x9xf32, #tpu.memory_space<smem>>
    %1160 = vector.broadcast %1159 : f32 to vector<2x256xf32>
    %1161 = arith.mulf %8, %1160 : vector<2x256xf32>
    %1162 = arith.addf %1158, %1161 : vector<2x256xf32>
    %c26_579 = arith.constant 26 : index
    %1163 = memref.load %arg2[%c26_579] : memref<32xf32, #tpu.memory_space<smem>>
    %1164 = vector.broadcast %1163 : f32 to vector<2x256xf32>
    %1165 = arith.addf %1162, %1164 : vector<2x256xf32>
    %cst_580 = arith.constant 0.000000e+00 : f32
    %1166 = vector.broadcast %cst_580 : f32 to vector<2x256xf32>
    %1167 = arith.maximumf %1165, %1166 : vector<2x256xf32>
    %c6656 = arith.constant 6656 : index
    %c0_581 = arith.constant 0 : index
    %1168 = vector.load %arg3[%c6656, %c0_581] : memref<8192x16xf32, #tpu.memory_space<vmem>>, vector<256x16xf32>
    %cst_582 = arith.constant dense<0.000000e+00> : vector<2x16xf32>
    %1169 = tpu.matmul %1167, %1168, %cst_582 {dimension_numbers = #tpu.dot_dimension_numbers<[1], [0], [0], [1], [0, 0, 1, 1], [], []>} : vector<2x256xf32>, vector<256x16xf32>, vector<2x16xf32> -> vector<2x16xf32>
    %1170 = arith.addf %1127, %1169 : vector<2x16xf32>
    %c27 = arith.constant 27 : index
    %c0_583 = arith.constant 0 : index
    %1171 = memref.load %arg1[%c27, %c0_583] : memref<32x9xf32, #tpu.memory_space<smem>>
    %1172 = vector.broadcast %1171 : f32 to vector<2x256xf32>
    %1173 = arith.mulf %0, %1172 : vector<2x256xf32>
    %c27_584 = arith.constant 27 : index
    %c1_585 = arith.constant 1 : index
    %1174 = memref.load %arg1[%c27_584, %c1_585] : memref<32x9xf32, #tpu.memory_space<smem>>
    %1175 = vector.broadcast %1174 : f32 to vector<2x256xf32>
    %1176 = arith.mulf %1, %1175 : vector<2x256xf32>
    %1177 = arith.addf %1173, %1176 : vector<2x256xf32>
    %c27_586 = arith.constant 27 : index
    %c2_587 = arith.constant 2 : index
    %1178 = memref.load %arg1[%c27_586, %c2_587] : memref<32x9xf32, #tpu.memory_space<smem>>
    %1179 = vector.broadcast %1178 : f32 to vector<2x256xf32>
    %1180 = arith.mulf %2, %1179 : vector<2x256xf32>
    %1181 = arith.addf %1177, %1180 : vector<2x256xf32>
    %c27_588 = arith.constant 27 : index
    %c3_589 = arith.constant 3 : index
    %1182 = memref.load %arg1[%c27_588, %c3_589] : memref<32x9xf32, #tpu.memory_space<smem>>
    %1183 = vector.broadcast %1182 : f32 to vector<2x256xf32>
    %1184 = arith.mulf %3, %1183 : vector<2x256xf32>
    %1185 = arith.addf %1181, %1184 : vector<2x256xf32>
    %c27_590 = arith.constant 27 : index
    %c4_591 = arith.constant 4 : index
    %1186 = memref.load %arg1[%c27_590, %c4_591] : memref<32x9xf32, #tpu.memory_space<smem>>
    %1187 = vector.broadcast %1186 : f32 to vector<2x256xf32>
    %1188 = arith.mulf %4, %1187 : vector<2x256xf32>
    %1189 = arith.addf %1185, %1188 : vector<2x256xf32>
    %c27_592 = arith.constant 27 : index
    %c5_593 = arith.constant 5 : index
    %1190 = memref.load %arg1[%c27_592, %c5_593] : memref<32x9xf32, #tpu.memory_space<smem>>
    %1191 = vector.broadcast %1190 : f32 to vector<2x256xf32>
    %1192 = arith.mulf %5, %1191 : vector<2x256xf32>
    %1193 = arith.addf %1189, %1192 : vector<2x256xf32>
    %c27_594 = arith.constant 27 : index
    %c6_595 = arith.constant 6 : index
    %1194 = memref.load %arg1[%c27_594, %c6_595] : memref<32x9xf32, #tpu.memory_space<smem>>
    %1195 = vector.broadcast %1194 : f32 to vector<2x256xf32>
    %1196 = arith.mulf %6, %1195 : vector<2x256xf32>
    %1197 = arith.addf %1193, %1196 : vector<2x256xf32>
    %c27_596 = arith.constant 27 : index
    %c7_597 = arith.constant 7 : index
    %1198 = memref.load %arg1[%c27_596, %c7_597] : memref<32x9xf32, #tpu.memory_space<smem>>
    %1199 = vector.broadcast %1198 : f32 to vector<2x256xf32>
    %1200 = arith.mulf %7, %1199 : vector<2x256xf32>
    %1201 = arith.addf %1197, %1200 : vector<2x256xf32>
    %c27_598 = arith.constant 27 : index
    %c8_599 = arith.constant 8 : index
    %1202 = memref.load %arg1[%c27_598, %c8_599] : memref<32x9xf32, #tpu.memory_space<smem>>
    %1203 = vector.broadcast %1202 : f32 to vector<2x256xf32>
    %1204 = arith.mulf %8, %1203 : vector<2x256xf32>
    %1205 = arith.addf %1201, %1204 : vector<2x256xf32>
    %c27_600 = arith.constant 27 : index
    %1206 = memref.load %arg2[%c27_600] : memref<32xf32, #tpu.memory_space<smem>>
    %1207 = vector.broadcast %1206 : f32 to vector<2x256xf32>
    %1208 = arith.addf %1205, %1207 : vector<2x256xf32>
    %cst_601 = arith.constant 0.000000e+00 : f32
    %1209 = vector.broadcast %cst_601 : f32 to vector<2x256xf32>
    %1210 = arith.maximumf %1208, %1209 : vector<2x256xf32>
    %c6912 = arith.constant 6912 : index
    %c0_602 = arith.constant 0 : index
    %1211 = vector.load %arg3[%c6912, %c0_602] : memref<8192x16xf32, #tpu.memory_space<vmem>>, vector<256x16xf32>
    %cst_603 = arith.constant dense<0.000000e+00> : vector<2x16xf32>
    %1212 = tpu.matmul %1210, %1211, %cst_603 {dimension_numbers = #tpu.dot_dimension_numbers<[1], [0], [0], [1], [0, 0, 1, 1], [], []>} : vector<2x256xf32>, vector<256x16xf32>, vector<2x16xf32> -> vector<2x16xf32>
    %1213 = arith.addf %1170, %1212 : vector<2x16xf32>
    %c28 = arith.constant 28 : index
    %c0_604 = arith.constant 0 : index
    %1214 = memref.load %arg1[%c28, %c0_604] : memref<32x9xf32, #tpu.memory_space<smem>>
    %1215 = vector.broadcast %1214 : f32 to vector<2x256xf32>
    %1216 = arith.mulf %0, %1215 : vector<2x256xf32>
    %c28_605 = arith.constant 28 : index
    %c1_606 = arith.constant 1 : index
    %1217 = memref.load %arg1[%c28_605, %c1_606] : memref<32x9xf32, #tpu.memory_space<smem>>
    %1218 = vector.broadcast %1217 : f32 to vector<2x256xf32>
    %1219 = arith.mulf %1, %1218 : vector<2x256xf32>
    %1220 = arith.addf %1216, %1219 : vector<2x256xf32>
    %c28_607 = arith.constant 28 : index
    %c2_608 = arith.constant 2 : index
    %1221 = memref.load %arg1[%c28_607, %c2_608] : memref<32x9xf32, #tpu.memory_space<smem>>
    %1222 = vector.broadcast %1221 : f32 to vector<2x256xf32>
    %1223 = arith.mulf %2, %1222 : vector<2x256xf32>
    %1224 = arith.addf %1220, %1223 : vector<2x256xf32>
    %c28_609 = arith.constant 28 : index
    %c3_610 = arith.constant 3 : index
    %1225 = memref.load %arg1[%c28_609, %c3_610] : memref<32x9xf32, #tpu.memory_space<smem>>
    %1226 = vector.broadcast %1225 : f32 to vector<2x256xf32>
    %1227 = arith.mulf %3, %1226 : vector<2x256xf32>
    %1228 = arith.addf %1224, %1227 : vector<2x256xf32>
    %c28_611 = arith.constant 28 : index
    %c4_612 = arith.constant 4 : index
    %1229 = memref.load %arg1[%c28_611, %c4_612] : memref<32x9xf32, #tpu.memory_space<smem>>
    %1230 = vector.broadcast %1229 : f32 to vector<2x256xf32>
    %1231 = arith.mulf %4, %1230 : vector<2x256xf32>
    %1232 = arith.addf %1228, %1231 : vector<2x256xf32>
    %c28_613 = arith.constant 28 : index
    %c5_614 = arith.constant 5 : index
    %1233 = memref.load %arg1[%c28_613, %c5_614] : memref<32x9xf32, #tpu.memory_space<smem>>
    %1234 = vector.broadcast %1233 : f32 to vector<2x256xf32>
    %1235 = arith.mulf %5, %1234 : vector<2x256xf32>
    %1236 = arith.addf %1232, %1235 : vector<2x256xf32>
    %c28_615 = arith.constant 28 : index
    %c6_616 = arith.constant 6 : index
    %1237 = memref.load %arg1[%c28_615, %c6_616] : memref<32x9xf32, #tpu.memory_space<smem>>
    %1238 = vector.broadcast %1237 : f32 to vector<2x256xf32>
    %1239 = arith.mulf %6, %1238 : vector<2x256xf32>
    %1240 = arith.addf %1236, %1239 : vector<2x256xf32>
    %c28_617 = arith.constant 28 : index
    %c7_618 = arith.constant 7 : index
    %1241 = memref.load %arg1[%c28_617, %c7_618] : memref<32x9xf32, #tpu.memory_space<smem>>
    %1242 = vector.broadcast %1241 : f32 to vector<2x256xf32>
    %1243 = arith.mulf %7, %1242 : vector<2x256xf32>
    %1244 = arith.addf %1240, %1243 : vector<2x256xf32>
    %c28_619 = arith.constant 28 : index
    %c8_620 = arith.constant 8 : index
    %1245 = memref.load %arg1[%c28_619, %c8_620] : memref<32x9xf32, #tpu.memory_space<smem>>
    %1246 = vector.broadcast %1245 : f32 to vector<2x256xf32>
    %1247 = arith.mulf %8, %1246 : vector<2x256xf32>
    %1248 = arith.addf %1244, %1247 : vector<2x256xf32>
    %c28_621 = arith.constant 28 : index
    %1249 = memref.load %arg2[%c28_621] : memref<32xf32, #tpu.memory_space<smem>>
    %1250 = vector.broadcast %1249 : f32 to vector<2x256xf32>
    %1251 = arith.addf %1248, %1250 : vector<2x256xf32>
    %cst_622 = arith.constant 0.000000e+00 : f32
    %1252 = vector.broadcast %cst_622 : f32 to vector<2x256xf32>
    %1253 = arith.maximumf %1251, %1252 : vector<2x256xf32>
    %c7168 = arith.constant 7168 : index
    %c0_623 = arith.constant 0 : index
    %1254 = vector.load %arg3[%c7168, %c0_623] : memref<8192x16xf32, #tpu.memory_space<vmem>>, vector<256x16xf32>
    %cst_624 = arith.constant dense<0.000000e+00> : vector<2x16xf32>
    %1255 = tpu.matmul %1253, %1254, %cst_624 {dimension_numbers = #tpu.dot_dimension_numbers<[1], [0], [0], [1], [0, 0, 1, 1], [], []>} : vector<2x256xf32>, vector<256x16xf32>, vector<2x16xf32> -> vector<2x16xf32>
    %1256 = arith.addf %1213, %1255 : vector<2x16xf32>
    %c29 = arith.constant 29 : index
    %c0_625 = arith.constant 0 : index
    %1257 = memref.load %arg1[%c29, %c0_625] : memref<32x9xf32, #tpu.memory_space<smem>>
    %1258 = vector.broadcast %1257 : f32 to vector<2x256xf32>
    %1259 = arith.mulf %0, %1258 : vector<2x256xf32>
    %c29_626 = arith.constant 29 : index
    %c1_627 = arith.constant 1 : index
    %1260 = memref.load %arg1[%c29_626, %c1_627] : memref<32x9xf32, #tpu.memory_space<smem>>
    %1261 = vector.broadcast %1260 : f32 to vector<2x256xf32>
    %1262 = arith.mulf %1, %1261 : vector<2x256xf32>
    %1263 = arith.addf %1259, %1262 : vector<2x256xf32>
    %c29_628 = arith.constant 29 : index
    %c2_629 = arith.constant 2 : index
    %1264 = memref.load %arg1[%c29_628, %c2_629] : memref<32x9xf32, #tpu.memory_space<smem>>
    %1265 = vector.broadcast %1264 : f32 to vector<2x256xf32>
    %1266 = arith.mulf %2, %1265 : vector<2x256xf32>
    %1267 = arith.addf %1263, %1266 : vector<2x256xf32>
    %c29_630 = arith.constant 29 : index
    %c3_631 = arith.constant 3 : index
    %1268 = memref.load %arg1[%c29_630, %c3_631] : memref<32x9xf32, #tpu.memory_space<smem>>
    %1269 = vector.broadcast %1268 : f32 to vector<2x256xf32>
    %1270 = arith.mulf %3, %1269 : vector<2x256xf32>
    %1271 = arith.addf %1267, %1270 : vector<2x256xf32>
    %c29_632 = arith.constant 29 : index
    %c4_633 = arith.constant 4 : index
    %1272 = memref.load %arg1[%c29_632, %c4_633] : memref<32x9xf32, #tpu.memory_space<smem>>
    %1273 = vector.broadcast %1272 : f32 to vector<2x256xf32>
    %1274 = arith.mulf %4, %1273 : vector<2x256xf32>
    %1275 = arith.addf %1271, %1274 : vector<2x256xf32>
    %c29_634 = arith.constant 29 : index
    %c5_635 = arith.constant 5 : index
    %1276 = memref.load %arg1[%c29_634, %c5_635] : memref<32x9xf32, #tpu.memory_space<smem>>
    %1277 = vector.broadcast %1276 : f32 to vector<2x256xf32>
    %1278 = arith.mulf %5, %1277 : vector<2x256xf32>
    %1279 = arith.addf %1275, %1278 : vector<2x256xf32>
    %c29_636 = arith.constant 29 : index
    %c6_637 = arith.constant 6 : index
    %1280 = memref.load %arg1[%c29_636, %c6_637] : memref<32x9xf32, #tpu.memory_space<smem>>
    %1281 = vector.broadcast %1280 : f32 to vector<2x256xf32>
    %1282 = arith.mulf %6, %1281 : vector<2x256xf32>
    %1283 = arith.addf %1279, %1282 : vector<2x256xf32>
    %c29_638 = arith.constant 29 : index
    %c7_639 = arith.constant 7 : index
    %1284 = memref.load %arg1[%c29_638, %c7_639] : memref<32x9xf32, #tpu.memory_space<smem>>
    %1285 = vector.broadcast %1284 : f32 to vector<2x256xf32>
    %1286 = arith.mulf %7, %1285 : vector<2x256xf32>
    %1287 = arith.addf %1283, %1286 : vector<2x256xf32>
    %c29_640 = arith.constant 29 : index
    %c8_641 = arith.constant 8 : index
    %1288 = memref.load %arg1[%c29_640, %c8_641] : memref<32x9xf32, #tpu.memory_space<smem>>
    %1289 = vector.broadcast %1288 : f32 to vector<2x256xf32>
    %1290 = arith.mulf %8, %1289 : vector<2x256xf32>
    %1291 = arith.addf %1287, %1290 : vector<2x256xf32>
    %c29_642 = arith.constant 29 : index
    %1292 = memref.load %arg2[%c29_642] : memref<32xf32, #tpu.memory_space<smem>>
    %1293 = vector.broadcast %1292 : f32 to vector<2x256xf32>
    %1294 = arith.addf %1291, %1293 : vector<2x256xf32>
    %cst_643 = arith.constant 0.000000e+00 : f32
    %1295 = vector.broadcast %cst_643 : f32 to vector<2x256xf32>
    %1296 = arith.maximumf %1294, %1295 : vector<2x256xf32>
    %c7424 = arith.constant 7424 : index
    %c0_644 = arith.constant 0 : index
    %1297 = vector.load %arg3[%c7424, %c0_644] : memref<8192x16xf32, #tpu.memory_space<vmem>>, vector<256x16xf32>
    %cst_645 = arith.constant dense<0.000000e+00> : vector<2x16xf32>
    %1298 = tpu.matmul %1296, %1297, %cst_645 {dimension_numbers = #tpu.dot_dimension_numbers<[1], [0], [0], [1], [0, 0, 1, 1], [], []>} : vector<2x256xf32>, vector<256x16xf32>, vector<2x16xf32> -> vector<2x16xf32>
    %1299 = arith.addf %1256, %1298 : vector<2x16xf32>
    %c30 = arith.constant 30 : index
    %c0_646 = arith.constant 0 : index
    %1300 = memref.load %arg1[%c30, %c0_646] : memref<32x9xf32, #tpu.memory_space<smem>>
    %1301 = vector.broadcast %1300 : f32 to vector<2x256xf32>
    %1302 = arith.mulf %0, %1301 : vector<2x256xf32>
    %c30_647 = arith.constant 30 : index
    %c1_648 = arith.constant 1 : index
    %1303 = memref.load %arg1[%c30_647, %c1_648] : memref<32x9xf32, #tpu.memory_space<smem>>
    %1304 = vector.broadcast %1303 : f32 to vector<2x256xf32>
    %1305 = arith.mulf %1, %1304 : vector<2x256xf32>
    %1306 = arith.addf %1302, %1305 : vector<2x256xf32>
    %c30_649 = arith.constant 30 : index
    %c2_650 = arith.constant 2 : index
    %1307 = memref.load %arg1[%c30_649, %c2_650] : memref<32x9xf32, #tpu.memory_space<smem>>
    %1308 = vector.broadcast %1307 : f32 to vector<2x256xf32>
    %1309 = arith.mulf %2, %1308 : vector<2x256xf32>
    %1310 = arith.addf %1306, %1309 : vector<2x256xf32>
    %c30_651 = arith.constant 30 : index
    %c3_652 = arith.constant 3 : index
    %1311 = memref.load %arg1[%c30_651, %c3_652] : memref<32x9xf32, #tpu.memory_space<smem>>
    %1312 = vector.broadcast %1311 : f32 to vector<2x256xf32>
    %1313 = arith.mulf %3, %1312 : vector<2x256xf32>
    %1314 = arith.addf %1310, %1313 : vector<2x256xf32>
    %c30_653 = arith.constant 30 : index
    %c4_654 = arith.constant 4 : index
    %1315 = memref.load %arg1[%c30_653, %c4_654] : memref<32x9xf32, #tpu.memory_space<smem>>
    %1316 = vector.broadcast %1315 : f32 to vector<2x256xf32>
    %1317 = arith.mulf %4, %1316 : vector<2x256xf32>
    %1318 = arith.addf %1314, %1317 : vector<2x256xf32>
    %c30_655 = arith.constant 30 : index
    %c5_656 = arith.constant 5 : index
    %1319 = memref.load %arg1[%c30_655, %c5_656] : memref<32x9xf32, #tpu.memory_space<smem>>
    %1320 = vector.broadcast %1319 : f32 to vector<2x256xf32>
    %1321 = arith.mulf %5, %1320 : vector<2x256xf32>
    %1322 = arith.addf %1318, %1321 : vector<2x256xf32>
    %c30_657 = arith.constant 30 : index
    %c6_658 = arith.constant 6 : index
    %1323 = memref.load %arg1[%c30_657, %c6_658] : memref<32x9xf32, #tpu.memory_space<smem>>
    %1324 = vector.broadcast %1323 : f32 to vector<2x256xf32>
    %1325 = arith.mulf %6, %1324 : vector<2x256xf32>
    %1326 = arith.addf %1322, %1325 : vector<2x256xf32>
    %c30_659 = arith.constant 30 : index
    %c7_660 = arith.constant 7 : index
    %1327 = memref.load %arg1[%c30_659, %c7_660] : memref<32x9xf32, #tpu.memory_space<smem>>
    %1328 = vector.broadcast %1327 : f32 to vector<2x256xf32>
    %1329 = arith.mulf %7, %1328 : vector<2x256xf32>
    %1330 = arith.addf %1326, %1329 : vector<2x256xf32>
    %c30_661 = arith.constant 30 : index
    %c8_662 = arith.constant 8 : index
    %1331 = memref.load %arg1[%c30_661, %c8_662] : memref<32x9xf32, #tpu.memory_space<smem>>
    %1332 = vector.broadcast %1331 : f32 to vector<2x256xf32>
    %1333 = arith.mulf %8, %1332 : vector<2x256xf32>
    %1334 = arith.addf %1330, %1333 : vector<2x256xf32>
    %c30_663 = arith.constant 30 : index
    %1335 = memref.load %arg2[%c30_663] : memref<32xf32, #tpu.memory_space<smem>>
    %1336 = vector.broadcast %1335 : f32 to vector<2x256xf32>
    %1337 = arith.addf %1334, %1336 : vector<2x256xf32>
    %cst_664 = arith.constant 0.000000e+00 : f32
    %1338 = vector.broadcast %cst_664 : f32 to vector<2x256xf32>
    %1339 = arith.maximumf %1337, %1338 : vector<2x256xf32>
    %c7680 = arith.constant 7680 : index
    %c0_665 = arith.constant 0 : index
    %1340 = vector.load %arg3[%c7680, %c0_665] : memref<8192x16xf32, #tpu.memory_space<vmem>>, vector<256x16xf32>
    %cst_666 = arith.constant dense<0.000000e+00> : vector<2x16xf32>
    %1341 = tpu.matmul %1339, %1340, %cst_666 {dimension_numbers = #tpu.dot_dimension_numbers<[1], [0], [0], [1], [0, 0, 1, 1], [], []>} : vector<2x256xf32>, vector<256x16xf32>, vector<2x16xf32> -> vector<2x16xf32>
    %1342 = arith.addf %1299, %1341 : vector<2x16xf32>
    %c31 = arith.constant 31 : index
    %c0_667 = arith.constant 0 : index
    %1343 = memref.load %arg1[%c31, %c0_667] : memref<32x9xf32, #tpu.memory_space<smem>>
    %1344 = vector.broadcast %1343 : f32 to vector<2x256xf32>
    %1345 = arith.mulf %0, %1344 : vector<2x256xf32>
    %c31_668 = arith.constant 31 : index
    %c1_669 = arith.constant 1 : index
    %1346 = memref.load %arg1[%c31_668, %c1_669] : memref<32x9xf32, #tpu.memory_space<smem>>
    %1347 = vector.broadcast %1346 : f32 to vector<2x256xf32>
    %1348 = arith.mulf %1, %1347 : vector<2x256xf32>
    %1349 = arith.addf %1345, %1348 : vector<2x256xf32>
    %c31_670 = arith.constant 31 : index
    %c2_671 = arith.constant 2 : index
    %1350 = memref.load %arg1[%c31_670, %c2_671] : memref<32x9xf32, #tpu.memory_space<smem>>
    %1351 = vector.broadcast %1350 : f32 to vector<2x256xf32>
    %1352 = arith.mulf %2, %1351 : vector<2x256xf32>
    %1353 = arith.addf %1349, %1352 : vector<2x256xf32>
    %c31_672 = arith.constant 31 : index
    %c3_673 = arith.constant 3 : index
    %1354 = memref.load %arg1[%c31_672, %c3_673] : memref<32x9xf32, #tpu.memory_space<smem>>
    %1355 = vector.broadcast %1354 : f32 to vector<2x256xf32>
    %1356 = arith.mulf %3, %1355 : vector<2x256xf32>
    %1357 = arith.addf %1353, %1356 : vector<2x256xf32>
    %c31_674 = arith.constant 31 : index
    %c4_675 = arith.constant 4 : index
    %1358 = memref.load %arg1[%c31_674, %c4_675] : memref<32x9xf32, #tpu.memory_space<smem>>
    %1359 = vector.broadcast %1358 : f32 to vector<2x256xf32>
    %1360 = arith.mulf %4, %1359 : vector<2x256xf32>
    %1361 = arith.addf %1357, %1360 : vector<2x256xf32>
    %c31_676 = arith.constant 31 : index
    %c5_677 = arith.constant 5 : index
    %1362 = memref.load %arg1[%c31_676, %c5_677] : memref<32x9xf32, #tpu.memory_space<smem>>
    %1363 = vector.broadcast %1362 : f32 to vector<2x256xf32>
    %1364 = arith.mulf %5, %1363 : vector<2x256xf32>
    %1365 = arith.addf %1361, %1364 : vector<2x256xf32>
    %c31_678 = arith.constant 31 : index
    %c6_679 = arith.constant 6 : index
    %1366 = memref.load %arg1[%c31_678, %c6_679] : memref<32x9xf32, #tpu.memory_space<smem>>
    %1367 = vector.broadcast %1366 : f32 to vector<2x256xf32>
    %1368 = arith.mulf %6, %1367 : vector<2x256xf32>
    %1369 = arith.addf %1365, %1368 : vector<2x256xf32>
    %c31_680 = arith.constant 31 : index
    %c7_681 = arith.constant 7 : index
    %1370 = memref.load %arg1[%c31_680, %c7_681] : memref<32x9xf32, #tpu.memory_space<smem>>
    %1371 = vector.broadcast %1370 : f32 to vector<2x256xf32>
    %1372 = arith.mulf %7, %1371 : vector<2x256xf32>
    %1373 = arith.addf %1369, %1372 : vector<2x256xf32>
    %c31_682 = arith.constant 31 : index
    %c8_683 = arith.constant 8 : index
    %1374 = memref.load %arg1[%c31_682, %c8_683] : memref<32x9xf32, #tpu.memory_space<smem>>
    %1375 = vector.broadcast %1374 : f32 to vector<2x256xf32>
    %1376 = arith.mulf %8, %1375 : vector<2x256xf32>
    %1377 = arith.addf %1373, %1376 : vector<2x256xf32>
    %c31_684 = arith.constant 31 : index
    %1378 = memref.load %arg2[%c31_684] : memref<32xf32, #tpu.memory_space<smem>>
    %1379 = vector.broadcast %1378 : f32 to vector<2x256xf32>
    %1380 = arith.addf %1377, %1379 : vector<2x256xf32>
    %cst_685 = arith.constant 0.000000e+00 : f32
    %1381 = vector.broadcast %cst_685 : f32 to vector<2x256xf32>
    %1382 = arith.maximumf %1380, %1381 : vector<2x256xf32>
    %c7936 = arith.constant 7936 : index
    %c0_686 = arith.constant 0 : index
    %1383 = vector.load %arg3[%c7936, %c0_686] : memref<8192x16xf32, #tpu.memory_space<vmem>>, vector<256x16xf32>
    %cst_687 = arith.constant dense<0.000000e+00> : vector<2x16xf32>
    %1384 = tpu.matmul %1382, %1383, %cst_687 {dimension_numbers = #tpu.dot_dimension_numbers<[1], [0], [0], [1], [0, 0, 1, 1], [], []>} : vector<2x256xf32>, vector<256x16xf32>, vector<2x16xf32> -> vector<2x16xf32>
    %1385 = arith.addf %1342, %1384 : vector<2x16xf32>
    %c0_688 = arith.constant 0 : index
    %c0_689 = arith.constant 0 : index
    %1386 = vector.load %arg4[%c0_688, %c0_689] : memref<1x16xf32, #tpu.memory_space<vmem>>, vector<1x16xf32>
    %1387 = vector.broadcast %1386 : vector<1x16xf32> to vector<2x16xf32>
    %1388 = arith.addf %1385, %1387 : vector<2x16xf32>
    %c0_690 = arith.constant 0 : index
    %c0_691 = arith.constant 0 : index
    %1389 = vector.load %arg5[%c0_690, %c0_691] : memref<2x16xf32, #tpu.memory_space<vmem>>, vector<2x16xf32>
    %1390 = arith.subf %1388, %1389 : vector<2x16xf32>
    %1391 = arith.mulf %1390, %1390 : vector<2x16xf32>
    %cst_692 = arith.constant dense<0.000000e+00> : vector<2xf32>
    %1392 = vector.multi_reduction <add>, %1391, %cst_692 [1] : vector<2x16xf32> to vector<2xf32>
    %1393 = vector.shape_cast %1392 : vector<2xf32> to vector<2x1xf32>
    %1394 = math.sqrt %1393 : vector<2x1xf32>
    %c0_693 = arith.constant 0 : index
    %c0_694 = arith.constant 0 : index
    %1395 = vector.load %arg6[%c0_693, %c0_694] : memref<2x1xf32, #tpu.memory_space<vmem>>, vector<2x1xf32>
    tpu.vector_store %arg6[%c0_693, %c0_694], %1394 {strides = array<i32>} : memref<2x1xf32, #tpu.memory_space<vmem>>, vector<2x1xf32>,
    return
  }
}

</mosaic_0001>

<bundles_post_ra>
// kernel: conve_forward.1
= control target key start
LH: loop header
LB: loop body
LE: loop exit
PB: predicated region body
PF: predicated region fallthrough
CT: control target
= control target key end

     0   :  { %11 = vsyncpa [#allocation3], 0  ;;  %s13836_s0 = inlined_call_operand.vmem [shape: f32[2,384], index: 0, kind: input, shape index: {}]   ;;  %s13837_s1 = inlined_call_operand.vmem [shape: f32[32,9], index: 1, kind: input, shape index: {}]   ;;  %s13838_s2 = inlined_call_operand.vmem [shape: f32[32], index: 2, kind: input, shape index: {}]   ;;  %s13839_s3 = inlined_call_operand.vmem [shape: f32[8192,16], index: 3, kind: input, shape index: {}]   ;;  %s13840_s4 = inlined_call_operand.vmem [shape: f32[1,16], index: 4, kind: input, shape index: {}]   ;;  %s13841_s5 = inlined_call_operand.vmem [shape: f32[2,16], index: 5, kind: input, shape index: {}]   ;;  %s13842_s6 = inlined_call_operand.vmem [shape: f32[2,1], index: 6, kind: output, shape index: {}]  }
   0x1   :  { %s20_s23 = sshll.u32 %s13837_s1, 4  ;;  %s21_s23 = int_to_ptr.vmem [resolvable:$true] %s20_s23 }
   0x2   :  { %12 = vsyncpa [#allocation5], 0  ;;  %s33_s26 = sshll.u32 %s13838_s2, 4  ;;  %s7986_s27 = scalar_lea.vmem %s21_s23, 512  ;;  %s34_s26 = int_to_ptr.vmem [resolvable:$true] %s33_s26 }
   0x3   :  { %p7987_p0 = scmp.ne.s32.totalorder %s21_s23, %s7986_s27  ;;  %p7991_p1 = scmp.lt.s32.totalorder %s21_s23, %s21_s23 }
   0x4   :  { %p7992_p2 = scmp.lt.s32.totalorder %s7986_s27, %s7986_s27 }
   0x6   :  { %p7993_p3 = por %p7992_p2, %p7991_p1 }
   0x8   :  { %p7994_p4 = pnand %p7993_p3, %p7987_p0 }
   0xa   :  { %7997 = shalt.err (!%p7994_p4)
}
   0xb   :  { %s8014_s28 = smov [#allocation2]   ;;  %s8015_s29 = smov 128  }
   0xc   :  { %s8016_s30 = smov 8   ;;  %s7998_s7 = scalar_lea.vmem %s34_s26, 16 }
   0xd   :  { %26 = dma.vmem_to_smem %s21_s23, 512, %s8014_s28, [#allocation3], %s8015_s29, %s8015_s29, %s8016_s30  }
   0xe   :  { %p7999_p5 = scmp.ne.s32.totalorder %s34_s26, %s7998_s7  ;;  %p8003_p6 = scmp.lt.s32.totalorder %s34_s26, %s34_s26 }
   0xf   :  { %p8004_p7 = scmp.lt.s32.totalorder %s7998_s7, %s7998_s7 }
  0x11   :  { %p8005_p8 = por %p8004_p7, %p8003_p6 }
  0x13   :  { %p8006_p9 = pnand %p8005_p8, %p7999_p5 }
  0x15   :  { %8009 = shalt.err (!%p8006_p9)
}
  0x16   :  { %s8017_s1 = smov [#allocation4]  }
  0x17   :  { %36 = dma.vmem_to_smem %s34_s26, 16, %s8017_s1, [#allocation5]  }
  0x18   :  { %8010 = dma.done.wait [#allocation3], 512  }
  0x19   :  { %8011 = vsyncadd [#allocation3], 4294966784 }
  0x1a   :  { %8012 = dma.done.wait [#allocation5], 16  }
  0x1b   :  { %8013 = vsyncadd [#allocation5], 4294967280 }
  0x1c   :  { %49 = sfence }
  0x1d   :  { %s6530_s2 = sld [smem:[#allocation2 + $0x82]]  ;;  %v8073_v0 = vld [vmem:[%s13836_s0] sm:$0x3f]  ;;  %v297_v1 = vld [vmem:[%s13839_s3 + $0x1f8] sm:$0xff]  ;;  %v296_v7 = vld [vmem:[%s13839_s3 + $0x1f0] sm:$0xff]  ;;  %s8018_s7 = smov 126  }
  0x1e   :  { %s6529_s8 = sld [smem:[#allocation2 + $0x81]]  ;;  %6839 = vmatprep.subr.mxu0 %v297_v1  ;;  %v281_v3 = vld [vmem:[%s13839_s3 + $0x178] sm:$0xff]  ;;  %v280_v11 = vld [vmem:[%s13839_s3 + $0x170] sm:$0xff]  ;;  %v295_v15 = vld [vmem:[%s13839_s3 + $0x1e8] sm:$0xff]  ;;  %s8019_s11 = smov 127   ;;  %vm62_vm0 = vcmask 1039360  }
  0x1f   :  { %s6521_s9 = sld [smem:[#allocation2 + $0x2]]  ;;  %v178_v4 = vld [vmem:[%s13839_s3 + $0xf8] sm:$0xff]  ;;  %6840 = vmatpush3.msra.mxu0 %v281_v3  ;;  %v177_v12 = vld [vmem:[%s13839_s3 + $0xf0] sm:$0xff]  ;;  %v279_v19 = vld [vmem:[%s13839_s3 + $0x168] sm:$0xff]  ;;  %vm73_vm1 = vcmask 1031168   ;;  %vm84_vm2 = vcmask 916480  }
  0x20   :  { %s8068_s10 = sld [smem:[#allocation2 + $0x1]]  ;;  %6874 = vmatprep.subr.mxu1 %v178_v4  ;;  %v162_v8 = vld [vmem:[%s13839_s3 + $0x78] sm:$0xff]  ;;  %6841 = vmatprep.subr.mxu0 %v296_v7  ;;  %v161_v16 = vld [vmem:[%s13839_s3 + $0x70] sm:$0xff]  ;;  %v176_v20 = vld [vmem:[%s13839_s3 + $0xe8] sm:$0xff]  ;;  %vm95_vm3 = vcmask 908288   ;;  %vm106_vm4 = vcmask 900096  }
  0x21   :  { %s8075_s13 = sld [smem:[#allocation2 + $0x3]]  ;;  %6875 = vmatpush3.msra.mxu1 %v162_v8  ;;  %6842 = vmatpush3.msra.mxu0 %v280_v11  ;;  %v294_v22 = vld [vmem:[%s13839_s3 + $0x1e0] sm:$0xff]  ;;  %v160_v23 = vld [vmem:[%s13839_s3 + $0x68] sm:$0xff]  ;;  %v293_v27 = vld [vmem:[%s13839_s3 + $0x1d8] sm:$0xff]  ;;  %vm117_vm5 = vcmask 785408   ;;  %vm128_vm6 = vcmask 777216  }
  0x22   :  { %s8077_s14 = sld [smem:[#allocation2 + $0x83]]  ;;  %6876 = vmatprep.subr.mxu1 %v177_v12  ;;  %6843 = vmatprep.subr.mxu0 %v295_v15  ;;  %v278_v24 = vld [vmem:[%s13839_s3 + $0x160] sm:$0xff]  ;;  %v277_v31 = vld [vmem:[%s13839_s3 + $0x158] sm:$0xff]  ;;  %v292_v34 = vld [vmem:[%s13839_s3 + $0x1d0] sm:$0xff]  ;;  %vm139_vm7 = vcmask 769024   ;;  %vm6501_vm8 = vcmask 123904  }
  0x23   :  { %v193_v2 = vstv %s6530_s2  ;;  %s8082_s17 = sld [smem:[#allocation2 + $0x4]]  ;;  %6877 = vmatpush3.msra.mxu1 %v161_v16  ;;  %6844 = vmatpush3.msra.mxu0 %v279_v19  ;;  %v175_v25 = vld [vmem:[%s13839_s3 + $0xe0] sm:$0xff]  ;;  %v174_v33 = vld [vmem:[%s13839_s3 + $0xd8] sm:$0xff]  ;;  %v276_v37 = vld [vmem:[%s13839_s3 + $0x150] sm:$0xff]  ;;  %vm6512_vm9 = vcmask 1024  }
  0x24   :  { %v194_v5 = vmul.f32 %v193_v2, %v8073_v0  ;;  %v183_v6 = vstv %s6529_s8  ;;  %s8091_s22 = sld [smem:[#allocation2 + $0x84]]  ;;  %6878 = vmatprep.subr.mxu1 %v176_v20  ;;  %6845 = vmatprep.subr.mxu0 %v294_v22  ;;  %v159_v28 = vld [vmem:[%s13839_s3 + $0x60] sm:$0xff]  ;;  %v158_v35 = vld [vmem:[%s13839_s3 + $0x58] sm:$0xff]  ;;  %v173_v38 = vld [vmem:[%s13839_s3 + $0xd0] sm:$0xff] }
  0x25   :  { %v184_v9 = vmul.f32 %v183_v6, %v8073_v0  ;;  %v67_v10 = vstv %s6521_s9  ;;  %s8118_s12 = sld [smem:[#allocation2 + $0x5]]  ;;  %6879 = vmatpush3.msra.mxu1 %v160_v23  ;;  %6846 = vmatpush3.msra.mxu0 %v278_v24  ;;  %v291_v41 = vld [vmem:[%s13839_s3 + $0x1c8] sm:$0xff]  ;;  %v157_v43 = vld [vmem:[%s13839_s3 + $0x50] sm:$0xff]  ;;  %v290_v47 = vld [vmem:[%s13839_s3 + $0x1c0] sm:$0xff] }
  0x26   :  { %196 = vrot.lane.b32.xlu1 %v194_v5, %s8018_s7  ;;  %v68_v13 = vmul.f32 %v67_v10, %v8073_v0  ;;  %v56_v14 = vstv %s8068_s10  ;;  %s8127_s19 = sld [smem:[#allocation2 + $0x85]]  ;;  %6880 = vmatprep.subr.mxu1 %v175_v25  ;;  %v275_v44 = vld [vmem:[%s13839_s3 + $0x148] sm:$0xff]  ;;  %v274_v51 = vld [vmem:[%s13839_s3 + $0x140] sm:$0xff] }
  0x27   :  { %186 = vrot.lane.b32.xlu0 %v184_v9, %s8019_s11  ;;  %v57_v17 = vmul.f32 %v56_v14, %v8073_v0  ;;  %v78_v18 = vstv %s8075_s13  ;;  %s8152_s1 = sld [smem:[#allocation2 + $0x6]]  ;;  %6847 = vmatprep.subr.mxu0 %v293_v27  ;;  %v172_v45 = vld [vmem:[%s13839_s3 + $0xc8] sm:$0xff]  ;;  %v171_v53 = vld [vmem:[%s13839_s3 + $0xc0] sm:$0xff] }
  0x28   :  { %v203_v21 = vstv %s8077_s14  ;;  %v79_v26 = vmul.f32 %v78_v18, %v8073_v0  ;;  %s8158_s9 = sld [smem:[#allocation2 + $0x86]]  ;;  %6881 = vmatpush3.msra.mxu1 %v159_v28  ;;  %6848 = vmatpush3.msra.mxu0 %v277_v31  ;;  %v156_v48 = vld [vmem:[%s13839_s3 + $0x48] sm:$0xff]  ;;  %v289_v54 = vld [vmem:[%s13839_s3 + $0x1b8] sm:$0xff]  ;;  %v155_v55 = vld [vmem:[%s13839_s3 + $0x40] sm:$0xff] }
  0x29   :  { %v204_v29 = vmul.f32 %v203_v21, %v8073_v0  ;;  %v89_v30 = vstv %s8082_s17  ;;  %s8180_s25 = sld [smem:[#allocation2 + $0x7]]  ;;  %6882 = vmatprep.subr.mxu1 %v174_v33  ;;  %6849 = vmatprep.subr.mxu0 %v292_v34  ;;  %v273_v57 = vld [vmem:[%s13839_s3 + $0x138] sm:$0xff]  ;;  %v288_v61 = vld [vmem:[%s13839_s3 + $0x1b0] sm:$0xff]  ;;  %v287_v4 = vld [vmem:[%s13839_s3 + $0x1a8] sm:$0xff] }
  0x2a   :  { %70 = vrot.lane.b32.xlu1 %v68_v13, %s8018_s7  ;;  %v213_v32 = vstv %s8091_s22  ;;  %s8020_s22 = smov 112   ;;  %v90_v36 = vmul.f32 %v89_v30, %v8073_v0  ;;  %s8186_s27 = sld [smem:[#allocation2 + $0x87]]  ;;  %6883 = vmatpush3.msra.mxu1 %v158_v35  ;;  %v170_v58 = vld [vmem:[%s13839_s3 + $0xb8] sm:$0xff]  ;;  %v272_v1 = vld [vmem:[%s13839_s3 + $0x130] sm:$0xff] }
  0x2b   :  { %59 = vrot.lane.b32.xlu0 %v57_v17, %s8019_s11  ;;  %v214_v39 = vmul.f32 %v213_v32, %v8073_v0  ;;  %v100_v40 = vstv %s8118_s12  ;;  %6850 = vmatpush3.msra.mxu0 %v276_v37  ;;  %s8208_s18 = sld [smem:[#allocation2 + $0x8]]  ;;  %v154_v63 = vld [vmem:[%s13839_s3 + $0x38] sm:$0xff]  ;;  %v169_v2 = vld [vmem:[%s13839_s3 + $0xb0] sm:$0xff] }
  0x2c   :  { %v223_v42 = vstv %s8127_s19  ;;  %6884 = vmatprep.subr.mxu1 %v173_v38  ;;  %s8021_s19 = smov 111   ;;  %v101_v46 = vmul.f32 %v100_v40, %v8073_v0  ;;  %6851 = vmatprep.subr.mxu0 %v291_v41  ;;  %s8214_s13 = sld [smem:[#allocation2 + $0x88]]  ;;  %v153_v5 = vld [vmem:[%s13839_s3 + $0x30] sm:$0xff]  ;;  %v271_v8 = vld [vmem:[%s13839_s3 + $0x128] sm:$0xff]  ;;  %v286_v11 = vld [vmem:[%s13839_s3 + $0x1a0] sm:$0xff] }
  0x2d   :  { %v224_v49 = vmul.f32 %v223_v42, %v8073_v0  ;;  %v111_v50 = vstv %s8152_s1  ;;  %6885 = vmatpush3.msra.mxu1 %v157_v43  ;;  %6852 = vmatpush3.msra.mxu0 %v275_v44  ;;  %s8236_s8 = sld [smem:[#allocation2 + $0x102]]  ;;  %v168_v10 = vld [vmem:[%s13839_s3 + $0xa8] sm:$0xff]  ;;  %v270_v14 = vld [vmem:[%s13839_s3 + $0x120] sm:$0xff]  ;;  %v285_v18 = vld [vmem:[%s13839_s3 + $0x198] sm:$0xff] }
  0x2e   :  { %81 = vrot.lane.b32.xlu1 %v79_v26, %s8020_s22  ;;  %v233_v52 = vstv %s8158_s9  ;;  %6886 = vmatprep.subr.mxu1 %v172_v45  ;;  %s8022_s9 = smov 110   ;;  %v112_v56 = vmul.f32 %v111_v50, %v8073_v0  ;;  %s8242_s17 = sld [smem:[#allocation2 + $0x101]]  ;;  %v152_v12 = vld [vmem:[%s13839_s3 + $0x28] sm:$0xff]  ;;  %v167_v15 = vld [vmem:[%s13839_s3 + $0xa0] sm:$0xff] }
  0x2f   :  { %206 = vrot.lane.b32.xlu0 %v204_v29, %s8020_s22  ;;  %6853 = vmatprep.subr.mxu0 %v290_v47  ;;  %v234_v59 = vmul.f32 %v233_v52, %v8073_v0  ;;  %v122_v60 = vstv %s8180_s25  ;;  %s8264_s29 = sld [smem:[#allocation2 + $0x103]]  ;;  %v151_v20 = vld [vmem:[%s13839_s3 + $0x20] sm:$0xff]  ;;  %v269_v21 = vld [vmem:[%s13839_s3 + $0x118] sm:$0xff] }
  0x30   :  { %6887 = vmatpush3.msra.mxu1 %v156_v48  ;;  %6854 = vmatpush3.msra.mxu0 %v274_v51  ;;  %v243_v62 = vstv %s8186_s27  ;;  %s8023_s27 = smov 96   ;;  %v123_v3 = vmul.f32 %v122_v60, %v8073_v0  ;;  %s8270_s2 = sld [smem:[#allocation2 + $0x181]]  ;;  %v166_v22 = vld [vmem:[%s13839_s3 + $0x98] sm:$0xff]  ;;  %v284_v24 = vld [vmem:[%s13839_s3 + $0x190] sm:$0xff]  ;;  %v283_v31 = vld [vmem:[%s13839_s3 + $0x188] sm:$0xff] }
  0x31   :  { %6888 = vmatprep.subr.mxu1 %v171_v53  ;;  %6855 = vmatprep.subr.mxu0 %v289_v54  ;;  %v244_v6 = vmul.f32 %v243_v62, %v8073_v0  ;;  %v133_v7 = vstv %s8208_s18  ;;  %s8292_s14 = sld [smem:[#allocation2 + $0x104]]  ;;  %v150_v25 = vld [vmem:[%s13839_s3 + $0x18] sm:$0xff]  ;;  %v268_v28 = vld [vmem:[%s13839_s3 + $0x110] sm:$0xff]  ;;  %v267_v34 = vld [vmem:[%s13839_s3 + $0x108] sm:$0xff] }
  0x32   :  { %92 = vrot.lane.b32.xlu1 %v90_v36, %s8021_s19  ;;  %6889 = vmatpush3.msra.mxu1 %v155_v55  ;;  %v253_v9 = vstv %s8214_s13  ;;  %s8024_s13 = smov 95   ;;  %v134_v13 = vmul.f32 %v133_v7, %v8073_v0  ;;  %s8298_s12 = sld [smem:[#allocation2 + $0x182]]  ;;  %v165_v30 = vld [vmem:[%s13839_s3 + $0x90] sm:$0xff]  ;;  %v164_v35 = vld [vmem:[%s13839_s3 + $0x88] sm:$0xff] }
  0x33   :  { %216 = vrot.lane.b32.xlu0 %v214_v39, %s8021_s19  ;;  %6856 = vmatpush3.msra.mxu0 %v273_v57  ;;  %v254_v16 = vmul.f32 %v253_v9, %v8073_v0  ;;  %v474_v17 = vstv %s8236_s8  ;;  %s8320_s24 = sld [smem:[#allocation2 + $0x105]]  ;;  %v149_v32 = vld [vmem:[%s13839_s3 + $0x10] sm:$0xff]  ;;  %v282_v38 = vld [vmem:[%s13839_s3 + $0x180] sm:$0xff] }
  0x34   :  { %6890 = vmatprep.subr.mxu1 %v170_v58  ;;  %6857 = vmatprep.subr.mxu0 %v288_v61  ;;  %v464_v19 = vstv %s8242_s17  ;;  %s8025_s17 = smov 94   ;;  %v475_v23 = vmul.f32 %v474_v17, %v8073_v0  ;;  %s8326_s28 = sld [smem:[#allocation2 + $0x183]]  ;;  %v148_v40 = vld [vmem:[%s13839_s3 + $0x8] sm:$0xff]  ;;  %v266_v41 = vld [vmem:[%s13839_s3 + $0x100] sm:$0xff]  ;;  %v578_v45 = vld [vmem:[%s13839_s3 + $0x2f8] sm:$0xff] }
  0x35   :  { %6891 = vmatpush3.msra.mxu1 %v154_v63  ;;  %6858 = vmatpush3.msra.mxu0 %v272_v1  ;;  %v465_v26 = vmul.f32 %v464_v19, %v8073_v0  ;;  %v484_v27 = vstv %s8264_s29  ;;  %s8348_s21 = sld [smem:[#allocation2 + $0x106]]  ;;  %v163_v42 = vld [vmem:[%s13839_s3 + $0x80] sm:$0xff]  ;;  %v779_v48 = vld [vmem:[%s13839_s3 + $0x3f8] sm:$0xff] }
  0x36   :  { %103 = vrot.lane.b32.xlu1 %v101_v46, %s8022_s9  ;;  %6892 = vmatprep.subr.mxu1 %v169_v2  ;;  %v665_v29 = vstv %s8270_s2  ;;  %v485_v33 = vmul.f32 %v484_v27, %v8073_v0  ;;  %s8354_s26 = sld [smem:[#allocation2 + $0x184]]  ;;  %v147_v44 = vld [vmem:[%s13839_s3] sm:$0xff] }
  0x37   :  { %226 = vrot.lane.b32.xlu0 %v224_v49, %s8022_s9  ;;  %6859 = vmatprep.subr.mxu0 %v287_v4  ;;  %v666_v36 = vmul.f32 %v665_v29, %v8073_v0  ;;  %v494_v37 = vstv %s8292_s14  ;;  %s6545_s20 = sld [smem:[#allocation2 + $0x107]] }
  0x38   :  { %6893 = vmatpush3.msra.mxu1 %v153_v5  ;;  %6860 = vmatpush3.msra.mxu0 %v271_v8  ;;  %v675_v39 = vstv %s8298_s12  ;;  %v495_v43 = vmul.f32 %v494_v37, %v8073_v0  ;;  %s6553_s1 = sld [smem:[#allocation2 + $0x185]] }
  0x39   :  { %6894 = vmatprep.subr.mxu1 %v168_v10  ;;  %6861 = vmatprep.subr.mxu0 %v286_v11  ;;  %v676_v46 = vmul.f32 %v675_v39, %v8073_v0  ;;  %v504_v47 = vstv %s8320_s24  ;;  %s6546_s24 = sld [smem:[#allocation2 + $0x108]] }
  0x3a   :  { %114 = vrot.lane.b32.xlu1 %v112_v56, %s8023_s27  ;;  %6895 = vmatpush3.msra.mxu1 %v152_v12  ;;  %v685_v49 = vstv %s8326_s28  ;;  %v505_v50 = vmul.f32 %v504_v47, %v8073_v0  ;;  %s6554_s30 = sld [smem:[#allocation2 + $0x186]] }
  0x3b   :  { %236 = vrot.lane.b32.xlu0 %v234_v59, %s8023_s27  ;;  %6862 = vmatpush3.msra.mxu0 %v270_v14  ;;  %v686_v51 = vmul.f32 %v685_v49, %v8073_v0  ;;  %v514_v52 = vstv %s8348_s21  ;;  %s6556_s28 = sld [smem:[#allocation2 + $0x188]] }
  0x3c   :  { %6896 = vmatprep.subr.mxu1 %v167_v15  ;;  %6863 = vmatprep.subr.mxu0 %v285_v18  ;;  %v695_v53 = vstv %s8354_s26  ;;  %v515_v54 = vmul.f32 %v514_v52, %v8073_v0  ;;  %s6555_s15 = sld [smem:[#allocation2 + $0x187]] }
  0x3d   :  { %6897 = vmatpush3.msra.mxu1 %v151_v20  ;;  %6864 = vmatpush3.msra.mxu0 %v269_v21  ;;  %v696_v55 = vmul.f32 %v695_v53, %v8073_v0  ;;  %v524_v56 = vstv %s6545_s20  ;;  %s6560_s21 = sld [smem:[#allocation2 + $0x202]] }
  0x3e   :  { %125 = vrot.lane.b32.xlu1 %v123_v3, %s8024_s13  ;;  %6898 = vmatprep.subr.mxu1 %v166_v22  ;;  %v705_v57 = vstv %s6553_s1  ;;  %v525_v58 = vmul.f32 %v524_v56, %v8073_v0  ;;  %s6559_s26 = sld [smem:[#allocation2 + $0x201]] }
  0x3f   :  { %246 = vrot.lane.b32.xlu0 %v244_v6, %s8024_s13  ;;  %6865 = vmatprep.subr.mxu0 %v284_v24  ;;  %v706_v59 = vmul.f32 %v705_v57, %v8073_v0  ;;  %v534_v60 = vstv %s6546_s24  ;;  %s6561_s14 = sld [smem:[#allocation2 + $0x203]] }
  0x40   :  { %6899 = vmatpush3.msra.mxu1 %v150_v25  ;;  %6866 = vmatpush3.msra.mxu0 %v268_v28  ;;  %v715_v61 = vstv %s6554_s30  ;;  %v535_v62 = vmul.f32 %v534_v60, %v8073_v0  ;;  %s6569_s29 = sld [smem:[#allocation2 + $0x281]] }
  0x41   :  { %6900 = vmatprep.subr.mxu1 %v165_v30  ;;  %6867 = vmatprep.subr.mxu0 %v283_v31  ;;  %v716_v63 = vmul.f32 %v715_v61, %v8073_v0  ;;  %v735_v1 = vstv %s6556_s28  ;;  %s6562_s8 = sld [smem:[#allocation2 + $0x204]] }
  0x42   :  { %136 = vrot.lane.b32.xlu1 %v134_v13, %s8025_s17  ;;  %6901 = vmatpush3.msra.mxu1 %v149_v32  ;;  %v725_v2 = vstv %s6555_s15  ;;  %v736_v3 = vmul.f32 %v735_v1, %v8073_v0  ;;  %s6570_s10 = sld [smem:[#allocation2 + $0x282]] }
  0x43   :  { %256 = vrot.lane.b32.xlu0 %v254_v16, %s8025_s17  ;;  %6868 = vmatpush3.msra.mxu0 %v267_v34  ;;  %v726_v4 = vmul.f32 %v725_v2, %v8073_v0  ;;  %v876_v5 = vstv %s6560_s21  ;;  %s6563_s12 = sld [smem:[#allocation2 + $0x205]] }
  0x44   :  { %6902 = vmatprep.subr.mxu1 %v164_v35  ;;  %6869 = vmatprep.subr.mxu0 %v282_v38  ;;  %v866_v6 = vstv %s6559_s26  ;;  %v877_v7 = vmul.f32 %v876_v5, %v8073_v0  ;;  %s6571_s18 = sld [smem:[#allocation2 + $0x283]] }
  0x45   :  { %6903 = vmatpush3.msra.mxu1 %v148_v40  ;;  %6870 = vmatpush3.msra.mxu0 %v266_v41  ;;  %v867_v8 = vmul.f32 %v866_v6, %v8073_v0  ;;  %v886_v9 = vstv %s6561_s14  ;;  %s6564_s2 = sld [smem:[#allocation2 + $0x206]] }
  0x46   :  { %477 = vrot.lane.b32.xlu1 %v475_v23, %s8018_s7  ;;  %6904 = vmatprep.subr.mxu1 %v163_v42  ;;  %v1067_v10 = vstv %s6569_s29  ;;  %v887_v11 = vmul.f32 %v886_v9, %v8073_v0  ;;  %s6572_s16 = sld [smem:[#allocation2 + $0x284]] }
  0x47   :  { %467 = vrot.lane.b32.xlu0 %v465_v26, %s8019_s11  ;;  %6905 = vmatpush3.msra.mxu1 %v147_v44  ;;  %v1068_v12 = vmul.f32 %v1067_v10, %v8073_v0  ;;  %v896_v13 = vstv %s6562_s8  ;;  %s6565_s20 = sld [smem:[#allocation2 + $0x207]] }
  0x48   :  { %6909 = vmatprep.subr.mxu0 %v578_v45  ;;  %6944 = vmatprep.subr.mxu1 %v779_v48  ;;  %v1077_v14 = vstv %s6570_s10  ;;  %v897_v15 = vmul.f32 %v896_v13, %v8073_v0  ;;  %s6573_s25 = sld [smem:[#allocation2 + $0x285]] }
  0x49   :  { %v1078_v16 = vmul.f32 %v1077_v14, %v8073_v0  ;;  %v906_v17 = vstv %s6563_s12  ;;  %s6566_s23 = sld [smem:[#allocation2 + $0x208]] }
  0x4a   :  { %487 = vrot.lane.b32.xlu1 %v485_v33, %s8020_s22  ;;  %v1087_v18 = vstv %s6571_s18  ;;  %v907_v19 = vmul.f32 %v906_v17, %v8073_v0  ;;  %s6574_s1 = sld [smem:[#allocation2 + $0x286]] }
  0x4b   :  { %668 = vrot.lane.b32.xlu0 %v666_v36, %s8019_s11  ;;  %v1088_v20 = vmul.f32 %v1087_v18, %v8073_v0  ;;  %v916_v21 = vstv %s6564_s2  ;;  %s6576_s24 = sld [smem:[#allocation2 + $0x288]] }
  0x4c   :  { %v1097_v22 = vstv %s6572_s16  ;;  %v917_v23 = vmul.f32 %v916_v21, %v8073_v0  ;;  %s6575_s30 = sld [smem:[#allocation2 + $0x287]] }
  0x4d   :  { %v1098_v24 = vmul.f32 %v1097_v22, %v8073_v0  ;;  %v926_v25 = vstv %s6565_s20  ;;  %s6580_s28 = sld [smem:[#allocation2 + $0x302]] }
  0x4e   :  { %497 = vrot.lane.b32.xlu1 %v495_v43, %s8021_s19  ;;  %v1107_v26 = vstv %s6573_s25  ;;  %v927_v27 = vmul.f32 %v926_v25, %v8073_v0  ;;  %s6579_s15 = sld [smem:[#allocation2 + $0x301]] }
  0x4f   :  { %678 = vrot.lane.b32.xlu0 %v676_v46, %s8018_s7  ;;  %v1108_v28 = vmul.f32 %v1107_v26, %v8073_v0  ;;  %v936_v29 = vstv %s6566_s23  ;;  %s6581_s21 = sld [smem:[#allocation2 + $0x303]] }
  0x50   :  { %v1117_v30 = vstv %s6574_s1  ;;  %v937_v31 = vmul.f32 %v936_v29, %v8073_v0  ;;  %s6589_s26 = sld [smem:[#allocation2 + $0x381]] }
  0x51   :  { %v1118_v32 = vmul.f32 %v1117_v30, %v8073_v0  ;;  %v1137_v33 = vstv %s6576_s24  ;;  %s6582_s14 = sld [smem:[#allocation2 + $0x304]] }
  0x52   :  { %507 = vrot.lane.b32.xlu1 %v505_v50, %s8022_s9  ;;  %v1127_v34 = vstv %s6575_s30  ;;  %v1138_v35 = vmul.f32 %v1137_v33, %v8073_v0  ;;  %s6590_s29 = sld [smem:[#allocation2 + $0x382]] }
  0x53   :  { %688 = vrot.lane.b32.xlu0 %v686_v51, %s8020_s22  ;;  %v1128_v36 = vmul.f32 %v1127_v34, %v8073_v0  ;;  %v1278_v37 = vstv %s6580_s28  ;;  %s6583_s8 = sld [smem:[#allocation2 + $0x305]] }
  0x54   :  { %v1268_v38 = vstv %s6579_s15  ;;  %v1279_v39 = vmul.f32 %v1278_v37, %v8073_v0  ;;  %s6591_s10 = sld [smem:[#allocation2 + $0x383]] }
  0x55   :  { %v1269_v40 = vmul.f32 %v1268_v38, %v8073_v0  ;;  %v1288_v41 = vstv %s6581_s21  ;;  %s6584_s12 = sld [smem:[#allocation2 + $0x306]] }
  0x56   :  { %517 = vrot.lane.b32.xlu1 %v515_v54, %s8023_s27  ;;  %v1469_v42 = vstv %s6589_s26  ;;  %v1289_v43 = vmul.f32 %v1288_v41, %v8073_v0  ;;  %s6592_s18 = sld [smem:[#allocation2 + $0x384]] }
  0x57   :  { %698 = vrot.lane.b32.xlu0 %v696_v55, %s8021_s19  ;;  %v1470_v44 = vmul.f32 %v1469_v42, %v8073_v0  ;;  %v1298_v45 = vstv %s6582_s14  ;;  %s6585_s2 = sld [smem:[#allocation2 + $0x307]] }
  0x58   :  { %v1479_v46 = vstv %s6590_s29  ;;  %v1299_v47 = vmul.f32 %v1298_v45, %v8073_v0  ;;  %s6593_s16 = sld [smem:[#allocation2 + $0x385]] }
  0x59   :  { %v1480_v48 = vmul.f32 %v1479_v46, %v8073_v0  ;;  %v1308_v49 = vstv %s6583_s8  ;;  %s6586_s20 = sld [smem:[#allocation2 + $0x308]] }
  0x5a   :  { %527 = vrot.lane.b32.xlu1 %v525_v58, %s8024_s13  ;;  %v1489_v50 = vstv %s6591_s10  ;;  %v1309_v51 = vmul.f32 %v1308_v49, %v8073_v0  ;;  %s6594_s25 = sld [smem:[#allocation2 + $0x386]] }
  0x5b   :  { %708 = vrot.lane.b32.xlu0 %v706_v59, %s8022_s9  ;;  %v1490_v52 = vmul.f32 %v1489_v50, %v8073_v0  ;;  %v1318_v53 = vstv %s6584_s12  ;;  %s6596_s23 = sld [smem:[#allocation2 + $0x388]] }
  0x5c   :  { %v1499_v54 = vstv %s6592_s18  ;;  %v1319_v55 = vmul.f32 %v1318_v53, %v8073_v0  ;;  %s6595_s1 = sld [smem:[#allocation2 + $0x387]] }
  0x5d   :  { %v1500_v56 = vmul.f32 %v1499_v54, %v8073_v0  ;;  %v1328_v57 = vstv %s6585_s2  ;;  %s8456_s24 = sld [smem:[#allocation2]] }
  0x5e   :  { %537 = vrot.lane.b32.xlu1 %v535_v62, %s8025_s17  ;;  %v1509_v58 = vstv %s6593_s16  ;;  %v1329_v59 = vmul.f32 %v1328_v57, %v8073_v0  ;;  %s8460_s30 = sld [smem:[#allocation2 + $0x402]] }
  0x5f   :  { %718 = vrot.lane.b32.xlu0 %v716_v63, %s8023_s27  ;;  %v1510_v60 = vmul.f32 %v1509_v58, %v8073_v0  ;;  %v1338_v61 = vstv %s6586_s20  ;;  %s8464_s28 = sld [smem:[#allocation2 + $0x401]] }
  0x60   :  { %v1519_v63 = vstv %s6594_s25  ;;  %s8466_s15 = sld [smem:[#allocation2 + $0x80]]  ;;  %v1339_v2 = vmul.f32 %v1338_v61, %v8073_v0 }
  0x61   :  { %s8472_s21 = sld [smem:[#allocation2 + $0x403]] }
  0x62   :  { %738 = vrot.lane.b32.xlu1 %v736_v3, %s8025_s17  ;;  %v1520_v3 = vmul.f32 %v1519_v63, %v8073_v0  ;;  %v1529_v6 = vstv %s6595_s1  ;;  %s8474_s26 = sld [smem:[#allocation2 + $0x481]] }
  0x63   :  { %728 = vrot.lane.b32.xlu0 %v726_v4, %s8024_s13  ;;  %v1539_v4 = vstv %s6596_s23  ;;  %v53_v9 = vstv %s8456_s24  ;;  %s8482_s14 = sld [smem:[#allocation2 + $0x404]] }
  0x64   :  { %s8485_s29 = sld [smem:[#allocation2 + $0x482]] }
  0x65   :  { %v1670_v14 = vstv %s8464_s28  ;;  %s8496_s12 = sld [smem:[#allocation2 + $0x405]] }
  0x66   :  { %879 = vrot.lane.b32.xlu1 %v877_v7, %s8018_s7  ;;  %v180_v17 = vstv %s8466_s15  ;;  %v1671_v22 = vmul.f32 %v1670_v14, %v8073_v0  ;;  %s8503_s18 = sld [smem:[#allocation2 + $0x483]] }
  0x67   :  { %869 = vrot.lane.b32.xlu0 %v867_v8, %s8019_s11  ;;  %v1540_v8 = vmul.f32 %v1539_v4, %v8073_v0  ;;  %s8509_s2 = sld [smem:[#allocation2 + $0x406]] }
  0x68   :  { %v1871_v25 = vstv %s8474_s26  ;;  %s8514_s16 = sld [smem:[#allocation2 + $0x484]] }
  0x69   :  { %v1872_v33 = vmul.f32 %v1871_v25, %v8073_v0  ;;  %v1700_v34 = vstv %s8482_s14  ;;  %s8522_s20 = sld [smem:[#allocation2 + $0x407]] }
  0x6a   :  { %889 = vrot.lane.b32.xlu1 %v887_v11, %s8020_s22  ;;  %v1530_v11 = vmul.f32 %v1529_v6, %v8073_v0  ;;  %v1881_v38 = vstv %s8485_s29  ;;  %v1701_v45 = vmul.f32 %v1700_v34, %v8073_v0  ;;  %s8527_s25 = sld [smem:[#allocation2 + $0x485]]  ;;  %v8571_v34 = vld [vmem:[%s13836_s0] sm:$0x3f] }
  0x6b   :  { %1070 = vrot.lane.b32.xlu0 %v1068_v12, %s8019_s11  ;;  %v1680_v12 = vstv %s8460_s30  ;;  %v1710_v46 = vstv %s8496_s12  ;;  %v1882_v49 = vmul.f32 %v1881_v38, %v8073_v0  ;;  %s8535_s23 = sld [smem:[#allocation2 + $0x408]] }
  0x6c   :  { %v1891_v54 = vstv %s8503_s18  ;;  %s8540_s1 = sld [smem:[#allocation2 + $0x486]] }
  0x6d   :  { %s8546_s24 = sld [smem:[#allocation4]] }
  0x6e   :  { %899 = vrot.lane.b32.xlu1 %v897_v15, %s8021_s19  ;;  %v8490_v15 = vld [vmem:[%s13836_s0] sm:$0xf]  ;;  %v1901_v4 = vstv %s8514_s16  ;;  %s8549_s30 = sld [smem:[#allocation4 + $0x1]] }
  0x6f   :  { %1080 = vrot.lane.b32.xlu0 %v1078_v16, %s8018_s7  ;;  %v181_v26 = vmul.f32 %v180_v17, %v8490_v15  ;;  %s8556_s28 = sld [smem:[#allocation2 + $0x100]] }
  0x70   :  { %s8562_s15 = sld [smem:[#allocation2 + $0x488]] }
  0x71   :  { %s8579_s29 = sld [smem:[#allocation2 + $0x502]] }
  0x72   :  { %909 = vrot.lane.b32.xlu1 %v907_v19, %s8022_s9  ;;  %v54_v19 = vmul.f32 %v53_v9, %v8490_v15  ;;  %s8584_s8 = sld [smem:[#allocation2 + $0x501]] }
  0x73   :  { %1090 = vrot.lane.b32.xlu0 %v1088_v20, %s8020_s22  ;;  %v1681_v20 = vmul.f32 %v1680_v12, %v8073_v0  ;;  %s8595_s10 = sld [smem:[#allocation2 + $0x503]] }
  0x74   :  { %s8599_s12 = sld [smem:[#allocation2 + $0x581]] }
  0x75   :  { %s8602_s18 = sld [smem:[#allocation2 + $0x180]] }
  0x76   :  { %919 = vrot.lane.b32.xlu1 %v917_v23, %s8023_s27  ;;  %v1690_v23 = vstv %s8472_s21  ;;  %s8565_s21 = sld [smem:[#allocation2 + $0x487]] }
  0x77   :  { %1100 = vrot.lane.b32.xlu0 %v1098_v24, %s8021_s19  ;;  %s8689_s16 = sld [smem:[#allocation4 + $0x2]] }
  0x78   :  { %s8780_s26 = sld [smem:[#allocation2 + $0x508]] }
  0x79   :  { %s8930_s14 = sld [smem:[#allocation2 + $0x681]] }
  0x7a   :  { %929 = vrot.lane.b32.xlu1 %v927_v27, %s8024_s13 }
  0x7b   :  { %1110 = vrot.lane.b32.xlu0 %v1108_v28, %s8022_s9 }
  0x7e   :  { %939 = vrot.lane.b32.xlu1 %v937_v31, %s8025_s17  ;;  %v1691_v31 = vmul.f32 %v1690_v23, %v8073_v0  ;;  %v1730_v23 = vstv %s8522_s20  ;;  %s9189_s20 = sld [smem:[#allocation2 + $0x300]] }
  0x7f   :  { %1120 = vrot.lane.b32.xlu0 %v1118_v32, %s8023_s27 }
  0x82   :  { %1140 = vrot.lane.b32.xlu1 %v1138_v35, %s8025_s17 }
  0x83   :  { %1130 = vrot.lane.b32.xlu0 %v1128_v36, %s8024_s13 }
  0x86   :  { %1281 = vrot.lane.b32.xlu1 %v1279_v39, %s8018_s7 }
  0x87   :  { %1271 = vrot.lane.b32.xlu0 %v1269_v40, %s8019_s11 }
  0x8a   :  { %1291 = vrot.lane.b32.xlu1 %v1289_v43, %s8020_s22 }
  0x8b   :  { %1472 = vrot.lane.b32.xlu0 %v1470_v44, %s8019_s11 }
  0x8e   :  { %1301 = vrot.lane.b32.xlu1 %v1299_v47, %s8021_s19 }
  0x8f   :  { %1482 = vrot.lane.b32.xlu0 %v1480_v48, %s8018_s7 }
  0x92   :  { %1311 = vrot.lane.b32.xlu1 %v1309_v51, %s8022_s9 }
  0x93   :  { %1492 = vrot.lane.b32.xlu0 %v1490_v52, %s8020_s22 }
  0x96   :  { %1321 = vrot.lane.b32.xlu1 %v1319_v55, %s8023_s27 }
  0x97   :  { %1502 = vrot.lane.b32.xlu0 %v1500_v56, %s8021_s19 }
  0x98   :  { %v8462_v62 = vpop.permute.xlu1 %196 }
  0x99   :  { %v187_v1 = vpop.permute.xlu0 %186  ;;  %v198_v35 = vrot.slane %v8462_v62, 2 }
  0x9a   :  { %1331 = vrot.lane.b32.xlu1 %v1329_v59, %s8024_s13  ;;  %v188_v18 = vrot.slane %v187_v1, 2  ;;  %v1711_v59 = vmul.f32 %v1710_v46, %v8073_v0 }
  0x9b   :  { %1512 = vrot.lane.b32.xlu0 %v1510_v60, %s8022_s9  ;;  %v199_v50 = vsel %vm73_vm1, %v8462_v62, %v198_v35  ;;  %v1720_v62 = vstv %s8509_s2  ;;  %v1731_v35 = vmul.f32 %v8571_v34, %v1730_v23  ;;  %s8615_s2 = sld [smem:[#allocation2 + $0x504]] }
  0x9c   :  { %v71_v5 = vpop.permute.xlu1 %70  ;;  %v189_v29 = vsel %vm62_vm0, %v187_v1, %v188_v18 }
  0x9d   :  { %v60_v7 = vpop.permute.xlu0 %59  ;;  %v72_v27 = vrot.slane %v71_v5, 2  ;;  %v191_v39 = vadd.f32 %v189_v29, %v181_v26 }
  0x9e   :  { %1341 = vrot.lane.b32.xlu1 %v1339_v2, %s8025_s17  ;;  %v61_v10 = vrot.slane %v60_v7, 2 }
  0x9f   :  { %1522 = vrot.lane.b32.xlu0 %v1520_v3, %s8023_s27  ;;  %v74_v40 = vsel %vm73_vm1, %v71_v5, %v72_v27  ;;  %v201_v55 = vadd.f32 %v199_v50, %v191_v39  ;;  %v1892_v3 = vmul.f32 %v1891_v54, %v8073_v0  ;;  %v1740_v39 = vstv %s8535_s23  ;;  %s8699_s23 = sld [smem:[#allocation2 + $0x506]] }
  0xa0   :  { %v82_v13 = vpop.permute.xlu1 %81  ;;  %v63_v21 = vsel %vm62_vm0, %v60_v7, %v61_v10  ;;  %v302_v10 = vlaneseq  ;;  %v1941_v54 = vstv %s8562_s15  ;;  %s8809_s15 = sld [smem:[#allocation2 + $0x200]] }
  0xa1   :  { %v207_v16 = vpop.permute.xlu0 %206  ;;  %v65_v30 = vadd.f32 %v63_v21, %v54_v19  ;;  %v83_v32 = vrot.slane %v82_v13, 2 }
  0xa2   :  { %1542 = vrot.lane.b32.xlu1 %v1540_v8, %s8025_s17  ;;  %v208_v36 = vrot.slane %v207_v16, 2  ;;  %v8026_v8 = vmov 1983009808  }
  0xa3   :  { %1532 = vrot.lane.b32.xlu0 %v1530_v11, %s8024_s13  ;;  %v76_v43 = vadd.f32 %v74_v40, %v65_v30  ;;  %v85_v47 = vsel %vm84_vm2, %v82_v13, %v83_v32  ;;  %v300_v9 = vunpack.c.l.s4 %v8026_v8  ;;  %v144_v40 = vstv %s8546_s24  ;;  %s9167_s24 = sld [smem:[#allocation2 + $0x686]] }
  0xa4   :  { %v93_v24 = vpop.permute.xlu1 %92  ;;  %v209_v51 = vsel %vm84_vm2, %v207_v16, %v208_v36  ;;  %v1721_v16 = vmul.f32 %v1720_v62, %v8073_v0 }
  0xa5   :  { %v217_v28 = vpop.permute.xlu0 %216  ;;  %v94_v41 = vrot.slane %v93_v24, 2  ;;  %v87_v60 = vadd.f32 %v85_v47, %v76_v43  ;;  %v211_v1 = vadd.f32 %v209_v51, %v201_v55  ;;  %v301_v30 = vunpack.c.0.s8 %v300_v9 }
  0xa6   :  { %1683 = vrot.lane.b32.xlu1 %v1681_v20, %s8018_s7  ;;  %v218_v44 = vrot.slane %v217_v28, 2  ;;  %v1902_v20 = vmul.f32 %v1901_v4, %v8073_v0  ;;  %v2082_v4 = vstv %s8579_s29  ;;  %s8750_s29 = sld [smem:[#allocation2 + $0x585]] }
  0xa7   :  { %1673 = vrot.lane.b32.xlu0 %v1671_v22, %s8019_s11  ;;  %v96_v56 = vsel %vm95_vm3, %v93_v24, %v94_v41  ;;  %v1911_v24 = vstv %s8527_s25  ;;  %s8655_s25 = sld [smem:[#allocation2 + $0x505]] }
  0xa8   :  { %v104_v37 = vpop.permute.xlu1 %103  ;;  %v219_v61 = vsel %vm95_vm3, %v217_v28, %v218_v44  ;;  %v98_v5 = vadd.f32 %v96_v56, %v87_v60  ;;  %v1912_v36 = vmul.f32 %v8571_v34, %v1911_v24  ;;  %v1921_v44 = vstv %s8540_s1  ;;  %s8625_s1 = sld [smem:[#allocation2 + $0x582]] }
  0xa9   :  { %v227_v42 = vpop.permute.xlu0 %226  ;;  %v105_v48 = vrot.slane %v104_v37, 2  ;;  %v221_v11 = vadd.f32 %v219_v61, %v211_v1 }
  0xaa   :  { %1693 = vrot.lane.b32.xlu1 %v1691_v31, %s8020_s22  ;;  %v228_v52 = vrot.slane %v227_v42, 2  ;;  %v303_v31 = vshrl.u32 %v302_v10, 7 }
  0xab   :  { %1874 = vrot.lane.b32.xlu0 %v1872_v33, %s8019_s11  ;;  %v107_v2 = vsel %vm106_vm4, %v104_v37, %v105_v48  ;;  %v461_v48 = vstv %s8556_s28  ;;  %s8740_s28 = sld [smem:[#allocation2 + $0x507]] }
  0xac   :  { %v115_v53 = vpop.permute.xlu1 %114  ;;  %v229_v6 = vsel %vm106_vm4, %v227_v42, %v228_v52  ;;  %v109_v17 = vadd.f32 %v107_v2, %v98_v5  ;;  %v8589_v50 = vsub.s32 %v301_v30, %v303_v31  ;;  %v462_v61 = vmul.f32 %v461_v48, %v8490_v15  ;;  %v560_v30 = vld [vmem:[%s13839_s3 + $0x268] sm:$0xff]  ;;  %v762_v31 = vld [vmem:[%s13839_s3 + $0x370] sm:$0xff] }
  0xad   :  { %v116_v57 = vrot.slane %v115_v53, 2  ;;  %v237_v58 = vpop.permute.xlu0 %236  ;;  %v231_v21 = vadd.f32 %v229_v6, %v221_v11 }
  0xae   :  { %v238_v63 = vrot.slane %v237_v58, 2  ;;  %1703 = vrot.lane.b32.xlu1 %v1701_v45, %s8021_s19  ;;  %v263_v45 = vstv %s8549_s30  ;;  %s8666_s30 = sld [smem:[#allocation2 + $0x583]] }
  0xaf   :  { %1884 = vrot.lane.b32.xlu0 %v1882_v49, %s8018_s7  ;;  %v118_v12 = vsel %vm117_vm5, %v115_v53, %v116_v57  ;;  %v1741_v49 = vmul.f32 %v8571_v34, %v1740_v39  ;;  %v1922_v53 = vmul.f32 %v8571_v34, %v1921_v44  ;;  %v1931_v57 = vstv %s8565_s21  ;;  %s8711_s21 = sld [smem:[#allocation2 + $0x584]] }
  0xb0   :  { %v126_v7 = vpop.permute.xlu1 %125  ;;  %v239_v18 = vsel %vm117_vm5, %v237_v58, %v238_v63  ;;  %v120_v25 = vadd.f32 %v118_v12, %v109_v17  ;;  %v1942_v63 = vmul.f32 %v8571_v34, %v1941_v54  ;;  %v1932_v2 = vmul.f32 %v8571_v34, %v1931_v57  ;;  %v562_v12 = vld [vmem:[%s13839_s3 + $0x278] sm:$0xff]  ;;  %v577_v17 = vld [vmem:[%s13839_s3 + $0x2f0] sm:$0xff] }
  0xb1   :  { %v127_v13 = vrot.slane %v126_v7, 2  ;;  %v247_v14 = vpop.permute.xlu0 %246  ;;  %v241_v0 = vadd.f32 %v239_v18, %v231_v21  ;;  %v2092_v21 = vstv %s8595_s10  ;;  %v2283_v54 = vstv %s8625_s1  ;;  %v573_v57 = vld [vmem:[%s13839_s3 + $0x2d0] sm:$0xff]  ;;  %s8822_s10 = sld [smem:[#allocation2 + $0x588]] }
  0xb2   :  { %v248_v19 = vrot.slane %v247_v14, 2  ;;  %1713 = vrot.lane.b32.xlu1 %v1711_v59, %s8022_s9  ;;  %s8917_s1 = sld [smem:[#allocation2 + $0x603]] }
  0xb3   :  { %v129_v22 = vsel %vm128_vm6, %v126_v7, %v127_v13  ;;  %1894 = vrot.lane.b32.xlu0 %v1892_v3, %s8020_s22  ;;  %v2072_v7 = vstv %s8584_s8  ;;  %v2083_v13 = vmul.f32 %v8571_v34, %v2082_v4  ;;  %s8971_s8 = sld [smem:[#allocation2 + $0x682]] }
  0xb4   :  { %v249_v26 = vsel %vm128_vm6, %v247_v14, %v248_v19  ;;  %v137_v27 = vpop.permute.xlu1 %136  ;;  %v131_v32 = vadd.f32 %v129_v22, %v120_v25  ;;  %v763_v14 = vld [vmem:[%s13839_s3 + $0x378] sm:$0xff]  ;;  %v2073_v18 = vmul.f32 %v8571_v34, %v2072_v7  ;;  %v576_v25 = vld [vmem:[%s13839_s3 + $0x2e8] sm:$0xff]  ;;  %v2284_v7 = vmul.f32 %v8571_v34, %v2283_v54  ;;  %v756_v54 = vld [vmem:[%s13839_s3 + $0x340] sm:$0xff] }
  0xb5   :  { %v138_v28 = vrot.slane %v137_v27, 2  ;;  %v257_v29 = vpop.permute.xlu0 %256  ;;  %v251_v37 = vadd.f32 %v249_v26, %v241_v0  ;;  %v778_v26 = vld [vmem:[%s13839_s3 + $0x3f0] sm:$0xff] }
  0xb6   :  { %v258_v33 = vrot.slane %v257_v29, 2  ;;  %1723 = vrot.lane.b32.xlu1 %v1721_v16, %s8023_s27 }
  0xb7   :  { %v140_v38 = vsel %vm139_vm7, %v137_v27, %v138_v28  ;;  %1904 = vrot.lane.b32.xlu0 %v1902_v20, %s8021_s19  ;;  %v561_v20 = vld [vmem:[%s13839_s3 + $0x270] sm:$0xff]  ;;  %v2273_v27 = vstv %s8599_s12  ;;  %v662_v28 = vstv %s8602_s18  ;;  %s8763_s12 = sld [smem:[#allocation4 + $0x3]] }
  0xb8   :  { %v142_v41 = vadd.f32 %v140_v38, %v131_v32  ;;  %v259_v42 = vsel %vm139_vm7, %v257_v29, %v258_v33  ;;  %v478_v43 = vpop.permute.xlu1 %477  ;;  %s9048_s18 = sld [smem:[#allocation4 + $0x4]] }
  0xb9   :  { %v261_v46 = vadd.f32 %v259_v42, %v251_v37  ;;  %v468_v47 = vpop.permute.xlu0 %467  ;;  %v479_v8 = vrot.slane %v478_v43, 2  ;;  %v2093_v37 = vmul.f32 %v8571_v34, %v2092_v21  ;;  %v663_v42 = vmul.f32 %v662_v28, %v8490_v15  ;;  %v774_v21 = vld [vmem:[%s13839_s3 + $0x3d0] sm:$0xff] }
  0xba   :  { %1733 = vrot.lane.b32.xlu1 %v1731_v35, %s8024_s13  ;;  %v145_v51 = vadd.f32 %v144_v40, %v142_v41  ;;  %v469_v52 = vrot.slane %v468_v47, 2  ;;  %v575_v35 = vld [vmem:[%s13839_s3 + $0x2e0] sm:$0xff]  ;;  %v2274_v41 = vmul.f32 %v8571_v34, %v2273_v27  ;;  %v758_v27 = vld [vmem:[%s13839_s3 + $0x350] sm:$0xff] }
  0xbb   :  { %1914 = vrot.lane.b32.xlu0 %v1912_v36, %s8022_s9  ;;  %v264_v55 = vadd.f32 %v263_v45, %v261_v46  ;;  %v480_v22 = vsel %vm73_vm1, %v478_v43, %v479_v8  ;;  %v777_v36 = vld [vmem:[%s13839_s3 + $0x3e8] sm:$0xff]  ;;  %v559_v40 = vld [vmem:[%s13839_s3 + $0x260] sm:$0xff]  ;;  %v574_v46 = vld [vmem:[%s13839_s3 + $0x2d8] sm:$0xff] }
  0xbc   :  { %v488_v56 = vpop.permute.xlu1 %487  ;;  %v146_v58 = vmax.f32 %v145_v51, 0.0  ;;  %v470_v1 = vsel %vm62_vm0, %v468_v47, %v469_v52  ;;  %v2102_v47 = vstv %s8615_s2  ;;  %v761_v52 = vld [vmem:[%s13839_s3 + $0x368] sm:$0xff]  ;;  %s8790_s2 = sld [smem:[#allocation2 + $0x586]] }
  0xbd   :  { %v8597_v59 = vpop.permute.xlu0 %668  ;;  %v265_v60 = vmax.f32 %v264_v55, 0.0  ;;  %v472_v11 = vadd.f32 %v470_v1, %v462_v61  ;;  %v489_v16 = vrot.slane %v488_v56, 2  ;;  %v2103_v1 = vmul.f32 %v8571_v34, %v2102_v47  ;;  %v772_v47 = vld [vmem:[%s13839_s3 + $0x3c0] sm:$0xff] }
  0xbe   :  { %1743 = vrot.lane.b32.xlu1 %v1741_v49, %s8025_s17  ;;  %v386_v62 = vrot.slane %v146_v58, %v8589_v50  ;;  %v670_v29 = vrot.slane %v8597_v59, 2 }
  0xbf   :  { %1924 = vrot.lane.b32.xlu0 %v1922_v53, %s8023_s27  ;;  %v305_v3 = vrot.slane %v265_v60, %v8589_v50  ;;  %v482_v0 = vadd.f32 %v480_v22, %v472_v11  ;;  %v490_v32 = vsel %vm84_vm2, %v488_v56, %v489_v16  ;;  %v558_v53 = vld [vmem:[%s13839_s3 + $0x258] sm:$0xff]  ;;  %v776_v56 = vld [vmem:[%s13839_s3 + $0x3e0] sm:$0xff]  ;;  %v572_v11 = vld [vmem:[%s13839_s3 + $0x2c8] sm:$0xff] }
  0xc0   :  { %v498_v5 = vpop.permute.xlu1 %497  ;;  %v387_v6 = vcombine.high %v386_v62, %v386_v62  ;;  %v671_v49 = vsel %vm62_vm0, %v8597_v59, %v670_v29  ;;  %v759_v16 = vld [vmem:[%s13839_s3 + $0x358] sm:$0xff] }
  0xc1   :  { %v8613_v9 = vpop.permute.xlu0 %678  ;;  %v306_v10 = vcombine.high %v305_v3, %v305_v3  ;;  %v499_v23 = vrot.slane %v498_v5, 2  ;;  %v492_v48 = vadd.f32 %v490_v32, %v482_v0  ;;  %v555_v0 = vld [vmem:[%s13839_s3 + $0x240] sm:$0xff]  ;;  %v773_v32 = vld [vmem:[%s13839_s3 + $0x3c8] sm:$0xff] }
  0xc2   :  { %1944 = vrot.lane.b32.xlu1 %v1942_v63, %s8025_s17  ;;  %454 = vmatprep.mubr.f32.mxu1 %v387_v6  ;;  %v680_v38 = vrot.slane %v8613_v9, 2  ;;  %v760_v63 = vld [vmem:[%s13839_s3 + $0x360] sm:$0xff]  ;;  %v775_v6 = vld [vmem:[%s13839_s3 + $0x3d8] sm:$0xff] }
  0xc3   :  { %1934 = vrot.lane.b32.xlu0 %v1932_v2, %s8024_s13  ;;  %373 = vmatprep.mubr.f32.mxu0 %v306_v10  ;;  %v500_v43 = vsel %vm95_vm3, %v498_v5, %v499_v23  ;;  %v673_v2 = vadd.f32 %v671_v49, %v663_v42  ;;  %v571_v23 = vld [vmem:[%s13839_s3 + $0x2c0] sm:$0xff]  ;;  %v757_v42 = vld [vmem:[%s13839_s3 + $0x348] sm:$0xff]  ;;  %v569_v49 = vld [vmem:[%s13839_s3 + $0x2b0] sm:$0xff] }
  0xc4   :  { %374 = vmatmul.mubr.f32.vlgmr.msra.gmra.mxu0 %v305_v3  ;;  %455 = vmatmul.mubr.f32.vlgmr.msra.gmra.mxu1 %v386_v62  ;;  %v508_v19 = vpop.permute.xlu1 %507  ;;  %v502_v58 = vadd.f32 %v500_v43, %v492_v48  ;;  %v681_v59 = vsel %vm73_vm1, %v8613_v9, %v680_v38  ;;  %v557_v62 = vld [vmem:[%s13839_s3 + $0x250] sm:$0xff]  ;;  %v570_v38 = vld [vmem:[%s13839_s3 + $0x2b8] sm:$0xff] }
  0xc5   :  { %6910 = vmatpush3.msra.mxu0 %v562_v12  ;;  %v8637_v24 = vpop.permute.xlu0 %688  ;;  %6945 = vmatpush3.msra.mxu1 %v763_v14  ;;  %v509_v33 = vrot.slane %v508_v19, 2  ;;  %v2112_v12 = vstv %s8655_s25  ;;  %v554_v43 = vld [vmem:[%s13839_s3 + $0x238] sm:$0xff]  ;;  %s9199_s25 = sld [smem:[#allocation2 + $0x688]] }
  0xc6   :  { %6911 = vmatprep.subr.mxu0 %v577_v17  ;;  %2085 = vrot.lane.b32.xlu1 %v2083_v13, %s8018_s7  ;;  %v690_v51 = vrot.slane %v8637_v24, 2  ;;  %v683_v13 = vadd.f32 %v681_v59, %v673_v2  ;;  %v556_v17 = vld [vmem:[%s13839_s3 + $0x248] sm:$0xff]  ;;  %v2113_v28 = vmul.f32 %v8571_v34, %v2112_v12  ;;  %v755_v2 = vld [vmem:[%s13839_s3 + $0x338] sm:$0xff]  ;;  %v551_v12 = vld [vmem:[%s13839_s3 + $0x220] sm:$0xff] }
  0xc7   :  { %6912 = vmatpush3.msra.mxu0 %v561_v20  ;;  %2075 = vrot.lane.b32.xlu0 %v2073_v18, %s8019_s11  ;;  %v510_v55 = vsel %vm106_vm4, %v508_v19, %v509_v33  ;;  %v2293_v18 = vstv %s8666_s30  ;;  %s8956_s30 = sld [smem:[#allocation2 + $0x604]] }
  0xc8   :  { %6913 = vmatprep.subr.mxu0 %v576_v25  ;;  %6946 = vmatprep.subr.mxu1 %v778_v26  ;;  %v518_v39 = vpop.permute.xlu1 %517  ;;  %v512_v8 = vadd.f32 %v510_v55, %v502_v58  ;;  %v691_v9 = vsel %vm84_vm2, %v8637_v24, %v690_v51  ;;  %v2294_v33 = vmul.f32 %v8571_v34, %v2293_v18  ;;  %v553_v55 = vld [vmem:[%s13839_s3 + $0x230] sm:$0xff]  ;;  %v771_v58 = vld [vmem:[%s13839_s3 + $0x3b8] sm:$0xff] }
  0xc9   :  { %6914 = vmatpush3.msra.mxu0 %v560_v30  ;;  %v519_v44 = vrot.slane %v518_v39, 2  ;;  %v699_v45 = vpop.permute.xlu0 %698  ;;  %6947 = vmatpush3.msra.mxu1 %v762_v31  ;;  %v693_v24 = vadd.f32 %v691_v9, %v683_v13  ;;  %v567_v9 = vld [vmem:[%s13839_s3 + $0x2a0] sm:$0xff] }
  0xca   :  { %6915 = vmatprep.subr.mxu0 %v575_v35  ;;  %6948 = vmatprep.subr.mxu1 %v777_v36  ;;  %v700_v60 = vrot.slane %v699_v45, 2  ;;  %v544_v36 = vstv %s8689_s16  ;;  %s8832_s16 = sld [smem:[#allocation2 + $0x587]] }
  0xcb   :  { %6916 = vmatpush3.msra.mxu0 %v559_v40  ;;  %2095 = vrot.lane.b32.xlu1 %v2093_v37, %s8020_s22  ;;  %v520_v3 = vsel %vm117_vm5, %v518_v39, %v519_v44  ;;  %v2122_v39 = vstv %s8699_s23  ;;  %s8874_s23 = sld [smem:[#allocation2 + $0x602]] }
  0xcc   :  { %2276 = vrot.lane.b32.xlu0 %v2274_v41, %s8019_s11  ;;  %6917 = vmatprep.subr.mxu0 %v574_v46  ;;  %v528_v61 = vpop.permute.xlu1 %527  ;;  %v522_v19 = vadd.f32 %v520_v3, %v512_v8  ;;  %v701_v20 = vsel %vm95_vm3, %v699_v45, %v700_v60  ;;  %v2303_v45 = vstv %s8711_s21  ;;  %v552_v3 = vld [vmem:[%s13839_s3 + $0x228] sm:$0xff]  ;;  %v770_v8 = vld [vmem:[%s13839_s3 + $0x3b0] sm:$0xff]  ;;  %s9464_s21 = sld [smem:[#allocation2 + $0x784]] }
  0xcd   :  { %6949 = vmatpush3.msra.mxu1 %v761_v52  ;;  %6918 = vmatpush3.msra.mxu0 %v558_v53  ;;  %v529_v4 = vrot.slane %v528_v61, 2  ;;  %v709_v5 = vpop.permute.xlu0 %708  ;;  %v703_v35 = vadd.f32 %v701_v20, %v693_v24  ;;  %v2304_v59 = vmul.f32 %v8571_v34, %v2303_v45  ;;  %v2323_v24 = vstv %s8790_s2  ;;  %v766_v45 = vld [vmem:[%s13839_s3 + $0x390] sm:$0xff]  ;;  %s9075_s2 = sld [smem:[#allocation2 + $0x684]] }
  0xce   :  { %6950 = vmatprep.subr.mxu1 %v776_v56  ;;  %v710_v10 = vrot.slane %v709_v5, 2  ;;  %6919 = vmatprep.subr.mxu0 %v573_v57  ;;  %v2123_v56 = vmul.f32 %v8571_v34, %v2122_v39 }
  0xcf   :  { %v530_v14 = vsel %vm128_vm6, %v528_v61, %v529_v4  ;;  %6951 = vmatpush3.msra.mxu1 %v760_v63  ;;  %6920 = vmatpush3.msra.mxu0 %v557_v62  ;;  %v568_v61 = vld [vmem:[%s13839_s3 + $0x2a8] sm:$0xff]  ;;  %v2132_v62 = vstv %s8740_s28  ;;  %s9065_s28 = sld [smem:[#allocation2 + $0x606]] }
  0xd0   :  { %6952 = vmatprep.subr.mxu1 %v775_v6  ;;  %2105 = vrot.lane.b32.xlu1 %v2103_v1, %s8021_s19  ;;  %v538_v22 = vpop.permute.xlu1 %537  ;;  %v532_v29 = vadd.f32 %v530_v14, %v522_v19  ;;  %v711_v30 = vsel %vm106_vm4, %v709_v5, %v710_v10  ;;  %v2313_v5 = vstv %s8750_s29  ;;  %v2133_v13 = vmul.f32 %v8571_v34, %v2132_v62  ;;  %v566_v19 = vld [vmem:[%s13839_s3 + $0x298] sm:$0xff]  ;;  %v764_v62 = vld [vmem:[%s13839_s3 + $0x380] sm:$0xff]  ;;  %s9112_s29 = sld [smem:[#allocation2 + $0x607]] }
  0xd1   :  { %2286 = vrot.lane.b32.xlu0 %v2284_v7, %s8018_s7  ;;  %6921 = vmatprep.subr.mxu0 %v572_v11  ;;  %v539_v25 = vrot.slane %v538_v22, 2  ;;  %v719_v26 = vpop.permute.xlu0 %718  ;;  %v713_v46 = vadd.f32 %v711_v30, %v703_v35  ;;  %v754_v11 = vld [vmem:[%s13839_s3 + $0x330] sm:$0xff]  ;;  %v745_v14 = vstv %s8763_s12  ;;  %s8882_s12 = sld [smem:[#allocation2 + $0x601]] }
  0xd2   :  { %6953 = vmatpush3.msra.mxu1 %v759_v16  ;;  %6922 = vmatpush3.msra.mxu0 %v556_v17  ;;  %v720_v31 = vrot.slane %v719_v26, 2  ;;  %v769_v16 = vld [vmem:[%s13839_s3 + $0x3a8] sm:$0xff]  ;;  %v2314_v17 = vmul.f32 %v8571_v34, %v2313_v5  ;;  %v964_v5 = vld [vmem:[%s13839_s3 + $0x478] sm:$0xff] }
  0xd3   :  { %6954 = vmatprep.subr.mxu1 %v774_v21  ;;  %v540_v37 = vsel %vm139_vm7, %v538_v22, %v539_v25  ;;  %6923 = vmatprep.subr.mxu0 %v571_v23  ;;  %v2142_v21 = vstv %s8780_s26  ;;  %v753_v22 = vld [vmem:[%s13839_s3 + $0x328] sm:$0xff]  ;;  %v550_v23 = vld [vmem:[%s13839_s3 + $0x218] sm:$0xff]  ;;  %s9025_s26 = sld [smem:[#allocation2 + $0x683]] }
  0xd4   :  { %v542_v40 = vadd.f32 %v540_v37, %v532_v29  ;;  %v721_v41 = vsel %vm117_vm5, %v719_v26, %v720_v31  ;;  %6955 = vmatpush3.msra.mxu1 %v758_v27  ;;  %6924 = vmatpush3.msra.mxu0 %v555_v0  ;;  %v739_v44 = vpop.permute.xlu1 %738  ;;  %v768_v27 = vld [vmem:[%s13839_s3 + $0x3a0] sm:$0xff]  ;;  %v565_v0 = vld [vmem:[%s13839_s3 + $0x290] sm:$0xff]  ;;  %v2143_v30 = vmul.f32 %v8571_v34, %v2142_v21  ;;  %v564_v37 = vld [vmem:[%s13839_s3 + $0x288] sm:$0xff] }
  0xd5   :  { %6956 = vmatprep.subr.mxu1 %v773_v32  ;;  %2115 = vrot.lane.b32.xlu1 %v2113_v28, %s8022_s9  ;;  %v729_v48 = vpop.permute.xlu0 %728  ;;  %v740_v52 = vrot.slane %v739_v44, 2  ;;  %v723_v57 = vadd.f32 %v721_v41, %v713_v46  ;;  %v752_v28 = vld [vmem:[%s13839_s3 + $0x320] sm:$0xff]  ;;  %v549_v29 = vld [vmem:[%s13839_s3 + $0x210] sm:$0xff]  ;;  %v767_v32 = vld [vmem:[%s13839_s3 + $0x398] sm:$0xff] }
  0xd6   :  { %v545_v51 = vadd.f32 %v544_v36, %v542_v40  ;;  %2296 = vrot.lane.b32.xlu0 %v2294_v33, %s8020_s22  ;;  %6925 = vmatprep.subr.mxu0 %v570_v38  ;;  %v730_v53 = vrot.slane %v729_v48, 2  ;;  %v2324_v33 = vmul.f32 %v8571_v34, %v2323_v24  ;;  %v863_v36 = vstv %s8809_s15  ;;  %v751_v41 = vld [vmem:[%s13839_s3 + $0x318] sm:$0xff]  ;;  %s8896_s15 = sld [smem:[#allocation2 + $0x280]] }
  0xd7   :  { %6957 = vmatpush3.msra.mxu1 %v757_v42  ;;  %6926 = vmatpush3.msra.mxu0 %v554_v43  ;;  %v741_v7 = vsel %vm139_vm7, %v739_v44, %v740_v52  ;;  %v2343_v42 = vstv %s8822_s10  ;;  %v2333_v43 = vstv %s8832_s16  ;;  %v548_v44 = vld [vmem:[%s13839_s3 + $0x208] sm:$0xff]  ;;  %v547_v52 = vld [vmem:[%s13839_s3 + $0x200] sm:$0xff]  ;;  %s9124_s10 = sld [smem:[#allocation2 + $0x685]] }
  0xd8   :  { %6958 = vmatprep.subr.mxu1 %v772_v47  ;;  %v731_v60 = vsel %vm128_vm6, %v729_v48, %v730_v53  ;;  %6927 = vmatprep.subr.mxu0 %v569_v49  ;;  %v8800_v63 = vpop.permute.xlu1 %879  ;;  %v546_v6 = vmax.f32 %v545_v51, 0.0  ;;  %v864_v47 = vmul.f32 %v863_v36, %v8490_v15  ;;  %v563_v48 = vld [vmem:[%s13839_s3 + $0x280] sm:$0xff]  ;;  %v750_v49 = vld [vmem:[%s13839_s3 + $0x310] sm:$0xff]  ;;  %v765_v53 = vld [vmem:[%s13839_s3 + $0x388] sm:$0xff]  ;;  %s9562_s16 = sld [smem:[#allocation2 + $0x786]] }
  0xd9   :  { %v733_v1 = vadd.f32 %v731_v60, %v723_v57  ;;  %6959 = vmatpush3.msra.mxu1 %v756_v54  ;;  %6928 = vmatpush3.msra.mxu0 %v553_v55  ;;  %v8811_v4 = vpop.permute.xlu0 %869  ;;  %v2344_v54 = vmul.f32 %v8571_v34, %v2343_v42  ;;  %v2334_v55 = vmul.f32 %v8571_v34, %v2333_v43  ;;  %v881_v60 = vrot.slane %v8800_v63, 2  ;;  %v1181_v21 = vld [vmem:[%s13839_s3 + $0x5f8] sm:$0xff] }
  0xda   :  { %6960 = vmatprep.subr.mxu1 %v771_v58  ;;  %2125 = vrot.lane.b32.xlu1 %v2123_v56, %s8023_s27  ;;  %v8855_v25 = vrot.slane %v546_v6, %v8589_v50  ;;  %v871_v40 = vrot.slane %v8811_v4, 2  ;;  %v749_v58 = vld [vmem:[%s13839_s3 + $0x308] sm:$0xff]  ;;  %v748_v6 = vld [vmem:[%s13839_s3 + $0x300] sm:$0xff] }
  0xdb   :  { %v743_v10 = vadd.f32 %v741_v7, %v733_v1  ;;  %2306 = vrot.lane.b32.xlu0 %v2304_v59, %s8021_s19  ;;  %6929 = vmatprep.subr.mxu0 %v568_v61  ;;  %v980_v61 = vld [vmem:[%s13839_s3 + $0x4f8] sm:$0xff]  ;;  %v2484_v1 = vstv %s8874_s23  ;;  %s9319_s23 = sld [smem:[#allocation2 + $0x781]] }
  0xdc   :  { %6961 = vmatpush3.msra.mxu1 %v755_v2  ;;  %6930 = vmatpush3.msra.mxu0 %v552_v3  ;;  %v8839_v18 = vpop.permute.xlu1 %889  ;;  %v587_v38 = vcombine.high %v8855_v25, %v8855_v25  ;;  %v872_v57 = vsel %vm62_vm0, %v8811_v4, %v871_v40  ;;  %v2474_v2 = vstv %s8882_s12  ;;  %s9008_s12 = sld [smem:[#allocation2 + $0x605]]  ;;  %v1164_v40 = vld [vmem:[%s13839_s3 + $0x570] sm:$0xff] }
  0xdd   :  { %6962 = vmatprep.subr.mxu1 %v770_v8  ;;  %6931 = vmatprep.subr.mxu0 %v567_v9  ;;  %v8844_v20 = vpop.permute.xlu0 %1070  ;;  %v746_v26 = vadd.f32 %v745_v14, %v743_v10  ;;  %v874_v4 = vadd.f32 %v872_v57, %v864_v47  ;;  %v891_v8 = vrot.slane %v8839_v18, 2  ;;  %v979_v9 = vld [vmem:[%s13839_s3 + $0x4f0] sm:$0xff]  ;;  %v1064_v10 = vstv %s8896_s15  ;;  %s9594_s15 = sld [smem:[#allocation2 + $0x788]] }
  0xde   :  { %6963 = vmatpush3.msra.mxu1 %v754_v11  ;;  %6932 = vmatpush3.msra.mxu0 %v551_v12  ;;  %v963_v11 = vld [vmem:[%s13839_s3 + $0x470] sm:$0xff]  ;;  %v2485_v12 = vmul.f32 %v8571_v34, %v2484_v1 }
  0xdf   :  { %6964 = vmatprep.subr.mxu1 %v769_v16  ;;  %2135 = vrot.lane.b32.xlu1 %v2133_v13, %s8024_s13  ;;  %v747_v39 = vmax.f32 %v746_v26, 0.0  ;;  %v2475_v13 = vmul.f32 %v8571_v34, %v2474_v2  ;;  %v882_v16 = vsel %vm73_vm1, %v8800_v63, %v881_v60  ;;  %v978_v63 = vld [vmem:[%s13839_s3 + $0x4e8] sm:$0xff]  ;;  %v1178_v60 = vld [vmem:[%s13839_s3 + $0x5e0] sm:$0xff] }
  0xe0   :  { %2316 = vrot.lane.b32.xlu0 %v2314_v17, %s8022_s9  ;;  %6933 = vmatprep.subr.mxu0 %v566_v19  ;;  %v8872_v31 = vpop.permute.xlu1 %899  ;;  %v1072_v17 = vrot.slane %v8844_v20, 2  ;;  %v884_v24 = vadd.f32 %v882_v16, %v874_v4  ;;  %v1162_v4 = vld [vmem:[%s13839_s3 + $0x560] sm:$0xff] }
  0xe1   :  { %6965 = vmatpush3.msra.mxu1 %v753_v22  ;;  %6934 = vmatpush3.msra.mxu0 %v550_v23  ;;  %v8880_v35 = vpop.permute.xlu0 %1080  ;;  %v787_v56 = vrot.slane %v747_v39, %v8589_v50  ;;  %v901_v19 = vrot.slane %v8872_v31, 2  ;;  %v2494_v22 = vstv %s8917_s1  ;;  %s9157_s1 = sld [smem:[#allocation2 + $0x608]] }
  0xe2   :  { %6966 = vmatprep.subr.mxu1 %v768_v27  ;;  %6935 = vmatprep.subr.mxu0 %v565_v0  ;;  %v1082_v26 = vrot.slane %v8880_v35, 2  ;;  %v1165_v0 = vld [vmem:[%s13839_s3 + $0x578] sm:$0xff]  ;;  %v2514_v16 = vstv %s9008_s12  ;;  %s9360_s12 = sld [smem:[#allocation2 + $0x782]] }
  0xe3   :  { %6967 = vmatpush3.msra.mxu1 %v752_v28  ;;  %6936 = vmatpush3.msra.mxu0 %v549_v29  ;;  %v788_v7 = vcombine.high %v787_v56, %v787_v56  ;;  %v962_v28 = vld [vmem:[%s13839_s3 + $0x468] sm:$0xff]  ;;  %v2675_v29 = vstv %s8930_s14  ;;  %s9412_s14 = sld [smem:[#allocation2 + $0x783]] }
  0xe4   :  { %6968 = vmatprep.subr.mxu1 %v767_v32  ;;  %2145 = vrot.lane.b32.xlu1 %v2143_v30, %s8025_s17  ;;  %v8905_v46 = vpop.permute.xlu1 %909  ;;  %v1065_v30 = vmul.f32 %v1064_v10, %v8490_v15  ;;  %v977_v32 = vld [vmem:[%s13839_s3 + $0x4e0] sm:$0xff]  ;;  %v1073_v15 = vsel %vm62_vm0, %v8844_v20, %v1072_v17  ;;  %v2676_v43 = vmul.f32 %v8571_v34, %v2675_v29  ;;  %v1160_v29 = vld [vmem:[%s13839_s3 + $0x550] sm:$0xff] }
  0xe5   :  { %2326 = vrot.lane.b32.xlu0 %v2324_v33, %s8023_s27  ;;  %6937 = vmatprep.subr.mxu0 %v564_v37  ;;  %v8915_v51 = vpop.permute.xlu0 %1090  ;;  %v911_v27 = vrot.slane %v8905_v46, 2  ;;  %v2495_v33 = vmul.f32 %v8571_v34, %v2494_v22  ;;  %v902_v37 = vsel %vm95_vm3, %v8872_v31, %v901_v19  ;;  %v1179_v31 = vld [vmem:[%s13839_s3 + $0x5e8] sm:$0xff]  ;;  %v1161_v19 = vld [vmem:[%s13839_s3 + $0x558] sm:$0xff] }
  0xe6   :  { %654 = vmatprep.mubr.f32.mxu0 %v587_v38  ;;  %6969 = vmatpush3.msra.mxu1 %v751_v41  ;;  %v1092_v38 = vrot.slane %v8915_v51, 2  ;;  %v961_v41 = vld [vmem:[%s13839_s3 + $0x460] sm:$0xff] }
  0xe7   :  { %6938 = vmatpush3.msra.mxu0 %v548_v44  ;;  %6970 = vmatprep.subr.mxu1 %v766_v45  ;;  %v2504_v44 = vstv %s8956_s30  ;;  %v1083_v45 = vsel %vm73_vm1, %v8880_v35, %v1082_v26  ;;  %v912_v47 = vsel %vm106_vm4, %v8905_v46, %v911_v27  ;;  %v1163_v35 = vld [vmem:[%s13839_s3 + $0x568] sm:$0xff]  ;;  %v960_v46 = vld [vmem:[%s13839_s3 + $0x458] sm:$0xff]  ;;  %s9264_s30 = sld [smem:[#allocation2 + $0x701]] }
  0xe8   :  { %6939 = vmatprep.subr.mxu0 %v563_v48  ;;  %6971 = vmatpush3.msra.mxu1 %v750_v49  ;;  %v8935_v59 = vpop.permute.xlu1 %919  ;;  %v976_v49 = vld [vmem:[%s13839_s3 + $0x4d8] sm:$0xff]  ;;  %v1093_v57 = vsel %vm84_vm2, %v8915_v51, %v1092_v38  ;;  %v946_v38 = vstv %s9048_s18  ;;  %s9582_s18 = sld [smem:[#allocation2 + $0x400]] }
  0xe9   :  { %6940 = vmatpush3.msra.mxu0 %v547_v52  ;;  %6972 = vmatprep.subr.mxu1 %v765_v53  ;;  %v8946_v3 = vpop.permute.xlu0 %1100  ;;  %v921_v39 = vrot.slane %v8935_v59, 2  ;;  %v1075_v53 = vadd.f32 %v1073_v15, %v1065_v30  ;;  %v957_v30 = vld [vmem:[%s13839_s3 + $0x440] sm:$0xff] }
  0xea   :  { %2346 = vrot.lane.b32.xlu1 %v2344_v54, %s8025_s17  ;;  %2336 = vrot.lane.b32.xlu0 %v2334_v55, %s8024_s13  ;;  %v1102_v48 = vrot.slane %v8946_v3, 2  ;;  %v2685_v55 = vstv %s8971_s8  ;;  %s9140_s8 = sld [smem:[#allocation4 + $0x5]] }
  0xeb   :  { %655 = vmatmul.mubr.f32.vlgmr.msra.gmra.mxu0 %v8855_v25  ;;  %6973 = vmatpush3.msra.mxu1 %v749_v58  ;;  %v892_v25 = vsel %vm84_vm2, %v8839_v18, %v891_v8  ;;  %v1180_v18 = vld [vmem:[%s13839_s3 + $0x5f0] sm:$0xff]  ;;  %v922_v58 = vsel %vm117_vm5, %v8935_v59, %v921_v39  ;;  %v1085_v51 = vadd.f32 %v1083_v45, %v1075_v53  ;;  %v972_v39 = vld [vmem:[%s13839_s3 + $0x4b8] sm:$0xff]  ;;  %v1174_v45 = vld [vmem:[%s13839_s3 + $0x5c0] sm:$0xff] }
  0xec   :  { %6979 = vmatprep.subr.mxu0 %v980_v61  ;;  %6974 = vmatprep.subr.mxu1 %v764_v62  ;;  %v8969_v14 = vpop.permute.xlu1 %929  ;;  %v894_v20 = vadd.f32 %v892_v25, %v884_v24  ;;  %v975_v62 = vld [vmem:[%s13839_s3 + $0x4d0] sm:$0xff]  ;;  %v2686_v10 = vmul.f32 %v8571_v34, %v2685_v55  ;;  %v2695_v24 = vstv %s9025_s26  ;;  %v1158_v53 = vld [vmem:[%s13839_s3 + $0x540] sm:$0xff]  ;;  %v1173_v55 = vld [vmem:[%s13839_s3 + $0x5b8] sm:$0xff]  ;;  %s9258_s26 = sld [smem:[#allocation2 + $0x702]] }
  0xed   :  { %6980 = vmatpush3.msra.mxu0 %v964_v5  ;;  %6975 = vmatpush3.msra.mxu1 %v748_v6  ;;  %v8981_v23 = vpop.permute.xlu0 %1110  ;;  %v931_v52 = vrot.slane %v8969_v14, 2  ;;  %v959_v5 = vld [vmem:[%s13839_s3 + $0x450] sm:$0xff]  ;;  %v2505_v6 = vmul.f32 %v8571_v34, %v2504_v44  ;;  %v2696_v15 = vmul.f32 %v8571_v34, %v2695_v24  ;;  %v2705_v44 = vstv %s9075_s2  ;;  %s9304_s2 = sld [smem:[#allocation2 + $0x703]] }
  0xee   :  { %855 = vmatprep.mubr.f32.mxu1 %v788_v7  ;;  %6981 = vmatprep.subr.mxu0 %v979_v9  ;;  %v904_v54 = vadd.f32 %v902_v37, %v894_v20  ;;  %v1112_v61 = vrot.slane %v8981_v23, 2  ;;  %v1103_v7 = vsel %vm95_vm3, %v8946_v3, %v1102_v48  ;;  %v1177_v9 = vld [vmem:[%s13839_s3 + $0x5d8] sm:$0xff]  ;;  %v974_v3 = vld [vmem:[%s13839_s3 + $0x4c8] sm:$0xff]  ;;  %v971_v48 = vld [vmem:[%s13839_s3 + $0x4b0] sm:$0xff] }
  0xef   :  { %856 = vmatmul.mubr.f32.vlgmr.msra.gmra.mxu1 %v787_v56  ;;  %6982 = vmatpush3.msra.mxu0 %v963_v11  ;;  %v932_v8 = vsel %vm128_vm6, %v8969_v14, %v931_v52 }
  0xf0   :  { %7014 = vmatprep.subr.mxu1 %v1181_v21  ;;  %2487 = vrot.lane.b32.xlu1 %v2485_v12, %s8018_s7  ;;  %v9006_v36 = vpop.permute.xlu1 %939  ;;  %v914_v59 = vadd.f32 %v912_v47, %v904_v54  ;;  %v1095_v12 = vadd.f32 %v1093_v57, %v1085_v51  ;;  %v1113_v14 = vsel %vm106_vm4, %v8981_v23, %v1112_v61  ;;  %v958_v21 = vld [vmem:[%s13839_s3 + $0x448] sm:$0xff]  ;;  %v1176_v23 = vld [vmem:[%s13839_s3 + $0x5d0] sm:$0xff]  ;;  %v2534_v61 = vstv %s9112_s29  ;;  %s9439_s29 = sld [smem:[#allocation2 + $0x706]] }
  0xf1   :  { %2477 = vrot.lane.b32.xlu0 %v2475_v13, %s8019_s11  ;;  %6983 = vmatprep.subr.mxu0 %v978_v63  ;;  %v9023_v42 = vpop.permute.xlu0 %1120  ;;  %v941_v1 = vrot.slane %v9006_v36, 2  ;;  %v955_v54 = vld [vmem:[%s13839_s3 + $0x430] sm:$0xff]  ;;  %v2706_v57 = vmul.f32 %v8571_v34, %v2705_v44 }
  0xf2   :  { %7015 = vmatpush3.msra.mxu1 %v1165_v0  ;;  %6984 = vmatpush3.msra.mxu0 %v962_v28  ;;  %v1122_v11 = vrot.slane %v9023_v42, 2  ;;  %v924_v13 = vadd.f32 %v922_v58, %v914_v59  ;;  %v1105_v26 = vadd.f32 %v1103_v7, %v1095_v12  ;;  %v973_v0 = vld [vmem:[%s13839_s3 + $0x4c0] sm:$0xff]  ;;  %v1171_v12 = vld [vmem:[%s13839_s3 + $0x5a8] sm:$0xff]  ;;  %v1168_v44 = vld [vmem:[%s13839_s3 + $0x590] sm:$0xff] }
  0xf3   :  { %7016 = vmatprep.subr.mxu1 %v1180_v18  ;;  %6985 = vmatprep.subr.mxu0 %v977_v32  ;;  %v942_v22 = vsel %vm139_vm7, %v9006_v36, %v941_v1  ;;  %v2515_v18 = vmul.f32 %v8571_v34, %v2514_v16  ;;  %v1175_v36 = vld [vmem:[%s13839_s3 + $0x5c8] sm:$0xff]  ;;  %v1157_v1 = vld [vmem:[%s13839_s3 + $0x538] sm:$0xff]  ;;  %v953_v7 = vld [vmem:[%s13839_s3 + $0x420] sm:$0xff]  ;;  %v2544_v16 = vstv %s9157_s1  ;;  %s9604_s1 = sld [smem:[#allocation2 + $0x787]] }
  0xf4   :  { %7017 = vmatpush3.msra.mxu1 %v1164_v40  ;;  %6986 = vmatpush3.msra.mxu0 %v961_v41  ;;  %v9050_v56 = vpop.permute.xlu1 %1140  ;;  %v934_v27 = vadd.f32 %v932_v8, %v924_v13  ;;  %v1123_v28 = vsel %vm117_vm5, %v9023_v42, %v1122_v11  ;;  %v1115_v32 = vadd.f32 %v1113_v14, %v1105_v26  ;;  %v2524_v41 = vstv %s9065_s28  ;;  %v9213_v8 = vld [vmem:[%s13836_s0] sm:$0x3f]  ;;  %s9216_s28 = sld [smem:[#allocation2 + $0x687]]  ;;  %v1155_v14 = vld [vmem:[%s13839_s3 + $0x528] sm:$0xff] }
  0xf5   :  { %7018 = vmatprep.subr.mxu1 %v1179_v31  ;;  %2497 = vrot.lane.b32.xlu1 %v2495_v33, %s8020_s22  ;;  %v1131_v2 = vpop.permute.xlu0 %1130  ;;  %v1159_v31 = vld [vmem:[%s13839_s3 + $0x548] sm:$0xff]  ;;  %v1142_v47 = vrot.slane %v9050_v56, 2  ;;  %v1147_v11 = vstv %s9140_s8  ;;  %v1170_v26 = vld [vmem:[%s13839_s3 + $0x5a0] sm:$0xff]  ;;  %s9343_s8 = sld [smem:[#allocation2 + $0x704]] }
  0xf6   :  { %2678 = vrot.lane.b32.xlu0 %v2676_v43, %s8019_s11  ;;  %6987 = vmatprep.subr.mxu0 %v976_v49  ;;  %v1132_v63 = vrot.slane %v1131_v2, 2  ;;  %v944_v33 = vadd.f32 %v942_v22, %v934_v27  ;;  %v1125_v20 = vadd.f32 %v1123_v28, %v1115_v32  ;;  %v956_v43 = vld [vmem:[%s13839_s3 + $0x438] sm:$0xff]  ;;  %v967_v27 = vld [vmem:[%s13839_s3 + $0x490] sm:$0xff]  ;;  %v1265_v32 = vstv %s9189_s20  ;;  %s9282_s20 = sld [smem:[#allocation2 + $0x380]] }
  0xf7   :  { %7019 = vmatpush3.msra.mxu1 %v1163_v35  ;;  %6988 = vmatpush3.msra.mxu0 %v960_v46  ;;  %v2525_v35 = vmul.f32 %v8571_v34, %v2524_v41  ;;  %v954_v34 = vld [vmem:[%s13839_s3 + $0x428] sm:$0xff]  ;;  %v951_v28 = vld [vmem:[%s13839_s3 + $0x410] sm:$0xff]  ;;  %v2745_v41 = vstv %s9199_s25  ;;  %s9516_s25 = sld [smem:[#allocation2 + $0x785]] }
  0xf8   :  { %7020 = vmatprep.subr.mxu1 %v1178_v60  ;;  %6989 = vmatprep.subr.mxu0 %v975_v62  ;;  %v9090_v17 = vpop.permute.xlu1 %1281  ;;  %v1133_v40 = vsel %vm128_vm6, %v1131_v2, %v1132_v63  ;;  %v947_v49 = vadd.f32 %v946_v38, %v944_v33  ;;  %v970_v60 = vld [vmem:[%s13839_s3 + $0x4a8] sm:$0xff]  ;;  %v1143_v62 = vsel %vm139_vm7, %v9050_v56, %v1142_v47  ;;  %v2715_v2 = vstv %s9124_s10  ;;  %v1172_v56 = vld [vmem:[%s13839_s3 + $0x5b0] sm:$0xff]  ;;  %s9818_s10 = sld [smem:[#allocation2 + $0x806]] }
  0xf9   :  { %7021 = vmatpush3.msra.mxu1 %v1162_v4  ;;  %6990 = vmatpush3.msra.mxu0 %v959_v5  ;;  %v9103_v25 = vpop.permute.xlu0 %1271  ;;  %v1135_v52 = vadd.f32 %v1133_v40, %v1125_v20  ;;  %v969_v4 = vld [vmem:[%s13839_s3 + $0x4a0] sm:$0xff]  ;;  %v2716_v13 = vmul.f32 %v9213_v8, %v2715_v2  ;;  %v966_v33 = vld [vmem:[%s13839_s3 + $0x488] sm:$0xff]  ;;  %v1153_v40 = vld [vmem:[%s13839_s3 + $0x518] sm:$0xff]  ;;  %v2886_v2 = vstv %s9258_s26  ;;  %s10201_s26 = sld [smem:[#allocation2 + $0x906]] }
  0xfa   :  { %7022 = vmatprep.subr.mxu1 %v1177_v9  ;;  %2507 = vrot.lane.b32.xlu1 %v2505_v6, %s8021_s19  ;;  %v948_v51 = vmax.f32 %v947_v49, 0.0  ;;  %v1156_v6 = vld [vmem:[%s13839_s3 + $0x530] sm:$0xff]  ;;  %v2535_v9 = vmul.f32 %v9213_v8, %v2534_v61  ;;  %v2735_v20 = vstv %s9216_s28  ;;  %s9793_s28 = sld [smem:[#allocation2 + $0x883]] }
  0xfb   :  { %2688 = vrot.lane.b32.xlu0 %v2686_v10, %s8018_s7  ;;  %6991 = vmatprep.subr.mxu0 %v974_v3  ;;  %v1145_v59 = vadd.f32 %v1143_v62, %v1135_v52  ;;  %v968_v3 = vld [vmem:[%s13839_s3 + $0x498] sm:$0xff]  ;;  %v1152_v49 = vld [vmem:[%s13839_s3 + $0x510] sm:$0xff]  ;;  %v949_v52 = vld [vmem:[%s13839_s3 + $0x400] sm:$0xff] }
  0xfc   :  { %7023 = vmatpush3.msra.mxu1 %v1161_v19  ;;  %6992 = vmatpush3.msra.mxu0 %v958_v21  ;;  %v9130_v37 = vpop.permute.xlu1 %1291  ;;  %v952_v19 = vld [vmem:[%s13839_s3 + $0x418] sm:$0xff]  ;;  %v2725_v21 = vstv %s9167_s24  ;;  %v9237_v22 = vrot.slane %v948_v51, %v8589_v50  ;;  %v1151_v62 = vld [vmem:[%s13839_s3 + $0x508] sm:$0xff]  ;;  %v2876_v51 = vstv %s9264_s30  ;;  %s9397_s30 = sld [smem:[#allocation2 + $0x705]] }
  0xfd   :  { %7024 = vmatprep.subr.mxu1 %v1176_v23  ;;  %6993 = vmatprep.subr.mxu0 %v973_v0  ;;  %v9138_v42 = vpop.permute.xlu0 %1472  ;;  %v1148_v24 = vadd.f32 %v1147_v11, %v1145_v59  ;;  %v1154_v0 = vld [vmem:[%s13839_s3 + $0x520] sm:$0xff]  ;;  %v1381_v11 = vld [vmem:[%s13839_s3 + $0x6f0] sm:$0xff]  ;;  %s9502_s24 = sld [smem:[#allocation2 + $0x707]] }
  0xfe   :  { %7025 = vmatpush3.msra.mxu1 %v1160_v29  ;;  %6994 = vmatpush3.msra.mxu0 %v957_v30  ;;  %v2545_v29 = vmul.f32 %v9213_v8, %v2544_v16  ;;  %v1169_v30 = vld [vmem:[%s13839_s3 + $0x598] sm:$0xff]  ;;  %v2887_v16 = vmul.f32 %v9213_v8, %v2886_v2  ;;  %v3087_v2 = vstv %s9360_s12  ;;  %s9453_s12 = sld [smem:[#allocation4 + $0x6]] }
  0xff   :  { %7026 = vmatprep.subr.mxu1 %v1175_v36  ;;  %2517 = vrot.lane.b32.xlu1 %v2515_v18, %s8022_s9  ;;  %v2726_v18 = vmul.f32 %v9213_v8, %v2725_v21  ;;  %v989_v36 = vcombine.high %v9237_v22, %v9237_v22  ;;  %v1474_v21 = vrot.slane %v9138_v42, 2 }
 0x100   :  { %2698 = vrot.lane.b32.xlu0 %v2696_v15, %s8020_s22  ;;  %6995 = vmatprep.subr.mxu0 %v972_v39  ;;  %v9169_v46 = vpop.permute.xlu1 %1301  ;;  %v1149_v15 = vmax.f32 %v1148_v24, 0.0  ;;  %v1273_v39 = vrot.slane %v9103_v25, 2  ;;  %v1583_v24 = vld [vmem:[%s13839_s3 + $0x7f8] sm:$0xff] }
 0x101   :  { %7027 = vmatpush3.msra.mxu1 %v1159_v31  ;;  %6996 = vmatpush3.msra.mxu0 %v956_v43  ;;  %v9175_v58 = vpop.permute.xlu0 %1482  ;;  %v950_v43 = vld [vmem:[%s13839_s3 + $0x408] sm:$0xff] }
 0x102   :  { %7028 = vmatprep.subr.mxu1 %v1174_v45  ;;  %6997 = vmatprep.subr.mxu0 %v971_v48  ;;  %v9294_v45 = vld [vmem:[%s13836_s0] sm:$0xf] }
 0x103   :  { %7029 = vmatpush3.msra.mxu1 %v1158_v53  ;;  %6998 = vmatpush3.msra.mxu0 %v955_v54  ;;  %v1266_v47 = vmul.f32 %v9294_v45, %v1265_v32  ;;  %v965_v48 = vld [vmem:[%s13839_s3 + $0x480] sm:$0xff]  ;;  %v1167_v53 = vld [vmem:[%s13839_s3 + $0x588] sm:$0xff]  ;;  %v2746_v54 = vmul.f32 %v9213_v8, %v2745_v41  ;;  %v1475_v41 = vsel %vm62_vm0, %v9138_v42, %v1474_v21  ;;  %v1579_v21 = vld [vmem:[%s13839_s3 + $0x7d8] sm:$0xff] }
 0x104   :  { %7030 = vmatprep.subr.mxu1 %v1173_v55  ;;  %2527 = vrot.lane.b32.xlu1 %v2525_v35, %s8023_s27  ;;  %v9201_v5 = vpop.permute.xlu1 %1311  ;;  %v2736_v35 = vmul.f32 %v9213_v8, %v2735_v20  ;;  %v1189_v55 = vrot.slane %v1149_v15, %v8589_v50  ;;  %v1364_v32 = vld [vmem:[%s13839_s3 + $0x668] sm:$0xff] }
 0x105   :  { %2708 = vrot.lane.b32.xlu0 %v2706_v57, %s8021_s19  ;;  %6999 = vmatprep.subr.mxu0 %v970_v60  ;;  %v9218_v10 = vpop.permute.xlu0 %1492  ;;  %v1274_v60 = vsel %vm62_vm0, %v9103_v25, %v1273_v39  ;;  %v1382_v25 = vld [vmem:[%s13839_s3 + $0x6f8] sm:$0xff]  ;;  %v1379_v39 = vld [vmem:[%s13839_s3 + $0x6e0] sm:$0xff] }
 0x106   :  { %7031 = vmatpush3.msra.mxu1 %v1157_v1  ;;  %7000 = vmatpush3.msra.mxu0 %v954_v34  ;;  %v1283_v1 = vrot.slane %v9090_v17, 2  ;;  %v1166_v34 = vld [vmem:[%s13839_s3 + $0x580] sm:$0xff]  ;;  %v1276_v59 = vadd.f32 %v1274_v60, %v1266_v47  ;;  %v1566_v47 = vld [vmem:[%s13839_s3 + $0x770] sm:$0xff]  ;;  %v1378_v60 = vld [vmem:[%s13839_s3 + $0x6d8] sm:$0xff] }
 0x107   :  { %7032 = vmatprep.subr.mxu1 %v1172_v56  ;;  %7001 = vmatprep.subr.mxu0 %v969_v4  ;;  %v1366_v56 = vld [vmem:[%s13839_s3 + $0x678] sm:$0xff]  ;;  %v1150_v4 = vld [vmem:[%s13839_s3 + $0x500] sm:$0xff] }
 0x108   :  { %7033 = vmatpush3.msra.mxu1 %v1156_v6  ;;  %7002 = vmatpush3.msra.mxu0 %v953_v7  ;;  %v9239_v63 = vpop.permute.xlu1 %1321  ;;  %v1190_v6 = vcombine.high %v1189_v55, %v1189_v55 }
 0x109   :  { %7034 = vmatprep.subr.mxu1 %v1171_v12  ;;  %2537 = vrot.lane.b32.xlu1 %v2535_v9, %s8024_s13  ;;  %v9248_v23 = vpop.permute.xlu0 %1502  ;;  %v1293_v9 = vrot.slane %v9130_v37, 2 }
 0x10a   :  { %2718 = vrot.lane.b32.xlu0 %v2716_v13, %s8022_s9  ;;  %7003 = vmatprep.subr.mxu0 %v968_v3  ;;  %v1466_v13 = vstv %s9282_s20  ;;  %v1365_v3 = vld [vmem:[%s13839_s3 + $0x670] sm:$0xff]  ;;  %s10085_s20 = sld [smem:[#allocation2 + $0x981]] }
 0x10b   :  { %7035 = vmatpush3.msra.mxu1 %v1155_v14  ;;  %7004 = vmatpush3.msra.mxu0 %v952_v19  ;;  %v2877_v14 = vmul.f32 %v9213_v8, %v2876_v51  ;;  %v1284_v19 = vsel %vm73_vm1, %v9090_v17, %v1283_v1  ;;  %v1467_v15 = vmul.f32 %v9294_v45, %v1466_v13  ;;  %v1361_v13 = vld [vmem:[%s13839_s3 + $0x650] sm:$0xff] }
 0x10c   :  { %7036 = vmatprep.subr.mxu1 %v1170_v26  ;;  %7005 = vmatprep.subr.mxu0 %v967_v27  ;;  %v9272_v38 = vpop.permute.xlu1 %1331  ;;  %v2896_v26 = vstv %s9304_s2  ;;  %v1286_v27 = vadd.f32 %v1284_v19, %v1276_v59  ;;  %s9550_s2 = sld [smem:[#allocation2 + $0x708]] }
 0x10d   :  { %7037 = vmatpush3.msra.mxu1 %v1154_v0  ;;  %7006 = vmatpush3.msra.mxu0 %v951_v28  ;;  %v9280_v31 = vpop.permute.xlu0 %1512  ;;  %v1380_v0 = vld [vmem:[%s13839_s3 + $0x6e8] sm:$0xff]  ;;  %v1294_v28 = vsel %vm84_vm2, %v9130_v37, %v1293_v9  ;;  %v1582_v37 = vld [vmem:[%s13839_s3 + $0x7f0] sm:$0xff] }
 0x10e   :  { %7038 = vmatprep.subr.mxu1 %v1169_v30  ;;  %2547 = vrot.lane.b32.xlu1 %v2545_v29, %s8025_s17  ;;  %v1484_v29 = vrot.slane %v9175_v58, 2  ;;  %v1313_v30 = vrot.slane %v9201_v5, 2  ;;  %v1296_v42 = vadd.f32 %v1294_v28, %v1286_v27 }
 0x10f   :  { %2728 = vrot.lane.b32.xlu0 %v2726_v18, %s8023_s27  ;;  %7007 = vmatprep.subr.mxu0 %v966_v33  ;;  %v1567_v18 = vld [vmem:[%s13839_s3 + $0x778] sm:$0xff]  ;;  %v3077_v33 = vstv %s9319_s23  ;;  %s9531_s23 = sld [smem:[#allocation4 + $0x7]] }
 0x110   :  { %1056 = vmatprep.mubr.f32.mxu0 %v989_v36  ;;  %7039 = vmatpush3.msra.mxu1 %v1153_v40  ;;  %v9315_v57 = vpop.permute.xlu1 %1341  ;;  %v2897_v40 = vmul.f32 %v9213_v8, %v2896_v26 }
 0x111   :  { %7008 = vmatpush3.msra.mxu0 %v950_v43  ;;  %7040 = vmatprep.subr.mxu1 %v1168_v44  ;;  %v9321_v61 = vpop.permute.xlu0 %1522  ;;  %v1494_v43 = vrot.slane %v9218_v10, 2  ;;  %v1323_v44 = vrot.slane %v9239_v63, 2 }
 0x112   :  { %7009 = vmatprep.subr.mxu0 %v965_v48  ;;  %7041 = vmatpush3.msra.mxu1 %v1152_v49  ;;  %v1363_v48 = vld [vmem:[%s13839_s3 + $0x660] sm:$0xff]  ;;  %v3078_v49 = vmul.f32 %v9213_v8, %v3077_v33 }
 0x113   :  { %7010 = vmatpush3.msra.mxu0 %v949_v52  ;;  %7042 = vmatprep.subr.mxu1 %v1167_v53  ;;  %v2906_v52 = vstv %s9343_s8  ;;  %v1495_v51 = vsel %vm84_vm2, %v9218_v10, %v1494_v43  ;;  %v1324_v59 = vsel %vm117_vm5, %v9239_v63, %v1323_v44  ;;  %v1343_v10 = vrot.slane %v9315_v57, 2  ;;  %v1564_v63 = vld [vmem:[%s13839_s3 + $0x760] sm:$0xff]  ;;  %s9702_s8 = sld [smem:[#allocation2 + $0x881]] }
 0x114   :  { %2748 = vrot.lane.b32.xlu1 %v2746_v54, %s8025_s17  ;;  %2738 = vrot.lane.b32.xlu0 %v2736_v35, %s8024_s13  ;;  %v9345_v7 = vpop.permute.xlu1 %1542  ;;  %v1485_v54 = vsel %vm73_vm1, %v9175_v58, %v1484_v29  ;;  %v1314_v35 = vsel %vm106_vm4, %v9201_v5, %v1313_v30  ;;  %v1565_v58 = vld [vmem:[%s13839_s3 + $0x768] sm:$0xff]  ;;  %v1362_v5 = vld [vmem:[%s13839_s3 + $0x658] sm:$0xff] }
 0x115   :  { %1057 = vmatmul.mubr.f32.vlgmr.msra.gmra.mxu0 %v9237_v22  ;;  %7043 = vmatpush3.msra.mxu1 %v1151_v62  ;;  %v9352_v12 = vpop.permute.xlu0 %1532  ;;  %v1303_v22 = vrot.slane %v9169_v46, 2  ;;  %v1333_v62 = vrot.slane %v9272_v38, 2  ;;  %v1563_v29 = vld [vmem:[%s13839_s3 + $0x758] sm:$0xff]  ;;  %v1360_v30 = vld [vmem:[%s13839_s3 + $0x648] sm:$0xff] }
 0x116   :  { %7049 = vmatprep.subr.mxu0 %v1382_v25  ;;  %7044 = vmatprep.subr.mxu1 %v1166_v34  ;;  %v1477_v25 = vadd.f32 %v1475_v41, %v1467_v15  ;;  %v1534_v33 = vrot.slane %v9352_v12, 2  ;;  %v1562_v41 = vld [vmem:[%s13839_s3 + $0x750] sm:$0xff] }
 0x117   :  { %7050 = vmatpush3.msra.mxu0 %v1366_v56  ;;  %7045 = vmatpush3.msra.mxu1 %v1150_v4  ;;  %v1304_v20 = vsel %vm95_vm3, %v9169_v46, %v1303_v22  ;;  %v1581_v46 = vld [vmem:[%s13839_s3 + $0x7e8] sm:$0xff]  ;;  %v1580_v56 = vld [vmem:[%s13839_s3 + $0x7e0] sm:$0xff]  ;;  %v1514_v4 = vrot.slane %v9280_v31, 2  ;;  %v1334_v19 = vsel %vm128_vm6, %v9272_v38, %v1333_v62  ;;  %v3088_v22 = vmul.f32 %v9213_v8, %v3087_v2 }
 0x118   :  { %1257 = vmatprep.mubr.f32.mxu1 %v1190_v6  ;;  %7051 = vmatprep.subr.mxu0 %v1381_v11  ;;  %v9373_v17 = vpop.permute.xlu1 %1683  ;;  %v1306_v34 = vadd.f32 %v1304_v20, %v1296_v42  ;;  %v1377_v6 = vld [vmem:[%s13839_s3 + $0x6d0] sm:$0xff]  ;;  %v1487_v9 = vadd.f32 %v1485_v54, %v1477_v25  ;;  %v2916_v38 = vstv %s9397_s30  ;;  %v1359_v20 = vld [vmem:[%s13839_s3 + $0x640] sm:$0xff]  ;;  %v2926_v54 = vstv %s9439_s29  ;;  %s9644_s29 = sld [smem:[#allocation2 + $0x802]] }
 0x119   :  { %1258 = vmatmul.mubr.f32.vlgmr.msra.gmra.mxu1 %v1189_v55  ;;  %7052 = vmatpush3.msra.mxu0 %v1365_v3  ;;  %v9386_v36 = vpop.permute.xlu0 %1673  ;;  %v1504_v55 = vrot.slane %v9248_v23, 2  ;;  %v2907_v3 = vmul.f32 %v9213_v8, %v2906_v52  ;;  %v1515_v28 = vsel %vm106_vm4, %v9280_v31, %v1514_v4  ;;  %v1578_v31 = vld [vmem:[%s13839_s3 + $0x7d0] sm:$0xff]  ;;  %v2917_v43 = vmul.f32 %v9213_v8, %v2916_v38  ;;  %s10217_s30 = sld [smem:[#allocation4 + $0xa]] }
 0x11a   :  { %7084 = vmatprep.subr.mxu1 %v1583_v24  ;;  %2889 = vrot.lane.b32.xlu1 %v2887_v16, %s8018_s7  ;;  %v1316_v11 = vadd.f32 %v1314_v35, %v1306_v34  ;;  %v1524_v24 = vrot.slane %v9321_v61, 2  ;;  %v1497_v27 = vadd.f32 %v1495_v51, %v1487_v9  ;;  %v1535_v52 = vsel %vm128_vm6, %v9352_v12, %v1534_v33  ;;  %v1576_v12 = vld [vmem:[%s13839_s3 + $0x7c0] sm:$0xff]  ;;  %v1372_v9 = vld [vmem:[%s13839_s3 + $0x6a8] sm:$0xff] }
 0x11b   :  { %2879 = vrot.lane.b32.xlu0 %v2877_v14, %s8019_s11  ;;  %7053 = vmatprep.subr.mxu0 %v1380_v0  ;;  %v1505_v14 = vsel %vm95_vm3, %v9248_v23, %v1504_v55  ;;  %v1376_v23 = vld [vmem:[%s13839_s3 + $0x6c8] sm:$0xff]  ;;  %v3107_v62 = vstv %s9464_s21  ;;  %v1544_v34 = vrot.slane %v9345_v7, 2  ;;  %v2927_v4 = vmul.f32 %v9213_v8, %v2926_v54  ;;  %s10228_s21 = sld [smem:[#allocation2 + $0x984]] }
 0x11c   :  { %7085 = vmatpush3.msra.mxu1 %v1567_v18  ;;  %7054 = vmatpush3.msra.mxu0 %v1364_v32  ;;  %v9419_v53 = vpop.permute.xlu1 %1693  ;;  %v1326_v0 = vadd.f32 %v1324_v59, %v1316_v11  ;;  %v1344_v18 = vsel %vm139_vm7, %v9315_v57, %v1343_v10  ;;  %v3097_v32 = vstv %s9412_s14  ;;  %v1507_v15 = vadd.f32 %v1505_v14, %v1497_v27  ;;  %v1561_v55 = vld [vmem:[%s13839_s3 + $0x748] sm:$0xff]  ;;  %v1560_v59 = vld [vmem:[%s13839_s3 + $0x740] sm:$0xff]  ;;  %s9726_s14 = sld [smem:[#allocation2 + $0x804]] }
 0x11d   :  { %7086 = vmatprep.subr.mxu1 %v1582_v37  ;;  %7055 = vmatprep.subr.mxu0 %v1379_v39  ;;  %v9430_v1 = vpop.permute.xlu0 %1874  ;;  %v1375_v39 = vld [vmem:[%s13839_s3 + $0x6c0] sm:$0xff]  ;;  %v1525_v57 = vsel %vm117_vm5, %v9321_v61, %v1524_v24  ;;  %v3098_v42 = vmul.f32 %v9213_v8, %v3097_v32  ;;  %v3108_v10 = vmul.f32 %v9213_v8, %v3107_v62  ;;  %v2936_v11 = vstv %s9502_s24  ;;  %v1356_v14 = vld [vmem:[%s13839_s3 + $0x628] sm:$0xff]  ;;  %v1370_v32 = vld [vmem:[%s13839_s3 + $0x698] sm:$0xff]  ;;  %s9834_s24 = sld [smem:[#allocation4 + $0x8]] }
 0x11e   :  { %7087 = vmatpush3.msra.mxu1 %v1566_v47  ;;  %7056 = vmatpush3.msra.mxu0 %v1363_v48  ;;  %v1336_v37 = vadd.f32 %v1334_v19, %v1326_v0  ;;  %v1517_v47 = vadd.f32 %v1515_v28, %v1507_v15  ;;  %v1577_v48 = vld [vmem:[%s13839_s3 + $0x7c8] sm:$0xff]  ;;  %v3117_v19 = vstv %s9516_s25  ;;  %v1371_v27 = vld [vmem:[%s13839_s3 + $0x6a0] sm:$0xff]  ;;  %v1558_v0 = vld [vmem:[%s13839_s3 + $0x730] sm:$0xff]  ;;  %v2937_v38 = vmul.f32 %v9213_v8, %v2936_v11  ;;  %s9883_s25 = sld [smem:[#allocation2 + $0x807]] }
 0x11f   :  { %7088 = vmatprep.subr.mxu1 %v1581_v46  ;;  %2899 = vrot.lane.b32.xlu1 %v2897_v40, %s8020_s22  ;;  %v1348_v46 = vstv %s9453_s12  ;;  %v1549_v28 = vstv %s9531_s23  ;;  %v2946_v33 = vstv %s9550_s2  ;;  %s9652_s23 = sld [smem:[#allocation2 + $0x801]]  ;;  %v1675_v62 = vrot.slane %v9386_v36, 2 }
 0x120   :  { %3080 = vrot.lane.b32.xlu0 %v3078_v49, %s8019_s11  ;;  %7057 = vmatprep.subr.mxu0 %v1378_v60  ;;  %v9466_v16 = vpop.permute.xlu1 %1703  ;;  %v1346_v61 = vadd.f32 %v1344_v18, %v1336_v37  ;;  %v1374_v49 = vld [vmem:[%s13839_s3 + $0x6b8] sm:$0xff]  ;;  %v1527_v35 = vadd.f32 %v1525_v57, %v1517_v47  ;;  %v1557_v37 = vld [vmem:[%s13839_s3 + $0x728] sm:$0xff]  ;;  %v1556_v47 = vld [vmem:[%s13839_s3 + $0x720] sm:$0xff]  ;;  %s9687_s12 = sld [smem:[#allocation2 + $0x803]] }
 0x121   :  { %7089 = vmatpush3.msra.mxu1 %v1565_v58  ;;  %7058 = vmatpush3.msra.mxu0 %v1362_v5  ;;  %v9477_v26 = vpop.permute.xlu0 %1884  ;;  %v1358_v60 = vld [vmem:[%s13839_s3 + $0x638] sm:$0xff]  ;;  %v1373_v58 = vld [vmem:[%s13839_s3 + $0x6b0] sm:$0xff]  ;;  %v1667_v54 = vstv %s9582_s18  ;;  %s9668_s18 = sld [smem:[#allocation2 + $0x480]]  ;;  %v1569_v11 = vld [vmem:[%s13839_s3 + $0x788] sm:$0xff] }
 0x122   :  { %7090 = vmatprep.subr.mxu1 %v1580_v56  ;;  %7059 = vmatprep.subr.mxu0 %v1377_v6  ;;  %v1349_v2 = vadd.f32 %v1348_v46, %v1346_v61  ;;  %v1537_v51 = vadd.f32 %v1535_v52, %v1527_v35  ;;  %v1357_v56 = vld [vmem:[%s13839_s3 + $0x630] sm:$0xff]  ;;  %v1575_v6 = vld [vmem:[%s13839_s3 + $0x7b8] sm:$0xff]  ;;  %v1368_v35 = vld [vmem:[%s13839_s3 + $0x688] sm:$0xff]  ;;  %s9741_s2 = sld [smem:[#allocation2 + $0x882]] }
 0x123   :  { %7091 = vmatpush3.msra.mxu1 %v1564_v63  ;;  %7060 = vmatpush3.msra.mxu0 %v1361_v13  ;;  %v1545_v13 = vsel %vm139_vm7, %v9345_v7, %v1544_v34  ;;  %v1574_v7 = vld [vmem:[%s13839_s3 + $0x7b0] sm:$0xff]  ;;  %v1571_v46 = vld [vmem:[%s13839_s3 + $0x798] sm:$0xff]  ;;  %v3147_v34 = vstv %s9594_s15  ;;  %s9895_s15 = sld [smem:[#allocation2 + $0x885]] }
 0x124   :  { %7092 = vmatprep.subr.mxu1 %v1579_v21  ;;  %2909 = vrot.lane.b32.xlu1 %v2907_v3, %s8021_s19  ;;  %v9504_v40 = vpop.permute.xlu1 %1713  ;;  %v1559_v3 = vld [vmem:[%s13839_s3 + $0x738] sm:$0xff]  ;;  %v1547_v24 = vadd.f32 %v1545_v13, %v1537_v51  ;;  %v1353_v61 = vld [vmem:[%s13839_s3 + $0x610] sm:$0xff]  ;;  %v3148_v13 = vmul.f32 %v9213_v8, %v3147_v34 }
 0x125   :  { %3090 = vrot.lane.b32.xlu0 %v3088_v22, %s8018_s7  ;;  %7061 = vmatprep.subr.mxu0 %v1376_v23  ;;  %v9518_v44 = vpop.permute.xlu0 %1894  ;;  %v1350_v22 = vmax.f32 %v1349_v2, 0.0  ;;  %v1355_v23 = vld [vmem:[%s13839_s3 + $0x620] sm:$0xff]  ;;  %v1352_v2 = vld [vmem:[%s13839_s3 + $0x608] sm:$0xff]  ;;  %v1570_v51 = vld [vmem:[%s13839_s3 + $0x790] sm:$0xff] }
 0x126   :  { %7093 = vmatpush3.msra.mxu1 %v1563_v29  ;;  %7062 = vmatpush3.msra.mxu0 %v1360_v30  ;;  %v1573_v29 = vld [vmem:[%s13839_s3 + $0x7a8] sm:$0xff]  ;;  %v3118_v30 = vmul.f32 %v9213_v8, %v3117_v19  ;;  %v1676_v19 = vsel %vm62_vm0, %v9386_v36, %v1675_v62  ;;  %v1568_v36 = vld [vmem:[%s13839_s3 + $0x780] sm:$0xff] }
 0x127   :  { %7094 = vmatprep.subr.mxu1 %v1578_v31  ;;  %7063 = vmatprep.subr.mxu0 %v1375_v39  ;;  %v1354_v31 = vld [vmem:[%s13839_s3 + $0x618] sm:$0xff]  ;;  %v3127_v39 = vstv %s9562_s16  ;;  %v9627_v57 = vrot.slane %v1350_v22, %v8589_v50  ;;  %v1553_v22 = vld [vmem:[%s13839_s3 + $0x708] sm:$0xff]  ;;  %s9845_s16 = sld [smem:[#allocation2 + $0x884]] }
 0x128   :  { %7095 = vmatpush3.msra.mxu1 %v1562_v41  ;;  %7064 = vmatpush3.msra.mxu0 %v1359_v20  ;;  %v9540_v25 = vpop.permute.xlu1 %1723  ;;  %v1550_v41 = vadd.f32 %v1549_v28, %v1547_v24  ;;  %v1572_v20 = vld [vmem:[%s13839_s3 + $0x7a0] sm:$0xff]  ;;  %v1685_v24 = vrot.slane %v9373_v17, 2  ;;  %v1768_v28 = vld [vmem:[%s13839_s3 + $0x878] sm:$0xff]  ;;  %v1766_v62 = vld [vmem:[%s13839_s3 + $0x868] sm:$0xff] }
 0x129   :  { %7096 = vmatprep.subr.mxu1 %v1577_v48  ;;  %2919 = vrot.lane.b32.xlu1 %v2917_v43, %s8022_s9  ;;  %v9552_v5 = vpop.permute.xlu0 %1904  ;;  %v1369_v43 = vld [vmem:[%s13839_s3 + $0x690] sm:$0xff]  ;;  %v2947_v48 = vmul.f32 %v9213_v8, %v2946_v33  ;;  %v1695_v33 = vrot.slane %v9419_v53, 2 }
 0x12a   :  { %3100 = vrot.lane.b32.xlu0 %v3098_v42, %s8020_s22  ;;  %7065 = vmatprep.subr.mxu0 %v1374_v49  ;;  %v3128_v49 = vmul.f32 %v9213_v8, %v3127_v39  ;;  %v1767_v39 = vld [vmem:[%s13839_s3 + $0x870] sm:$0xff] }
 0x12b   :  { %7097 = vmatpush3.msra.mxu1 %v1561_v55  ;;  %7066 = vmatpush3.msra.mxu0 %v1358_v60  ;;  %v1391_v55 = vcombine.high %v9627_v57, %v9627_v57  ;;  %v1551_v60 = vmax.f32 %v1550_v41, 0.0 }
 0x12c   :  { %7098 = vmatprep.subr.mxu1 %v1576_v12  ;;  %7067 = vmatprep.subr.mxu0 %v1373_v58  ;;  %v9572_v63 = vpop.permute.xlu1 %1733  ;;  %v1555_v12 = vld [vmem:[%s13839_s3 + $0x718] sm:$0xff]  ;;  %v3137_v58 = vstv %s9604_s1  ;;  %s10322_s1 = sld [smem:[#allocation2 + $0x986]] }
 0x12d   :  { %7099 = vmatpush3.msra.mxu1 %v1560_v59  ;;  %7068 = vmatpush3.msra.mxu0 %v1357_v56  ;;  %v9585_v21 = vpop.permute.xlu0 %1914  ;;  %v1668_v56 = vmul.f32 %v9294_v45, %v1667_v54  ;;  %v1696_v54 = vsel %vm84_vm2, %v9419_v53, %v1695_v33  ;;  %v1984_v53 = vld [vmem:[%s13839_s3 + $0x9f0] sm:$0xff]  ;;  %v1982_v33 = vld [vmem:[%s13839_s3 + $0x9e0] sm:$0xff] }
 0x12e   :  { %7100 = vmatprep.subr.mxu1 %v1575_v6  ;;  %2929 = vrot.lane.b32.xlu1 %v2927_v4, %s8023_s27  ;;  %v1367_v4 = vld [vmem:[%s13839_s3 + $0x680] sm:$0xff]  ;;  %v1554_v6 = vld [vmem:[%s13839_s3 + $0x710] sm:$0xff] }
 0x12f   :  { %3110 = vrot.lane.b32.xlu0 %v3108_v10, %s8021_s19  ;;  %7069 = vmatprep.subr.mxu0 %v1372_v9  ;;  %v1351_v9 = vld [vmem:[%s13839_s3 + $0x600] sm:$0xff] }
 0x130   :  { %7101 = vmatpush3.msra.mxu1 %v1559_v3  ;;  %7070 = vmatpush3.msra.mxu0 %v1356_v14  ;;  %v9611_v18 = vpop.permute.xlu1 %1743  ;;  %v3138_v3 = vmul.f32 %v9213_v8, %v3137_v58  ;;  %v1591_v14 = vrot.slane %v1551_v60, %v8589_v50  ;;  %v1969_v60 = vld [vmem:[%s13839_s3 + $0x978] sm:$0xff] }
 0x131   :  { %7102 = vmatprep.subr.mxu1 %v1574_v7  ;;  %7071 = vmatprep.subr.mxu0 %v1371_v27  ;;  %v9617_v15 = vpop.permute.xlu0 %1924  ;;  %v1784_v7 = vld [vmem:[%s13839_s3 + $0x8f8] sm:$0xff]  ;;  %v3288_v27 = vstv %s9644_s29  ;;  %s9976_s29 = sld [smem:[#allocation2 + $0x888]] }
 0x132   :  { %7103 = vmatpush3.msra.mxu1 %v1558_v0  ;;  %7072 = vmatpush3.msra.mxu0 %v1355_v23  ;;  %v3278_v0 = vstv %s9652_s23  ;;  %v3289_v41 = vmul.f32 %v9213_v8, %v3288_v27  ;;  %s9778_s23 = sld [smem:[#allocation2 + $0x805]] }
 0x133   :  { %7104 = vmatprep.subr.mxu1 %v1573_v29  ;;  %2939 = vrot.lane.b32.xlu1 %v2937_v38, %s8024_s13  ;;  %v1678_v38 = vadd.f32 %v1676_v19, %v1668_v56  ;;  %v1552_v29 = vld [vmem:[%s13839_s3 + $0x700] sm:$0xff] }
 0x134   :  { %3120 = vrot.lane.b32.xlu0 %v3118_v30, %s8022_s9  ;;  %7073 = vmatprep.subr.mxu0 %v1370_v32  ;;  %v9646_v42 = vpop.permute.xlu1 %1944  ;;  %v1592_v30 = vcombine.high %v1591_v14, %v1591_v14 }
 0x135   :  { %7105 = vmatpush3.msra.mxu1 %v1557_v37  ;;  %7074 = vmatpush3.msra.mxu0 %v1354_v31  ;;  %v9654_v52 = vpop.permute.xlu0 %1934  ;;  %v1783_v37 = vld [vmem:[%s13839_s3 + $0x8f0] sm:$0xff]  ;;  %v1868_v31 = vstv %s9668_s18  ;;  %s10354_s18 = sld [smem:[#allocation2 + $0x988]] }
 0x136   :  { %7106 = vmatprep.subr.mxu1 %v1572_v20  ;;  %7075 = vmatprep.subr.mxu0 %v1369_v43  ;;  %v3279_v20 = vmul.f32 %v9213_v8, %v3278_v0  ;;  %v1876_v43 = vrot.slane %v9430_v1, 2  ;;  %v1869_v58 = vmul.f32 %v9294_v45, %v1868_v31  ;;  %v1779_v31 = vld [vmem:[%s13839_s3 + $0x8d0] sm:$0xff] }
 0x137   :  { %7107 = vmatpush3.msra.mxu1 %v1556_v47  ;;  %7076 = vmatpush3.msra.mxu0 %v1353_v61  ;;  %v1705_v47 = vrot.slane %v9466_v16, 2  ;;  %v1985_v61 = vld [vmem:[%s13839_s3 + $0x9f8] sm:$0xff] }
 0x138   :  { %7108 = vmatprep.subr.mxu1 %v1571_v46  ;;  %2949 = vrot.lane.b32.xlu1 %v2947_v48, %s8025_s17  ;;  %v9677_v59 = vpop.permute.xlu1 %2085  ;;  %v3298_v48 = vstv %s9687_s12  ;;  %v1877_v56 = vsel %vm62_vm0, %v9430_v1, %v1876_v43  ;;  %s9929_s12 = sld [smem:[#allocation2 + $0x808]] }
 0x139   :  { %3130 = vrot.lane.b32.xlu0 %v3128_v49, %s8023_s27  ;;  %7077 = vmatprep.subr.mxu0 %v1368_v35  ;;  %v9689_v10 = vpop.permute.xlu0 %2075  ;;  %v1782_v49 = vld [vmem:[%s13839_s3 + $0x8e8] sm:$0xff]  ;;  %v1886_v35 = vrot.slane %v9477_v26, 2  ;;  %v1706_v45 = vsel %vm95_vm3, %v9466_v16, %v1705_v47  ;;  %v1879_v27 = vadd.f32 %v1877_v56, %v1869_v58  ;;  %v3499_v58 = vstv %s9793_s28  ;;  %v1980_v56 = vld [vmem:[%s13839_s3 + $0x9d0] sm:$0xff]  ;;  %s10026_s28 = sld [smem:[#allocation2 + $0x902]] }
 0x13a   :  { %1458 = vmatprep.mubr.f32.mxu0 %v1391_v55  ;;  %7109 = vmatpush3.msra.mxu1 %v1555_v12  ;;  %v1715_v55 = vrot.slane %v9504_v40, 2  ;;  %v3479_v12 = vstv %s9702_s8  ;;  %v1983_v16 = vld [vmem:[%s13839_s3 + $0x9e8] sm:$0xff]  ;;  %s10176_s8 = sld [smem:[#allocation2 + $0x983]] }
 0x13b   :  { %7078 = vmatpush3.msra.mxu0 %v1352_v2  ;;  %7110 = vmatprep.subr.mxu1 %v1570_v51  ;;  %v1781_v2 = vld [vmem:[%s13839_s3 + $0x8e0] sm:$0xff]  ;;  %v3299_v51 = vmul.f32 %v9213_v8, %v3298_v48 }
 0x13c   :  { %7079 = vmatprep.subr.mxu0 %v1367_v4  ;;  %7111 = vmatpush3.msra.mxu1 %v1554_v6  ;;  %v1896_v4 = vrot.slane %v9518_v44, 2  ;;  %v1725_v6 = vrot.slane %v9540_v25, 2  ;;  %v1716_v19 = vsel %vm106_vm4, %v9504_v40, %v1715_v55  ;;  %v1764_v40 = vld [vmem:[%s13839_s3 + $0x858] sm:$0xff] }
 0x13d   :  { %7080 = vmatpush3.msra.mxu0 %v1351_v9  ;;  %7112 = vmatprep.subr.mxu1 %v1569_v11  ;;  %v9716_v23 = vpop.permute.xlu1 %2095  ;;  %v1968_v9 = vld [vmem:[%s13839_s3 + $0x970] sm:$0xff]  ;;  %v1765_v11 = vld [vmem:[%s13839_s3 + $0x860] sm:$0xff] }
 0x13e   :  { %3150 = vrot.lane.b32.xlu1 %v3148_v13, %s8025_s17  ;;  %3140 = vrot.lane.b32.xlu0 %v3138_v3, %s8024_s13  ;;  %v9728_v32 = vpop.permute.xlu0 %2276  ;;  %v3480_v13 = vmul.f32 %v9213_v8, %v3479_v12  ;;  %v3308_v3 = vstv %s9726_s14  ;;  %s9964_s14 = sld [smem:[#allocation2 + $0x500]] }
 0x13f   :  { %1459 = vmatmul.mubr.f32.vlgmr.msra.gmra.mxu0 %v9627_v57  ;;  %7113 = vmatpush3.msra.mxu1 %v1553_v22  ;;  %v1686_v57 = vsel %vm73_vm1, %v9373_v17, %v1685_v24  ;;  %v1906_v22 = vrot.slane %v9552_v5, 2  ;;  %v1780_v24 = vld [vmem:[%s13839_s3 + $0x8d8] sm:$0xff] }
 0x140   :  { %7119 = vmatprep.subr.mxu0 %v1784_v7  ;;  %7114 = vmatprep.subr.mxu1 %v1568_v36  ;;  %v1688_v46 = vadd.f32 %v1686_v57, %v1678_v38  ;;  %v1735_v7 = vrot.slane %v9572_v63, 2  ;;  %v3489_v38 = vstv %s9741_s2  ;;  %v3309_v57 = vmul.f32 %v9213_v8, %v3308_v3  ;;  %v1776_v3 = vld [vmem:[%s13839_s3 + $0x8b8] sm:$0xff]  ;;  %s9908_s2 = sld [smem:[#allocation4 + $0x9]] }
 0x141   :  { %7120 = vmatpush3.msra.mxu0 %v1768_v28  ;;  %7115 = vmatpush3.msra.mxu1 %v1552_v29  ;;  %v1897_v29 = vsel %vm84_vm2, %v9518_v44, %v1896_v4  ;;  %v1745_v44 = vrot.slane %v9611_v18, 2  ;;  %v1907_v43 = vsel %vm95_vm3, %v9552_v5, %v1906_v22  ;;  %v3490_v48 = vmul.f32 %v9213_v8, %v3489_v38  ;;  %v1778_v5 = vld [vmem:[%s13839_s3 + $0x8c8] sm:$0xff]  ;;  %v1964_v4 = vld [vmem:[%s13839_s3 + $0x950] sm:$0xff] }
 0x142   :  { %1659 = vmatprep.mubr.f32.mxu1 %v1592_v30  ;;  %7121 = vmatprep.subr.mxu0 %v1783_v37  ;;  %v9754_v17 = vpop.permute.xlu1 %2105  ;;  %v1698_v1 = vadd.f32 %v1696_v54, %v1688_v46  ;;  %v1726_v30 = vsel %vm117_vm5, %v9540_v25, %v1725_v6  ;;  %v1916_v37 = vrot.slane %v9585_v21, 2  ;;  %v1966_v25 = vld [vmem:[%s13839_s3 + $0x960] sm:$0xff]  ;;  %v1736_v47 = vsel %vm128_vm6, %v9572_v63, %v1735_v7  ;;  %v1760_v7 = vld [vmem:[%s13839_s3 + $0x838] sm:$0xff] }
 0x143   :  { %1660 = vmatmul.mubr.f32.vlgmr.msra.gmra.mxu1 %v1591_v14  ;;  %7122 = vmatpush3.msra.mxu0 %v1767_v39  ;;  %v9767_v34 = vpop.permute.xlu0 %2286  ;;  %v1887_v14 = vsel %vm73_vm1, %v9477_v26, %v1886_v35  ;;  %v1967_v26 = vld [vmem:[%s13839_s3 + $0x968] sm:$0xff]  ;;  %v1926_v46 = vrot.slane %v9617_v15, 2  ;;  %v3318_v35 = vstv %s9778_s23  ;;  %v1746_v12 = vsel %vm139_vm7, %v9611_v18, %v1745_v44  ;;  %v1761_v6 = vld [vmem:[%s13839_s3 + $0x840] sm:$0xff]  ;;  %s9944_s23 = sld [smem:[#allocation2 + $0x886]]  ;;  %v1977_v44 = vld [vmem:[%s13839_s3 + $0x9b8] sm:$0xff] }
 0x144   :  { %7154 = vmatprep.subr.mxu1 %v1985_v61  ;;  %3291 = vrot.lane.b32.xlu1 %v3289_v41, %s8018_s7  ;;  %v1708_v0 = vadd.f32 %v1706_v45, %v1698_v1  ;;  %v1889_v39 = vadd.f32 %v1887_v14, %v1879_v27  ;;  %v1981_v61 = vld [vmem:[%s13839_s3 + $0x9d8] sm:$0xff]  ;;  %v1917_v63 = vsel %vm106_vm4, %v9585_v21, %v1916_v37  ;;  %v1777_v45 = vld [vmem:[%s13839_s3 + $0x8c0] sm:$0xff]  ;;  %v3509_v27 = vstv %s9845_s16  ;;  %s10070_s16 = sld [smem:[#allocation2 + $0x903]] }
 0x145   :  { %3281 = vrot.lane.b32.xlu0 %v3279_v20, %s8019_s11  ;;  %7123 = vmatprep.subr.mxu0 %v1782_v49  ;;  %v1763_v20 = vld [vmem:[%s13839_s3 + $0x850] sm:$0xff]  ;;  %v1927_v18 = vsel %vm117_vm5, %v9617_v15, %v1926_v46  ;;  %v1979_v15 = vld [vmem:[%s13839_s3 + $0x9c8] sm:$0xff]  ;;  %v9941_v37 = vld [vmem:[%s13836_s0] sm:$0x3f] }
 0x146   :  { %7155 = vmatpush3.msra.mxu1 %v1969_v60  ;;  %7124 = vmatpush3.msra.mxu0 %v1766_v62  ;;  %v1718_v41 = vadd.f32 %v1716_v19, %v1708_v0  ;;  %v1899_v49 = vadd.f32 %v1897_v29, %v1889_v39  ;;  %v1965_v60 = vld [vmem:[%s13839_s3 + $0x958] sm:$0xff]  ;;  %v1762_v62 = vld [vmem:[%s13839_s3 + $0x848] sm:$0xff]  ;;  %v3328_v19 = vstv %s9818_s10  ;;  %v3510_v39 = vmul.f32 %v9941_v37, %v3509_v27  ;;  %s9986_s10 = sld [smem:[#allocation2 + $0x887]] }
 0x147   :  { %7156 = vmatprep.subr.mxu1 %v1984_v53  ;;  %7125 = vmatprep.subr.mxu0 %v1781_v2  ;;  %v9809_v36 = vpop.permute.xlu1 %2115  ;;  %v1936_v53 = vrot.slane %v9654_v52, 2  ;;  %v1957_v27 = vld [vmem:[%s13839_s3 + $0x918] sm:$0xff] }
 0x148   :  { %7157 = vmatpush3.msra.mxu1 %v1968_v9  ;;  %7126 = vmatpush3.msra.mxu0 %v1765_v11  ;;  %v9820_v28 = vpop.permute.xlu0 %2296  ;;  %v1728_v54 = vadd.f32 %v1726_v30, %v1718_v41  ;;  %v3319_v9 = vmul.f32 %v9213_v8, %v3318_v35  ;;  %v1962_v30 = vld [vmem:[%s13839_s3 + $0x940] sm:$0xff]  ;;  %v1774_v41 = vld [vmem:[%s13839_s3 + $0x8a8] sm:$0xff] }
 0x149   :  { %7158 = vmatprep.subr.mxu1 %v1983_v16  ;;  %3301 = vrot.lane.b32.xlu1 %v3299_v51, %s8020_s22  ;;  %v1909_v51 = vadd.f32 %v1907_v43, %v1899_v49  ;;  %v3500_v16 = vmul.f32 %v9213_v8, %v3499_v58  ;;  %v1937_v14 = vsel %vm128_vm6, %v9654_v52, %v1936_v53  ;;  %v1963_v8 = vld [vmem:[%s13839_s3 + $0x948] sm:$0xff]  ;;  %v1978_v52 = vld [vmem:[%s13839_s3 + $0x9c0] sm:$0xff]  ;;  %v1961_v43 = vld [vmem:[%s13839_s3 + $0x938] sm:$0xff] }
 0x14a   :  { %3482 = vrot.lane.b32.xlu0 %v3480_v13, %s8019_s11  ;;  %7127 = vmatprep.subr.mxu0 %v1780_v24  ;;  %v1738_v21 = vadd.f32 %v1736_v47, %v1728_v54  ;;  %v1750_v13 = vstv %s9834_s24  ;;  %v1758_v47 = vld [vmem:[%s13839_s3 + $0x828] sm:$0xff]  ;;  %v1773_v54 = vld [vmem:[%s13839_s3 + $0x8a0] sm:$0xff]  ;;  %s10342_s24 = sld [smem:[#allocation2 + $0x600]] }
 0x14b   :  { %7159 = vmatpush3.msra.mxu1 %v1967_v26  ;;  %7128 = vmatpush3.msra.mxu0 %v1764_v40  ;;  %v1919_v11 = vadd.f32 %v1917_v63, %v1909_v51  ;;  %v1946_v26 = vrot.slane %v9646_v42, 2  ;;  %v1775_v40 = vld [vmem:[%s13839_s3 + $0x8b0] sm:$0xff]  ;;  %v1757_v35 = vld [vmem:[%s13839_s3 + $0x820] sm:$0xff]  ;;  %v1772_v58 = vld [vmem:[%s13839_s3 + $0x898] sm:$0xff]  ;;  %v3348_v53 = vstv %s9929_s12  ;;  %s10443_s12 = sld [smem:[#allocation2 + $0xa03]] }
 0x14c   :  { %7160 = vmatprep.subr.mxu1 %v1982_v33  ;;  %7129 = vmatprep.subr.mxu0 %v1779_v31  ;;  %v9860_v55 = vpop.permute.xlu1 %2125  ;;  %v1748_v1 = vadd.f32 %v1746_v12, %v1738_v21  ;;  %v1759_v33 = vld [vmem:[%s13839_s3 + $0x830] sm:$0xff]  ;;  %v3329_v31 = vmul.f32 %v9941_v37, %v3328_v19  ;;  %v1959_v51 = vld [vmem:[%s13839_s3 + $0x928] sm:$0xff]  ;;  %v1756_v21 = vld [vmem:[%s13839_s3 + $0x818] sm:$0xff] }
 0x14d   :  { %7161 = vmatpush3.msra.mxu1 %v1966_v25  ;;  %7130 = vmatpush3.msra.mxu0 %v1763_v20  ;;  %v9874_v2 = vpop.permute.xlu0 %2306  ;;  %v1929_v24 = vadd.f32 %v1927_v18, %v1919_v11  ;;  %v3338_v25 = vstv %s9883_s25  ;;  %s10032_s25 = sld [smem:[#allocation2 + $0x901]]  ;;  %v1770_v19 = vld [vmem:[%s13839_s3 + $0x888] sm:$0xff] }
 0x14e   :  { %7162 = vmatprep.subr.mxu1 %v1981_v61  ;;  %3311 = vrot.lane.b32.xlu1 %v3309_v57, %s8021_s19  ;;  %v1751_v38 = vadd.f32 %v1750_v13, %v1748_v1  ;;  %v1947_v57 = vsel %vm139_vm7, %v9646_v42, %v1946_v26  ;;  %v3519_v61 = vstv %s9895_s15  ;;  %v1976_v42 = vld [vmem:[%s13839_s3 + $0x9b0] sm:$0xff]  ;;  %v3339_v63 = vmul.f32 %v9941_v37, %v3338_v25  ;;  %v1958_v1 = vld [vmem:[%s13839_s3 + $0x920] sm:$0xff]  ;;  %s10124_s15 = sld [smem:[#allocation2 + $0x982]] }
 0x14f   :  { %3492 = vrot.lane.b32.xlu0 %v3490_v48, %s8018_s7  ;;  %7131 = vmatprep.subr.mxu0 %v1778_v5  ;;  %v1939_v29 = vadd.f32 %v1937_v14, %v1929_v24  ;;  %v1960_v5 = vld [vmem:[%s13839_s3 + $0x930] sm:$0xff]  ;;  %v3520_v12 = vmul.f32 %v9941_v37, %v3519_v61  ;;  %v1973_v13 = vld [vmem:[%s13839_s3 + $0x998] sm:$0xff]  ;;  %v2069_v14 = vstv %s9964_s14  ;;  %s10046_s14 = sld [smem:[#allocation2 + $0x580]] }
 0x150   :  { %7163 = vmatpush3.msra.mxu1 %v1965_v60  ;;  %7132 = vmatpush3.msra.mxu0 %v1762_v62  ;;  %v1752_v46 = vmax.f32 %v1751_v38, 0.0  ;;  %v1951_v60 = vstv %s9908_s2  ;;  %v1975_v62 = vld [vmem:[%s13839_s3 + $0x9a8] sm:$0xff]  ;;  %v3539_v26 = vstv %s9986_s10  ;;  %v1972_v38 = vld [vmem:[%s13839_s3 + $0x990] sm:$0xff]  ;;  %s10109_s2 = sld [smem:[#allocation2 + $0x904]] }
 0x151   :  { %7164 = vmatprep.subr.mxu1 %v1980_v56  ;;  %7133 = vmatprep.subr.mxu0 %v1777_v45  ;;  %v9910_v22 = vpop.permute.xlu1 %2135  ;;  %v1949_v49 = vadd.f32 %v1947_v57, %v1939_v29  ;;  %v3529_v56 = vstv %s9944_s23  ;;  %v1971_v25 = vld [vmem:[%s13839_s3 + $0x988] sm:$0xff]  ;;  %s10266_s23 = sld [smem:[#allocation2 + $0x907]] }
 0x152   :  { %7165 = vmatpush3.msra.mxu1 %v1964_v4  ;;  %7134 = vmatpush3.msra.mxu0 %v1761_v6  ;;  %v9919_v0 = vpop.permute.xlu0 %2316  ;;  %v10005_v45 = vrot.slane %v1752_v46, %v8589_v50  ;;  %v1974_v6 = vld [vmem:[%s13839_s3 + $0x9a0] sm:$0xff]  ;;  %v1955_v46 = vld [vmem:[%s13839_s3 + $0x908] sm:$0xff]  ;;  %s10549_s10 = sld [smem:[#allocation2 + $0xa83]] }
 0x153   :  { %7166 = vmatprep.subr.mxu1 %v1979_v15  ;;  %3321 = vrot.lane.b32.xlu1 %v3319_v9, %s8022_s9  ;;  %v1952_v18 = vadd.f32 %v1951_v60, %v1949_v49  ;;  %v1771_v9 = vld [vmem:[%s13839_s3 + $0x890] sm:$0xff]  ;;  %v2087_v49 = vrot.slane %v9677_v59, 2  ;;  %v2170_v60 = vld [vmem:[%s13839_s3 + $0xa78] sm:$0xff] }
 0x154   :  { %3502 = vrot.lane.b32.xlu0 %v3500_v16, %s8020_s22  ;;  %7135 = vmatprep.subr.mxu0 %v1776_v3  ;;  %v1755_v15 = vld [vmem:[%s13839_s3 + $0x810] sm:$0xff]  ;;  %v3349_v16 = vmul.f32 %v9941_v37, %v3348_v53  ;;  %v3530_v3 = vmul.f32 %v9941_v37, %v3529_v56  ;;  %v1793_v24 = vcombine.high %v10005_v45, %v10005_v45  ;;  %v2097_v53 = vrot.slane %v9716_v23, 2 }
 0x155   :  { %7167 = vmatpush3.msra.mxu1 %v1963_v8  ;;  %7136 = vmatpush3.msra.mxu0 %v1760_v7  ;;  %v1953_v8 = vmax.f32 %v1952_v18, 0.0  ;;  %v2077_v7 = vrot.slane %v9689_v10, 2  ;;  %v2169_v56 = vld [vmem:[%s13839_s3 + $0xa70] sm:$0xff] }
 0x156   :  { %7168 = vmatprep.subr.mxu1 %v1978_v52  ;;  %7137 = vmatprep.subr.mxu0 %v1775_v40  ;;  %v9954_v20 = vpop.permute.xlu1 %2145  ;;  %v3549_v52 = vstv %s9976_s29  ;;  %v1754_v40 = vld [vmem:[%s13839_s3 + $0x808] sm:$0xff]  ;;  %s10278_s29 = sld [smem:[#allocation2 + $0x985]] }
 0x157   :  { %7169 = vmatpush3.msra.mxu1 %v1962_v30  ;;  %7138 = vmatpush3.msra.mxu0 %v1759_v33  ;;  %v9967_v48 = vpop.permute.xlu0 %2326  ;;  %v10060_v30 = vld [vmem:[%s13836_s0] sm:$0xf]  ;;  %v3550_v57 = vmul.f32 %v9941_v37, %v3549_v52  ;;  %v2078_v61 = vsel %vm62_vm0, %v9689_v10, %v2077_v7  ;;  %v2168_v7 = vld [vmem:[%s13839_s3 + $0xa68] sm:$0xff] }
 0x158   :  { %7170 = vmatprep.subr.mxu1 %v1977_v44  ;;  %3331 = vrot.lane.b32.xlu1 %v3329_v31, %s8023_s27  ;;  %v2070_v33 = vmul.f32 %v10060_v30, %v2069_v14  ;;  %v1769_v31 = vld [vmem:[%s13839_s3 + $0x880] sm:$0xff]  ;;  %v1956_v44 = vld [vmem:[%s13839_s3 + $0x910] sm:$0xff]  ;;  %v2098_v14 = vsel %vm84_vm2, %v9716_v23, %v2097_v53 }
 0x159   :  { %3512 = vrot.lane.b32.xlu0 %v3510_v39, %s8021_s19  ;;  %7139 = vmatprep.subr.mxu0 %v1774_v41  ;;  %v1753_v41 = vld [vmem:[%s13839_s3 + $0x800] sm:$0xff]  ;;  %v2386_v23 = vld [vmem:[%s13839_s3 + $0xbf0] sm:$0xff] }
 0x15a   :  { %7171 = vmatpush3.msra.mxu1 %v1961_v43  ;;  %7140 = vmatpush3.msra.mxu0 %v1758_v47  ;;  %v3540_v43 = vmul.f32 %v9941_v37, %v3539_v26  ;;  %v1993_v47 = vrot.slane %v1953_v8, %v8589_v50  ;;  %v1970_v10 = vld [vmem:[%s13839_s3 + $0x980] sm:$0xff]  ;;  %v2371_v8 = vld [vmem:[%s13839_s3 + $0xb78] sm:$0xff] }
 0x15b   :  { %7172 = vmatprep.subr.mxu1 %v1976_v42  ;;  %7141 = vmatprep.subr.mxu0 %v1773_v54  ;;  %v2186_v42 = vld [vmem:[%s13839_s3 + $0xaf8] sm:$0xff]  ;;  %v3690_v54 = vstv %s10026_s28  ;;  %s10957_s28 = sld [smem:[#allocation2 + $0xb06]] }
 0x15c   :  { %7173 = vmatpush3.msra.mxu1 %v1960_v5  ;;  %7142 = vmatpush3.msra.mxu0 %v1757_v35  ;;  %v10007_v4 = vpop.permute.xlu1 %2346  ;;  %v10016_v11 = vpop.permute.xlu0 %2336  ;;  %v3680_v5 = vstv %s10032_s25  ;;  %v3691_v18 = vmul.f32 %v9941_v37, %v3690_v54  ;;  %s10161_s25 = sld [smem:[#allocation2 + $0x905]] }
 0x15d   :  { %7174 = vmatprep.subr.mxu1 %v1975_v62  ;;  %3341 = vrot.lane.b32.xlu1 %v3339_v63, %s8024_s13  ;;  %v2080_v63 = vadd.f32 %v2078_v61, %v2070_v33  ;;  %v1954_v62 = vld [vmem:[%s13839_s3 + $0x900] sm:$0xff] }
 0x15e   :  { %3522 = vrot.lane.b32.xlu0 %v3520_v12, %s8022_s9  ;;  %7143 = vmatprep.subr.mxu0 %v1772_v58  ;;  %v1994_v12 = vcombine.high %v1993_v47, %v1993_v47 }
 0x15f   :  { %7175 = vmatpush3.msra.mxu1 %v1959_v51  ;;  %7144 = vmatpush3.msra.mxu0 %v1756_v21  ;;  %v2185_v51 = vld [vmem:[%s13839_s3 + $0xaf0] sm:$0xff]  ;;  %v2270_v21 = vstv %s10046_s14  ;;  %s10841_s14 = sld [smem:[#allocation2 + $0xb81]] }
 0x160   :  { %7176 = vmatprep.subr.mxu1 %v1974_v6  ;;  %7145 = vmatprep.subr.mxu0 %v1771_v9  ;;  %v3681_v6 = vmul.f32 %v9941_v37, %v3680_v5  ;;  %v2278_v9 = vrot.slane %v9728_v32, 2  ;;  %v2271_v26 = vmul.f32 %v10060_v30, %v2270_v21  ;;  %v2318_v21 = vrot.slane %v9919_v0, 2 }
 0x161   :  { %7177 = vmatpush3.msra.mxu1 %v1958_v1  ;;  %7146 = vmatpush3.msra.mxu0 %v1755_v15  ;;  %v2107_v1 = vrot.slane %v9754_v17, 2  ;;  %v2387_v15 = vld [vmem:[%s13839_s3 + $0xbf8] sm:$0xff] }
 0x162   :  { %7178 = vmatprep.subr.mxu1 %v1973_v13  ;;  %3351 = vrot.lane.b32.xlu1 %v3349_v16, %s8025_s17  ;;  %v10055_v29 = vpop.permute.xlu1 %2487  ;;  %v3700_v16 = vstv %s10070_s16  ;;  %v2279_v33 = vsel %vm62_vm0, %v9728_v32, %v2278_v9  ;;  %s10312_s16 = sld [smem:[#allocation2 + $0x908]] }
 0x163   :  { %3532 = vrot.lane.b32.xlu0 %v3530_v3, %s8023_s27  ;;  %7147 = vmatprep.subr.mxu0 %v1770_v19  ;;  %v10072_v39 = vpop.permute.xlu0 %2477  ;;  %v2184_v3 = vld [vmem:[%s13839_s3 + $0xae8] sm:$0xff]  ;;  %v2288_v19 = vrot.slane %v9767_v34, 2  ;;  %v2281_v5 = vadd.f32 %v2279_v33, %v2271_v26 }
 0x164   :  { %1860 = vmatprep.mubr.f32.mxu0 %v1793_v24  ;;  %7179 = vmatpush3.msra.mxu1 %v1957_v27  ;;  %v2117_v24 = vrot.slane %v9809_v36, 2  ;;  %v3881_v27 = vstv %s10085_s20  ;;  %s10574_s20 = sld [smem:[#allocation2 + $0xa06]] }
 0x165   :  { %7148 = vmatpush3.msra.mxu0 %v1754_v40  ;;  %7180 = vmatprep.subr.mxu1 %v1972_v38  ;;  %v2183_v40 = vld [vmem:[%s13839_s3 + $0xae0] sm:$0xff]  ;;  %v3701_v38 = vmul.f32 %v9941_v37, %v3700_v16  ;;  %v2289_v61 = vsel %vm73_vm1, %v9767_v34, %v2288_v19  ;;  %v2369_v34 = vld [vmem:[%s13839_s3 + $0xb68] sm:$0xff]  ;;  %v2383_v16 = vld [vmem:[%s13839_s3 + $0xbd8] sm:$0xff] }
 0x166   :  { %7149 = vmatprep.subr.mxu0 %v1769_v31  ;;  %7181 = vmatpush3.msra.mxu1 %v1956_v44  ;;  %v2108_v31 = vsel %vm95_vm3, %v9754_v17, %v2107_v1  ;;  %v2298_v44 = vrot.slane %v9820_v28, 2  ;;  %v2385_v17 = vld [vmem:[%s13839_s3 + $0xbe8] sm:$0xff] }
 0x167   :  { %7150 = vmatpush3.msra.mxu0 %v1753_v41  ;;  %7182 = vmatprep.subr.mxu1 %v1971_v25  ;;  %v10099_v35 = vpop.permute.xlu1 %2497  ;;  %v2127_v41 = vrot.slane %v9860_v55, 2  ;;  %v2370_v25 = vld [vmem:[%s13839_s3 + $0xb70] sm:$0xff] }
 0x168   :  { %3552 = vrot.lane.b32.xlu1 %v3550_v57, %s8025_s17  ;;  %3542 = vrot.lane.b32.xlu0 %v3540_v43, %s8024_s13  ;;  %v10111_v58 = vpop.permute.xlu0 %2678  ;;  %v2167_v57 = vld [vmem:[%s13839_s3 + $0xa60] sm:$0xff]  ;;  %v3882_v43 = vmul.f32 %v9941_v37, %v3881_v27  ;;  %v2164_v27 = vld [vmem:[%s13839_s3 + $0xa48] sm:$0xff] }
 0x169   :  { %1861 = vmatmul.mubr.f32.vlgmr.msra.gmra.mxu0 %v10005_v45  ;;  %7183 = vmatpush3.msra.mxu1 %v1955_v46  ;;  %v2088_v45 = vsel %vm73_vm1, %v9677_v59, %v2087_v49  ;;  %v2118_v46 = vsel %vm106_vm4, %v9809_v36, %v2117_v24  ;;  %v2308_v49 = vrot.slane %v9874_v2, 2  ;;  %v2166_v36 = vld [vmem:[%s13839_s3 + $0xa58] sm:$0xff]  ;;  %v2128_v53 = vsel %vm117_vm5, %v9860_v55, %v2127_v41  ;;  %v2368_v55 = vld [vmem:[%s13839_s3 + $0xb60] sm:$0xff]  ;;  %v2366_v41 = vld [vmem:[%s13839_s3 + $0xb50] sm:$0xff] }
 0x16a   :  { %7189 = vmatprep.subr.mxu0 %v2186_v42  ;;  %7184 = vmatprep.subr.mxu1 %v1970_v10  ;;  %v2090_v13 = vadd.f32 %v2088_v45, %v2080_v63  ;;  %v2182_v42 = vld [vmem:[%s13839_s3 + $0xad8] sm:$0xff]  ;;  %v2137_v10 = vrot.slane %v9910_v22, 2  ;;  %v2165_v45 = vld [vmem:[%s13839_s3 + $0xa50] sm:$0xff]  ;;  %v3720_v24 = vstv %s10161_s25  ;;  %s10656_s25 = sld [smem:[#allocation2 + $0xa85]] }
 0x16b   :  { %7190 = vmatpush3.msra.mxu0 %v2170_v60  ;;  %7185 = vmatpush3.msra.mxu1 %v1954_v62  ;;  %v3891_v60 = vstv %s10124_s15  ;;  %v2309_v1 = vsel %vm95_vm3, %v9874_v2, %v2308_v49  ;;  %v2180_v2 = vld [vmem:[%s13839_s3 + $0xac8] sm:$0xff]  ;;  %v3730_v49 = vstv %s10201_s26  ;;  %s10291_s15 = sld [smem:[#allocation4 + $0xb]] }
 0x16c   :  { %2061 = vmatprep.mubr.f32.mxu1 %v1994_v12  ;;  %7191 = vmatprep.subr.mxu0 %v2185_v51  ;;  %v10137_v59 = vpop.permute.xlu1 %2507  ;;  %v2100_v32 = vadd.f32 %v2098_v14, %v2090_v13  ;;  %v2299_v12 = vsel %vm84_vm2, %v9820_v28, %v2298_v44  ;;  %v2384_v51 = vld [vmem:[%s13839_s3 + $0xbe0] sm:$0xff]  ;;  %v2147_v28 = vrot.slane %v9954_v20, 2  ;;  %v3892_v13 = vmul.f32 %v9941_v37, %v3891_v60  ;;  %s10404_s26 = sld [smem:[#allocation2 + $0xa02]] }
 0x16d   :  { %2062 = vmatmul.mubr.f32.vlgmr.msra.gmra.mxu1 %v1993_v47  ;;  %7192 = vmatpush3.msra.mxu0 %v2169_v56  ;;  %v10150_v52 = vpop.permute.xlu0 %2688  ;;  %v3710_v47 = vstv %s10109_s2  ;;  %v2181_v56 = vld [vmem:[%s13839_s3 + $0xad0] sm:$0xff]  ;;  %v2179_v44 = vld [vmem:[%s13839_s3 + $0xac0] sm:$0xff]  ;;  %v2348_v60 = vrot.slane %v10007_v4, 2  ;;  %s10458_s2 = sld [smem:[#allocation2 + $0xa81]] }
 0x16e   :  { %7224 = vmatprep.subr.mxu1 %v2387_v15  ;;  %3693 = vrot.lane.b32.xlu1 %v3691_v18, %s8018_s7  ;;  %v2110_v63 = vadd.f32 %v2108_v31, %v2100_v32  ;;  %v2291_v18 = vadd.f32 %v2289_v61, %v2281_v5  ;;  %v3711_v9 = vmul.f32 %v9941_v37, %v3710_v47  ;;  %v2382_v31 = vld [vmem:[%s13839_s3 + $0xbd0] sm:$0xff]  ;;  %v2152_v47 = vstv %s10217_s30  ;;  %v2178_v61 = vld [vmem:[%s13839_s3 + $0xab8] sm:$0xff]  ;;  %s10364_s30 = sld [smem:[#allocation2 + $0x987]] }
 0x16f   :  { %3683 = vrot.lane.b32.xlu0 %v3681_v6, %s8019_s11  ;;  %7193 = vmatprep.subr.mxu0 %v2184_v3  ;;  %v2138_v15 = vsel %vm128_vm6, %v9910_v22, %v2137_v10  ;;  %v2328_v3 = vrot.slane %v9967_v48, 2  ;;  %v2319_v22 = vsel %vm106_vm4, %v9919_v0, %v2318_v21  ;;  %v2148_v26 = vsel %vm139_vm7, %v9954_v20, %v2147_v28  ;;  %v2365_v5 = vld [vmem:[%s13839_s3 + $0xb48] sm:$0xff]  ;;  %v2364_v21 = vld [vmem:[%s13839_s3 + $0xb40] sm:$0xff] }
 0x170   :  { %7225 = vmatpush3.msra.mxu1 %v2371_v8  ;;  %7194 = vmatpush3.msra.mxu0 %v2168_v7  ;;  %v2120_v6 = vadd.f32 %v2118_v46, %v2110_v63  ;;  %v2301_v14 = vadd.f32 %v2299_v12, %v2291_v18  ;;  %v2367_v7 = vld [vmem:[%s13839_s3 + $0xb58] sm:$0xff]  ;;  %v2177_v12 = vld [vmem:[%s13839_s3 + $0xab0] sm:$0xff]  ;;  %v3731_v28 = vmul.f32 %v9941_v37, %v3730_v49  ;;  %v2471_v49 = vstv %s10342_s24  ;;  %s10424_s24 = sld [smem:[#allocation2 + $0x680]] }
 0x171   :  { %7226 = vmatprep.subr.mxu1 %v2386_v23  ;;  %7195 = vmatprep.subr.mxu0 %v2183_v40  ;;  %v10192_v54 = vpop.permute.xlu1 %2517  ;;  %v3901_v23 = vstv %s10176_s8  ;;  %v2338_v40 = vrot.slane %v10016_v11, 2  ;;  %v2329_v20 = vsel %vm117_vm5, %v9967_v48, %v2328_v3  ;;  %v2381_v48 = vld [vmem:[%s13839_s3 + $0xbc8] sm:$0xff]  ;;  %v2162_v63 = vld [vmem:[%s13839_s3 + $0xa38] sm:$0xff]  ;;  %s10482_s8 = sld [smem:[#allocation2 + $0xa04]] }
 0x172   :  { %7227 = vmatpush3.msra.mxu1 %v2370_v25  ;;  %7196 = vmatpush3.msra.mxu0 %v2167_v57  ;;  %v10203_v62 = vpop.permute.xlu0 %2698  ;;  %v2130_v19 = vadd.f32 %v2128_v53, %v2120_v6  ;;  %v2311_v33 = vadd.f32 %v2309_v1, %v2301_v14  ;;  %v2163_v25 = vld [vmem:[%s13839_s3 + $0xa40] sm:$0xff]  ;;  %v3721_v57 = vmul.f32 %v9941_v37, %v3720_v24  ;;  %v2379_v18 = vld [vmem:[%s13839_s3 + $0xbb8] sm:$0xff]  ;;  %v2362_v24 = vld [vmem:[%s13839_s3 + $0xb30] sm:$0xff] }
 0x173   :  { %7228 = vmatprep.subr.mxu1 %v2385_v17  ;;  %3703 = vrot.lane.b32.xlu1 %v3701_v38, %s8020_s22  ;;  %v2339_v46 = vsel %vm128_vm6, %v10016_v11, %v2338_v40  ;;  %v2380_v11 = vld [vmem:[%s13839_s3 + $0xbc0] sm:$0xff]  ;;  %v2349_v1 = vsel %vm139_vm7, %v10007_v4, %v2348_v60  ;;  %v2378_v4 = vld [vmem:[%s13839_s3 + $0xbb0] sm:$0xff]  ;;  %v2174_v40 = vld [vmem:[%s13839_s3 + $0xa98] sm:$0xff] }
 0x174   :  { %3884 = vrot.lane.b32.xlu0 %v3882_v43, %s8019_s11  ;;  %7197 = vmatprep.subr.mxu0 %v2182_v42  ;;  %v2140_v0 = vadd.f32 %v2138_v15, %v2130_v19  ;;  %v2321_v32 = vadd.f32 %v2319_v22, %v2311_v33  ;;  %v3902_v43 = vmul.f32 %v9941_v37, %v3901_v23  ;;  %v2363_v15 = vld [vmem:[%s13839_s3 + $0xb38] sm:$0xff]  ;;  %v2159_v22 = vld [vmem:[%s13839_s3 + $0xa20] sm:$0xff]  ;;  %v3750_v33 = vstv %s10312_s16  ;;  %s10497_s16 = sld [smem:[#allocation2 + $0xa82]] }
 0x175   :  { %7229 = vmatpush3.msra.mxu1 %v2369_v34  ;;  %7198 = vmatpush3.msra.mxu0 %v2166_v36  ;;  %v3911_v34 = vstv %s10228_s21  ;;  %v3951_v60 = vstv %s10354_s18  ;;  %s10590_s21 = sld [smem:[#allocation4 + $0xc]] }
 0x176   :  { %7230 = vmatprep.subr.mxu1 %v2384_v51  ;;  %7199 = vmatprep.subr.mxu0 %v2181_v56  ;;  %v10243_v8 = vpop.permute.xlu1 %2527  ;;  %v2150_v17 = vadd.f32 %v2148_v26, %v2140_v0  ;;  %v2331_v10 = vadd.f32 %v2329_v20, %v2321_v32  ;;  %v2161_v56 = vld [vmem:[%s13839_s3 + $0xa30] sm:$0xff]  ;;  %v3912_v6 = vmul.f32 %v9941_v37, %v3911_v34  ;;  %v2377_v26 = vld [vmem:[%s13839_s3 + $0xba8] sm:$0xff]  ;;  %v2479_v34 = vrot.slane %v10072_v39, 2  ;;  %s10690_s18 = sld [smem:[#allocation2 + $0xa08]] }
 0x177   :  { %7231 = vmatpush3.msra.mxu1 %v2368_v55  ;;  %7200 = vmatpush3.msra.mxu0 %v2165_v45  ;;  %v10257_v38 = vpop.permute.xlu0 %2708  ;;  %v2176_v55 = vld [vmem:[%s13839_s3 + $0xaa8] sm:$0xff]  ;;  %v3740_v45 = vstv %s10266_s23  ;;  %v2173_v32 = vld [vmem:[%s13839_s3 + $0xa90] sm:$0xff]  ;;  %s10410_s23 = sld [smem:[#allocation2 + $0xa01]] }
 0x178   :  { %7232 = vmatprep.subr.mxu1 %v2383_v16  ;;  %3713 = vrot.lane.b32.xlu1 %v3711_v9, %s8021_s19  ;;  %v2153_v53 = vadd.f32 %v2152_v47, %v2150_v17  ;;  %v2341_v51 = vadd.f32 %v2339_v46, %v2331_v10  ;;  %v2160_v16 = vld [vmem:[%s13839_s3 + $0xa28] sm:$0xff]  ;;  %v3751_v47 = vmul.f32 %v9941_v37, %v3750_v33  ;;  %v2499_v33 = vrot.slane %v10099_v35, 2 }
 0x179   :  { %3894 = vrot.lane.b32.xlu0 %v3892_v13, %s8018_s7  ;;  %7201 = vmatprep.subr.mxu0 %v2180_v2  ;;  %v3921_v13 = vstv %s10278_s29  ;;  %v2175_v2 = vld [vmem:[%s13839_s3 + $0xaa0] sm:$0xff]  ;;  %v2361_v0 = vld [vmem:[%s13839_s3 + $0xb28] sm:$0xff]  ;;  %s10639_s29 = sld [smem:[#allocation2 + $0xa07]] }
 0x17a   :  { %7233 = vmatpush3.msra.mxu1 %v2367_v7  ;;  %7202 = vmatpush3.msra.mxu0 %v2164_v27  ;;  %v2154_v14 = vmax.f32 %v2153_v53, 0.0  ;;  %v2351_v19 = vadd.f32 %v2349_v1, %v2341_v51  ;;  %v3741_v7 = vmul.f32 %v9941_v37, %v3740_v45  ;;  %v2353_v27 = vstv %s10291_s15  ;;  %v2172_v10 = vld [vmem:[%s13839_s3 + $0xa88] sm:$0xff]  ;;  %v2374_v51 = vld [vmem:[%s13839_s3 + $0xb90] sm:$0xff]  ;;  %s11098_s15 = sld [smem:[#allocation2 + $0x800]] }
 0x17b   :  { %7234 = vmatprep.subr.mxu1 %v2382_v31  ;;  %7203 = vmatprep.subr.mxu0 %v2179_v44  ;;  %v10293_v42 = vpop.permute.xlu1 %2537  ;;  %v3922_v23 = vmul.f32 %v9941_v37, %v3921_v13  ;;  %v2158_v31 = vld [vmem:[%s13839_s3 + $0xa18] sm:$0xff]  ;;  %v3931_v44 = vstv %s10322_s1  ;;  %v2156_v53 = vld [vmem:[%s13839_s3 + $0xa08] sm:$0xff]  ;;  %v3952_v1 = vmul.f32 %v9941_v37, %v3951_v60  ;;  %v2480_v13 = vsel %vm62_vm0, %v10072_v39, %v2479_v34  ;;  %v2372_v39 = vld [vmem:[%s13839_s3 + $0xb80] sm:$0xff]  ;;  %s10601_s1 = sld [smem:[#allocation2 + $0xa84]] }
 0x17c   :  { %7235 = vmatpush3.msra.mxu1 %v2366_v41  ;;  %7204 = vmatpush3.msra.mxu0 %v2163_v25  ;;  %v10302_v36 = vpop.permute.xlu0 %2718  ;;  %v10383_v20 = vrot.slane %v2154_v14, %v8589_v50  ;;  %v2354_v41 = vadd.f32 %v2353_v27, %v2351_v19  ;;  %v3932_v46 = vmul.f32 %v9941_v37, %v3931_v44  ;;  %v2373_v45 = vld [vmem:[%s13839_s3 + $0xb88] sm:$0xff]  ;;  %v2489_v19 = vrot.slane %v10055_v29, 2  ;;  %v2572_v27 = vld [vmem:[%s13839_s3 + $0xc78] sm:$0xff]  ;;  %v2571_v44 = vld [vmem:[%s13839_s3 + $0xc70] sm:$0xff] }
 0x17d   :  { %7236 = vmatprep.subr.mxu1 %v2381_v48  ;;  %3723 = vrot.lane.b32.xlu1 %v3721_v57, %s8022_s9  ;;  %v2376_v57 = vld [vmem:[%s13839_s3 + $0xba0] sm:$0xff]  ;;  %v2357_v14 = vld [vmem:[%s13839_s3 + $0xb08] sm:$0xff] }
 0x17e   :  { %3904 = vrot.lane.b32.xlu0 %v3902_v43, %s8020_s22  ;;  %7205 = vmatprep.subr.mxu0 %v2178_v61  ;;  %v2360_v48 = vld [vmem:[%s13839_s3 + $0xb20] sm:$0xff]  ;;  %v2157_v43 = vld [vmem:[%s13839_s3 + $0xa10] sm:$0xff]  ;;  %v2375_v61 = vld [vmem:[%s13839_s3 + $0xb98] sm:$0xff] }
 0x17f   :  { %7237 = vmatpush3.msra.mxu1 %v2365_v5  ;;  %7206 = vmatpush3.msra.mxu0 %v2162_v63  ;;  %v2195_v5 = vcombine.high %v10383_v20, %v10383_v20  ;;  %v2355_v63 = vmax.f32 %v2354_v41, 0.0  ;;  %v2570_v34 = vld [vmem:[%s13839_s3 + $0xc68] sm:$0xff] }
 0x180   :  { %7238 = vmatprep.subr.mxu1 %v2380_v11  ;;  %7207 = vmatprep.subr.mxu0 %v2177_v12  ;;  %v10332_v9 = vpop.permute.xlu1 %2547  ;;  %v2359_v11 = vld [vmem:[%s13839_s3 + $0xb18] sm:$0xff]  ;;  %v3941_v12 = vstv %s10364_s30  ;;  %s10973_s30 = sld [smem:[#allocation4 + $0xe]] }
 0x181   :  { %7239 = vmatpush3.msra.mxu1 %v2364_v21  ;;  %7208 = vmatpush3.msra.mxu0 %v2161_v56  ;;  %v10345_v3 = vpop.permute.xlu0 %2728  ;;  %v2472_v56 = vmul.f32 %v10060_v30, %v2471_v49  ;;  %v2500_v49 = vsel %vm84_vm2, %v10099_v35, %v2499_v33  ;;  %v2788_v35 = vld [vmem:[%s13839_s3 + $0xdf0] sm:$0xff]  ;;  %v2786_v33 = vld [vmem:[%s13839_s3 + $0xde0] sm:$0xff] }
 0x182   :  { %7240 = vmatprep.subr.mxu1 %v2379_v18  ;;  %3733 = vrot.lane.b32.xlu1 %v3731_v28, %s8023_s27  ;;  %v2171_v28 = vld [vmem:[%s13839_s3 + $0xa80] sm:$0xff]  ;;  %v2358_v18 = vld [vmem:[%s13839_s3 + $0xb10] sm:$0xff] }
 0x183   :  { %3914 = vrot.lane.b32.xlu0 %v3912_v6, %s8021_s19  ;;  %7209 = vmatprep.subr.mxu0 %v2176_v55  ;;  %v2155_v55 = vld [vmem:[%s13839_s3 + $0xa00] sm:$0xff] }
 0x184   :  { %7241 = vmatpush3.msra.mxu1 %v2363_v15  ;;  %7210 = vmatpush3.msra.mxu0 %v2160_v16  ;;  %v3942_v15 = vmul.f32 %v9941_v37, %v3941_v12  ;;  %v2395_v16 = vrot.slane %v2355_v63, %v8589_v50  ;;  %v2773_v63 = vld [vmem:[%s13839_s3 + $0xd78] sm:$0xff] }
 0x185   :  { %7242 = vmatprep.subr.mxu1 %v2378_v4  ;;  %7211 = vmatprep.subr.mxu0 %v2175_v2  ;;  %v2588_v4 = vld [vmem:[%s13839_s3 + $0xcf8] sm:$0xff]  ;;  %v4092_v2 = vstv %s10404_s26  ;;  %s10732_s26 = sld [smem:[#allocation2 + $0xa88]] }
 0x186   :  { %7243 = vmatpush3.msra.mxu1 %v2362_v24  ;;  %7212 = vmatpush3.msra.mxu0 %v2159_v22  ;;  %v10385_v25 = vpop.permute.xlu1 %2748  ;;  %v10394_v17 = vpop.permute.xlu0 %2738  ;;  %v4082_v24 = vstv %s10410_s23  ;;  %v4093_v41 = vmul.f32 %v9941_v37, %v4092_v2  ;;  %s10534_s23 = sld [smem:[#allocation2 + $0xa05]] }
 0x187   :  { %7244 = vmatprep.subr.mxu1 %v2377_v26  ;;  %3743 = vrot.lane.b32.xlu1 %v3741_v7, %s8024_s13  ;;  %v2482_v7 = vadd.f32 %v2480_v13, %v2472_v56  ;;  %v2356_v26 = vld [vmem:[%s13839_s3 + $0xb00] sm:$0xff] }
 0x188   :  { %3924 = vrot.lane.b32.xlu0 %v3922_v23, %s8022_s9  ;;  %7213 = vmatprep.subr.mxu0 %v2174_v40  ;;  %v2396_v23 = vcombine.high %v2395_v16, %v2395_v16 }
 0x189   :  { %7245 = vmatpush3.msra.mxu1 %v2361_v0  ;;  %7214 = vmatpush3.msra.mxu0 %v2158_v31  ;;  %v2587_v0 = vld [vmem:[%s13839_s3 + $0xcf0] sm:$0xff]  ;;  %v2672_v31 = vstv %s10424_s24  ;;  %s10984_s24 = sld [smem:[#allocation2 + $0xb84]] }
 0x18a   :  { %7246 = vmatprep.subr.mxu1 %v2376_v57  ;;  %7215 = vmatprep.subr.mxu0 %v2173_v32  ;;  %v4083_v57 = vmul.f32 %v9941_v37, %v4082_v24  ;;  %v2680_v32 = vrot.slane %v10111_v58, 2  ;;  %v2673_v12 = vmul.f32 %v10060_v30, %v2672_v31  ;;  %v2583_v31 = vld [vmem:[%s13839_s3 + $0xcd0] sm:$0xff] }
 0x18b   :  { %7247 = vmatpush3.msra.mxu1 %v2360_v48  ;;  %7216 = vmatpush3.msra.mxu0 %v2157_v43  ;;  %v2509_v48 = vrot.slane %v10137_v59, 2  ;;  %v2789_v43 = vld [vmem:[%s13839_s3 + $0xdf8] sm:$0xff] }
 0x18c   :  { %7248 = vmatprep.subr.mxu1 %v2375_v61  ;;  %3753 = vrot.lane.b32.xlu1 %v3751_v47, %s8025_s17  ;;  %v10433_v21 = vpop.permute.xlu1 %2889  ;;  %v4102_v47 = vstv %s10443_s12  ;;  %v2681_v56 = vsel %vm62_vm0, %v10111_v58, %v2680_v32  ;;  %s10826_s12 = sld [smem:[#allocation2 + $0xb03]] }
 0x18d   :  { %3934 = vrot.lane.b32.xlu0 %v3932_v46, %s8023_s27  ;;  %7217 = vmatprep.subr.mxu0 %v2172_v10  ;;  %v10445_v6 = vpop.permute.xlu0 %2879  ;;  %v2586_v46 = vld [vmem:[%s13839_s3 + $0xce8] sm:$0xff]  ;;  %v2690_v10 = vrot.slane %v10150_v52, 2  ;;  %v2510_v30 = vsel %vm95_vm3, %v10137_v59, %v2509_v48  ;;  %v2683_v2 = vadd.f32 %v2681_v56, %v2673_v12  ;;  %v2740_v12 = vrot.slane %v10394_v17, 2  ;;  %v2581_v56 = vld [vmem:[%s13839_s3 + $0xcc0] sm:$0xff] }
 0x18e   :  { %2262 = vmatprep.mubr.f32.mxu0 %v2195_v5  ;;  %7249 = vmatpush3.msra.mxu1 %v2359_v11  ;;  %v2519_v5 = vrot.slane %v10192_v54, 2  ;;  %v4283_v11 = vstv %s10458_s2  ;;  %v2787_v59 = vld [vmem:[%s13839_s3 + $0xde8] sm:$0xff]  ;;  %s10669_s2 = sld [smem:[#allocation4 + $0xd]] }
 0x18f   :  { %7218 = vmatpush3.msra.mxu0 %v2156_v53  ;;  %7250 = vmatprep.subr.mxu1 %v2374_v51  ;;  %v2585_v53 = vld [vmem:[%s13839_s3 + $0xce0] sm:$0xff]  ;;  %v4103_v51 = vmul.f32 %v9941_v37, %v4102_v47 }
 0x190   :  { %7219 = vmatprep.subr.mxu0 %v2171_v28  ;;  %7251 = vmatpush3.msra.mxu1 %v2358_v18  ;;  %v2700_v28 = vrot.slane %v10203_v62, 2  ;;  %v2529_v18 = vrot.slane %v10243_v8, 2  ;;  %v2520_v13 = vsel %vm106_vm4, %v10192_v54, %v2519_v5  ;;  %v2568_v54 = vld [vmem:[%s13839_s3 + $0xc58] sm:$0xff] }
 0x191   :  { %7220 = vmatpush3.msra.mxu0 %v2155_v55  ;;  %7252 = vmatprep.subr.mxu1 %v2373_v45  ;;  %v10472_v22 = vpop.permute.xlu1 %2899  ;;  %v2772_v55 = vld [vmem:[%s13839_s3 + $0xd70] sm:$0xff]  ;;  %v2569_v45 = vld [vmem:[%s13839_s3 + $0xc60] sm:$0xff] }
 0x192   :  { %3954 = vrot.lane.b32.xlu1 %v3952_v1, %s8025_s17  ;;  %3944 = vrot.lane.b32.xlu0 %v3942_v15, %s8024_s13  ;;  %v10484_v40 = vpop.permute.xlu0 %3080  ;;  %v4284_v1 = vmul.f32 %v9941_v37, %v4283_v11  ;;  %v4112_v15 = vstv %s10482_s8  ;;  %v4303_v11 = vstv %s10549_s10  ;;  %s10720_s8 = sld [smem:[#allocation2 + $0x700]] }
 0x193   :  { %2263 = vmatmul.mubr.f32.vlgmr.msra.gmra.mxu0 %v10383_v20  ;;  %7253 = vmatpush3.msra.mxu1 %v2357_v14  ;;  %v2490_v20 = vsel %vm73_vm1, %v10055_v29, %v2489_v19  ;;  %v2710_v14 = vrot.slane %v10257_v38, 2  ;;  %v2584_v19 = vld [vmem:[%s13839_s3 + $0xcd8] sm:$0xff]  ;;  %s11110_s10 = sld [smem:[#allocation2 + $0xb88]] }
 0x194   :  { %7259 = vmatprep.subr.mxu0 %v2588_v4  ;;  %7254 = vmatprep.subr.mxu1 %v2372_v39  ;;  %v2492_v61 = vadd.f32 %v2490_v20, %v2482_v7  ;;  %v2539_v4 = vrot.slane %v10293_v42, 2  ;;  %v4293_v7 = vstv %s10497_s16  ;;  %v4113_v20 = vmul.f32 %v9941_v37, %v4112_v15  ;;  %v2580_v15 = vld [vmem:[%s13839_s3 + $0xcb8] sm:$0xff]  ;;  %s10700_s16 = sld [smem:[#allocation2 + $0xa86]] }
 0x195   :  { %7260 = vmatpush3.msra.mxu0 %v2572_v27  ;;  %7255 = vmatpush3.msra.mxu1 %v2356_v26  ;;  %v2701_v26 = vsel %vm84_vm2, %v10203_v62, %v2700_v28  ;;  %v2549_v62 = vrot.slane %v10332_v9, 2  ;;  %v2711_v32 = vsel %vm95_vm3, %v10257_v38, %v2710_v14  ;;  %v4294_v47 = vmul.f32 %v9941_v37, %v4293_v7  ;;  %v2582_v38 = vld [vmem:[%s13839_s3 + $0xcc8] sm:$0xff]  ;;  %v2769_v37 = vld [vmem:[%s13839_s3 + $0xd58] sm:$0xff]  ;;  %v2565_v28 = vld [vmem:[%s13839_s3 + $0xc40] sm:$0xff] }
 0x196   :  { %2463 = vmatprep.mubr.f32.mxu1 %v2396_v23  ;;  %7261 = vmatprep.subr.mxu0 %v2587_v0  ;;  %v10510_v29 = vpop.permute.xlu1 %2909  ;;  %v2502_v58 = vadd.f32 %v2500_v49, %v2492_v61  ;;  %v2530_v23 = vsel %vm117_vm5, %v10243_v8, %v2529_v18  ;;  %v2720_v0 = vrot.slane %v10302_v36, 2  ;;  %v2770_v8 = vld [vmem:[%s13839_s3 + $0xd60] sm:$0xff]  ;;  %v2540_v48 = vsel %vm128_vm6, %v10293_v42, %v2539_v4  ;;  %v2767_v4 = vld [vmem:[%s13839_s3 + $0xd48] sm:$0xff]  ;;  %v2579_v7 = vld [vmem:[%s13839_s3 + $0xcb0] sm:$0xff] }
 0x197   :  { %2464 = vmatmul.mubr.f32.vlgmr.msra.gmra.mxu1 %v2395_v16  ;;  %7262 = vmatpush3.msra.mxu0 %v2571_v44  ;;  %v10523_v60 = vpop.permute.xlu0 %3090  ;;  %v2691_v16 = vsel %vm73_vm1, %v10150_v52, %v2690_v10  ;;  %v2771_v52 = vld [vmem:[%s13839_s3 + $0xd68] sm:$0xff]  ;;  %v2730_v61 = vrot.slane %v10345_v3, 2  ;;  %v4122_v10 = vstv %s10534_s23  ;;  %v10653_v18 = vld [vmem:[%s13836_s0] sm:$0x3f]  ;;  %s10932_s23 = sld [smem:[#allocation2 + $0xb83]] }
 0x198   :  { %7294 = vmatprep.subr.mxu1 %v2789_v43  ;;  %4095 = vrot.lane.b32.xlu1 %v4093_v41, %s8018_s7  ;;  %v2512_v24 = vadd.f32 %v2510_v30, %v2502_v58  ;;  %v2693_v44 = vadd.f32 %v2691_v16, %v2683_v2  ;;  %v2785_v43 = vld [vmem:[%s13839_s3 + $0xdd8] sm:$0xff]  ;;  %v2721_v42 = vsel %vm106_vm4, %v10302_v36, %v2720_v0  ;;  %v2768_v30 = vld [vmem:[%s13839_s3 + $0xd50] sm:$0xff]  ;;  %v2783_v58 = vld [vmem:[%s13839_s3 + $0xdc8] sm:$0xff] }
 0x199   :  { %4085 = vrot.lane.b32.xlu0 %v4083_v57, %s8019_s11  ;;  %7263 = vmatprep.subr.mxu0 %v2586_v46  ;;  %v2567_v57 = vld [vmem:[%s13839_s3 + $0xc50] sm:$0xff]  ;;  %v2741_v16 = vsel %vm128_vm6, %v10394_v17, %v2740_v12  ;;  %v2564_v2 = vld [vmem:[%s13839_s3 + $0xc38] sm:$0xff]  ;;  %v2782_v17 = vld [vmem:[%s13839_s3 + $0xdc0] sm:$0xff] }
 0x19a   :  { %7295 = vmatpush3.msra.mxu1 %v2773_v63  ;;  %7264 = vmatpush3.msra.mxu0 %v2570_v34  ;;  %v2522_v41 = vadd.f32 %v2520_v13, %v2512_v24  ;;  %v2703_v46 = vadd.f32 %v2701_v26, %v2693_v44  ;;  %v2566_v63 = vld [vmem:[%s13839_s3 + $0xc48] sm:$0xff]  ;;  %v2550_v34 = vsel %vm139_vm7, %v10332_v9, %v2549_v62  ;;  %v4132_v13 = vstv %s10574_s20  ;;  %v2563_v0 = vld [vmem:[%s13839_s3 + $0xc30] sm:$0xff]  ;;  %v2781_v62 = vld [vmem:[%s13839_s3 + $0xdb8] sm:$0xff]  ;;  %s10782_s20 = sld [smem:[#allocation2 + $0xb02]] }
 0x19b   :  { %7296 = vmatprep.subr.mxu1 %v2788_v35  ;;  %7265 = vmatprep.subr.mxu0 %v2585_v53  ;;  %v10565_v39 = vpop.permute.xlu1 %2919  ;;  %v2731_v9 = vsel %vm117_vm5, %v10345_v3, %v2730_v61  ;;  %v4313_v24 = vstv %s10601_s1  ;;  %v4152_v12 = vstv %s10690_s18  ;;  %s11078_s1 = sld [smem:[#allocation2 + $0xb86]] }
 0x19c   :  { %7297 = vmatpush3.msra.mxu1 %v2772_v55  ;;  %7266 = vmatpush3.msra.mxu0 %v2569_v45  ;;  %v10576_v27 = vpop.permute.xlu0 %3100  ;;  %v2532_v49 = vadd.f32 %v2530_v23, %v2522_v41  ;;  %v2713_v53 = vadd.f32 %v2711_v32, %v2703_v46  ;;  %v4123_v55 = vmul.f32 %v10653_v18, %v4122_v10  ;;  %v2578_v41 = vld [vmem:[%s13839_s3 + $0xca8] sm:$0xff]  ;;  %v2765_v32 = vld [vmem:[%s13839_s3 + $0xd38] sm:$0xff]  ;;  %v2561_v10 = vld [vmem:[%s13839_s3 + $0xc20] sm:$0xff]  ;;  %s11199_s18 = sld [smem:[#allocation2 + $0xc03]] }
 0x19d   :  { %7298 = vmatprep.subr.mxu1 %v2787_v59  ;;  %4105 = vrot.lane.b32.xlu1 %v4103_v51, %s8020_s22  ;;  %v2784_v51 = vld [vmem:[%s13839_s3 + $0xdd0] sm:$0xff]  ;;  %v4304_v59 = vmul.f32 %v10653_v18, %v4303_v11  ;;  %v4314_v44 = vmul.f32 %v10653_v18, %v4313_v24  ;;  %v2576_v11 = vld [vmem:[%s13839_s3 + $0xc98] sm:$0xff] }
 0x19e   :  { %4286 = vrot.lane.b32.xlu0 %v4284_v1, %s8019_s11  ;;  %7267 = vmatprep.subr.mxu0 %v2584_v19  ;;  %v2542_v36 = vadd.f32 %v2540_v48, %v2532_v49  ;;  %v2723_v45 = vadd.f32 %v2721_v42, %v2713_v53  ;;  %v2554_v1 = vstv %s10590_s21  ;;  %v2562_v48 = vld [vmem:[%s13839_s3 + $0xc28] sm:$0xff]  ;;  %v2577_v49 = vld [vmem:[%s13839_s3 + $0xca0] sm:$0xff]  ;;  %s10742_s21 = sld [smem:[#allocation2 + $0xa87]] }
 0x19f   :  { %7299 = vmatpush3.msra.mxu1 %v2771_v52  ;;  %7268 = vmatpush3.msra.mxu0 %v2568_v54  ;;  %v2750_v54 = vrot.slane %v10385_v25, 2  ;;  %v2763_v53 = vld [vmem:[%s13839_s3 + $0xd28] sm:$0xff]  ;;  %v2761_v24 = vld [vmem:[%s13839_s3 + $0xd18] sm:$0xff] }
 0x1a0   :  { %7300 = vmatprep.subr.mxu1 %v2786_v33  ;;  %7269 = vmatprep.subr.mxu0 %v2583_v31  ;;  %v10616_v5 = vpop.permute.xlu1 %2929  ;;  %v2552_v3 = vadd.f32 %v2550_v34, %v2542_v36  ;;  %v2733_v19 = vadd.f32 %v2731_v9, %v2723_v45  ;;  %v2766_v33 = vld [vmem:[%s13839_s3 + $0xd40] sm:$0xff]  ;;  %v4133_v31 = vmul.f32 %v10653_v18, %v4132_v13  ;;  %v2560_v36 = vld [vmem:[%s13839_s3 + $0xc18] sm:$0xff]  ;;  %v2574_v13 = vld [vmem:[%s13839_s3 + $0xc88] sm:$0xff] }
 0x1a1   :  { %7301 = vmatpush3.msra.mxu1 %v2770_v8  ;;  %7270 = vmatpush3.msra.mxu0 %v2567_v57  ;;  %v10630_v35 = vpop.permute.xlu0 %3110  ;;  %v4142_v8 = vstv %s10639_s29  ;;  %s10788_s29 = sld [smem:[#allocation2 + $0xb01]] }
 0x1a2   :  { %7302 = vmatprep.subr.mxu1 %v2785_v43  ;;  %4115 = vrot.lane.b32.xlu1 %v4113_v20, %s8021_s19  ;;  %v2555_v26 = vadd.f32 %v2554_v1, %v2552_v3  ;;  %v2743_v23 = vadd.f32 %v2741_v16, %v2733_v19  ;;  %v2751_v20 = vsel %vm139_vm7, %v10385_v25, %v2750_v54  ;;  %v4323_v43 = vstv %s10656_s25  ;;  %v2780_v25 = vld [vmem:[%s13839_s3 + $0xdb0] sm:$0xff]  ;;  %v2762_v3 = vld [vmem:[%s13839_s3 + $0xd20] sm:$0xff]  ;;  %s10880_s25 = sld [smem:[#allocation2 + $0xb82]] }
 0x1a3   :  { %4296 = vrot.lane.b32.xlu0 %v4294_v47, %s8018_s7  ;;  %7271 = vmatprep.subr.mxu0 %v2582_v38  ;;  %v2764_v38 = vld [vmem:[%s13839_s3 + $0xd30] sm:$0xff]  ;;  %v4143_v42 = vmul.f32 %v10653_v18, %v4142_v8  ;;  %v4324_v34 = vmul.f32 %v10653_v18, %v4323_v43  ;;  %v2777_v1 = vld [vmem:[%s13839_s3 + $0xd98] sm:$0xff]  ;;  %v2873_v16 = vstv %s10720_s8  ;;  %s10802_s8 = sld [smem:[#allocation2 + $0x780]] }
 0x1a4   :  { %7303 = vmatpush3.msra.mxu1 %v2769_v37  ;;  %7272 = vmatpush3.msra.mxu0 %v2566_v63  ;;  %v2556_v61 = vmax.f32 %v2555_v26, 0.0  ;;  %v2753_v46 = vadd.f32 %v2751_v20, %v2743_v23  ;;  %v2755_v37 = vstv %s10669_s2  ;;  %v2779_v63 = vld [vmem:[%s13839_s3 + $0xda8] sm:$0xff]  ;;  %v4343_v54 = vstv %s10742_s21  ;;  %v2776_v26 = vld [vmem:[%s13839_s3 + $0xd90] sm:$0xff]  ;;  %s10865_s2 = sld [smem:[#allocation2 + $0xb04]] }
 0x1a5   :  { %7304 = vmatprep.subr.mxu1 %v2784_v51  ;;  %7273 = vmatprep.subr.mxu0 %v2581_v56  ;;  %v10671_v14 = vpop.permute.xlu1 %2939  ;;  %v4333_v51 = vstv %s10700_s16  ;;  %v2775_v8 = vld [vmem:[%s13839_s3 + $0xd88] sm:$0xff]  ;;  %s11022_s16 = sld [smem:[#allocation2 + $0xb07]] }
 0x1a6   :  { %7305 = vmatpush3.msra.mxu1 %v2768_v30  ;;  %7274 = vmatpush3.msra.mxu0 %v2565_v28  ;;  %v10680_v52 = vpop.permute.xlu0 %3120  ;;  %v10761_v56 = vrot.slane %v2556_v61, %v8589_v50  ;;  %v2756_v9 = vadd.f32 %v2755_v37, %v2753_v46  ;;  %v2778_v28 = vld [vmem:[%s13839_s3 + $0xda0] sm:$0xff]  ;;  %v2759_v61 = vld [vmem:[%s13839_s3 + $0xd08] sm:$0xff]  ;;  %v2891_v46 = vrot.slane %v10433_v21, 2  ;;  %v2974_v37 = vld [vmem:[%s13839_s3 + $0xe78] sm:$0xff]  ;;  %s11305_s21 = sld [smem:[#allocation2 + $0xc83]] }
 0x1a7   :  { %7306 = vmatprep.subr.mxu1 %v2783_v58  ;;  %4125 = vrot.lane.b32.xlu1 %v4123_v55, %s8022_s9  ;;  %v2575_v55 = vld [vmem:[%s13839_s3 + $0xc90] sm:$0xff] }
 0x1a8   :  { %4306 = vrot.lane.b32.xlu0 %v4304_v59, %s8020_s22  ;;  %7275 = vmatprep.subr.mxu0 %v2580_v15  ;;  %v2559_v58 = vld [vmem:[%s13839_s3 + $0xc10] sm:$0xff]  ;;  %v4153_v59 = vmul.f32 %v10653_v18, %v4152_v12  ;;  %v4334_v15 = vmul.f32 %v10653_v18, %v4333_v51  ;;  %v2597_v19 = vcombine.high %v10761_v56, %v10761_v56  ;;  %v2901_v12 = vrot.slane %v10472_v22, 2 }
 0x1a9   :  { %7307 = vmatpush3.msra.mxu1 %v2767_v4  ;;  %7276 = vmatpush3.msra.mxu0 %v2564_v2  ;;  %v2757_v4 = vmax.f32 %v2756_v9, 0.0  ;;  %v2881_v2 = vrot.slane %v10445_v6, 2  ;;  %v2973_v51 = vld [vmem:[%s13839_s3 + $0xe70] sm:$0xff] }
 0x1aa   :  { %7308 = vmatprep.subr.mxu1 %v2782_v17  ;;  %7277 = vmatprep.subr.mxu0 %v2579_v7  ;;  %v10710_v57 = vpop.permute.xlu1 %2949  ;;  %v4353_v17 = vstv %s10732_s26  ;;  %v2558_v7 = vld [vmem:[%s13839_s3 + $0xc08] sm:$0xff]  ;;  %s11034_s26 = sld [smem:[#allocation2 + $0xb85]] }
 0x1ab   :  { %7309 = vmatpush3.msra.mxu1 %v2766_v33  ;;  %7278 = vmatpush3.msra.mxu0 %v2563_v0  ;;  %v10723_v47 = vpop.permute.xlu0 %3130  ;;  %v10816_v33 = vld [vmem:[%s13836_s0] sm:$0xf]  ;;  %v4354_v20 = vmul.f32 %v10653_v18, %v4353_v17  ;;  %v2882_v43 = vsel %vm62_vm0, %v10445_v6, %v2881_v2  ;;  %v2972_v2 = vld [vmem:[%s13839_s3 + $0xe68] sm:$0xff] }
 0x1ac   :  { %7310 = vmatprep.subr.mxu1 %v2781_v62  ;;  %4135 = vrot.lane.b32.xlu1 %v4133_v31, %s8023_s27  ;;  %v2874_v0 = vmul.f32 %v10816_v33, %v2873_v16  ;;  %v2573_v31 = vld [vmem:[%s13839_s3 + $0xc80] sm:$0xff]  ;;  %v2760_v62 = vld [vmem:[%s13839_s3 + $0xd10] sm:$0xff]  ;;  %v2902_v16 = vsel %vm84_vm2, %v10472_v22, %v2901_v12 }
 0x1ad   :  { %4316 = vrot.lane.b32.xlu0 %v4314_v44, %s8021_s19  ;;  %7279 = vmatprep.subr.mxu0 %v2578_v41  ;;  %v2557_v41 = vld [vmem:[%s13839_s3 + $0xc00] sm:$0xff]  ;;  %v3190_v22 = vld [vmem:[%s13839_s3 + $0xff0] sm:$0xff] }
 0x1ae   :  { %7311 = vmatpush3.msra.mxu1 %v2765_v32  ;;  %7280 = vmatpush3.msra.mxu0 %v2562_v48  ;;  %v4344_v32 = vmul.f32 %v10653_v18, %v4343_v54  ;;  %v2797_v48 = vrot.slane %v2757_v4, %v8589_v50  ;;  %v2774_v6 = vld [vmem:[%s13839_s3 + $0xd80] sm:$0xff]  ;;  %v3175_v4 = vld [vmem:[%s13839_s3 + $0xf78] sm:$0xff] }
 0x1af   :  { %7312 = vmatprep.subr.mxu1 %v2780_v25  ;;  %7281 = vmatprep.subr.mxu0 %v2577_v49  ;;  %v2990_v25 = vld [vmem:[%s13839_s3 + $0xef8] sm:$0xff]  ;;  %v4494_v49 = vstv %s10782_s20  ;;  %s11713_s20 = sld [smem:[#allocation2 + $0xd06]] }
 0x1b0   :  { %7313 = vmatpush3.msra.mxu1 %v2764_v38  ;;  %7282 = vmatpush3.msra.mxu0 %v2561_v10  ;;  %v10763_v30 = vpop.permute.xlu1 %3150  ;;  %v10772_v45 = vpop.permute.xlu0 %3140  ;;  %v4484_v38 = vstv %s10788_s29  ;;  %v4495_v9 = vmul.f32 %v10653_v18, %v4494_v49  ;;  %s10917_s29 = sld [smem:[#allocation2 + $0xb05]] }
 0x1b1   :  { %7314 = vmatprep.subr.mxu1 %v2779_v63  ;;  %4145 = vrot.lane.b32.xlu1 %v4143_v42, %s8024_s13  ;;  %v2884_v42 = vadd.f32 %v2882_v43, %v2874_v0  ;;  %v2758_v63 = vld [vmem:[%s13839_s3 + $0xd00] sm:$0xff] }
 0x1b2   :  { %4326 = vrot.lane.b32.xlu0 %v4324_v34, %s8022_s9  ;;  %7283 = vmatprep.subr.mxu0 %v2576_v11  ;;  %v2798_v34 = vcombine.high %v2797_v48, %v2797_v48 }
 0x1b3   :  { %7315 = vmatpush3.msra.mxu1 %v2763_v53  ;;  %7284 = vmatpush3.msra.mxu0 %v2560_v36  ;;  %v2989_v53 = vld [vmem:[%s13839_s3 + $0xef0] sm:$0xff]  ;;  %v3074_v36 = vstv %s10802_s8  ;;  %s11597_s8 = sld [smem:[#allocation2 + $0xd81]] }
 0x1b4   :  { %7316 = vmatprep.subr.mxu1 %v2778_v28  ;;  %7285 = vmatprep.subr.mxu0 %v2575_v55  ;;  %v4485_v28 = vmul.f32 %v10653_v18, %v4484_v38  ;;  %v3082_v55 = vrot.slane %v10484_v40, 2  ;;  %v3075_v54 = vmul.f32 %v10816_v33, %v3074_v36  ;;  %v3122_v36 = vrot.slane %v10680_v52, 2 }
 0x1b5   :  { %7317 = vmatpush3.msra.mxu1 %v2762_v3  ;;  %7286 = vmatpush3.msra.mxu0 %v2559_v58  ;;  %v2911_v3 = vrot.slane %v10510_v29, 2  ;;  %v3191_v58 = vld [vmem:[%s13839_s3 + $0xff8] sm:$0xff] }
 0x1b6   :  { %7318 = vmatprep.subr.mxu1 %v2777_v1  ;;  %4155 = vrot.lane.b32.xlu1 %v4153_v59, %s8025_s17  ;;  %v10811_v23 = vpop.permute.xlu1 %3291  ;;  %v4504_v59 = vstv %s10826_s12  ;;  %v3083_v0 = vsel %vm62_vm0, %v10484_v40, %v3082_v55  ;;  %s11068_s12 = sld [smem:[#allocation2 + $0xb08]] }
 0x1b7   :  { %4336 = vrot.lane.b32.xlu0 %v4334_v15, %s8023_s27  ;;  %7287 = vmatprep.subr.mxu0 %v2574_v13  ;;  %v10828_v44 = vpop.permute.xlu0 %3281  ;;  %v2988_v15 = vld [vmem:[%s13839_s3 + $0xee8] sm:$0xff]  ;;  %v3092_v13 = vrot.slane %v10523_v60, 2  ;;  %v3085_v38 = vadd.f32 %v3083_v0, %v3075_v54 }
 0x1b8   :  { %2664 = vmatprep.mubr.f32.mxu0 %v2597_v19  ;;  %7319 = vmatpush3.msra.mxu1 %v2761_v24  ;;  %v2921_v19 = vrot.slane %v10565_v39, 2  ;;  %v4685_v24 = vstv %s10841_s14  ;;  %s11330_s14 = sld [smem:[#allocation2 + $0xc06]] }
 0x1b9   :  { %7288 = vmatpush3.msra.mxu0 %v2558_v7  ;;  %7320 = vmatprep.subr.mxu1 %v2776_v26  ;;  %v2987_v7 = vld [vmem:[%s13839_s3 + $0xee0] sm:$0xff]  ;;  %v4505_v26 = vmul.f32 %v10653_v18, %v4504_v59  ;;  %v3093_v43 = vsel %vm73_vm1, %v10523_v60, %v3092_v13  ;;  %v3173_v60 = vld [vmem:[%s13839_s3 + $0xf68] sm:$0xff]  ;;  %v3187_v59 = vld [vmem:[%s13839_s3 + $0xfd8] sm:$0xff] }
 0x1ba   :  { %7289 = vmatprep.subr.mxu0 %v2573_v31  ;;  %7321 = vmatpush3.msra.mxu1 %v2760_v62  ;;  %v2912_v31 = vsel %vm95_vm3, %v10510_v29, %v2911_v3  ;;  %v3102_v62 = vrot.slane %v10576_v27, 2  ;;  %v3189_v29 = vld [vmem:[%s13839_s3 + $0xfe8] sm:$0xff] }
 0x1bb   :  { %7290 = vmatpush3.msra.mxu0 %v2557_v41  ;;  %7322 = vmatprep.subr.mxu1 %v2775_v8  ;;  %v10855_v10 = vpop.permute.xlu1 %3301  ;;  %v2931_v41 = vrot.slane %v10616_v5, 2  ;;  %v3174_v8 = vld [vmem:[%s13839_s3 + $0xf70] sm:$0xff] }
 0x1bc   :  { %4356 = vrot.lane.b32.xlu1 %v4354_v20, %s8025_s17  ;;  %4346 = vrot.lane.b32.xlu0 %v4344_v32, %s8024_s13  ;;  %v10867_v11 = vpop.permute.xlu0 %3482  ;;  %v2971_v20 = vld [vmem:[%s13839_s3 + $0xe60] sm:$0xff]  ;;  %v4686_v32 = vmul.f32 %v10653_v18, %v4685_v24  ;;  %v2968_v24 = vld [vmem:[%s13839_s3 + $0xe48] sm:$0xff] }
 0x1bd   :  { %2665 = vmatmul.mubr.f32.vlgmr.msra.gmra.mxu0 %v10761_v56  ;;  %7323 = vmatpush3.msra.mxu1 %v2759_v61  ;;  %v2892_v56 = vsel %vm73_vm1, %v10433_v21, %v2891_v46  ;;  %v2922_v61 = vsel %vm106_vm4, %v10565_v39, %v2921_v19  ;;  %v3112_v46 = vrot.slane %v10630_v35, 2  ;;  %v2970_v39 = vld [vmem:[%s13839_s3 + $0xe58] sm:$0xff]  ;;  %v2932_v12 = vsel %vm117_vm5, %v10616_v5, %v2931_v41  ;;  %v3172_v5 = vld [vmem:[%s13839_s3 + $0xf60] sm:$0xff]  ;;  %v3170_v41 = vld [vmem:[%s13839_s3 + $0xf50] sm:$0xff] }
 0x1be   :  { %7329 = vmatprep.subr.mxu0 %v2990_v25  ;;  %7324 = vmatprep.subr.mxu1 %v2774_v6  ;;  %v2894_v1 = vadd.f32 %v2892_v56, %v2884_v42  ;;  %v2986_v25 = vld [vmem:[%s13839_s3 + $0xed8] sm:$0xff]  ;;  %v2941_v6 = vrot.slane %v10671_v14, 2  ;;  %v2969_v56 = vld [vmem:[%s13839_s3 + $0xe50] sm:$0xff]  ;;  %v4524_v19 = vstv %s10917_s29  ;;  %s11412_s29 = sld [smem:[#allocation2 + $0xc85]] }
 0x1bf   :  { %7330 = vmatpush3.msra.mxu0 %v2974_v37  ;;  %7325 = vmatpush3.msra.mxu1 %v2758_v63  ;;  %v4695_v37 = vstv %s10880_s25  ;;  %v3113_v3 = vsel %vm95_vm3, %v10630_v35, %v3112_v46  ;;  %v2984_v35 = vld [vmem:[%s13839_s3 + $0xec8] sm:$0xff]  ;;  %v4534_v46 = vstv %s10957_s28  ;;  %s11047_s25 = sld [smem:[#allocation4 + $0xf]] }
 0x1c0   :  { %2865 = vmatprep.mubr.f32.mxu1 %v2798_v34  ;;  %7331 = vmatprep.subr.mxu0 %v2989_v53  ;;  %v10893_v21 = vpop.permute.xlu1 %3311  ;;  %v2904_v40 = vadd.f32 %v2902_v16, %v2894_v1  ;;  %v3103_v34 = vsel %vm84_vm2, %v10576_v27, %v3102_v62  ;;  %v3188_v53 = vld [vmem:[%s13839_s3 + $0xfe0] sm:$0xff]  ;;  %v2951_v27 = vrot.slane %v10710_v57, 2  ;;  %v4696_v1 = vmul.f32 %v10653_v18, %v4695_v37  ;;  %s11160_s28 = sld [smem:[#allocation2 + $0xc02]] }
 0x1c1   :  { %2866 = vmatmul.mubr.f32.vlgmr.msra.gmra.mxu1 %v2797_v48  ;;  %7332 = vmatpush3.msra.mxu0 %v2973_v51  ;;  %v10906_v17 = vpop.permute.xlu0 %3492  ;;  %v4514_v48 = vstv %s10865_s2  ;;  %v2985_v51 = vld [vmem:[%s13839_s3 + $0xed0] sm:$0xff]  ;;  %v2983_v62 = vld [vmem:[%s13839_s3 + $0xec0] sm:$0xff]  ;;  %v3152_v37 = vrot.slane %v10763_v30, 2  ;;  %s11214_s2 = sld [smem:[#allocation2 + $0xc81]] }
 0x1c2   :  { %7364 = vmatprep.subr.mxu1 %v3191_v58  ;;  %4497 = vrot.lane.b32.xlu1 %v4495_v9, %s8018_s7  ;;  %v2914_v42 = vadd.f32 %v2912_v31, %v2904_v40  ;;  %v3095_v9 = vadd.f32 %v3093_v43, %v3085_v38  ;;  %v4515_v55 = vmul.f32 %v10653_v18, %v4514_v48  ;;  %v3186_v31 = vld [vmem:[%s13839_s3 + $0xfd0] sm:$0xff]  ;;  %v2956_v48 = vstv %s10973_s30  ;;  %v2982_v43 = vld [vmem:[%s13839_s3 + $0xeb8] sm:$0xff]  ;;  %s11120_s30 = sld [smem:[#allocation2 + $0xb87]] }
 0x1c3   :  { %4487 = vrot.lane.b32.xlu0 %v4485_v28, %s8019_s11  ;;  %7333 = vmatprep.subr.mxu0 %v2988_v15  ;;  %v2942_v58 = vsel %vm128_vm6, %v10671_v14, %v2941_v6  ;;  %v3132_v15 = vrot.slane %v10723_v47, 2  ;;  %v3123_v14 = vsel %vm106_vm4, %v10680_v52, %v3122_v36  ;;  %v2952_v54 = vsel %vm139_vm7, %v10710_v57, %v2951_v27  ;;  %v3169_v38 = vld [vmem:[%s13839_s3 + $0xf48] sm:$0xff]  ;;  %v3168_v36 = vld [vmem:[%s13839_s3 + $0xf40] sm:$0xff] }
 0x1c4   :  { %7365 = vmatpush3.msra.mxu1 %v3175_v4  ;;  %7334 = vmatpush3.msra.mxu0 %v2972_v2  ;;  %v2924_v28 = vadd.f32 %v2922_v61, %v2914_v42  ;;  %v3105_v16 = vadd.f32 %v3103_v34, %v3095_v9  ;;  %v3171_v2 = vld [vmem:[%s13839_s3 + $0xf58] sm:$0xff]  ;;  %v2981_v34 = vld [vmem:[%s13839_s3 + $0xeb0] sm:$0xff]  ;;  %v4535_v27 = vmul.f32 %v10653_v18, %v4534_v46  ;;  %v3275_v46 = vstv %s11098_s15  ;;  %s11180_s15 = sld [smem:[#allocation2 + $0x880]] }
 0x1c5   :  { %7366 = vmatprep.subr.mxu1 %v3190_v22  ;;  %7335 = vmatprep.subr.mxu0 %v2987_v7  ;;  %v10948_v49 = vpop.permute.xlu1 %3321  ;;  %v4705_v22 = vstv %s10932_s23  ;;  %v3142_v7 = vrot.slane %v10772_v45, 2  ;;  %v3133_v57 = vsel %vm117_vm5, %v10723_v47, %v3132_v15  ;;  %v3185_v47 = vld [vmem:[%s13839_s3 + $0xfc8] sm:$0xff]  ;;  %v2966_v42 = vld [vmem:[%s13839_s3 + $0xe38] sm:$0xff]  ;;  %s11238_s23 = sld [smem:[#allocation2 + $0xc04]] }
 0x1c6   :  { %7367 = vmatpush3.msra.mxu1 %v3174_v8  ;;  %7336 = vmatpush3.msra.mxu0 %v2971_v20  ;;  %v10959_v63 = vpop.permute.xlu0 %3502  ;;  %v2934_v13 = vadd.f32 %v2932_v12, %v2924_v28  ;;  %v3115_v0 = vadd.f32 %v3113_v3, %v3105_v16  ;;  %v2967_v8 = vld [vmem:[%s13839_s3 + $0xe40] sm:$0xff]  ;;  %v4525_v20 = vmul.f32 %v10653_v18, %v4524_v19  ;;  %v3183_v9 = vld [vmem:[%s13839_s3 + $0xfb8] sm:$0xff]  ;;  %v3166_v19 = vld [vmem:[%s13839_s3 + $0xf30] sm:$0xff] }
 0x1c7   :  { %7368 = vmatprep.subr.mxu1 %v3189_v29  ;;  %4507 = vrot.lane.b32.xlu1 %v4505_v26, %s8020_s22  ;;  %v3143_v61 = vsel %vm128_vm6, %v10772_v45, %v3142_v7  ;;  %v3184_v45 = vld [vmem:[%s13839_s3 + $0xfc0] sm:$0xff]  ;;  %v3153_v3 = vsel %vm139_vm7, %v10763_v30, %v3152_v37  ;;  %v3182_v30 = vld [vmem:[%s13839_s3 + $0xfb0] sm:$0xff]  ;;  %v2978_v7 = vld [vmem:[%s13839_s3 + $0xe98] sm:$0xff] }
 0x1c8   :  { %4688 = vrot.lane.b32.xlu0 %v4686_v32, %s8019_s11  ;;  %7337 = vmatprep.subr.mxu0 %v2986_v25  ;;  %v2944_v52 = vadd.f32 %v2942_v58, %v2934_v13  ;;  %v3125_v40 = vadd.f32 %v3123_v14, %v3115_v0  ;;  %v4706_v32 = vmul.f32 %v10653_v18, %v4705_v22  ;;  %v3167_v58 = vld [vmem:[%s13839_s3 + $0xf38] sm:$0xff]  ;;  %v2963_v14 = vld [vmem:[%s13839_s3 + $0xe20] sm:$0xff]  ;;  %v4554_v0 = vstv %s11068_s12  ;;  %s11253_s12 = sld [smem:[#allocation2 + $0xc82]] }
 0x1c9   :  { %7369 = vmatpush3.msra.mxu1 %v3173_v60  ;;  %7338 = vmatpush3.msra.mxu0 %v2970_v39  ;;  %v4715_v60 = vstv %s10984_s24  ;;  %v4755_v37 = vstv %s11110_s10  ;;  %s11346_s24 = sld [smem:[#allocation4 + $0x10]] }
 0x1ca   :  { %7370 = vmatprep.subr.mxu1 %v3188_v53  ;;  %7339 = vmatprep.subr.mxu0 %v2985_v51  ;;  %v10999_v4 = vpop.permute.xlu1 %3331  ;;  %v2954_v29 = vadd.f32 %v2952_v54, %v2944_v52  ;;  %v3135_v6 = vadd.f32 %v3133_v57, %v3125_v40  ;;  %v2965_v51 = vld [vmem:[%s13839_s3 + $0xe30] sm:$0xff]  ;;  %v4716_v28 = vmul.f32 %v10653_v18, %v4715_v60  ;;  %v3181_v54 = vld [vmem:[%s13839_s3 + $0xfa8] sm:$0xff]  ;;  %v3283_v60 = vrot.slane %v10828_v44, 2  ;;  %s11446_s10 = sld [smem:[#allocation2 + $0xc08]] }
 0x1cb   :  { %7371 = vmatpush3.msra.mxu1 %v3172_v5  ;;  %7340 = vmatpush3.msra.mxu0 %v2969_v56  ;;  %v11013_v26 = vpop.permute.xlu0 %3512  ;;  %v2980_v5 = vld [vmem:[%s13839_s3 + $0xea8] sm:$0xff]  ;;  %v4544_v56 = vstv %s11022_s16  ;;  %v2977_v40 = vld [vmem:[%s13839_s3 + $0xe90] sm:$0xff]  ;;  %s11166_s16 = sld [smem:[#allocation2 + $0xc01]] }
 0x1cc   :  { %7372 = vmatprep.subr.mxu1 %v3187_v59  ;;  %4517 = vrot.lane.b32.xlu1 %v4515_v55, %s8021_s19  ;;  %v2957_v12 = vadd.f32 %v2956_v48, %v2954_v29  ;;  %v3145_v53 = vadd.f32 %v3143_v61, %v3135_v6  ;;  %v2964_v59 = vld [vmem:[%s13839_s3 + $0xe28] sm:$0xff]  ;;  %v4555_v48 = vmul.f32 %v10653_v18, %v4554_v0  ;;  %v3303_v0 = vrot.slane %v10855_v10, 2 }
 0x1cd   :  { %4698 = vrot.lane.b32.xlu0 %v4696_v1, %s8018_s7  ;;  %7341 = vmatprep.subr.mxu0 %v2984_v35  ;;  %v4725_v1 = vstv %s11034_s26  ;;  %v2979_v35 = vld [vmem:[%s13839_s3 + $0xea0] sm:$0xff]  ;;  %v3165_v52 = vld [vmem:[%s13839_s3 + $0xf28] sm:$0xff]  ;;  %s11866_s26 = sld [smem:[#allocation2 + $0xd88]] }
 0x1ce   :  { %7373 = vmatpush3.msra.mxu1 %v3171_v2  ;;  %7342 = vmatpush3.msra.mxu0 %v2968_v24  ;;  %v2958_v16 = vmax.f32 %v2957_v12, 0.0  ;;  %v3155_v13 = vadd.f32 %v3153_v3, %v3145_v53  ;;  %v4545_v2 = vmul.f32 %v10653_v18, %v4544_v56  ;;  %v3157_v24 = vstv %s11047_s25  ;;  %v2976_v6 = vld [vmem:[%s13839_s3 + $0xe88] sm:$0xff]  ;;  %v3178_v53 = vld [vmem:[%s13839_s3 + $0xf90] sm:$0xff]  ;;  %s11425_s25 = sld [smem:[#allocation4 + $0x11]] }
 0x1cf   :  { %7374 = vmatprep.subr.mxu1 %v3186_v31  ;;  %7343 = vmatprep.subr.mxu0 %v2983_v62  ;;  %v11049_v25 = vpop.permute.xlu1 %3341  ;;  %v4726_v22 = vmul.f32 %v10653_v18, %v4725_v1  ;;  %v2962_v31 = vld [vmem:[%s13839_s3 + $0xe18] sm:$0xff]  ;;  %v4735_v62 = vstv %s11078_s1  ;;  %v2960_v12 = vld [vmem:[%s13839_s3 + $0xe08] sm:$0xff]  ;;  %v4756_v3 = vmul.f32 %v10653_v18, %v4755_v37  ;;  %v3284_v1 = vsel %vm62_vm0, %v10828_v44, %v3283_v60  ;;  %v3176_v44 = vld [vmem:[%s13839_s3 + $0xf80] sm:$0xff]  ;;  %s11400_s1 = sld [smem:[#allocation2 + $0xc07]] }
 0x1d0   :  { %7375 = vmatpush3.msra.mxu1 %v3170_v41  ;;  %7344 = vmatpush3.msra.mxu0 %v2967_v8  ;;  %v11058_v39 = vpop.permute.xlu0 %3522  ;;  %v11139_v57 = vrot.slane %v2958_v16, %v8589_v50  ;;  %v3158_v41 = vadd.f32 %v3157_v24, %v3155_v13  ;;  %v4736_v61 = vmul.f32 %v10653_v18, %v4735_v62  ;;  %v3177_v56 = vld [vmem:[%s13839_s3 + $0xf88] sm:$0xff]  ;;  %v3293_v13 = vrot.slane %v10811_v23, 2  ;;  %v3376_v24 = vld [vmem:[%s13839_s3 + $0x1078] sm:$0xff]  ;;  %v3375_v62 = vld [vmem:[%s13839_s3 + $0x1070] sm:$0xff] }
 0x1d1   :  { %7376 = vmatprep.subr.mxu1 %v3185_v47  ;;  %4527 = vrot.lane.b32.xlu1 %v4525_v20, %s8022_s9  ;;  %v3180_v20 = vld [vmem:[%s13839_s3 + $0xfa0] sm:$0xff]  ;;  %v3161_v16 = vld [vmem:[%s13839_s3 + $0xf08] sm:$0xff] }
 0x1d2   :  { %4708 = vrot.lane.b32.xlu0 %v4706_v32, %s8020_s22  ;;  %7345 = vmatprep.subr.mxu0 %v2982_v43  ;;  %v3164_v47 = vld [vmem:[%s13839_s3 + $0xf20] sm:$0xff]  ;;  %v2961_v32 = vld [vmem:[%s13839_s3 + $0xe10] sm:$0xff]  ;;  %v3179_v43 = vld [vmem:[%s13839_s3 + $0xf98] sm:$0xff] }
 0x1d3   :  { %7377 = vmatpush3.msra.mxu1 %v3169_v38  ;;  %7346 = vmatpush3.msra.mxu0 %v2966_v42  ;;  %v2999_v38 = vcombine.high %v11139_v57, %v11139_v57  ;;  %v3159_v42 = vmax.f32 %v3158_v41, 0.0  ;;  %v3374_v60 = vld [vmem:[%s13839_s3 + $0x1068] sm:$0xff] }
 0x1d4   :  { %7378 = vmatprep.subr.mxu1 %v3184_v45  ;;  %7347 = vmatprep.subr.mxu0 %v2981_v34  ;;  %v11088_v55 = vpop.permute.xlu1 %3351  ;;  %v3163_v45 = vld [vmem:[%s13839_s3 + $0xf18] sm:$0xff]  ;;  %v4745_v34 = vstv %s11120_s30  ;;  %s11729_s30 = sld [smem:[#allocation4 + $0x12]] }
 0x1d5   :  { %7379 = vmatpush3.msra.mxu1 %v3168_v36  ;;  %7348 = vmatpush3.msra.mxu0 %v2965_v51  ;;  %v11101_v15 = vpop.permute.xlu0 %3532  ;;  %v3276_v51 = vmul.f32 %v10816_v33, %v3275_v46  ;;  %v3304_v46 = vsel %vm84_vm2, %v10855_v10, %v3303_v0  ;;  %v3592_v10 = vld [vmem:[%s13839_s3 + $0x11f0] sm:$0xff]  ;;  %v3524_v0 = vrot.slane %v11058_v39, 2 }
 0x1d6   :  { %7380 = vmatprep.subr.mxu1 %v3183_v9  ;;  %4537 = vrot.lane.b32.xlu1 %v4535_v27, %s8023_s27  ;;  %v2975_v27 = vld [vmem:[%s13839_s3 + $0xe80] sm:$0xff]  ;;  %v3162_v9 = vld [vmem:[%s13839_s3 + $0xf10] sm:$0xff] }
 0x1d7   :  { %4718 = vrot.lane.b32.xlu0 %v4716_v28, %s8021_s19  ;;  %7349 = vmatprep.subr.mxu0 %v2980_v5  ;;  %v2959_v5 = vld [vmem:[%s13839_s3 + $0xe00] sm:$0xff] }
 0x1d8   :  { %7381 = vmatpush3.msra.mxu1 %v3167_v58  ;;  %7350 = vmatpush3.msra.mxu0 %v2964_v59  ;;  %v4746_v58 = vmul.f32 %v10653_v18, %v4745_v34  ;;  %v3199_v59 = vrot.slane %v3159_v42, %v8589_v50  ;;  %v3577_v42 = vld [vmem:[%s13839_s3 + $0x1178] sm:$0xff] }
 0x1d9   :  { %7382 = vmatprep.subr.mxu1 %v3182_v30  ;;  %7351 = vmatprep.subr.mxu0 %v2979_v35  ;;  %v3392_v30 = vld [vmem:[%s13839_s3 + $0x10f8] sm:$0xff]  ;;  %v4896_v35 = vstv %s11160_s28  ;;  %s11488_s28 = sld [smem:[#allocation2 + $0xc88]] }
 0x1da   :  { %7383 = vmatpush3.msra.mxu1 %v3166_v19  ;;  %7352 = vmatpush3.msra.mxu0 %v2963_v14  ;;  %v11141_v8 = vpop.permute.xlu1 %3552  ;;  %v11150_v29 = vpop.permute.xlu0 %3542  ;;  %v4886_v19 = vstv %s11166_s16  ;;  %v4897_v41 = vmul.f32 %v10653_v18, %v4896_v35  ;;  %s11290_s16 = sld [smem:[#allocation2 + $0xc05]] }
 0x1db   :  { %7384 = vmatprep.subr.mxu1 %v3181_v54  ;;  %4547 = vrot.lane.b32.xlu1 %v4545_v2, %s8024_s13  ;;  %v3286_v2 = vadd.f32 %v3284_v1, %v3276_v51  ;;  %v3160_v54 = vld [vmem:[%s13839_s3 + $0xf00] sm:$0xff] }
 0x1dc   :  { %4728 = vrot.lane.b32.xlu0 %v4726_v22, %s8022_s9  ;;  %7353 = vmatprep.subr.mxu0 %v2978_v7  ;;  %v3200_v22 = vcombine.high %v3199_v59, %v3199_v59 }
 0x1dd   :  { %7385 = vmatpush3.msra.mxu1 %v3165_v52  ;;  %7354 = vmatpush3.msra.mxu0 %v2962_v31  ;;  %v3391_v52 = vld [vmem:[%s13839_s3 + $0x10f0] sm:$0xff]  ;;  %v3476_v31 = vstv %s11180_s15  ;;  %s11740_s15 = sld [smem:[#allocation2 + $0xd84]] }
 0x1de   :  { %7386 = vmatprep.subr.mxu1 %v3180_v20  ;;  %7355 = vmatprep.subr.mxu0 %v2977_v40  ;;  %v4887_v20 = vmul.f32 %v10653_v18, %v4886_v19  ;;  %v3484_v40 = vrot.slane %v10867_v11, 2  ;;  %v3477_v34 = vmul.f32 %v10816_v33, %v3476_v31  ;;  %v5097_v19 = vstv %s11253_s12  ;;  %s11456_s12 = sld [smem:[#allocation2 + $0xc86]] }
 0x1df   :  { %7387 = vmatpush3.msra.mxu1 %v3164_v47  ;;  %7356 = vmatpush3.msra.mxu0 %v2961_v32  ;;  %v3313_v47 = vrot.slane %v10893_v21, 2  ;;  %v3593_v32 = vld [vmem:[%s13839_s3 + $0x11f8] sm:$0xff] }
 0x1e0   :  { %7388 = vmatprep.subr.mxu1 %v3179_v43  ;;  %4557 = vrot.lane.b32.xlu1 %v4555_v48, %s8025_s17  ;;  %v11189_v36 = vpop.permute.xlu1 %3693  ;;  %v4906_v48 = vstv %s11199_s18  ;;  %v3485_v51 = vsel %vm62_vm0, %v10867_v11, %v3484_v40  ;;  %s11476_s18 = sld [smem:[#allocation2 + $0x900]] }
 0x1e1   :  { %4738 = vrot.lane.b32.xlu0 %v4736_v61, %s8023_s27  ;;  %7357 = vmatprep.subr.mxu0 %v2976_v6  ;;  %v11201_v28 = vpop.permute.xlu0 %3683  ;;  %v3390_v61 = vld [vmem:[%s13839_s3 + $0x10e8] sm:$0xff]  ;;  %v3494_v6 = vrot.slane %v10906_v17, 2  ;;  %v3314_v33 = vsel %vm95_vm3, %v10893_v21, %v3313_v47 }
 0x1e2   :  { %3066 = vmatprep.mubr.f32.mxu0 %v2999_v38  ;;  %7389 = vmatpush3.msra.mxu1 %v3163_v45  ;;  %v3323_v38 = vrot.slane %v10948_v49, 2  ;;  %v5087_v45 = vstv %s11214_s2  ;;  %v3591_v21 = vld [vmem:[%s13839_s3 + $0x11e8] sm:$0xff]  ;;  %s11688_s2 = sld [smem:[#allocation2 + $0xd83]] }
 0x1e3   :  { %7358 = vmatpush3.msra.mxu0 %v2960_v12  ;;  %7390 = vmatprep.subr.mxu1 %v3178_v53  ;;  %v3389_v12 = vld [vmem:[%s13839_s3 + $0x10e0] sm:$0xff]  ;;  %v4907_v53 = vmul.f32 %v10653_v18, %v4906_v48 }
 0x1e4   :  { %7359 = vmatprep.subr.mxu0 %v2975_v27  ;;  %7391 = vmatpush3.msra.mxu1 %v3162_v9  ;;  %v3504_v27 = vrot.slane %v10959_v63, 2  ;;  %v3333_v9 = vrot.slane %v10999_v4, 2  ;;  %v3324_v1 = vsel %vm106_vm4, %v10948_v49, %v3323_v38  ;;  %v3372_v49 = vld [vmem:[%s13839_s3 + $0x1058] sm:$0xff] }
 0x1e5   :  { %7360 = vmatpush3.msra.mxu0 %v2959_v5  ;;  %7392 = vmatprep.subr.mxu1 %v3177_v56  ;;  %v11228_v14 = vpop.permute.xlu1 %3703  ;;  %v3576_v5 = vld [vmem:[%s13839_s3 + $0x1170] sm:$0xff]  ;;  %v3373_v56 = vld [vmem:[%s13839_s3 + $0x1060] sm:$0xff] }
 0x1e6   :  { %4758 = vrot.lane.b32.xlu1 %v4756_v3, %s8025_s17  ;;  %4748 = vrot.lane.b32.xlu0 %v4746_v58, %s8024_s13  ;;  %v11240_v7 = vpop.permute.xlu0 %3884  ;;  %v5088_v3 = vmul.f32 %v10653_v18, %v5087_v45  ;;  %v4916_v58 = vstv %s11238_s23  ;;  %v3487_v18 = vadd.f32 %v3485_v51, %v3477_v34  ;;  %s11362_s23 = sld [smem:[#allocation2 + $0xc84]]  ;;  %v5107_v34 = vstv %s11305_s21 }
 0x1e7   :  { %3067 = vmatmul.mubr.f32.vlgmr.msra.gmra.mxu0 %v11139_v57  ;;  %7393 = vmatpush3.msra.mxu1 %v3161_v16  ;;  %v3294_v57 = vsel %vm73_vm1, %v10811_v23, %v3293_v13  ;;  %v3514_v16 = vrot.slane %v11013_v26, 2  ;;  %v3388_v13 = vld [vmem:[%s13839_s3 + $0x10d8] sm:$0xff]  ;;  %v3588_v51 = vld [vmem:[%s13839_s3 + $0x11d0] sm:$0xff]  ;;  %s11582_s21 = sld [smem:[#allocation2 + $0xd03]] }
 0x1e8   :  { %7399 = vmatprep.subr.mxu0 %v3392_v30  ;;  %7394 = vmatprep.subr.mxu1 %v3176_v44  ;;  %v3296_v43 = vadd.f32 %v3294_v57, %v3286_v2  ;;  %v3343_v30 = vrot.slane %v11049_v25, 2 }
 0x1e9   :  { %7400 = vmatpush3.msra.mxu0 %v3376_v24  ;;  %7395 = vmatpush3.msra.mxu1 %v3160_v54  ;;  %v3505_v24 = vsel %vm84_vm2, %v10959_v63, %v3504_v27  ;;  %v3334_v54 = vsel %vm117_vm5, %v10999_v4, %v3333_v9  ;;  %v3353_v63 = vrot.slane %v11088_v55, 2  ;;  %v3574_v4 = vld [vmem:[%s13839_s3 + $0x1160] sm:$0xff]  ;;  %v3515_v40 = vsel %vm95_vm3, %v11013_v26, %v3514_v16  ;;  %v3386_v26 = vld [vmem:[%s13839_s3 + $0x10c8] sm:$0xff]  ;;  %v3572_v27 = vld [vmem:[%s13839_s3 + $0x1150] sm:$0xff] }
 0x1ea   :  { %3267 = vmatprep.mubr.f32.mxu1 %v3200_v22  ;;  %7401 = vmatprep.subr.mxu0 %v3391_v52  ;;  %v11266_v23 = vpop.permute.xlu1 %3713  ;;  %v3306_v11 = vadd.f32 %v3304_v46, %v3296_v43  ;;  %v3590_v22 = vld [vmem:[%s13839_s3 + $0x11e0] sm:$0xff]  ;;  %v3387_v52 = vld [vmem:[%s13839_s3 + $0x10d0] sm:$0xff]  ;;  %v3344_v47 = vsel %vm128_vm6, %v11049_v25, %v3343_v30  ;;  %v3534_v43 = vrot.slane %v11101_v15, 2  ;;  %v3525_v25 = vsel %vm106_vm4, %v11058_v39, %v3524_v0  ;;  %v3571_v30 = vld [vmem:[%s13839_s3 + $0x1148] sm:$0xff] }
 0x1eb   :  { %3268 = vmatmul.mubr.f32.vlgmr.msra.gmra.mxu1 %v3199_v59  ;;  %7402 = vmatpush3.msra.mxu0 %v3375_v62  ;;  %v11279_v37 = vpop.permute.xlu0 %3894  ;;  %v3495_v59 = vsel %vm73_vm1, %v10906_v17, %v3494_v6  ;;  %v3575_v17 = vld [vmem:[%s13839_s3 + $0x1168] sm:$0xff]  ;;  %v4926_v6 = vstv %s11290_s16  ;;  %v3354_v45 = vsel %vm139_vm7, %v11088_v55, %v3353_v63  ;;  %v3369_v9 = vld [vmem:[%s13839_s3 + $0x1040] sm:$0xff]  ;;  %v3367_v0 = vld [vmem:[%s13839_s3 + $0x1030] sm:$0xff]  ;;  %s11854_s16 = sld [smem:[#allocation2 + $0xa00]] }
 0x1ec   :  { %7434 = vmatprep.subr.mxu1 %v3593_v32  ;;  %4899 = vrot.lane.b32.xlu1 %v4897_v41, %s8018_s7  ;;  %v3316_v35 = vadd.f32 %v3314_v33, %v3306_v11  ;;  %v3497_v31 = vadd.f32 %v3495_v59, %v3487_v18  ;;  %v3371_v41 = vld [vmem:[%s13839_s3 + $0x1050] sm:$0xff]  ;;  %v3589_v32 = vld [vmem:[%s13839_s3 + $0x11d8] sm:$0xff]  ;;  %v3385_v33 = vld [vmem:[%s13839_s3 + $0x10c0] sm:$0xff]  ;;  %v3535_v55 = vsel %vm117_vm5, %v11101_v15, %v3534_v43 }
 0x1ed   :  { %4889 = vrot.lane.b32.xlu0 %v4887_v20, %s8019_s11  ;;  %7403 = vmatprep.subr.mxu0 %v3390_v61  ;;  %v11359_v20 = vld [vmem:[%s13836_s0] sm:$0x3f]  ;;  %v3587_v15 = vld [vmem:[%s13839_s3 + $0x11c8] sm:$0xff]  ;;  %v3368_v18 = vld [vmem:[%s13839_s3 + $0x1038] sm:$0xff] }
 0x1ee   :  { %7435 = vmatpush3.msra.mxu1 %v3577_v42  ;;  %7404 = vmatpush3.msra.mxu0 %v3374_v60  ;;  %v3326_v62 = vadd.f32 %v3324_v1, %v3316_v35  ;;  %v4917_v57 = vmul.f32 %v11359_v20, %v4916_v58  ;;  %v5098_v48 = vmul.f32 %v11359_v20, %v5097_v19  ;;  %v3573_v42 = vld [vmem:[%s13839_s3 + $0x1158] sm:$0xff]  ;;  %v3370_v60 = vld [vmem:[%s13839_s3 + $0x1048] sm:$0xff]  ;;  %v4936_v1 = vstv %s11330_s14  ;;  %v3383_v19 = vld [vmem:[%s13839_s3 + $0x10b0] sm:$0xff]  ;;  %s11538_s14 = sld [smem:[#allocation2 + $0xd02]] }
 0x1ef   :  { %7436 = vmatprep.subr.mxu1 %v3592_v10  ;;  %7405 = vmatprep.subr.mxu0 %v3389_v12  ;;  %v11321_v44 = vpop.permute.xlu1 %3723  ;;  %v3507_v61 = vadd.f32 %v3505_v24, %v3497_v31  ;;  %v3544_v10 = vrot.slane %v11150_v29, 2  ;;  %v3384_v58 = vld [vmem:[%s13839_s3 + $0x10b8] sm:$0xff]  ;;  %v5117_v35 = vstv %s11362_s23  ;;  %s11834_s23 = sld [smem:[#allocation2 + $0xd86]] }
 0x1f0   :  { %7437 = vmatpush3.msra.mxu1 %v3576_v5  ;;  %7406 = vmatpush3.msra.mxu0 %v3373_v56  ;;  %v11332_v2 = vpop.permute.xlu0 %3904  ;;  %v3336_v46 = vadd.f32 %v3334_v54, %v3326_v62  ;;  %v4927_v5 = vmul.f32 %v11359_v20, %v4926_v6  ;;  %v3585_v63 = vld [vmem:[%s13839_s3 + $0x11b8] sm:$0xff]  ;;  %v5118_v31 = vmul.f32 %v11359_v20, %v5117_v35  ;;  %v3382_v62 = vld [vmem:[%s13839_s3 + $0x10a8] sm:$0xff]  ;;  %v3365_v6 = vld [vmem:[%s13839_s3 + $0x1020] sm:$0xff] }
 0x1f1   :  { %7438 = vmatprep.subr.mxu1 %v3591_v21  ;;  %4909 = vrot.lane.b32.xlu1 %v4907_v53, %s8020_s22  ;;  %v3517_v53 = vadd.f32 %v3515_v40, %v3507_v61  ;;  %v5108_v21 = vmul.f32 %v11359_v20, %v5107_v34  ;;  %v3545_v59 = vsel %vm128_vm6, %v11150_v29, %v3544_v10  ;;  %v3586_v29 = vld [vmem:[%s13839_s3 + $0x11c0] sm:$0xff]  ;;  %v3569_v40 = vld [vmem:[%s13839_s3 + $0x1138] sm:$0xff]  ;;  %v4956_v10 = vstv %s11446_s10  ;;  %s11955_s10 = sld [smem:[#allocation2 + $0xe03]] }
 0x1f2   :  { %5090 = vrot.lane.b32.xlu0 %v5088_v3, %s8019_s11  ;;  %7407 = vmatprep.subr.mxu0 %v3388_v13  ;;  %v3346_v39 = vadd.f32 %v3344_v47, %v3336_v46  ;;  %v3358_v3 = vstv %s11346_s24  ;;  %v3366_v47 = vld [vmem:[%s13839_s3 + $0x1028] sm:$0xff]  ;;  %v3381_v46 = vld [vmem:[%s13839_s3 + $0x10a0] sm:$0xff]  ;;  %s11498_s24 = sld [smem:[#allocation2 + $0xc87]] }
 0x1f3   :  { %7439 = vmatpush3.msra.mxu1 %v3575_v17  ;;  %7408 = vmatpush3.msra.mxu0 %v3372_v49  ;;  %v3527_v56 = vadd.f32 %v3525_v25, %v3517_v53  ;;  %v3554_v49 = vrot.slane %v11141_v8, 2  ;;  %v3380_v34 = vld [vmem:[%s13839_s3 + $0x1098] sm:$0xff]  ;;  %v3567_v53 = vld [vmem:[%s13839_s3 + $0x1128] sm:$0xff] }
 0x1f4   :  { %7440 = vmatprep.subr.mxu1 %v3590_v22  ;;  %7409 = vmatprep.subr.mxu0 %v3387_v52  ;;  %v11377_v38 = vpop.permute.xlu1 %3733  ;;  %v3356_v11 = vadd.f32 %v3354_v45, %v3346_v39  ;;  %v3570_v22 = vld [vmem:[%s13839_s3 + $0x1140] sm:$0xff]  ;;  %v4937_v52 = vmul.f32 %v11359_v20, %v4936_v1  ;;  %v3364_v39 = vld [vmem:[%s13839_s3 + $0x1018] sm:$0xff]  ;;  %v3378_v1 = vld [vmem:[%s13839_s3 + $0x1088] sm:$0xff] }
 0x1f5   :  { %7441 = vmatpush3.msra.mxu1 %v3574_v4  ;;  %7410 = vmatpush3.msra.mxu0 %v3371_v41  ;;  %v11391_v12 = vpop.permute.xlu0 %3914  ;;  %v3537_v13 = vadd.f32 %v3535_v55, %v3527_v56  ;;  %v4946_v4 = vstv %s11400_s1  ;;  %s11544_s1 = sld [smem:[#allocation2 + $0xd01]]  ;;  %v3565_v35 = vld [vmem:[%s13839_s3 + $0x1118] sm:$0xff] }
 0x1f6   :  { %7442 = vmatprep.subr.mxu1 %v3589_v32  ;;  %4919 = vrot.lane.b32.xlu1 %v4917_v57, %s8021_s19  ;;  %v3359_v24 = vadd.f32 %v3358_v3, %v3356_v11  ;;  %v3555_v57 = vsel %vm139_vm7, %v11141_v8, %v3554_v49  ;;  %v5127_v32 = vstv %s11412_s29  ;;  %v3584_v8 = vld [vmem:[%s13839_s3 + $0x11b0] sm:$0xff]  ;;  %v4947_v25 = vmul.f32 %v11359_v20, %v4946_v4  ;;  %v3566_v11 = vld [vmem:[%s13839_s3 + $0x1120] sm:$0xff]  ;;  %s11636_s29 = sld [smem:[#allocation2 + $0xd82]] }
 0x1f7   :  { %5100 = vrot.lane.b32.xlu0 %v5098_v48, %s8018_s7  ;;  %7411 = vmatprep.subr.mxu0 %v3386_v26  ;;  %v3547_v54 = vadd.f32 %v3545_v59, %v3537_v13  ;;  %v3568_v26 = vld [vmem:[%s13839_s3 + $0x1130] sm:$0xff]  ;;  %v5128_v45 = vmul.f32 %v11359_v20, %v5127_v32  ;;  %v3581_v3 = vld [vmem:[%s13839_s3 + $0x1198] sm:$0xff]  ;;  %v3677_v59 = vstv %s11476_s18  ;;  %s11558_s18 = sld [smem:[#allocation2 + $0x980]] }
 0x1f8   :  { %7443 = vmatpush3.msra.mxu1 %v3573_v42  ;;  %7412 = vmatpush3.msra.mxu0 %v3370_v60  ;;  %v3360_v43 = vmax.f32 %v3359_v24, 0.0  ;;  %v3559_v42 = vstv %s11425_s25  ;;  %v3583_v60 = vld [vmem:[%s13839_s3 + $0x11a8] sm:$0xff]  ;;  %v5147_v49 = vstv %s11498_s24  ;;  %v3580_v24 = vld [vmem:[%s13839_s3 + $0x1190] sm:$0xff]  ;;  %s11621_s25 = sld [smem:[#allocation2 + $0xd04]] }
 0x1f9   :  { %7444 = vmatprep.subr.mxu1 %v3588_v51  ;;  %7413 = vmatprep.subr.mxu0 %v3385_v33  ;;  %v11427_v16 = vpop.permute.xlu1 %3743  ;;  %v3557_v61 = vadd.f32 %v3555_v57, %v3547_v54  ;;  %v5137_v51 = vstv %s11456_s12  ;;  %v3579_v4 = vld [vmem:[%s13839_s3 + $0x1188] sm:$0xff]  ;;  %s11778_s12 = sld [smem:[#allocation2 + $0xd07]] }
 0x1fa   :  { %7445 = vmatpush3.msra.mxu1 %v3572_v27  ;;  %7414 = vmatpush3.msra.mxu0 %v3369_v9  ;;  %v11436_v17 = vpop.permute.xlu0 %3924  ;;  %v11517_v33 = vrot.slane %v3360_v43, %v8589_v50  ;;  %v3582_v9 = vld [vmem:[%s13839_s3 + $0x11a0] sm:$0xff]  ;;  %v3563_v43 = vld [vmem:[%s13839_s3 + $0x1108] sm:$0xff]  ;;  %s12061_s24 = sld [smem:[#allocation2 + $0xe83]] }
 0x1fb   :  { %7446 = vmatprep.subr.mxu1 %v3587_v15  ;;  %4929 = vrot.lane.b32.xlu1 %v4927_v5, %s8022_s9  ;;  %v3560_v55 = vadd.f32 %v3559_v42, %v3557_v61  ;;  %v3379_v5 = vld [vmem:[%s13839_s3 + $0x1090] sm:$0xff]  ;;  %v3695_v61 = vrot.slane %v11189_v36, 2  ;;  %v3778_v42 = vld [vmem:[%s13839_s3 + $0x1278] sm:$0xff] }
 0x1fc   :  { %5110 = vrot.lane.b32.xlu0 %v5108_v21, %s8020_s22  ;;  %7415 = vmatprep.subr.mxu0 %v3384_v58  ;;  %v3363_v15 = vld [vmem:[%s13839_s3 + $0x1010] sm:$0xff]  ;;  %v4957_v21 = vmul.f32 %v11359_v20, %v4956_v10  ;;  %v5138_v58 = vmul.f32 %v11359_v20, %v5137_v51  ;;  %v3401_v13 = vcombine.high %v11517_v33, %v11517_v33  ;;  %v3705_v10 = vrot.slane %v11228_v14, 2 }
 0x1fd   :  { %7447 = vmatpush3.msra.mxu1 %v3571_v30  ;;  %7416 = vmatpush3.msra.mxu0 %v3368_v18  ;;  %v3561_v30 = vmax.f32 %v3560_v55, 0.0  ;;  %v3685_v18 = vrot.slane %v11201_v28, 2  ;;  %v3777_v51 = vld [vmem:[%s13839_s3 + $0x1270] sm:$0xff] }
 0x1fe   :  { %7448 = vmatprep.subr.mxu1 %v3586_v29  ;;  %7417 = vmatprep.subr.mxu0 %v3383_v19  ;;  %v11466_v41 = vpop.permute.xlu1 %3753  ;;  %v5157_v29 = vstv %s11488_s28  ;;  %v3362_v19 = vld [vmem:[%s13839_s3 + $0x1008] sm:$0xff]  ;;  %s11790_s28 = sld [smem:[#allocation2 + $0xd85]] }
 0x1ff   :  { %7449 = vmatpush3.msra.mxu1 %v3570_v22  ;;  %7418 = vmatpush3.msra.mxu0 %v3367_v0  ;;  %v11479_v48 = vpop.permute.xlu0 %3934  ;;  %v11572_v22 = vld [vmem:[%s13836_s0] sm:$0xf]  ;;  %v5158_v57 = vmul.f32 %v11359_v20, %v5157_v29  ;;  %v3686_v32 = vsel %vm62_vm0, %v11201_v28, %v3685_v18  ;;  %v3776_v18 = vld [vmem:[%s13839_s3 + $0x1268] sm:$0xff] }
 0x200   :  { %7450 = vmatprep.subr.mxu1 %v3585_v63  ;;  %4939 = vrot.lane.b32.xlu1 %v4937_v52, %s8023_s27  ;;  %v3678_v0 = vmul.f32 %v11572_v22, %v3677_v59  ;;  %v3377_v52 = vld [vmem:[%s13839_s3 + $0x1080] sm:$0xff]  ;;  %v3564_v63 = vld [vmem:[%s13839_s3 + $0x1110] sm:$0xff]  ;;  %v3706_v59 = vsel %vm84_vm2, %v11228_v14, %v3705_v10 }
 0x201   :  { %5120 = vrot.lane.b32.xlu0 %v5118_v31, %s8021_s19  ;;  %7419 = vmatprep.subr.mxu0 %v3382_v62  ;;  %v3361_v62 = vld [vmem:[%s13839_s3 + $0x1000] sm:$0xff]  ;;  %v3994_v14 = vld [vmem:[%s13839_s3 + $0x13f0] sm:$0xff] }
 0x202   :  { %7451 = vmatpush3.msra.mxu1 %v3569_v40  ;;  %7420 = vmatpush3.msra.mxu0 %v3366_v47  ;;  %v5148_v40 = vmul.f32 %v11359_v20, %v5147_v49  ;;  %v3601_v47 = vrot.slane %v3561_v30, %v8589_v50  ;;  %v3578_v28 = vld [vmem:[%s13839_s3 + $0x1180] sm:$0xff]  ;;  %v3979_v30 = vld [vmem:[%s13839_s3 + $0x1378] sm:$0xff] }
 0x203   :  { %7452 = vmatprep.subr.mxu1 %v3584_v8  ;;  %7421 = vmatprep.subr.mxu0 %v3381_v46  ;;  %v3794_v8 = vld [vmem:[%s13839_s3 + $0x12f8] sm:$0xff]  ;;  %v5298_v46 = vstv %s11538_s14  ;;  %s12338_s14 = sld [smem:[#allocation2 + $0xf03]] }
 0x204   :  { %7453 = vmatpush3.msra.mxu1 %v3568_v26  ;;  %7422 = vmatpush3.msra.mxu0 %v3365_v6  ;;  %v11519_v27 = vpop.permute.xlu1 %3954  ;;  %v11528_v56 = vpop.permute.xlu0 %3944  ;;  %v5288_v26 = vstv %s11544_s1  ;;  %v5299_v55 = vmul.f32 %v11359_v20, %v5298_v46  ;;  %s11673_s1 = sld [smem:[#allocation2 + $0xd05]] }
 0x205   :  { %7454 = vmatprep.subr.mxu1 %v3583_v60  ;;  %4949 = vrot.lane.b32.xlu1 %v4947_v25, %s8024_s13  ;;  %v3688_v25 = vadd.f32 %v3686_v32, %v3678_v0  ;;  %v3562_v60 = vld [vmem:[%s13839_s3 + $0x1100] sm:$0xff] }
 0x206   :  { %5130 = vrot.lane.b32.xlu0 %v5128_v45, %s8022_s9  ;;  %7423 = vmatprep.subr.mxu0 %v3380_v34  ;;  %v3602_v45 = vcombine.high %v3601_v47, %v3601_v47 }
 0x207   :  { %7455 = vmatpush3.msra.mxu1 %v3567_v53  ;;  %7424 = vmatpush3.msra.mxu0 %v3364_v39  ;;  %v3793_v53 = vld [vmem:[%s13839_s3 + $0x12f0] sm:$0xff]  ;;  %v3878_v39 = vstv %s11558_s18  ;;  %s12244_s18 = sld [smem:[#allocation2 + $0xe88]] }
 0x208   :  { %7456 = vmatprep.subr.mxu1 %v3582_v9  ;;  %7425 = vmatprep.subr.mxu0 %v3379_v5  ;;  %v5289_v9 = vmul.f32 %v11359_v20, %v5288_v26  ;;  %v3886_v5 = vrot.slane %v11240_v7, 2  ;;  %v3879_v49 = vmul.f32 %v11572_v22, %v3878_v39  ;;  %v3926_v39 = vrot.slane %v11436_v17, 2 }
 0x209   :  { %7457 = vmatpush3.msra.mxu1 %v3566_v11  ;;  %7426 = vmatpush3.msra.mxu0 %v3363_v15  ;;  %v3715_v11 = vrot.slane %v11266_v23, 2  ;;  %v3995_v15 = vld [vmem:[%s13839_s3 + $0x13f8] sm:$0xff] }
 0x20a   :  { %7458 = vmatprep.subr.mxu1 %v3581_v3  ;;  %4959 = vrot.lane.b32.xlu1 %v4957_v21, %s8025_s17  ;;  %v11567_v54 = vpop.permute.xlu1 %4095  ;;  %v5308_v21 = vstv %s11582_s21  ;;  %v3887_v0 = vsel %vm62_vm0, %v11240_v7, %v3886_v5  ;;  %s11824_s21 = sld [smem:[#allocation2 + $0xd08]] }
 0x20b   :  { %5140 = vrot.lane.b32.xlu0 %v5138_v58, %s8023_s27  ;;  %7427 = vmatprep.subr.mxu0 %v3378_v1  ;;  %v11584_v31 = vpop.permute.xlu0 %4085  ;;  %v3792_v58 = vld [vmem:[%s13839_s3 + $0x12e8] sm:$0xff]  ;;  %v3896_v1 = vrot.slane %v11279_v37, 2  ;;  %v3889_v26 = vadd.f32 %v3887_v0, %v3879_v49 }
 0x20c   :  { %3468 = vmatprep.mubr.f32.mxu0 %v3401_v13  ;;  %7459 = vmatpush3.msra.mxu1 %v3565_v35  ;;  %v3725_v13 = vrot.slane %v11321_v44, 2  ;;  %v5489_v35 = vstv %s11597_s8  ;;  %s12353_s8 = sld [smem:[#allocation2 + $0xf81]] }
 0x20d   :  { %7428 = vmatpush3.msra.mxu0 %v3362_v19  ;;  %7460 = vmatprep.subr.mxu1 %v3580_v24  ;;  %v3791_v19 = vld [vmem:[%s13839_s3 + $0x12e0] sm:$0xff]  ;;  %v5309_v24 = vmul.f32 %v11359_v20, %v5308_v21  ;;  %v3897_v32 = vsel %vm73_vm1, %v11279_v37, %v3896_v1  ;;  %v3977_v37 = vld [vmem:[%s13839_s3 + $0x1368] sm:$0xff]  ;;  %v3991_v21 = vld [vmem:[%s13839_s3 + $0x13d8] sm:$0xff] }
 0x20e   :  { %7429 = vmatprep.subr.mxu0 %v3377_v52  ;;  %7461 = vmatpush3.msra.mxu1 %v3564_v63  ;;  %v3716_v52 = vsel %vm95_vm3, %v11266_v23, %v3715_v11  ;;  %v3906_v63 = vrot.slane %v11332_v2, 2  ;;  %v3993_v23 = vld [vmem:[%s13839_s3 + $0x13e8] sm:$0xff] }
 0x20f   :  { %7430 = vmatpush3.msra.mxu0 %v3361_v62  ;;  %7462 = vmatprep.subr.mxu1 %v3579_v4  ;;  %v11611_v6 = vpop.permute.xlu1 %4105  ;;  %v3735_v62 = vrot.slane %v11377_v38, 2  ;;  %v3978_v4 = vld [vmem:[%s13839_s3 + $0x1370] sm:$0xff] }
 0x210   :  { %5160 = vrot.lane.b32.xlu1 %v5158_v57, %s8025_s17  ;;  %5150 = vrot.lane.b32.xlu0 %v5148_v40, %s8024_s13  ;;  %v11623_v34 = vpop.permute.xlu0 %4286  ;;  %v3775_v57 = vld [vmem:[%s13839_s3 + $0x1260] sm:$0xff]  ;;  %v5490_v40 = vmul.f32 %v11359_v20, %v5489_v35  ;;  %v3772_v35 = vld [vmem:[%s13839_s3 + $0x1248] sm:$0xff] }
 0x211   :  { %3469 = vmatmul.mubr.f32.vlgmr.msra.gmra.mxu0 %v11517_v33  ;;  %7463 = vmatpush3.msra.mxu1 %v3563_v43  ;;  %v3696_v33 = vsel %vm73_vm1, %v11189_v36, %v3695_v61  ;;  %v3726_v43 = vsel %vm106_vm4, %v11321_v44, %v3725_v13  ;;  %v3916_v61 = vrot.slane %v11391_v12, 2  ;;  %v3774_v44 = vld [vmem:[%s13839_s3 + $0x1258] sm:$0xff]  ;;  %v3736_v10 = vsel %vm117_vm5, %v11377_v38, %v3735_v62  ;;  %v3976_v38 = vld [vmem:[%s13839_s3 + $0x1360] sm:$0xff]  ;;  %v3974_v62 = vld [vmem:[%s13839_s3 + $0x1350] sm:$0xff] }
 0x212   :  { %7469 = vmatprep.subr.mxu0 %v3794_v8  ;;  %7464 = vmatprep.subr.mxu1 %v3578_v28  ;;  %v3698_v3 = vadd.f32 %v3696_v33, %v3688_v25  ;;  %v3790_v8 = vld [vmem:[%s13839_s3 + $0x12d8] sm:$0xff]  ;;  %v3745_v28 = vrot.slane %v11427_v16, 2  ;;  %v3773_v33 = vld [vmem:[%s13839_s3 + $0x1250] sm:$0xff]  ;;  %v5328_v13 = vstv %s11673_s1  ;;  %s12168_s1 = sld [smem:[#allocation2 + $0xe85]] }
 0x213   :  { %7470 = vmatpush3.msra.mxu0 %v3778_v42  ;;  %7465 = vmatpush3.msra.mxu1 %v3562_v60  ;;  %v5499_v42 = vstv %s11636_s29  ;;  %v3917_v11 = vsel %vm95_vm3, %v11391_v12, %v3916_v61  ;;  %v3788_v12 = vld [vmem:[%s13839_s3 + $0x12c8] sm:$0xff]  ;;  %v5338_v61 = vstv %s11713_s20  ;;  %s11803_s29 = sld [smem:[#allocation4 + $0x13]] }
 0x214   :  { %3669 = vmatprep.mubr.f32.mxu1 %v3602_v45  ;;  %7471 = vmatprep.subr.mxu0 %v3793_v53  ;;  %v11649_v36 = vpop.permute.xlu1 %4115  ;;  %v3708_v7 = vadd.f32 %v3706_v59, %v3698_v3  ;;  %v3907_v45 = vsel %vm84_vm2, %v11332_v2, %v3906_v63  ;;  %v3992_v53 = vld [vmem:[%s13839_s3 + $0x13e0] sm:$0xff]  ;;  %v3755_v2 = vrot.slane %v11466_v41, 2  ;;  %v5500_v3 = vmul.f32 %v11359_v20, %v5499_v42  ;;  %s11916_s20 = sld [smem:[#allocation2 + $0xe02]] }
 0x215   :  { %3670 = vmatmul.mubr.f32.vlgmr.msra.gmra.mxu1 %v3601_v47  ;;  %7472 = vmatpush3.msra.mxu0 %v3777_v51  ;;  %v11662_v29 = vpop.permute.xlu0 %4296  ;;  %v5318_v47 = vstv %s11621_s25  ;;  %v3789_v51 = vld [vmem:[%s13839_s3 + $0x12d0] sm:$0xff]  ;;  %v3787_v63 = vld [vmem:[%s13839_s3 + $0x12c0] sm:$0xff]  ;;  %v3956_v42 = vrot.slane %v11519_v27, 2  ;;  %s11970_s25 = sld [smem:[#allocation2 + $0xe81]] }
 0x216   :  { %7504 = vmatprep.subr.mxu1 %v3995_v15  ;;  %5301 = vrot.lane.b32.xlu1 %v5299_v55, %s8018_s7  ;;  %v3718_v25 = vadd.f32 %v3716_v52, %v3708_v7  ;;  %v3899_v55 = vadd.f32 %v3897_v32, %v3889_v26  ;;  %v5319_v5 = vmul.f32 %v11359_v20, %v5318_v47  ;;  %v3990_v52 = vld [vmem:[%s13839_s3 + $0x13d0] sm:$0xff]  ;;  %v3760_v47 = vstv %s11729_s30  ;;  %v3786_v32 = vld [vmem:[%s13839_s3 + $0x12b8] sm:$0xff]  ;;  %s11876_s30 = sld [smem:[#allocation2 + $0xd87]] }
 0x217   :  { %5291 = vrot.lane.b32.xlu0 %v5289_v9, %s8019_s11  ;;  %7473 = vmatprep.subr.mxu0 %v3792_v58  ;;  %v3746_v15 = vsel %vm128_vm6, %v11427_v16, %v3745_v28  ;;  %v3936_v58 = vrot.slane %v11479_v48, 2  ;;  %v3927_v16 = vsel %vm106_vm4, %v11436_v17, %v3926_v39  ;;  %v3756_v49 = vsel %vm139_vm7, %v11466_v41, %v3755_v2  ;;  %v3973_v26 = vld [vmem:[%s13839_s3 + $0x1348] sm:$0xff]  ;;  %v3972_v39 = vld [vmem:[%s13839_s3 + $0x1340] sm:$0xff] }
 0x218   :  { %7505 = vmatpush3.msra.mxu1 %v3979_v30  ;;  %7474 = vmatpush3.msra.mxu0 %v3776_v18  ;;  %v3728_v9 = vadd.f32 %v3726_v43, %v3718_v25  ;;  %v3909_v59 = vadd.f32 %v3907_v45, %v3899_v55  ;;  %v3975_v18 = vld [vmem:[%s13839_s3 + $0x1358] sm:$0xff]  ;;  %v3785_v45 = vld [vmem:[%s13839_s3 + $0x12b0] sm:$0xff]  ;;  %v5339_v2 = vmul.f32 %v11359_v20, %v5338_v61  ;;  %v4079_v61 = vstv %s11854_s16  ;;  %s11936_s16 = sld [smem:[#allocation2 + $0xa80]] }
 0x219   :  { %7506 = vmatprep.subr.mxu1 %v3994_v14  ;;  %7475 = vmatprep.subr.mxu0 %v3791_v19  ;;  %v11704_v46 = vpop.permute.xlu1 %4125  ;;  %v5509_v14 = vstv %s11688_s2  ;;  %v3946_v19 = vrot.slane %v11528_v56, 2  ;;  %v3937_v41 = vsel %vm117_vm5, %v11479_v48, %v3936_v58  ;;  %v3989_v48 = vld [vmem:[%s13839_s3 + $0x13c8] sm:$0xff]  ;;  %v3770_v25 = vld [vmem:[%s13839_s3 + $0x1238] sm:$0xff]  ;;  %s11994_s2 = sld [smem:[#allocation2 + $0xe04]] }
 0x21a   :  { %7507 = vmatpush3.msra.mxu1 %v3978_v4  ;;  %7476 = vmatpush3.msra.mxu0 %v3775_v57  ;;  %v11715_v60 = vpop.permute.xlu0 %4306  ;;  %v3738_v1 = vadd.f32 %v3736_v10, %v3728_v9  ;;  %v3919_v0 = vadd.f32 %v3917_v11, %v3909_v59  ;;  %v3771_v4 = vld [vmem:[%s13839_s3 + $0x1240] sm:$0xff]  ;;  %v5329_v57 = vmul.f32 %v11359_v20, %v5328_v13  ;;  %v3987_v55 = vld [vmem:[%s13839_s3 + $0x13b8] sm:$0xff]  ;;  %v3970_v13 = vld [vmem:[%s13839_s3 + $0x1330] sm:$0xff] }
 0x21b   :  { %7508 = vmatprep.subr.mxu1 %v3993_v23  ;;  %5311 = vrot.lane.b32.xlu1 %v5309_v24, %s8020_s22  ;;  %v3947_v43 = vsel %vm128_vm6, %v11528_v56, %v3946_v19  ;;  %v3988_v56 = vld [vmem:[%s13839_s3 + $0x13c0] sm:$0xff]  ;;  %v3957_v11 = vsel %vm139_vm7, %v11519_v27, %v3956_v42  ;;  %v3986_v27 = vld [vmem:[%s13839_s3 + $0x13b0] sm:$0xff]  ;;  %v3782_v19 = vld [vmem:[%s13839_s3 + $0x1298] sm:$0xff] }
 0x21c   :  { %5492 = vrot.lane.b32.xlu0 %v5490_v40, %s8019_s11  ;;  %7477 = vmatprep.subr.mxu0 %v3790_v8  ;;  %v3748_v17 = vadd.f32 %v3746_v15, %v3738_v1  ;;  %v3929_v7 = vadd.f32 %v3927_v16, %v3919_v0  ;;  %v5510_v40 = vmul.f32 %v11359_v20, %v5509_v14  ;;  %v3971_v15 = vld [vmem:[%s13839_s3 + $0x1338] sm:$0xff]  ;;  %v3767_v16 = vld [vmem:[%s13839_s3 + $0x1220] sm:$0xff]  ;;  %v5358_v0 = vstv %s11824_s21  ;;  %s12009_s21 = sld [smem:[#allocation2 + $0xe82]] }
 0x21d   :  { %7509 = vmatpush3.msra.mxu1 %v3977_v37  ;;  %7478 = vmatpush3.msra.mxu0 %v3774_v44  ;;  %v5519_v37 = vstv %s11740_s15  ;;  %v5559_v42 = vstv %s11866_s26  ;;  %s12118_s26 = sld [smem:[#allocation2 + $0xe84]] }
 0x21e   :  { %7510 = vmatprep.subr.mxu1 %v3992_v53  ;;  %7479 = vmatprep.subr.mxu0 %v3789_v51  ;;  %v11755_v30 = vpop.permute.xlu1 %4135  ;;  %v3758_v23 = vadd.f32 %v3756_v49, %v3748_v17  ;;  %v3939_v28 = vadd.f32 %v3937_v41, %v3929_v7  ;;  %v3769_v51 = vld [vmem:[%s13839_s3 + $0x1230] sm:$0xff]  ;;  %v5520_v9 = vmul.f32 %v11359_v20, %v5519_v37  ;;  %v3985_v49 = vld [vmem:[%s13839_s3 + $0x13a8] sm:$0xff]  ;;  %v4087_v37 = vrot.slane %v11584_v31, 2  ;;  %s12444_s15 = sld [smem:[#allocation2 + $0xf83]] }
 0x21f   :  { %7511 = vmatpush3.msra.mxu1 %v3976_v38  ;;  %7480 = vmatpush3.msra.mxu0 %v3773_v33  ;;  %v11769_v24 = vpop.permute.xlu0 %4316  ;;  %v3784_v38 = vld [vmem:[%s13839_s3 + $0x12a8] sm:$0xff]  ;;  %v5348_v33 = vstv %s11778_s12  ;;  %v3781_v7 = vld [vmem:[%s13839_s3 + $0x1290] sm:$0xff]  ;;  %s11922_s12 = sld [smem:[#allocation2 + $0xe01]] }
 0x220   :  { %7512 = vmatprep.subr.mxu1 %v3991_v21  ;;  %5321 = vrot.lane.b32.xlu1 %v5319_v5, %s8021_s19  ;;  %v3761_v10 = vadd.f32 %v3760_v47, %v3758_v23  ;;  %v3949_v53 = vadd.f32 %v3947_v43, %v3939_v28  ;;  %v3768_v21 = vld [vmem:[%s13839_s3 + $0x1228] sm:$0xff]  ;;  %v5359_v47 = vmul.f32 %v11359_v20, %v5358_v0  ;;  %v4107_v0 = vrot.slane %v11611_v6, 2 }
 0x221   :  { %5502 = vrot.lane.b32.xlu0 %v5500_v3, %s8018_s7  ;;  %7481 = vmatprep.subr.mxu0 %v3788_v12  ;;  %v5529_v3 = vstv %s11790_s28  ;;  %v3783_v12 = vld [vmem:[%s13839_s3 + $0x12a0] sm:$0xff]  ;;  %v3969_v17 = vld [vmem:[%s13839_s3 + $0x1328] sm:$0xff]  ;;  %s12556_s28 = sld [smem:[#allocation4 + $0x17]] }
 0x222   :  { %7513 = vmatpush3.msra.mxu1 %v3975_v18  ;;  %7482 = vmatpush3.msra.mxu0 %v3772_v35  ;;  %v3762_v59 = vmax.f32 %v3761_v10, 0.0  ;;  %v3959_v1 = vadd.f32 %v3957_v11, %v3949_v53  ;;  %v5349_v18 = vmul.f32 %v11359_v20, %v5348_v33  ;;  %v3961_v35 = vstv %s11803_s29  ;;  %v3780_v28 = vld [vmem:[%s13839_s3 + $0x1288] sm:$0xff]  ;;  %v3982_v53 = vld [vmem:[%s13839_s3 + $0x1390] sm:$0xff]  ;;  %s12496_s29 = sld [smem:[#allocation2 + $0xf84]] }
 0x223   :  { %7514 = vmatprep.subr.mxu1 %v3990_v52  ;;  %7483 = vmatprep.subr.mxu0 %v3787_v63  ;;  %v11805_v8 = vpop.permute.xlu1 %4145  ;;  %v5530_v14 = vmul.f32 %v11359_v20, %v5529_v3  ;;  %v3766_v52 = vld [vmem:[%s13839_s3 + $0x1218] sm:$0xff]  ;;  %v5539_v63 = vstv %s11834_s23  ;;  %v3764_v10 = vld [vmem:[%s13839_s3 + $0x1208] sm:$0xff]  ;;  %v5560_v11 = vmul.f32 %v11359_v20, %v5559_v42  ;;  %v4088_v3 = vsel %vm62_vm0, %v11584_v31, %v4087_v37  ;;  %v3980_v31 = vld [vmem:[%s13839_s3 + $0x1380] sm:$0xff]  ;;  %s12156_s23 = sld [smem:[#allocation2 + $0xe07]] }
 0x224   :  { %7515 = vmatpush3.msra.mxu1 %v3974_v62  ;;  %7484 = vmatpush3.msra.mxu0 %v3771_v4  ;;  %v11814_v44 = vpop.permute.xlu0 %4326  ;;  %v11895_v41 = vrot.slane %v3762_v59, %v8589_v50  ;;  %v3962_v62 = vadd.f32 %v3961_v35, %v3959_v1  ;;  %v5540_v43 = vmul.f32 %v11359_v20, %v5539_v63  ;;  %v3981_v33 = vld [vmem:[%s13839_s3 + $0x1388] sm:$0xff]  ;;  %v4097_v1 = vrot.slane %v11567_v54, 2  ;;  %v4180_v35 = vld [vmem:[%s13839_s3 + $0x1478] sm:$0xff]  ;;  %v4179_v63 = vld [vmem:[%s13839_s3 + $0x1470] sm:$0xff] }
 0x225   :  { %7516 = vmatprep.subr.mxu1 %v3989_v48  ;;  %5331 = vrot.lane.b32.xlu1 %v5329_v57, %s8022_s9  ;;  %v3984_v57 = vld [vmem:[%s13839_s3 + $0x13a0] sm:$0xff]  ;;  %v3965_v59 = vld [vmem:[%s13839_s3 + $0x1308] sm:$0xff] }
 0x226   :  { %5512 = vrot.lane.b32.xlu0 %v5510_v40, %s8020_s22  ;;  %7485 = vmatprep.subr.mxu0 %v3786_v32  ;;  %v3968_v48 = vld [vmem:[%s13839_s3 + $0x1320] sm:$0xff]  ;;  %v3765_v40 = vld [vmem:[%s13839_s3 + $0x1210] sm:$0xff]  ;;  %v3983_v32 = vld [vmem:[%s13839_s3 + $0x1398] sm:$0xff] }
 0x227   :  { %7517 = vmatpush3.msra.mxu1 %v3973_v26  ;;  %7486 = vmatpush3.msra.mxu0 %v3770_v25  ;;  %v3803_v26 = vcombine.high %v11895_v41, %v11895_v41  ;;  %v3963_v25 = vmax.f32 %v3962_v62, 0.0  ;;  %v4178_v37 = vld [vmem:[%s13839_s3 + $0x1468] sm:$0xff] }
 0x228   :  { %7518 = vmatprep.subr.mxu1 %v3988_v56  ;;  %7487 = vmatprep.subr.mxu0 %v3785_v45  ;;  %v11844_v5 = vpop.permute.xlu1 %4155  ;;  %v3967_v56 = vld [vmem:[%s13839_s3 + $0x1318] sm:$0xff]  ;;  %v5549_v45 = vstv %s11876_s30  ;;  %s12202_s30 = sld [smem:[#allocation2 + $0xe08]] }
 0x229   :  { %7519 = vmatpush3.msra.mxu1 %v3972_v39  ;;  %7488 = vmatpush3.msra.mxu0 %v3769_v51  ;;  %v11857_v58 = vpop.permute.xlu0 %4336  ;;  %v4080_v51 = vmul.f32 %v11572_v22, %v4079_v61  ;;  %v4108_v61 = vsel %vm84_vm2, %v11611_v6, %v4107_v0  ;;  %v4396_v6 = vld [vmem:[%s13839_s3 + $0x15f0] sm:$0xff]  ;;  %v4394_v0 = vld [vmem:[%s13839_s3 + $0x15e0] sm:$0xff] }
 0x22a   :  { %7520 = vmatprep.subr.mxu1 %v3987_v55  ;;  %5341 = vrot.lane.b32.xlu1 %v5339_v2, %s8023_s27  ;;  %v3779_v2 = vld [vmem:[%s13839_s3 + $0x1280] sm:$0xff]  ;;  %v3966_v55 = vld [vmem:[%s13839_s3 + $0x1310] sm:$0xff] }
 0x22b   :  { %5522 = vrot.lane.b32.xlu0 %v5520_v9, %s8021_s19  ;;  %7489 = vmatprep.subr.mxu0 %v3784_v38  ;;  %v3763_v38 = vld [vmem:[%s13839_s3 + $0x1200] sm:$0xff] }
 0x22c   :  { %7521 = vmatpush3.msra.mxu1 %v3971_v15  ;;  %7490 = vmatpush3.msra.mxu0 %v3768_v21  ;;  %v5550_v15 = vmul.f32 %v11359_v20, %v5549_v45  ;;  %v4003_v21 = vrot.slane %v3963_v25, %v8589_v50  ;;  %v4381_v25 = vld [vmem:[%s13839_s3 + $0x1578] sm:$0xff] }
 0x22d   :  { %7522 = vmatprep.subr.mxu1 %v3986_v27  ;;  %7491 = vmatprep.subr.mxu0 %v3783_v12  ;;  %v4196_v27 = vld [vmem:[%s13839_s3 + $0x14f8] sm:$0xff]  ;;  %v5700_v12 = vstv %s11916_s20  ;;  %s12091_s20 = sld [smem:[#allocation2 + $0xe06]] }
 0x22e   :  { %7523 = vmatpush3.msra.mxu1 %v3970_v13  ;;  %7492 = vmatpush3.msra.mxu0 %v3767_v16  ;;  %v11897_v4 = vpop.permute.xlu1 %4356  ;;  %v11906_v23 = vpop.permute.xlu0 %4346  ;;  %v5690_v13 = vstv %s11922_s12  ;;  %v5701_v62 = vmul.f32 %v11359_v20, %v5700_v12  ;;  %s12046_s12 = sld [smem:[#allocation2 + $0xe05]] }
 0x22f   :  { %7524 = vmatprep.subr.mxu1 %v3985_v49  ;;  %5351 = vrot.lane.b32.xlu1 %v5349_v18, %s8024_s13  ;;  %v4090_v18 = vadd.f32 %v4088_v3, %v4080_v51  ;;  %v3964_v49 = vld [vmem:[%s13839_s3 + $0x1300] sm:$0xff] }
 0x230   :  { %5532 = vrot.lane.b32.xlu0 %v5530_v14, %s8022_s9  ;;  %7493 = vmatprep.subr.mxu0 %v3782_v19  ;;  %v4004_v14 = vcombine.high %v4003_v21, %v4003_v21 }
 0x231   :  { %7525 = vmatpush3.msra.mxu1 %v3969_v17  ;;  %7494 = vmatpush3.msra.mxu0 %v3766_v52  ;;  %v4195_v17 = vld [vmem:[%s13839_s3 + $0x14f0] sm:$0xff]  ;;  %v4280_v52 = vstv %s11936_s16  ;;  %s12107_s16 = sld [smem:[#allocation4 + $0x14]] }
 0x232   :  { %7526 = vmatprep.subr.mxu1 %v3984_v57  ;;  %7495 = vmatprep.subr.mxu0 %v3781_v7  ;;  %v5691_v57 = vmul.f32 %v11359_v20, %v5690_v13  ;;  %v4288_v7 = vrot.slane %v11623_v34, 2  ;;  %v4281_v45 = vmul.f32 %v11572_v22, %v4280_v52  ;;  %v4191_v52 = vld [vmem:[%s13839_s3 + $0x14d0] sm:$0xff] }
 0x233   :  { %7527 = vmatpush3.msra.mxu1 %v3968_v48  ;;  %7496 = vmatpush3.msra.mxu0 %v3765_v40  ;;  %v4117_v48 = vrot.slane %v11649_v36, 2  ;;  %v4397_v40 = vld [vmem:[%s13839_s3 + $0x15f8] sm:$0xff] }
 0x234   :  { %7528 = vmatprep.subr.mxu1 %v3983_v32  ;;  %5361 = vrot.lane.b32.xlu1 %v5359_v47, %s8025_s17  ;;  %v11945_v39 = vpop.permute.xlu1 %4497  ;;  %v5710_v47 = vstv %s11955_s10  ;;  %v4289_v51 = vsel %vm62_vm0, %v11623_v34, %v4288_v7  ;;  %s12232_s10 = sld [smem:[#allocation2 + $0xb00]] }
 0x235   :  { %5542 = vrot.lane.b32.xlu0 %v5540_v43, %s8023_s27  ;;  %7497 = vmatprep.subr.mxu0 %v3780_v28  ;;  %v11957_v9 = vpop.permute.xlu0 %4487  ;;  %v4194_v43 = vld [vmem:[%s13839_s3 + $0x14e8] sm:$0xff]  ;;  %v4298_v28 = vrot.slane %v11662_v29, 2  ;;  %v4118_v22 = vsel %vm95_vm3, %v11649_v36, %v4117_v48  ;;  %v4291_v12 = vadd.f32 %v4289_v51, %v4281_v45  ;;  %v5911_v45 = vstv %s12061_s24  ;;  %v4392_v51 = vld [vmem:[%s13839_s3 + $0x15d0] sm:$0xff]  ;;  %s12300_s24 = sld [smem:[#allocation2 + $0xf01]] }
 0x236   :  { %3870 = vmatprep.mubr.f32.mxu0 %v3803_v26  ;;  %7529 = vmatpush3.msra.mxu1 %v3967_v56  ;;  %v4127_v26 = vrot.slane %v11704_v46, 2  ;;  %v5891_v56 = vstv %s11970_s25  ;;  %v4395_v36 = vld [vmem:[%s13839_s3 + $0x15e8] sm:$0xff]  ;;  %s12212_s25 = sld [smem:[#allocation2 + $0xe86]] }
 0x237   :  { %7498 = vmatpush3.msra.mxu0 %v3764_v10  ;;  %7530 = vmatprep.subr.mxu1 %v3982_v53  ;;  %v4193_v10 = vld [vmem:[%s13839_s3 + $0x14e0] sm:$0xff]  ;;  %v5711_v53 = vmul.f32 %v11359_v20, %v5710_v47  ;;  %v4380_v20 = vld [vmem:[%s13839_s3 + $0x1570] sm:$0xff] }
 0x238   :  { %7499 = vmatprep.subr.mxu0 %v3779_v2  ;;  %7531 = vmatpush3.msra.mxu1 %v3966_v55  ;;  %v4308_v2 = vrot.slane %v11715_v60, 2  ;;  %v4137_v55 = vrot.slane %v11755_v30, 2  ;;  %v4128_v3 = vsel %vm106_vm4, %v11704_v46, %v4127_v26  ;;  %v4176_v46 = vld [vmem:[%s13839_s3 + $0x1458] sm:$0xff] }
 0x239   :  { %7500 = vmatpush3.msra.mxu0 %v3763_v38  ;;  %7532 = vmatprep.subr.mxu1 %v3981_v33  ;;  %v11984_v16 = vpop.permute.xlu1 %4507  ;;  %v4177_v38 = vld [vmem:[%s13839_s3 + $0x1460] sm:$0xff] }
 0x23a   :  { %5562 = vrot.lane.b32.xlu1 %v5560_v11, %s8025_s17  ;;  %5552 = vrot.lane.b32.xlu0 %v5550_v15, %s8024_s13  ;;  %v11996_v19 = vpop.permute.xlu0 %4688  ;;  %v12069_v33 = vld [vmem:[%s13836_s0] sm:$0x3f]  ;;  %v5720_v15 = vstv %s11994_s2  ;;  %s12485_s2 = sld [smem:[#allocation4 + $0x16]] }
 0x23b   :  { %3871 = vmatmul.mubr.f32.vlgmr.msra.gmra.mxu0 %v11895_v41  ;;  %7533 = vmatpush3.msra.mxu1 %v3965_v59  ;;  %v4098_v41 = vsel %vm73_vm1, %v11567_v54, %v4097_v1  ;;  %v5892_v11 = vmul.f32 %v12069_v33, %v5891_v56  ;;  %v4318_v59 = vrot.slane %v11769_v24, 2  ;;  %v4192_v1 = vld [vmem:[%s13839_s3 + $0x14d8] sm:$0xff] }
 0x23c   :  { %7539 = vmatprep.subr.mxu0 %v4196_v27  ;;  %7534 = vmatprep.subr.mxu1 %v3980_v31  ;;  %v4100_v32 = vadd.f32 %v4098_v41, %v4090_v18  ;;  %v4147_v27 = vrot.slane %v11805_v8, 2  ;;  %v5901_v18 = vstv %s12009_s21  ;;  %v5721_v41 = vmul.f32 %v12069_v33, %v5720_v15  ;;  %v4188_v15 = vld [vmem:[%s13839_s3 + $0x14b8] sm:$0xff]  ;;  %s12178_s21 = sld [smem:[#allocation4 + $0x15]] }
 0x23d   :  { %7540 = vmatpush3.msra.mxu0 %v4180_v35  ;;  %7535 = vmatpush3.msra.mxu1 %v3964_v49  ;;  %v4309_v49 = vsel %vm84_vm2, %v11715_v60, %v4308_v2  ;;  %v4157_v60 = vrot.slane %v11844_v5, 2  ;;  %v4319_v7 = vsel %vm95_vm3, %v11769_v24, %v4318_v59  ;;  %v5902_v47 = vmul.f32 %v12069_v33, %v5901_v18  ;;  %v4190_v24 = vld [vmem:[%s13839_s3 + $0x14c8] sm:$0xff]  ;;  %v4376_v2 = vld [vmem:[%s13839_s3 + $0x1550] sm:$0xff] }
 0x23e   :  { %4071 = vmatprep.mubr.f32.mxu1 %v4004_v14  ;;  %7541 = vmatprep.subr.mxu0 %v4195_v17  ;;  %v12022_v54 = vpop.permute.xlu1 %4517  ;;  %v4110_v34 = vadd.f32 %v4108_v61, %v4100_v32  ;;  %v4138_v14 = vsel %vm117_vm5, %v11755_v30, %v4137_v55  ;;  %v4328_v17 = vrot.slane %v11814_v44, 2  ;;  %v4378_v30 = vld [vmem:[%s13839_s3 + $0x1560] sm:$0xff]  ;;  %v4148_v48 = vsel %vm128_vm6, %v11805_v8, %v4147_v27  ;;  %v4375_v27 = vld [vmem:[%s13839_s3 + $0x1548] sm:$0xff]  ;;  %v4187_v18 = vld [vmem:[%s13839_s3 + $0x14b0] sm:$0xff] }
 0x23f   :  { %4072 = vmatmul.mubr.f32.vlgmr.msra.gmra.mxu1 %v4003_v21  ;;  %7542 = vmatpush3.msra.mxu0 %v4179_v63  ;;  %v12035_v42 = vpop.permute.xlu0 %4698  ;;  %v4299_v21 = vsel %vm73_vm1, %v11662_v29, %v4298_v28  ;;  %v4379_v29 = vld [vmem:[%s13839_s3 + $0x1568] sm:$0xff]  ;;  %v4338_v32 = vrot.slane %v11857_v58, 2  ;;  %v5730_v28 = vstv %s12046_s12  ;;  %v4158_v56 = vsel %vm139_vm7, %v11844_v5, %v4157_v60  ;;  %v4173_v55 = vld [vmem:[%s13839_s3 + $0x1440] sm:$0xff]  ;;  %v4389_v60 = vld [vmem:[%s13839_s3 + $0x15b8] sm:$0xff] }
 0x240   :  { %7574 = vmatprep.subr.mxu1 %v4397_v40  ;;  %5703 = vrot.lane.b32.xlu1 %v5701_v62, %s8018_s7  ;;  %v4120_v13 = vadd.f32 %v4118_v22, %v4110_v34  ;;  %v4301_v63 = vadd.f32 %v4299_v21, %v4291_v12  ;;  %v4393_v40 = vld [vmem:[%s13839_s3 + $0x15d8] sm:$0xff]  ;;  %v4329_v8 = vsel %vm106_vm4, %v11814_v44, %v4328_v17  ;;  %v4189_v22 = vld [vmem:[%s13839_s3 + $0x14c0] sm:$0xff]  ;;  %v4171_v17 = vld [vmem:[%s13839_s3 + $0x1430] sm:$0xff] }
 0x241   :  { %5693 = vrot.lane.b32.xlu0 %v5691_v57, %s8019_s11  ;;  %7543 = vmatprep.subr.mxu0 %v4194_v43  ;;  %v4175_v57 = vld [vmem:[%s13839_s3 + $0x1450] sm:$0xff]  ;;  %v4339_v5 = vsel %vm117_vm5, %v11857_v58, %v4338_v32  ;;  %v4391_v58 = vld [vmem:[%s13839_s3 + $0x15c8] sm:$0xff]  ;;  %v4172_v12 = vld [vmem:[%s13839_s3 + $0x1438] sm:$0xff] }
 0x242   :  { %7575 = vmatpush3.msra.mxu1 %v4381_v25  ;;  %7544 = vmatpush3.msra.mxu0 %v4178_v37  ;;  %v4130_v62 = vadd.f32 %v4128_v3, %v4120_v13  ;;  %v4311_v43 = vadd.f32 %v4309_v49, %v4301_v63  ;;  %v4377_v25 = vld [vmem:[%s13839_s3 + $0x1558] sm:$0xff]  ;;  %v4174_v37 = vld [vmem:[%s13839_s3 + $0x1448] sm:$0xff]  ;;  %v5740_v3 = vstv %s12091_s20  ;;  %v5921_v13 = vstv %s12118_s26  ;;  %s12377_s26 = sld [smem:[#allocation2 + $0xf04]] }
 0x243   :  { %7576 = vmatprep.subr.mxu1 %v4396_v6  ;;  %7545 = vmatprep.subr.mxu0 %v4193_v10  ;;  %v12082_v31 = vpop.permute.xlu1 %4527  ;;  %v4348_v6 = vrot.slane %v11906_v23, 2  ;;  %v5922_v63 = vmul.f32 %v12069_v33, %v5921_v13  ;;  %v4369_v13 = vld [vmem:[%s13839_s3 + $0x1518] sm:$0xff]  ;;  %s12469_s20 = sld [smem:[#allocation2 + $0xf06]] }
 0x244   :  { %7577 = vmatpush3.msra.mxu1 %v4380_v20  ;;  %7546 = vmatpush3.msra.mxu0 %v4177_v38  ;;  %v12093_v35 = vpop.permute.xlu0 %4708  ;;  %v4140_v61 = vadd.f32 %v4138_v14, %v4130_v62  ;;  %v5731_v20 = vmul.f32 %v12069_v33, %v5730_v28  ;;  %v4186_v62 = vld [vmem:[%s13839_s3 + $0x14a8] sm:$0xff]  ;;  %v4372_v28 = vld [vmem:[%s13839_s3 + $0x1530] sm:$0xff] }
 0x245   :  { %7578 = vmatprep.subr.mxu1 %v4395_v36  ;;  %5713 = vrot.lane.b32.xlu1 %v5711_v53, %s8020_s22  ;;  %v4321_v53 = vadd.f32 %v4319_v7, %v4311_v43  ;;  %v5912_v36 = vmul.f32 %v12069_v33, %v5911_v45  ;;  %v4349_v21 = vsel %vm128_vm6, %v11906_v23, %v4348_v6  ;;  %v4390_v23 = vld [vmem:[%s13839_s3 + $0x15c0] sm:$0xff]  ;;  %v4373_v7 = vld [vmem:[%s13839_s3 + $0x1538] sm:$0xff]  ;;  %v5760_v6 = vstv %s12202_s30 }
 0x246   :  { %5894 = vrot.lane.b32.xlu0 %v5892_v11, %s8019_s11  ;;  %7547 = vmatprep.subr.mxu0 %v4192_v1  ;;  %v4150_v44 = vadd.f32 %v4148_v48, %v4140_v61  ;;  %v4162_v11 = vstv %s12107_s16  ;;  %v4170_v48 = vld [vmem:[%s13839_s3 + $0x1428] sm:$0xff]  ;;  %v4185_v61 = vld [vmem:[%s13839_s3 + $0x14a0] sm:$0xff]  ;;  %s12255_s16 = sld [smem:[#allocation2 + $0xe87]] }
 0x247   :  { %7579 = vmatpush3.msra.mxu1 %v4379_v29  ;;  %7548 = vmatpush3.msra.mxu0 %v4176_v46  ;;  %v4331_v38 = vadd.f32 %v4329_v8, %v4321_v53  ;;  %v4358_v46 = vrot.slane %v11897_v4, 2  ;;  %v4169_v8 = vld [vmem:[%s13839_s3 + $0x1420] sm:$0xff]  ;;  %v4184_v45 = vld [vmem:[%s13839_s3 + $0x1498] sm:$0xff] }
 0x248   :  { %7580 = vmatprep.subr.mxu1 %v4394_v0  ;;  %7549 = vmatprep.subr.mxu0 %v4191_v52  ;;  %v12133_v26 = vpop.permute.xlu1 %4537  ;;  %v4160_v34 = vadd.f32 %v4158_v56, %v4150_v44  ;;  %v4374_v0 = vld [vmem:[%s13839_s3 + $0x1540] sm:$0xff]  ;;  %v5741_v52 = vmul.f32 %v12069_v33, %v5740_v3  ;;  %v4371_v44 = vld [vmem:[%s13839_s3 + $0x1528] sm:$0xff]  ;;  %v4481_v3 = vstv %s12232_s10  ;;  %s12314_s10 = sld [smem:[#allocation2 + $0xb80]] }
 0x249   :  { %7581 = vmatpush3.msra.mxu1 %v4378_v30  ;;  %7550 = vmatpush3.msra.mxu0 %v4175_v57  ;;  %v12147_v10 = vpop.permute.xlu0 %4718  ;;  %v4341_v1 = vadd.f32 %v4339_v5, %v4331_v38  ;;  %v5750_v30 = vstv %s12156_s23  ;;  %s12644_s23 = sld [smem:[#allocation2 + $0xc80]] }
 0x24a   :  { %7582 = vmatprep.subr.mxu1 %v4393_v40  ;;  %5723 = vrot.lane.b32.xlu1 %v5721_v41, %s8021_s19  ;;  %v4163_v49 = vadd.f32 %v4162_v11, %v4160_v34  ;;  %v4359_v41 = vsel %vm139_vm7, %v11897_v4, %v4358_v46  ;;  %v5931_v40 = vstv %s12168_s1  ;;  %v4388_v4 = vld [vmem:[%s13839_s3 + $0x15b0] sm:$0xff]  ;;  %v4370_v34 = vld [vmem:[%s13839_s3 + $0x1520] sm:$0xff]  ;;  %s12392_s1 = sld [smem:[#allocation2 + $0xf82]] }
 0x24b   :  { %5904 = vrot.lane.b32.xlu0 %v5902_v47, %s8018_s7  ;;  %7551 = vmatprep.subr.mxu0 %v4190_v24  ;;  %v4351_v14 = vadd.f32 %v4349_v21, %v4341_v1  ;;  %v4363_v24 = vstv %s12178_s21  ;;  %v5932_v56 = vmul.f32 %v12069_v33, %v5931_v40  ;;  %s12294_s21 = sld [smem:[#allocation2 + $0xf02]]  ;;  %v4385_v11 = vld [vmem:[%s13839_s3 + $0x1598] sm:$0xff]  ;;  %v4182_v1 = vld [vmem:[%s13839_s3 + $0x1488] sm:$0xff] }
 0x24c   :  { %7583 = vmatpush3.msra.mxu1 %v4377_v25  ;;  %7552 = vmatpush3.msra.mxu0 %v4174_v37  ;;  %v4164_v32 = vmax.f32 %v4163_v49, 0.0  ;;  %v5751_v25 = vmul.f32 %v12069_v33, %v5750_v30  ;;  %v4387_v37 = vld [vmem:[%s13839_s3 + $0x15a8] sm:$0xff]  ;;  %v5951_v46 = vstv %s12255_s16  ;;  %v4384_v49 = vld [vmem:[%s13839_s3 + $0x1590] sm:$0xff] }
 0x24d   :  { %7584 = vmatprep.subr.mxu1 %v4392_v51  ;;  %7553 = vmatprep.subr.mxu0 %v4189_v22  ;;  %v12183_v59 = vpop.permute.xlu1 %4547  ;;  %v4361_v43 = vadd.f32 %v4359_v41, %v4351_v14  ;;  %v4168_v51 = vld [vmem:[%s13839_s3 + $0x1418] sm:$0xff]  ;;  %v5941_v22 = vstv %s12212_s25  ;;  %v4383_v30 = vld [vmem:[%s13839_s3 + $0x1588] sm:$0xff]  ;;  %s12582_s25 = sld [smem:[#allocation2 + $0xf08]] }
 0x24e   :  { %7585 = vmatpush3.msra.mxu1 %v4376_v2  ;;  %7554 = vmatpush3.msra.mxu0 %v4173_v55  ;;  %v12192_v29 = vpop.permute.xlu0 %4728  ;;  %v12273_v5 = vrot.slane %v4164_v32, %v8589_v50  ;;  %v4386_v55 = vld [vmem:[%s13839_s3 + $0x15a0] sm:$0xff]  ;;  %v4367_v32 = vld [vmem:[%s13839_s3 + $0x1508] sm:$0xff] }
 0x24f   :  { %7586 = vmatprep.subr.mxu1 %v4391_v58  ;;  %5733 = vrot.lane.b32.xlu1 %v5731_v20, %s8022_s9  ;;  %v4364_v53 = vadd.f32 %v4363_v24, %v4361_v43  ;;  %v4183_v20 = vld [vmem:[%s13839_s3 + $0x1490] sm:$0xff]  ;;  %v4499_v43 = vrot.slane %v11945_v39, 2  ;;  %v6092_v24 = vstv %s12300_s24  ;;  %s12429_s24 = sld [smem:[#allocation2 + $0xf05]] }
 0x250   :  { %5914 = vrot.lane.b32.xlu0 %v5912_v36, %s8020_s22  ;;  %7555 = vmatprep.subr.mxu0 %v4188_v15  ;;  %v4167_v58 = vld [vmem:[%s13839_s3 + $0x1410] sm:$0xff]  ;;  %v5761_v36 = vmul.f32 %v12069_v33, %v5760_v6  ;;  %v5942_v15 = vmul.f32 %v12069_v33, %v5941_v22  ;;  %v4509_v6 = vrot.slane %v11984_v16, 2 }
 0x251   :  { %7587 = vmatpush3.msra.mxu1 %v4375_v27  ;;  %7556 = vmatpush3.msra.mxu0 %v4172_v12  ;;  %v4365_v21 = vmax.f32 %v4364_v53, 0.0  ;;  %v4205_v27 = vcombine.high %v12273_v5, %v12273_v5  ;;  %v4489_v12 = vrot.slane %v11957_v9, 2  ;;  %v4597_v53 = vld [vmem:[%s13839_s3 + $0x16f0] sm:$0xff] }
 0x252   :  { %7588 = vmatprep.subr.mxu1 %v4390_v23  ;;  %7557 = vmatprep.subr.mxu0 %v4187_v18  ;;  %v12222_v57 = vpop.permute.xlu1 %4557  ;;  %v5961_v23 = vstv %s12244_s18  ;;  %v4166_v18 = vld [vmem:[%s13839_s3 + $0x1408] sm:$0xff]  ;;  %s12633_s18 = sld [smem:[#allocation2 + $0xf87]] }
 0x253   :  { %7589 = vmatpush3.msra.mxu1 %v4374_v0  ;;  %7558 = vmatpush3.msra.mxu0 %v4171_v17  ;;  %v12235_v47 = vpop.permute.xlu0 %4738  ;;  %v12328_v0 = vld [vmem:[%s13836_s0] sm:$0xf]  ;;  %v5962_v41 = vmul.f32 %v12069_v33, %v5961_v23  ;;  %v4490_v40 = vsel %vm62_vm0, %v11957_v9, %v4489_v12  ;;  %v4580_v12 = vld [vmem:[%s13839_s3 + $0x1668] sm:$0xff] }
 0x254   :  { %7590 = vmatprep.subr.mxu1 %v4389_v60  ;;  %5743 = vrot.lane.b32.xlu1 %v5741_v52, %s8023_s27  ;;  %v4482_v17 = vmul.f32 %v12328_v0, %v4481_v3  ;;  %v4181_v52 = vld [vmem:[%s13839_s3 + $0x1480] sm:$0xff]  ;;  %v4368_v60 = vld [vmem:[%s13839_s3 + $0x1510] sm:$0xff]  ;;  %v4700_v3 = vrot.slane %v12035_v42, 2 }
 0x255   :  { %5924 = vrot.lane.b32.xlu0 %v5922_v63, %s8021_s19  ;;  %7559 = vmatprep.subr.mxu0 %v4186_v62  ;;  %v4165_v62 = vld [vmem:[%s13839_s3 + $0x1400] sm:$0xff] }
 0x256   :  { %7591 = vmatpush3.msra.mxu1 %v4373_v7  ;;  %7560 = vmatpush3.msra.mxu0 %v4170_v48  ;;  %v5952_v7 = vmul.f32 %v12069_v33, %v5951_v46  ;;  %v4405_v48 = vrot.slane %v4365_v21, %v8589_v50  ;;  %v4382_v9 = vld [vmem:[%s13839_s3 + $0x1580] sm:$0xff]  ;;  %v4510_v21 = vsel %vm84_vm2, %v11984_v16, %v4509_v6  ;;  %v4798_v16 = vld [vmem:[%s13839_s3 + $0x17f0] sm:$0xff] }
 0x257   :  { %7592 = vmatprep.subr.mxu1 %v4388_v4  ;;  %7561 = vmatprep.subr.mxu0 %v4185_v61  ;;  %v4598_v4 = vld [vmem:[%s13839_s3 + $0x16f8] sm:$0xff]  ;;  %v6102_v61 = vstv %s12294_s21  ;;  %s13225_s21 = sld [smem:[#allocation2 + $0xe80]] }
 0x258   :  { %7593 = vmatpush3.msra.mxu1 %v4372_v28  ;;  %7562 = vmatpush3.msra.mxu0 %v4169_v8  ;;  %v12275_v2 = vpop.permute.xlu1 %4758  ;;  %v12284_v38 = vpop.permute.xlu0 %4748  ;;  %v4492_v8 = vadd.f32 %v4490_v40, %v4482_v17  ;;  %v6103_v22 = vmul.f32 %v12069_v33, %v6102_v61  ;;  %v4701_v40 = vsel %vm73_vm1, %v12035_v42, %v4700_v3  ;;  %v4781_v42 = vld [vmem:[%s13839_s3 + $0x1768] sm:$0xff] }
 0x259   :  { %7594 = vmatprep.subr.mxu1 %v4387_v37  ;;  %5753 = vrot.lane.b32.xlu1 %v5751_v25, %s8024_s13  ;;  %v4582_v25 = vld [vmem:[%s13839_s3 + $0x1678] sm:$0xff]  ;;  %v4366_v37 = vld [vmem:[%s13839_s3 + $0x1500] sm:$0xff] }
 0x25a   :  { %5934 = vrot.lane.b32.xlu0 %v5932_v56, %s8022_s9  ;;  %7563 = vmatprep.subr.mxu0 %v4184_v45  ;;  %v4406_v56 = vcombine.high %v4405_v48, %v4405_v48 }
 0x25b   :  { %7595 = vmatpush3.msra.mxu1 %v4371_v44  ;;  %7564 = vmatpush3.msra.mxu0 %v4168_v51  ;;  %v4682_v44 = vstv %s12314_s10  ;;  %v4581_v51 = vld [vmem:[%s13839_s3 + $0x1670] sm:$0xff]  ;;  %s12534_s10 = sld [smem:[#allocation2 + $0xf07]] }
 0x25c   :  { %7596 = vmatprep.subr.mxu1 %v4386_v55  ;;  %7565 = vmatprep.subr.mxu0 %v4183_v20  ;;  %v6093_v55 = vmul.f32 %v12069_v33, %v6092_v24  ;;  %v4690_v20 = vrot.slane %v11996_v19, 2  ;;  %v4683_v46 = vmul.f32 %v12328_v0, %v4682_v44  ;;  %v4730_v44 = vrot.slane %v12192_v29, 2 }
 0x25d   :  { %7597 = vmatpush3.msra.mxu1 %v4370_v34  ;;  %7566 = vmatpush3.msra.mxu0 %v4167_v58  ;;  %v4519_v34 = vrot.slane %v12022_v54, 2  ;;  %v4799_v58 = vld [vmem:[%s13839_s3 + $0x17f8] sm:$0xff] }
 0x25e   :  { %7598 = vmatprep.subr.mxu1 %v4385_v11  ;;  %5763 = vrot.lane.b32.xlu1 %v5761_v36, %s8025_s17  ;;  %v12323_v14 = vpop.permute.xlu1 %4899  ;;  %v6112_v36 = vstv %s12338_s14  ;;  %v4691_v17 = vsel %vm62_vm0, %v11996_v19, %v4690_v20  ;;  %s12546_s14 = sld [smem:[#allocation2 + $0xf85]] }
 0x25f   :  { %5944 = vrot.lane.b32.xlu0 %v5942_v15, %s8023_s27  ;;  %7567 = vmatprep.subr.mxu0 %v4182_v1  ;;  %v12340_v63 = vpop.permute.xlu0 %4889  ;;  %v4596_v15 = vld [vmem:[%s13839_s3 + $0x16e8] sm:$0xff]  ;;  %v4529_v1 = vrot.slane %v12082_v31, 2  ;;  %v4693_v24 = vadd.f32 %v4691_v17, %v4683_v46 }
 0x260   :  { %4272 = vmatprep.mubr.f32.mxu0 %v4205_v27  ;;  %7599 = vmatpush3.msra.mxu1 %v4369_v13  ;;  %v4783_v27 = vld [vmem:[%s13839_s3 + $0x1778] sm:$0xff]  ;;  %v6293_v13 = vstv %s12353_s8  ;;  %s13083_s8 = sld [smem:[#allocation4 + $0x1a]] }
 0x261   :  { %7568 = vmatpush3.msra.mxu0 %v4166_v18  ;;  %7600 = vmatprep.subr.mxu1 %v4384_v49  ;;  %v4595_v18 = vld [vmem:[%s13839_s3 + $0x16e0] sm:$0xff]  ;;  %v6113_v49 = vmul.f32 %v12069_v33, %v6112_v36  ;;  %v4795_v36 = vld [vmem:[%s13839_s3 + $0x17d8] sm:$0xff] }
 0x262   :  { %7569 = vmatprep.subr.mxu0 %v4181_v52  ;;  %7601 = vmatpush3.msra.mxu1 %v4368_v60  ;;  %v4520_v52 = vsel %vm95_vm3, %v12022_v54, %v4519_v34  ;;  %v4710_v60 = vrot.slane %v12093_v35, 2  ;;  %v4797_v54 = vld [vmem:[%s13839_s3 + $0x17e8] sm:$0xff] }
 0x263   :  { %7570 = vmatpush3.msra.mxu0 %v4165_v62  ;;  %7602 = vmatprep.subr.mxu1 %v4383_v30  ;;  %v12367_v28 = vpop.permute.xlu1 %4909  ;;  %v4539_v62 = vrot.slane %v12133_v26, 2  ;;  %v4782_v30 = vld [vmem:[%s13839_s3 + $0x1770] sm:$0xff] }
 0x264   :  { %5964 = vrot.lane.b32.xlu1 %v5962_v41, %s8025_s17  ;;  %5954 = vrot.lane.b32.xlu0 %v5952_v7, %s8024_s13  ;;  %v12379_v45 = vpop.permute.xlu0 %5090  ;;  %v4579_v41 = vld [vmem:[%s13839_s3 + $0x1660] sm:$0xff]  ;;  %v6294_v7 = vmul.f32 %v12069_v33, %v6293_v13  ;;  %v4576_v13 = vld [vmem:[%s13839_s3 + $0x1648] sm:$0xff] }
 0x265   :  { %4273 = vmatmul.mubr.f32.vlgmr.msra.gmra.mxu0 %v12273_v5  ;;  %7603 = vmatpush3.msra.mxu1 %v4367_v32  ;;  %v4500_v5 = vsel %vm73_vm1, %v11945_v39, %v4499_v43  ;;  %v4530_v32 = vsel %vm106_vm4, %v12082_v31, %v4529_v1  ;;  %v4720_v43 = vrot.slane %v12147_v10, 2  ;;  %v4578_v31 = vld [vmem:[%s13839_s3 + $0x1658] sm:$0xff]  ;;  %v4540_v6 = vsel %vm117_vm5, %v12133_v26, %v4539_v62  ;;  %v4780_v26 = vld [vmem:[%s13839_s3 + $0x1760] sm:$0xff]  ;;  %v4778_v62 = vld [vmem:[%s13839_s3 + $0x1750] sm:$0xff] }
 0x266   :  { %7609 = vmatprep.subr.mxu0 %v4598_v4  ;;  %7604 = vmatprep.subr.mxu1 %v4382_v9  ;;  %v4502_v11 = vadd.f32 %v4500_v5, %v4492_v8  ;;  %v4594_v4 = vld [vmem:[%s13839_s3 + $0x16d8] sm:$0xff]  ;;  %v4549_v9 = vrot.slane %v12183_v59, 2  ;;  %v4577_v5 = vld [vmem:[%s13839_s3 + $0x1650] sm:$0xff]  ;;  %v6132_v1 = vstv %s12429_s24 }
 0x267   :  { %7610 = vmatpush3.msra.mxu0 %v4582_v25  ;;  %7605 = vmatpush3.msra.mxu1 %v4366_v37  ;;  %v6303_v25 = vstv %s12392_s1  ;;  %v4721_v34 = vsel %vm95_vm3, %v12147_v10, %v4720_v43  ;;  %v4592_v10 = vld [vmem:[%s13839_s3 + $0x16c8] sm:$0xff]  ;;  %v6142_v43 = vstv %s12469_s20  ;;  %s12570_s1 = sld [smem:[#allocation2 + $0xc00]] }
 0x268   :  { %4473 = vmatprep.mubr.f32.mxu1 %v4406_v56  ;;  %7611 = vmatprep.subr.mxu0 %v4597_v53  ;;  %v12405_v39 = vpop.permute.xlu1 %4919  ;;  %v4512_v19 = vadd.f32 %v4510_v21, %v4502_v11  ;;  %v4711_v56 = vsel %vm84_vm2, %v12093_v35, %v4710_v60  ;;  %v4796_v53 = vld [vmem:[%s13839_s3 + $0x17e0] sm:$0xff]  ;;  %v4559_v35 = vrot.slane %v12222_v57, 2  ;;  %v6304_v11 = vmul.f32 %v12069_v33, %v6303_v25 }
 0x269   :  { %4474 = vmatmul.mubr.f32.vlgmr.msra.gmra.mxu1 %v4405_v48  ;;  %7612 = vmatpush3.msra.mxu0 %v4581_v51  ;;  %v12418_v23 = vpop.permute.xlu0 %5100  ;;  %v6122_v48 = vstv %s12377_s26  ;;  %v4593_v51 = vld [vmem:[%s13839_s3 + $0x16d0] sm:$0xff]  ;;  %v4591_v60 = vld [vmem:[%s13839_s3 + $0x16c0] sm:$0xff]  ;;  %v4760_v25 = vrot.slane %v12275_v2, 2  ;;  %s12592_s26 = sld [smem:[#allocation2 + $0xf86]] }
 0x26a   :  { %7644 = vmatprep.subr.mxu1 %v4799_v58  ;;  %6105 = vrot.lane.b32.xlu1 %v6103_v22, %s8018_s7  ;;  %v4522_v8 = vadd.f32 %v4520_v52, %v4512_v19  ;;  %v4703_v22 = vadd.f32 %v4701_v40, %v4693_v24  ;;  %v6123_v20 = vmul.f32 %v12069_v33, %v6122_v48  ;;  %v4794_v52 = vld [vmem:[%s13839_s3 + $0x17d0] sm:$0xff]  ;;  %v4564_v48 = vstv %s12485_s2  ;;  %v4590_v40 = vld [vmem:[%s13839_s3 + $0x16b8] sm:$0xff] }
 0x26b   :  { %6095 = vrot.lane.b32.xlu0 %v6093_v55, %s8019_s11  ;;  %7613 = vmatprep.subr.mxu0 %v4596_v15  ;;  %v4550_v58 = vsel %vm128_vm6, %v12183_v59, %v4549_v9  ;;  %v4740_v15 = vrot.slane %v12235_v47, 2  ;;  %v4731_v59 = vsel %vm106_vm4, %v12192_v29, %v4730_v44  ;;  %v4560_v46 = vsel %vm139_vm7, %v12222_v57, %v4559_v35  ;;  %v4777_v24 = vld [vmem:[%s13839_s3 + $0x1748] sm:$0xff]  ;;  %v4776_v44 = vld [vmem:[%s13839_s3 + $0x1740] sm:$0xff] }
 0x26c   :  { %7645 = vmatpush3.msra.mxu1 %v4783_v27  ;;  %7614 = vmatpush3.msra.mxu0 %v4580_v12  ;;  %v4532_v55 = vadd.f32 %v4530_v32, %v4522_v8  ;;  %v4713_v21 = vadd.f32 %v4711_v56, %v4703_v22  ;;  %v4779_v12 = vld [vmem:[%s13839_s3 + $0x1758] sm:$0xff]  ;;  %v4589_v56 = vld [vmem:[%s13839_s3 + $0x16b0] sm:$0xff]  ;;  %v6143_v35 = vmul.f32 %v12069_v33, %v6142_v43 }
 0x26d   :  { %7646 = vmatprep.subr.mxu1 %v4798_v16  ;;  %7615 = vmatprep.subr.mxu0 %v4595_v18  ;;  %v12460_v61 = vpop.permute.xlu1 %4929  ;;  %v6313_v16 = vstv %s12444_s15  ;;  %v4750_v18 = vrot.slane %v12284_v38, 2  ;;  %v4741_v57 = vsel %vm117_vm5, %v12235_v47, %v4740_v15  ;;  %v4793_v47 = vld [vmem:[%s13839_s3 + $0x17c8] sm:$0xff]  ;;  %v4574_v8 = vld [vmem:[%s13839_s3 + $0x1638] sm:$0xff]  ;;  %v4569_v43 = vld [vmem:[%s13839_s3 + $0x1610] sm:$0xff]  ;;  %s13144_s15 = sld [smem:[#allocation4 + $0x1b]] }
 0x26e   :  { %7647 = vmatpush3.msra.mxu1 %v4782_v30  ;;  %7616 = vmatpush3.msra.mxu0 %v4579_v41  ;;  %v12471_v37 = vpop.permute.xlu0 %5110  ;;  %v4542_v3 = vadd.f32 %v4540_v6, %v4532_v55  ;;  %v4723_v17 = vadd.f32 %v4721_v34, %v4713_v21  ;;  %v4575_v30 = vld [vmem:[%s13839_s3 + $0x1640] sm:$0xff]  ;;  %v6133_v41 = vmul.f32 %v12069_v33, %v6132_v1  ;;  %v4791_v22 = vld [vmem:[%s13839_s3 + $0x17b8] sm:$0xff]  ;;  %v4765_v1 = vstv %s12556_s28 }
 0x26f   :  { %7648 = vmatprep.subr.mxu1 %v4797_v54  ;;  %6115 = vrot.lane.b32.xlu1 %v6113_v49, %s8020_s22  ;;  %v4751_v32 = vsel %vm128_vm6, %v12284_v38, %v4750_v18  ;;  %v4792_v38 = vld [vmem:[%s13839_s3 + $0x17c0] sm:$0xff]  ;;  %v4761_v34 = vsel %vm139_vm7, %v12275_v2, %v4760_v25  ;;  %v4790_v2 = vld [vmem:[%s13839_s3 + $0x17b0] sm:$0xff]  ;;  %v4789_v18 = vld [vmem:[%s13839_s3 + $0x17a8] sm:$0xff] }
 0x270   :  { %6296 = vrot.lane.b32.xlu0 %v6294_v7, %s8019_s11  ;;  %7617 = vmatprep.subr.mxu0 %v4594_v4  ;;  %v4552_v29 = vadd.f32 %v4550_v58, %v4542_v3  ;;  %v4733_v19 = vadd.f32 %v4731_v59, %v4723_v17  ;;  %v6314_v7 = vmul.f32 %v12069_v33, %v6313_v16  ;;  %v4775_v58 = vld [vmem:[%s13839_s3 + $0x1738] sm:$0xff]  ;;  %v4774_v59 = vld [vmem:[%s13839_s3 + $0x1730] sm:$0xff]  ;;  %v4891_v16 = vrot.slane %v12340_v63, 2 }
 0x271   :  { %7649 = vmatpush3.msra.mxu1 %v4781_v42  ;;  %7618 = vmatpush3.msra.mxu0 %v4578_v31  ;;  %v6323_v42 = vstv %s12496_s29  ;;  %s12622_s29 = sld [smem:[#allocation2 + $0xf88]] }
 0x272   :  { %7650 = vmatprep.subr.mxu1 %v4796_v53  ;;  %7619 = vmatprep.subr.mxu0 %v4593_v51  ;;  %v12511_v27 = vpop.permute.xlu1 %4939  ;;  %v4562_v54 = vadd.f32 %v4560_v46, %v4552_v29  ;;  %v4743_v9 = vadd.f32 %v4741_v57, %v4733_v19  ;;  %v4573_v51 = vld [vmem:[%s13839_s3 + $0x1630] sm:$0xff]  ;;  %v6324_v55 = vmul.f32 %v12069_v33, %v6323_v42  ;;  %v4883_v46 = vstv %s12570_s1  ;;  %v4586_v29 = vld [vmem:[%s13839_s3 + $0x1698] sm:$0xff]  ;;  %v4773_v57 = vld [vmem:[%s13839_s3 + $0x1728] sm:$0xff]  ;;  %s12935_s1 = sld [smem:[#allocation2 + $0xd80]] }
 0x273   :  { %7651 = vmatpush3.msra.mxu1 %v4780_v26  ;;  %7620 = vmatpush3.msra.mxu0 %v4577_v5  ;;  %v12525_v49 = vpop.permute.xlu0 %5120  ;;  %v4588_v26 = vld [vmem:[%s13839_s3 + $0x16a8] sm:$0xff]  ;;  %v6152_v5 = vstv %s12534_s10  ;;  %v4901_v42 = vrot.slane %v12323_v14, 2  ;;  %s12854_s10 = sld [smem:[#allocation4 + $0x19]] }
 0x274   :  { %7652 = vmatprep.subr.mxu1 %v4795_v36  ;;  %6125 = vrot.lane.b32.xlu1 %v6123_v20, %s8021_s19  ;;  %v4565_v6 = vadd.f32 %v4564_v48, %v4562_v54  ;;  %v4753_v53 = vadd.f32 %v4751_v32, %v4743_v9  ;;  %v4572_v36 = vld [vmem:[%s13839_s3 + $0x1628] sm:$0xff]  ;;  %v4884_v54 = vmul.f32 %v12328_v0, %v4883_v46  ;;  %v4772_v32 = vld [vmem:[%s13839_s3 + $0x1720] sm:$0xff] }
 0x275   :  { %6306 = vrot.lane.b32.xlu0 %v6304_v11, %s8018_s7  ;;  %7621 = vmatprep.subr.mxu0 %v4592_v10  ;;  %v6333_v11 = vstv %s12546_s14  ;;  %v4587_v10 = vld [vmem:[%s13839_s3 + $0x16a0] sm:$0xff]  ;;  %s12865_s14 = sld [smem:[#allocation2 + $0xd00]] }
 0x276   :  { %7653 = vmatpush3.msra.mxu1 %v4779_v12  ;;  %7622 = vmatpush3.msra.mxu0 %v4576_v13  ;;  %v4566_v21 = vmax.f32 %v4565_v6, 0.0  ;;  %v4763_v3 = vadd.f32 %v4761_v34, %v4753_v53  ;;  %v4571_v12 = vld [vmem:[%s13839_s3 + $0x1620] sm:$0xff]  ;;  %v6153_v13 = vmul.f32 %v12069_v33, %v6152_v5  ;;  %v6334_v17 = vmul.f32 %v12069_v33, %v6333_v11  ;;  %v4771_v53 = vld [vmem:[%s13839_s3 + $0x1718] sm:$0xff]  ;;  %s13440_s7 = sld [smem:[#allocation2 + $0xf00]] }
 0x277   :  { %7654 = vmatprep.subr.mxu1 %v4794_v52  ;;  %7623 = vmatprep.subr.mxu0 %v4591_v60  ;;  %v12561_v4 = vpop.permute.xlu1 %4949  ;;  %v6162_v52 = vstv %s12582_s25  ;;  %v5092_v5 = vrot.slane %v12379_v45, 2  ;;  %v4583_v34 = vld [vmem:[%s13839_s3 + $0x1680] sm:$0xff] }
 0x278   :  { %7655 = vmatpush3.msra.mxu1 %v4778_v62  ;;  %7624 = vmatpush3.msra.mxu0 %v4575_v30  ;;  %v12572_v31 = vpop.permute.xlu0 %5130  ;;  %v4766_v60 = vadd.f32 %v4765_v1, %v4763_v3  ;;  %v4570_v62 = vld [vmem:[%s13839_s3 + $0x1618] sm:$0xff]  ;;  %v6343_v30 = vstv %s12592_s26  ;;  %v6163_v9 = vmul.f32 %v12069_v33, %v6162_v52  ;;  %v4921_v3 = vrot.slane %v12405_v39, 2  ;;  %s13428_s26 = sld [smem:[#allocation4 + $0x1d]] }
 0x279   :  { %7656 = vmatprep.subr.mxu1 %v4793_v47  ;;  %6135 = vrot.lane.b32.xlu1 %v6133_v41, %s8022_s9  ;;  %v12655_v41 = vrot.slane %v4566_v21, %v8589_v50  ;;  %v4788_v47 = vld [vmem:[%s13839_s3 + $0x17a0] sm:$0xff]  ;;  %v4902_v21 = vsel %vm73_vm1, %v12323_v14, %v4901_v42  ;;  %v5102_v14 = vrot.slane %v12418_v23, 2 }
 0x27a   :  { %6316 = vrot.lane.b32.xlu0 %v6314_v7, %s8020_s22  ;;  %7625 = vmatprep.subr.mxu0 %v4590_v40  ;;  %v4585_v7 = vld [vmem:[%s13839_s3 + $0x1690] sm:$0xff]  ;;  %v4892_v40 = vsel %vm62_vm0, %v12340_v63, %v4891_v16  ;;  %v4787_v63 = vld [vmem:[%s13839_s3 + $0x1798] sm:$0xff]  ;;  %v4769_v16 = vld [vmem:[%s13839_s3 + $0x1708] sm:$0xff]  ;;  %s13680_s22 = sld [smem:[#allocation4 + $0x1f]] }
 0x27b   :  { %7657 = vmatpush3.msra.mxu1 %v4777_v24  ;;  %7626 = vmatpush3.msra.mxu0 %v4574_v8  ;;  %v6344_v24 = vmul.f32 %v12069_v33, %v6343_v30  ;;  %v4767_v8 = vmax.f32 %v4766_v60, 0.0  ;;  %v4607_v25 = vcombine.high %v12655_v41, %v12655_v41  ;;  %v4894_v6 = vadd.f32 %v4892_v40, %v4884_v54 }
 0x27c   :  { %7658 = vmatprep.subr.mxu1 %v4792_v38  ;;  %7627 = vmatprep.subr.mxu0 %v4589_v56  ;;  %v12602_v20 = vpop.permute.xlu1 %4959  ;;  %v4584_v38 = vld [vmem:[%s13839_s3 + $0x1688] sm:$0xff]  ;;  %v6363_v56 = vstv %s12622_s29  ;;  %v4922_v60 = vsel %vm95_vm3, %v12405_v39, %v4921_v3  ;;  %v4941_v30 = vrot.slane %v12511_v27, 2  ;;  %v5103_v39 = vsel %vm73_vm1, %v12418_v23, %v5102_v14  ;;  %v4995_v14 = vld [vmem:[%s13839_s3 + $0x18d0] sm:$0xff] }
 0x27d   :  { %7659 = vmatpush3.msra.mxu1 %v4776_v44  ;;  %7628 = vmatpush3.msra.mxu0 %v4573_v51  ;;  %v12613_v15 = vpop.permute.xlu0 %5140  ;;  %v6353_v44 = vstv %s12633_s18  ;;  %v4911_v51 = vrot.slane %v12367_v28, 2  ;;  %v5122_v40 = vrot.slane %v12525_v49, 2  ;;  %v4951_v23 = vrot.slane %v12561_v4, 2 }
 0x27e   :  { %7660 = vmatprep.subr.mxu1 %v4791_v22  ;;  %6145 = vrot.lane.b32.xlu1 %v6143_v35, %s8023_s27  ;;  %v4568_v35 = vld [vmem:[%s13839_s3 + $0x1608] sm:$0xff]  ;;  %v4786_v22 = vld [vmem:[%s13839_s3 + $0x1790] sm:$0xff]  ;;  %v6354_v1 = vmul.f32 %v12069_v33, %v6353_v44 }
 0x27f   :  { %6326 = vrot.lane.b32.xlu0 %v6324_v55, %s8021_s19  ;;  %7629 = vmatprep.subr.mxu0 %v4588_v26  ;;  %v5084_v26 = vstv %s12644_s23  ;;  %v5200_v44 = vld [vmem:[%s13839_s3 + $0x19f0] sm:$0xff]  ;;  %s13368_s23 = sld [smem:[#allocation4 + $0x1c]] }
 0x280   :  { %7661 = vmatpush3.msra.mxu1 %v4775_v58  ;;  %7630 = vmatpush3.msra.mxu0 %v4572_v36  ;;  %v4770_v58 = vld [vmem:[%s13839_s3 + $0x1710] sm:$0xff]  ;;  %v6364_v36 = vmul.f32 %v12069_v33, %v6363_v56  ;;  %v5085_v46 = vmul.f32 %v12328_v0, %v5084_v26  ;;  %v4931_v33 = vrot.slane %v12460_v61, 2  ;;  %v4961_v56 = vrot.slane %v12602_v20, 2 }
 0x281   :  { %7662 = vmatprep.subr.mxu1 %v4790_v2  ;;  %7631 = vmatprep.subr.mxu0 %v4587_v10  ;;  %v4567_v2 = vld [vmem:[%s13839_s3 + $0x1600] sm:$0xff]  ;;  %v4785_v10 = vld [vmem:[%s13839_s3 + $0x1788] sm:$0xff] }
 0x282   :  { %7663 = vmatpush3.msra.mxu1 %v4774_v59  ;;  %7632 = vmatpush3.msra.mxu0 %v4571_v12  ;;  %v12657_v19 = vpop.permute.xlu1 %5160  ;;  %v12667_v48 = vpop.permute.xlu0 %5150  ;;  %v4807_v59 = vrot.slane %v4767_v8, %v8589_v50  ;;  %v4904_v12 = vadd.f32 %v4902_v21, %v4894_v6  ;;  %v5132_v8 = vrot.slane %v12572_v31, 2  ;;  %v4996_v21 = vld [vmem:[%s13839_s3 + $0x18d8] sm:$0xff] }
 0x283   :  { %7664 = vmatprep.subr.mxu1 %v4789_v18  ;;  %6155 = vrot.lane.b32.xlu1 %v6153_v13, %s8024_s13  ;;  %v4912_v13 = vsel %vm84_vm2, %v12367_v28, %v4911_v51  ;;  %v5093_v18 = vsel %vm62_vm0, %v12379_v45, %v5092_v5  ;;  %v4784_v28 = vld [vmem:[%s13839_s3 + $0x1780] sm:$0xff]  ;;  %v4984_v45 = vld [vmem:[%s13839_s3 + $0x1878] sm:$0xff]  ;;  %v5123_v51 = vsel %vm95_vm3, %v12525_v49, %v5122_v40  ;;  %v5184_v5 = vld [vmem:[%s13839_s3 + $0x1970] sm:$0xff] }
 0x284   :  { %6336 = vrot.lane.b32.xlu0 %v6334_v17, %s8022_s9  ;;  %7633 = vmatprep.subr.mxu0 %v4586_v29  ;;  %v5000_v17 = vld [vmem:[%s13839_s3 + $0x18f8] sm:$0xff]  ;;  %v5112_v29 = vrot.slane %v12471_v37, 2  ;;  %v4952_v49 = vsel %vm128_vm6, %v12561_v4, %v4951_v23  ;;  %v5133_v3 = vsel %vm106_vm4, %v12572_v31, %v5132_v8  ;;  %v5183_v4 = vld [vmem:[%s13839_s3 + $0x1968] sm:$0xff]  ;;  %v5198_v31 = vld [vmem:[%s13839_s3 + $0x19e0] sm:$0xff] }
 0x285   :  { %7665 = vmatpush3.msra.mxu1 %v4773_v57  ;;  %7634 = vmatpush3.msra.mxu0 %v4570_v62  ;;  %v4768_v57 = vld [vmem:[%s13839_s3 + $0x1700] sm:$0xff]  ;;  %v4808_v62 = vcombine.high %v4807_v59, %v4807_v59  ;;  %v4992_v23 = vld [vmem:[%s13839_s3 + $0x18b8] sm:$0xff] }
 0x286   :  { %7666 = vmatprep.subr.mxu1 %v4788_v47  ;;  %7635 = vmatprep.subr.mxu0 %v4585_v7  ;;  %v4914_v47 = vadd.f32 %v4912_v13, %v4904_v12  ;;  %v4999_v7 = vld [vmem:[%s13839_s3 + $0x18f0] sm:$0xff] }
 0x287   :  { %7667 = vmatpush3.msra.mxu1 %v4772_v32  ;;  %7636 = vmatpush3.msra.mxu0 %v4569_v43  ;;  %v5095_v32 = vadd.f32 %v5093_v18, %v5085_v46  ;;  %v4932_v43 = vsel %vm106_vm4, %v12460_v61, %v4931_v33  ;;  %v4998_v61 = vld [vmem:[%s13839_s3 + $0x18e8] sm:$0xff]  ;;  %v4979_v33 = vld [vmem:[%s13839_s3 + $0x1850] sm:$0xff] }
 0x288   :  { %7668 = vmatprep.subr.mxu1 %v4787_v63  ;;  %6165 = vrot.lane.b32.xlu1 %v6163_v9, %s8025_s17  ;;  %v12702_v55 = vpop.permute.xlu1 %5301  ;;  %v4983_v9 = vld [vmem:[%s13839_s3 + $0x1870] sm:$0xff]  ;;  %v5113_v63 = vsel %vm84_vm2, %v12471_v37, %v5112_v29  ;;  %v4982_v37 = vld [vmem:[%s13839_s3 + $0x1868] sm:$0xff] }
 0x289   :  { %6346 = vrot.lane.b32.xlu0 %v6344_v24, %s8023_s27  ;;  %7637 = vmatprep.subr.mxu0 %v4584_v38  ;;  %v12714_v11 = vpop.permute.xlu0 %5291  ;;  %v5201_v24 = vld [vmem:[%s13839_s3 + $0x19f8] sm:$0xff]  ;;  %v5105_v42 = vadd.f32 %v5103_v39, %v5095_v32  ;;  %s12789_s27 = sld [smem:[#allocation4 + $0x18]]  ;;  %v5180_v39 = vld [vmem:[%s13839_s3 + $0x1950] sm:$0xff] }
 0x28a   :  { %4674 = vmatprep.mubr.f32.mxu0 %v4607_v25  ;;  %7669 = vmatpush3.msra.mxu1 %v4771_v53  ;;  %v5185_v38 = vld [vmem:[%s13839_s3 + $0x1978] sm:$0xff]  ;;  %v4942_v25 = vsel %vm117_vm5, %v12511_v27, %v4941_v30  ;;  %v4997_v27 = vld [vmem:[%s13839_s3 + $0x18e0] sm:$0xff] }
 0x28b   :  { %7638 = vmatpush3.msra.mxu0 %v4568_v35  ;;  %7670 = vmatprep.subr.mxu1 %v4786_v22  ;;  %v5142_v35 = vrot.slane %v12613_v15, 2  ;;  %v5115_v26 = vadd.f32 %v5113_v63, %v5105_v42  ;;  %v4993_v30 = vld [vmem:[%s13839_s3 + $0x18c0] sm:$0xff]  ;;  %v5179_v63 = vld [vmem:[%s13839_s3 + $0x1948] sm:$0xff]  ;;  %v4991_v42 = vld [vmem:[%s13839_s3 + $0x18b0] sm:$0xff] }
 0x28c   :  { %7639 = vmatprep.subr.mxu0 %v4583_v34  ;;  %7671 = vmatpush3.msra.mxu1 %v4770_v58  ;;  %v4981_v34 = vld [vmem:[%s13839_s3 + $0x1860] sm:$0xff] }
 0x28d   :  { %7640 = vmatpush3.msra.mxu0 %v4567_v2  ;;  %7672 = vmatprep.subr.mxu1 %v4785_v10  ;;  %v12744_v52 = vpop.permute.xlu1 %5311  ;;  %v5152_v2 = vrot.slane %v12667_v48, 2  ;;  %v5125_v10 = vadd.f32 %v5123_v51, %v5115_v26  ;;  %v5143_v13 = vsel %vm117_vm5, %v12613_v15, %v5142_v35  ;;  %v5197_v15 = vld [vmem:[%s13839_s3 + $0x19d8] sm:$0xff]  ;;  %v4974_v35 = vld [vmem:[%s13839_s3 + $0x1828] sm:$0xff]  ;;  %v5285_v26 = vstv %s12865_s14 }
 0x28e   :  { %6366 = vrot.lane.b32.xlu1 %v6364_v36, %s8025_s17  ;;  %6356 = vrot.lane.b32.xlu0 %v6354_v1, %s8024_s13  ;;  %v12757_v54 = vpop.permute.xlu0 %5492  ;;  %v5199_v36 = vld [vmem:[%s13839_s3 + $0x19e8] sm:$0xff]  ;;  %v4980_v1 = vld [vmem:[%s13839_s3 + $0x1858] sm:$0xff]  ;;  %s13155_s13 = sld [smem:[#allocation2 + $0xe00]] }
 0x28f   :  { %4675 = vmatmul.mubr.f32.vlgmr.msra.gmra.mxu0 %v12655_v41  ;;  %7673 = vmatpush3.msra.mxu1 %v4769_v16  ;;  %v4924_v41 = vadd.f32 %v4922_v60, %v4914_v47  ;;  %v5182_v16 = vld [vmem:[%s13839_s3 + $0x1960] sm:$0xff]  ;;  %v5153_v29 = vsel %vm128_vm6, %v12667_v48, %v5152_v2  ;;  %v5181_v60 = vld [vmem:[%s13839_s3 + $0x1958] sm:$0xff]  ;;  %v5196_v48 = vld [vmem:[%s13839_s3 + $0x19d0] sm:$0xff]  ;;  %v5162_v47 = vrot.slane %v12657_v19, 2  ;;  %v5286_v2 = vmul.f32 %v12328_v0, %v5285_v26 }
 0x290   :  { %7679 = vmatprep.subr.mxu0 %v5000_v17  ;;  %7674 = vmatprep.subr.mxu1 %v4784_v28  ;;  %v4994_v17 = vld [vmem:[%s13839_s3 + $0x18c8] sm:$0xff] }
 0x291   :  { %7680 = vmatpush3.msra.mxu0 %v4984_v45  ;;  %7675 = vmatpush3.msra.mxu1 %v4768_v57  ;;  %v4934_v53 = vadd.f32 %v4932_v43, %v4924_v41  ;;  %v4978_v45 = vld [vmem:[%s13839_s3 + $0x1848] sm:$0xff]  ;;  %v4966_v57 = vstv %s12789_s27  ;;  %v5163_v8 = vsel %vm139_vm7, %v12657_v19, %v5162_v47  ;;  %v5167_v19 = vstv %s12854_s10  ;;  %v5188_v47 = vld [vmem:[%s13839_s3 + $0x1990] sm:$0xff] }
 0x292   :  { %4875 = vmatprep.mubr.f32.mxu1 %v4808_v62  ;;  %7681 = vmatprep.subr.mxu0 %v4999_v7  ;;  %v12792_v6 = vpop.permute.xlu1 %5321  ;;  %v4977_v7 = vld [vmem:[%s13839_s3 + $0x1840] sm:$0xff]  ;;  %v5175_v0 = vld [vmem:[%s13839_s3 + $0x1928] sm:$0xff] }
 0x293   :  { %4876 = vmatmul.mubr.f32.vlgmr.msra.gmra.mxu1 %v4807_v59  ;;  %7682 = vmatpush3.msra.mxu0 %v4983_v9  ;;  %v12803_v22 = vpop.permute.xlu0 %5502  ;;  %v4944_v58 = vadd.f32 %v4942_v25, %v4934_v53  ;;  %v4962_v59 = vsel %vm139_vm7, %v12602_v20, %v4961_v56  ;;  %v5135_v20 = vadd.f32 %v5133_v3, %v5125_v10  ;;  %v5195_v9 = vld [vmem:[%s13839_s3 + $0x19c8] sm:$0xff]  ;;  %v4975_v25 = vld [vmem:[%s13839_s3 + $0x1830] sm:$0xff]  ;;  %v5193_v53 = vld [vmem:[%s13839_s3 + $0x19b8] sm:$0xff] }
 0x294   :  { %7714 = vmatprep.subr.mxu1 %v5201_v24  ;;  %7683 = vmatprep.subr.mxu0 %v4998_v61  ;;  %v4976_v24 = vld [vmem:[%s13839_s3 + $0x1838] sm:$0xff]  ;;  %v5194_v61 = vld [vmem:[%s13839_s3 + $0x19c0] sm:$0xff]  ;;  %v5191_v10 = vld [vmem:[%s13839_s3 + $0x19a8] sm:$0xff] }
 0x295   :  { %7715 = vmatpush3.msra.mxu1 %v5185_v38  ;;  %7684 = vmatpush3.msra.mxu0 %v4982_v37  ;;  %v4954_v12 = vadd.f32 %v4952_v49, %v4944_v58  ;;  %v5145_v62 = vadd.f32 %v5143_v13, %v5135_v20  ;;  %v5178_v37 = vld [vmem:[%s13839_s3 + $0x1940] sm:$0xff]  ;;  %v5192_v49 = vld [vmem:[%s13839_s3 + $0x19b0] sm:$0xff] }
 0x296   :  { %7716 = vmatprep.subr.mxu1 %v5200_v44  ;;  %7685 = vmatprep.subr.mxu0 %v4997_v27  ;;  %v4990_v44 = vld [vmem:[%s13839_s3 + $0x18a8] sm:$0xff]  ;;  %v5177_v27 = vld [vmem:[%s13839_s3 + $0x1938] sm:$0xff]  ;;  %v4989_v58 = vld [vmem:[%s13839_s3 + $0x18a0] sm:$0xff] }
 0x297   :  { %7717 = vmatpush3.msra.mxu1 %v5184_v5  ;;  %7686 = vmatpush3.msra.mxu0 %v4981_v34  ;;  %v12838_v46 = vpop.permute.xlu1 %5331  ;;  %v4964_v28 = vadd.f32 %v4962_v59, %v4954_v12  ;;  %v5155_v40 = vadd.f32 %v5153_v29, %v5145_v62  ;;  %v5293_v5 = vrot.slane %v12714_v11, 2  ;;  %v4973_v3 = vld [vmem:[%s13839_s3 + $0x1820] sm:$0xff]  ;;  %v4986_v29 = vld [vmem:[%s13839_s3 + $0x1888] sm:$0xff]  ;;  %v5486_v62 = vstv %s12935_s1  ;;  %s13523_s1 = sld [smem:[#allocation2 + $0xf80]] }
 0x298   :  { %7718 = vmatprep.subr.mxu1 %v5199_v36  ;;  %7687 = vmatprep.subr.mxu0 %v4996_v21  ;;  %v12846_v18 = vpop.permute.xlu0 %5512  ;;  %v5176_v21 = vld [vmem:[%s13839_s3 + $0x1930] sm:$0xff] }
 0x299   :  { %7719 = vmatpush3.msra.mxu1 %v5183_v4  ;;  %7688 = vmatpush3.msra.mxu0 %v4980_v1  ;;  %v4967_v43 = vadd.f32 %v4966_v57, %v4964_v28  ;;  %v5165_v38 = vadd.f32 %v5163_v8, %v5155_v40  ;;  %v4988_v4 = vld [vmem:[%s13839_s3 + $0x1898] sm:$0xff]  ;;  %v5294_v59 = vsel %vm62_vm0, %v12714_v11, %v5293_v5  ;;  %v4987_v11 = vld [vmem:[%s13839_s3 + $0x1890] sm:$0xff]  ;;  %v4985_v40 = vld [vmem:[%s13839_s3 + $0x1880] sm:$0xff] }
 0x29a   :  { %7720 = vmatprep.subr.mxu1 %v5198_v31  ;;  %7689 = vmatprep.subr.mxu0 %v4995_v14  ;;  %v4972_v31 = vld [vmem:[%s13839_s3 + $0x1818] sm:$0xff]  ;;  %v5190_v14 = vld [vmem:[%s13839_s3 + $0x19a0] sm:$0xff] }
 0x29b   :  { %7721 = vmatpush3.msra.mxu1 %v5182_v16  ;;  %7690 = vmatpush3.msra.mxu0 %v4979_v33  ;;  %v4968_v56 = vmax.f32 %v4967_v43, 0.0  ;;  %v5168_v36 = vadd.f32 %v5167_v19, %v5165_v38  ;;  %v5303_v16 = vrot.slane %v12702_v55, 2  ;;  %v5174_v33 = vld [vmem:[%s13839_s3 + $0x1920] sm:$0xff]  ;;  %v5189_v28 = vld [vmem:[%s13839_s3 + $0x1998] sm:$0xff]  ;;  %v5172_v43 = vld [vmem:[%s13839_s3 + $0x1910] sm:$0xff] }
 0x29c   :  { %7722 = vmatprep.subr.mxu1 %v5197_v15  ;;  %7691 = vmatprep.subr.mxu0 %v4994_v17  ;;  %v12880_v32 = vpop.permute.xlu1 %5341  ;;  %v4971_v15 = vld [vmem:[%s13839_s3 + $0x1810] sm:$0xff]  ;;  %v5296_v17 = vadd.f32 %v5294_v59, %v5286_v2  ;;  %v5173_v57 = vld [vmem:[%s13839_s3 + $0x1918] sm:$0xff]  ;;  %v13024_v38 = vld [vmem:[%s13836_s0] sm:$0xf] }
 0x29d   :  { %7723 = vmatpush3.msra.mxu1 %v5181_v60  ;;  %7692 = vmatpush3.msra.mxu0 %v4978_v45  ;;  %v12888_v41 = vpop.permute.xlu0 %5522  ;;  %v12951_v1 = vrot.slane %v4968_v56, %v8589_v50  ;;  %v5169_v20 = vmax.f32 %v5168_v36, 0.0  ;;  %v5313_v45 = vrot.slane %v12744_v52, 2  ;;  %v5333_v56 = vrot.slane %v12838_v46, 2  ;;  %v5385_v2 = vld [vmem:[%s13839_s3 + $0x1a70] sm:$0xff]  ;;  %v5603_v59 = vld [vmem:[%s13839_s3 + $0x1bf8] sm:$0xff] }
 0x29e   :  { %7724 = vmatprep.subr.mxu1 %v5196_v48  ;;  %7693 = vmatprep.subr.mxu0 %v4993_v30  ;;  %v5494_v48 = vrot.slane %v12757_v54, 2  ;;  %v4970_v30 = vld [vmem:[%s13839_s3 + $0x1808] sm:$0xff]  ;;  %v5343_v5 = vrot.slane %v12880_v32, 2  ;;  %v5524_v36 = vrot.slane %v12888_v41, 2 }
 0x29f   :  { %7725 = vmatpush3.msra.mxu1 %v5180_v39  ;;  %7694 = vmatpush3.msra.mxu0 %v4977_v7  ;;  %v5009_v60 = vcombine.high %v12951_v1, %v12951_v1  ;;  %v5304_v39 = vsel %vm73_vm1, %v12702_v55, %v5303_v16  ;;  %v5323_v7 = vrot.slane %v12792_v6, 2  ;;  %v5504_v55 = vrot.slane %v12803_v22, 2 }
 0x2a0   :  { %7726 = vmatprep.subr.mxu1 %v5195_v9  ;;  %7695 = vmatprep.subr.mxu0 %v4992_v23  ;;  %v5209_v9 = vrot.slane %v5169_v20, %v8589_v50  ;;  %v5495_v19 = vsel %vm62_vm0, %v12757_v54, %v5494_v48  ;;  %v5386_v54 = vld [vmem:[%s13839_s3 + $0x1a78] sm:$0xff]  ;;  %v5344_v20 = vsel %vm117_vm5, %v12880_v32, %v5343_v5  ;;  %v5582_v5 = vld [vmem:[%s13839_s3 + $0x1b50] sm:$0xff] }
 0x2a1   :  { %7727 = vmatpush3.msra.mxu1 %v5179_v63  ;;  %7696 = vmatpush3.msra.mxu0 %v4976_v24  ;;  %v12917_v51 = vpop.permute.xlu1 %5351  ;;  %v5306_v63 = vadd.f32 %v5304_v39, %v5296_v17  ;;  %v4969_v24 = vld [vmem:[%s13839_s3 + $0x1800] sm:$0xff]  ;;  %v5525_v17 = vsel %vm95_vm3, %v12888_v41, %v5524_v36  ;;  %v5398_v48 = vld [vmem:[%s13839_s3 + $0x1ad8] sm:$0xff]  ;;  %v5597_v36 = vld [vmem:[%s13839_s3 + $0x1bc8] sm:$0xff] }
 0x2a2   :  { %7728 = vmatprep.subr.mxu1 %v5194_v61  ;;  %7697 = vmatprep.subr.mxu0 %v4991_v42  ;;  %v12927_v34 = vpop.permute.xlu0 %5532  ;;  %v5187_v61 = vld [vmem:[%s13839_s3 + $0x1988] sm:$0xff]  ;;  %v5314_v42 = vsel %vm84_vm2, %v12744_v52, %v5313_v45  ;;  %v5402_v52 = vld [vmem:[%s13839_s3 + $0x1af8] sm:$0xff]  ;;  %v5210_v26 = vcombine.high %v5209_v9, %v5209_v9  ;;  %v5383_v45 = vld [vmem:[%s13839_s3 + $0x1a60] sm:$0xff] }
 0x2a3   :  { %7729 = vmatpush3.msra.mxu1 %v5178_v37  ;;  %7698 = vmatpush3.msra.mxu0 %v4975_v25  ;;  %v5487_v37 = vmul.f32 %v13024_v38, %v5486_v62  ;;  %v5171_v25 = vld [vmem:[%s13839_s3 + $0x1908] sm:$0xff] }
 0x2a4   :  { %7730 = vmatprep.subr.mxu1 %v5193_v53  ;;  %7699 = vmatprep.subr.mxu0 %v4990_v44  ;;  %v5186_v53 = vld [vmem:[%s13839_s3 + $0x1980] sm:$0xff]  ;;  %v5514_v44 = vrot.slane %v12846_v18, 2  ;;  %v5601_v62 = vld [vmem:[%s13839_s3 + $0x1be8] sm:$0xff] }
 0x2a5   :  { %7731 = vmatpush3.msra.mxu1 %v5177_v27  ;;  %7700 = vmatpush3.msra.mxu0 %v4974_v35  ;;  %v5324_v27 = vsel %vm95_vm3, %v12792_v6, %v5323_v7  ;;  %v5170_v35 = vld [vmem:[%s13839_s3 + $0x1900] sm:$0xff]  ;;  %v5401_v6 = vld [vmem:[%s13839_s3 + $0x1af0] sm:$0xff]  ;;  %v5585_v7 = vld [vmem:[%s13839_s3 + $0x1b68] sm:$0xff] }
 0x2a6   :  { %7732 = vmatprep.subr.mxu1 %v5192_v49  ;;  %7701 = vmatprep.subr.mxu0 %v4989_v58  ;;  %v12961_v12 = vpop.permute.xlu1 %5361  ;;  %v5316_v49 = vadd.f32 %v5314_v42, %v5306_v63  ;;  %v5505_v58 = vsel %vm73_vm1, %v12803_v22, %v5504_v55  ;;  %v5353_v22 = vrot.slane %v12917_v51, 2  ;;  %v5397_v55 = vld [vmem:[%s13839_s3 + $0x1ad0] sm:$0xff] }
 0x2a7   :  { %7733 = vmatpush3.msra.mxu1 %v5176_v21  ;;  %7702 = vmatpush3.msra.mxu0 %v4973_v3  ;;  %v12969_v13 = vpop.permute.xlu0 %5542  ;;  %v5497_v21 = vadd.f32 %v5495_v19, %v5487_v37  ;;  %v5334_v3 = vsel %vm106_vm4, %v12838_v46, %v5333_v56  ;;  %v5400_v46 = vld [vmem:[%s13839_s3 + $0x1ae8] sm:$0xff]  ;;  %v5363_v16 = vrot.slane %v12961_v12, 2  ;;  %v5381_v42 = vld [vmem:[%s13839_s3 + $0x1a50] sm:$0xff]  ;;  %v5599_v37 = vld [vmem:[%s13839_s3 + $0x1bd8] sm:$0xff] }
 0x2a8   :  { %7734 = vmatprep.subr.mxu1 %v5191_v10  ;;  %7703 = vmatprep.subr.mxu0 %v4988_v4  ;;  %v5326_v4 = vadd.f32 %v5324_v27, %v5316_v49  ;;  %v5544_v32 = vrot.slane %v12969_v13, 2  ;;  %v5354_v41 = vsel %vm128_vm6, %v12917_v51, %v5353_v22  ;;  %v5583_v19 = vld [vmem:[%s13839_s3 + $0x1b58] sm:$0xff]  ;;  %v5379_v49 = vld [vmem:[%s13839_s3 + $0x1a40] sm:$0xff] }
 0x2a9   :  { %7735 = vmatpush3.msra.mxu1 %v5175_v0  ;;  %7704 = vmatpush3.msra.mxu0 %v4972_v31  ;;  %v5534_v0 = vrot.slane %v12927_v34, 2  ;;  %v5596_v22 = vld [vmem:[%s13839_s3 + $0x1bc0] sm:$0xff] }
 0x2aa   :  { %7736 = vmatprep.subr.mxu1 %v5190_v14  ;;  %7705 = vmatprep.subr.mxu0 %v4987_v11  ;;  %v5507_v14 = vadd.f32 %v5505_v58, %v5497_v21  ;;  %v5384_v11 = vld [vmem:[%s13839_s3 + $0x1a68] sm:$0xff]  ;;  %v5394_v21 = vld [vmem:[%s13839_s3 + $0x1ab8] sm:$0xff] }
 0x2ab   :  { %7737 = vmatpush3.msra.mxu1 %v5174_v33  ;;  %7706 = vmatpush3.msra.mxu0 %v4971_v15  ;;  %v5336_v33 = vadd.f32 %v5334_v3, %v5326_v4  ;;  %v5602_v15 = vld [vmem:[%s13839_s3 + $0x1bf0] sm:$0xff]  ;;  %v5581_v3 = vld [vmem:[%s13839_s3 + $0x1b48] sm:$0xff] }
 0x2ac   :  { %7738 = vmatprep.subr.mxu1 %v5189_v28  ;;  %7707 = vmatprep.subr.mxu0 %v4986_v29  ;;  %v13008_v23 = vpop.permute.xlu1 %5562  ;;  %v13017_v8 = vpop.permute.xlu0 %5552  ;;  %v5399_v28 = vld [vmem:[%s13839_s3 + $0x1ae0] sm:$0xff] }
 0x2ad   :  { %5076 = vmatprep.mubr.f32.mxu0 %v5009_v60  ;;  %7739 = vmatpush3.msra.mxu1 %v5173_v57  ;;  %v5586_v60 = vld [vmem:[%s13839_s3 + $0x1b70] sm:$0xff]  ;;  %v5346_v57 = vadd.f32 %v5344_v20, %v5336_v33  ;;  %v5595_v20 = vld [vmem:[%s13839_s3 + $0x1bb8] sm:$0xff] }
 0x2ae   :  { %7708 = vmatpush3.msra.mxu0 %v4970_v30  ;;  %7740 = vmatprep.subr.mxu1 %v5188_v47  ;;  %v5535_v30 = vsel %vm106_vm4, %v12927_v34, %v5534_v0  ;;  %v5554_v47 = vrot.slane %v13017_v8, 2  ;;  %v5600_v34 = vld [vmem:[%s13839_s3 + $0x1be0] sm:$0xff]  ;;  %v5579_v33 = vld [vmem:[%s13839_s3 + $0x1b38] sm:$0xff] }
 0x2af   :  { %7709 = vmatprep.subr.mxu0 %v4985_v40  ;;  %7741 = vmatpush3.msra.mxu1 %v5172_v43  ;;  %v5382_v40 = vld [vmem:[%s13839_s3 + $0x1a58] sm:$0xff]  ;;  %v5364_v43 = vsel %vm139_vm7, %v12961_v12, %v5363_v16  ;;  %v5356_v63 = vadd.f32 %v5354_v41, %v5346_v57  ;;  %v5580_v0 = vld [vmem:[%s13839_s3 + $0x1b40] sm:$0xff]  ;;  %v5392_v16 = vld [vmem:[%s13839_s3 + $0x1aa8] sm:$0xff] }
 0x2b0   :  { %7710 = vmatpush3.msra.mxu0 %v4969_v24  ;;  %7742 = vmatprep.subr.mxu1 %v5187_v61  ;;  %v5545_v24 = vsel %vm117_vm5, %v12969_v13, %v5544_v32  ;;  %v5584_v61 = vld [vmem:[%s13839_s3 + $0x1b60] sm:$0xff]  ;;  %v5396_v13 = vld [vmem:[%s13839_s3 + $0x1ac8] sm:$0xff]  ;;  %v5555_v56 = vsel %vm128_vm6, %v13017_v8, %v5554_v47  ;;  %v5598_v8 = vld [vmem:[%s13839_s3 + $0x1bd0] sm:$0xff] }
 0x2b1   :  { %5077 = vmatmul.mubr.f32.vlgmr.msra.gmra.mxu0 %v12951_v1  ;;  %7743 = vmatpush3.msra.mxu1 %v5171_v25  ;;  %v5515_v1 = vsel %vm84_vm2, %v12846_v18, %v5514_v44  ;;  %v5587_v18 = vld [vmem:[%s13839_s3 + $0x1b78] sm:$0xff]  ;;  %v5366_v25 = vadd.f32 %v5364_v43, %v5356_v63  ;;  %v5594_v32 = vld [vmem:[%s13839_s3 + $0x1bb0] sm:$0xff]  ;;  %v5375_v41 = vld [vmem:[%s13839_s3 + $0x1a20] sm:$0xff] }
 0x2b2   :  { %7749 = vmatprep.subr.mxu0 %v5402_v52  ;;  %7744 = vmatprep.subr.mxu1 %v5186_v53  ;;  %v13062_v10 = vpop.permute.xlu1 %5703  ;;  %v5517_v29 = vadd.f32 %v5515_v1, %v5507_v14  ;;  %v5380_v52 = vld [vmem:[%s13839_s3 + $0x1a48] sm:$0xff]  ;;  %v5368_v53 = vstv %s13083_s8  ;;  %v5393_v1 = vld [vmem:[%s13839_s3 + $0x1ab0] sm:$0xff]  ;;  %v5374_v43 = vld [vmem:[%s13839_s3 + $0x1a18] sm:$0xff] }
 0x2b3   :  { %7750 = vmatpush3.msra.mxu0 %v5386_v54  ;;  %7745 = vmatpush3.msra.mxu1 %v5170_v35  ;;  %v13073_v31 = vpop.permute.xlu0 %5693  ;;  %v5395_v54 = vld [vmem:[%s13839_s3 + $0x1ac0] sm:$0xff]  ;;  %v5564_v35 = vrot.slane %v13008_v23, 2  ;;  %v5377_v14 = vld [vmem:[%s13839_s3 + $0x1a30] sm:$0xff] }
 0x2b4   :  { %5277 = vmatprep.mubr.f32.mxu1 %v5210_v26  ;;  %7751 = vmatprep.subr.mxu0 %v5401_v6  ;;  %v5527_v51 = vadd.f32 %v5525_v17, %v5517_v29  ;;  %v5369_v6 = vadd.f32 %v5368_v53, %v5366_v25  ;;  %v5687_v17 = vstv %s13155_s13  ;;  %v5391_v29 = vld [vmem:[%s13839_s3 + $0x1aa0] sm:$0xff]  ;;  %v5389_v63 = vld [vmem:[%s13839_s3 + $0x1a90] sm:$0xff]  ;;  %v5888_v53 = vstv %s13225_s21  ;;  %s13641_s21 = sld [smem:[#allocation4 + $0x1e]] }
 0x2b5   :  { %5278 = vmatmul.mubr.f32.vlgmr.msra.gmra.mxu1 %v5209_v9  ;;  %7752 = vmatpush3.msra.mxu0 %v5385_v2  ;;  %v5378_v2 = vld [vmem:[%s13839_s3 + $0x1a38] sm:$0xff]  ;;  %v5565_v4 = vsel %vm139_vm7, %v13008_v23, %v5564_v35 }
 0x2b6   :  { %7784 = vmatprep.subr.mxu1 %v5603_v59  ;;  %7753 = vmatprep.subr.mxu0 %v5400_v46  ;;  %v5537_v12 = vadd.f32 %v5535_v30, %v5527_v51  ;;  %v5370_v23 = vmax.f32 %v5369_v6, 0.0  ;;  %v5390_v30 = vld [vmem:[%s13839_s3 + $0x1a98] sm:$0xff] }
 0x2b7   :  { %7785 = vmatpush3.msra.mxu1 %v5587_v18  ;;  %7754 = vmatpush3.msra.mxu0 %v5384_v11  ;;  %v13112_v39 = vpop.permute.xlu1 %5713  ;;  %v5569_v11 = vstv %s13144_s15 }
 0x2b8   :  { %7786 = vmatprep.subr.mxu1 %v5602_v15  ;;  %7755 = vmatprep.subr.mxu0 %v5399_v28  ;;  %v13122_v9 = vpop.permute.xlu0 %5894  ;;  %v5547_v44 = vadd.f32 %v5545_v24, %v5537_v12  ;;  %v5376_v15 = vld [vmem:[%s13839_s3 + $0x1a28] sm:$0xff]  ;;  %v5695_v28 = vrot.slane %v13073_v31, 2  ;;  %v13243_v47 = vrot.slane %v5370_v23, %v8589_v50  ;;  %v5576_v24 = vld [vmem:[%s13839_s3 + $0x1b20] sm:$0xff]  ;;  %v5373_v12 = vld [vmem:[%s13839_s3 + $0x1a10] sm:$0xff] }
 0x2b9   :  { %7787 = vmatpush3.msra.mxu1 %v5586_v60  ;;  %7756 = vmatpush3.msra.mxu0 %v5383_v45  ;;  %v5578_v45 = vld [vmem:[%s13839_s3 + $0x1b30] sm:$0xff] }
 0x2ba   :  { %7788 = vmatprep.subr.mxu1 %v5601_v62  ;;  %7757 = vmatprep.subr.mxu0 %v5398_v48  ;;  %v5557_v58 = vadd.f32 %v5555_v56, %v5547_v44  ;;  %v5688_v62 = vmul.f32 %v13024_v38, %v5687_v17  ;;  %v5593_v48 = vld [vmem:[%s13839_s3 + $0x1ba8] sm:$0xff]  ;;  %v5715_v56 = vrot.slane %v13112_v39, 2  ;;  %v5896_v44 = vrot.slane %v13122_v9, 2 }
 0x2bb   :  { %7789 = vmatpush3.msra.mxu1 %v5585_v7  ;;  %7758 = vmatpush3.msra.mxu0 %v5382_v40  ;;  %v5696_v7 = vsel %vm62_vm0, %v13073_v31, %v5695_v28  ;;  %v5577_v40 = vld [vmem:[%s13839_s3 + $0x1b28] sm:$0xff] }
 0x2bc   :  { %7790 = vmatprep.subr.mxu1 %v5600_v34  ;;  %7759 = vmatprep.subr.mxu0 %v5397_v55  ;;  %v13157_v27 = vpop.permute.xlu1 %5723  ;;  %v5567_v46 = vadd.f32 %v5565_v4, %v5557_v58  ;;  %v5592_v34 = vld [vmem:[%s13839_s3 + $0x1ba0] sm:$0xff]  ;;  %v5705_v55 = vrot.slane %v13062_v10, 2  ;;  %v5574_v58 = vld [vmem:[%s13839_s3 + $0x1b10] sm:$0xff]  ;;  %v5573_v4 = vld [vmem:[%s13839_s3 + $0x1b08] sm:$0xff] }
 0x2bd   :  { %7791 = vmatpush3.msra.mxu1 %v5584_v61  ;;  %7760 = vmatpush3.msra.mxu0 %v5381_v42  ;;  %v13166_v26 = vpop.permute.xlu0 %5904  ;;  %v5698_v61 = vadd.f32 %v5696_v7, %v5688_v62  ;;  %v5591_v42 = vld [vmem:[%s13839_s3 + $0x1b98] sm:$0xff] }
 0x2be   :  { %7792 = vmatprep.subr.mxu1 %v5599_v37  ;;  %7761 = vmatprep.subr.mxu0 %v5396_v13  ;;  %v5570_v60 = vadd.f32 %v5569_v11, %v5567_v46  ;;  %v5388_v37 = vld [vmem:[%s13839_s3 + $0x1a88] sm:$0xff]  ;;  %v5411_v13 = vcombine.high %v13243_v47, %v13243_v47  ;;  %v5706_v35 = vsel %vm73_vm1, %v13062_v10, %v5705_v55  ;;  %v5371_v10 = vld [vmem:[%s13839_s3 + $0x1a00] sm:$0xff]  ;;  %v5989_v7 = vld [vmem:[%s13839_s3 + $0x1d78] sm:$0xff] }
 0x2bf   :  { %7793 = vmatpush3.msra.mxu1 %v5583_v19  ;;  %7762 = vmatpush3.msra.mxu0 %v5380_v52  ;;  %v5575_v19 = vld [vmem:[%s13839_s3 + $0x1b18] sm:$0xff]  ;;  %v6004_v55 = vld [vmem:[%s13839_s3 + $0x1df0] sm:$0xff] }
 0x2c0   :  { %7794 = vmatprep.subr.mxu1 %v5598_v8  ;;  %7763 = vmatprep.subr.mxu0 %v5395_v54  ;;  %v5571_v31 = vmax.f32 %v5570_v60, 0.0  ;;  %v5372_v8 = vld [vmem:[%s13839_s3 + $0x1a08] sm:$0xff]  ;;  %v5590_v54 = vld [vmem:[%s13839_s3 + $0x1b90] sm:$0xff] }
 0x2c1   :  { %7795 = vmatpush3.msra.mxu1 %v5582_v5  ;;  %7764 = vmatpush3.msra.mxu0 %v5379_v49  ;;  %v13194_v59 = vpop.permute.xlu1 %5733  ;;  %v5725_v5 = vrot.slane %v13157_v27, 2  ;;  %v5387_v49 = vld [vmem:[%s13839_s3 + $0x1a80] sm:$0xff] }
 0x2c2   :  { %7796 = vmatprep.subr.mxu1 %v5597_v36  ;;  %7765 = vmatprep.subr.mxu0 %v5394_v21  ;;  %v13202_v18 = vpop.permute.xlu0 %5914  ;;  %v5611_v6 = vrot.slane %v5571_v31, %v8589_v50  ;;  %v5708_v36 = vadd.f32 %v5706_v35, %v5698_v61  ;;  %v5906_v21 = vrot.slane %v13166_v26, 2 }
 0x2c3   :  { %7797 = vmatpush3.msra.mxu1 %v5581_v3  ;;  %7766 = vmatpush3.msra.mxu0 %v5378_v2  ;;  %v5589_v3 = vld [vmem:[%s13839_s3 + $0x1b88] sm:$0xff]  ;;  %v5716_v2 = vsel %vm84_vm2, %v13112_v39, %v5715_v56  ;;  %v5804_v39 = vld [vmem:[%s13839_s3 + $0x1cf8] sm:$0xff]  ;;  %v5916_v23 = vrot.slane %v13202_v18, 2 }
 0x2c4   :  { %7798 = vmatprep.subr.mxu1 %v5596_v22  ;;  %7767 = vmatprep.subr.mxu0 %v5393_v1  ;;  %v5889_v22 = vmul.f32 %v13024_v38, %v5888_v53  ;;  %v5735_v1 = vrot.slane %v13194_v59, 2  ;;  %v5718_v17 = vadd.f32 %v5716_v2, %v5708_v36  ;;  %v5907_v28 = vsel %vm73_vm1, %v13166_v26, %v5906_v21  ;;  %v6003_v56 = vld [vmem:[%s13839_s3 + $0x1de8] sm:$0xff]  ;;  %v5986_v36 = vld [vmem:[%s13839_s3 + $0x1d60] sm:$0xff]  ;;  %v5783_v21 = vld [vmem:[%s13839_s3 + $0x1c50] sm:$0xff] }
 0x2c5   :  { %7799 = vmatpush3.msra.mxu1 %v5580_v0  ;;  %7768 = vmatpush3.msra.mxu0 %v5377_v14  ;;  %v5897_v0 = vsel %vm62_vm0, %v13122_v9, %v5896_v44  ;;  %v5588_v14 = vld [vmem:[%s13839_s3 + $0x1b80] sm:$0xff]  ;;  %v5788_v9 = vld [vmem:[%s13839_s3 + $0x1c78] sm:$0xff]  ;;  %v5917_v62 = vsel %vm84_vm2, %v13202_v18, %v5916_v23  ;;  %v5786_v18 = vld [vmem:[%s13839_s3 + $0x1c68] sm:$0xff] }
 0x2c6   :  { %7800 = vmatprep.subr.mxu1 %v5595_v20  ;;  %7769 = vmatprep.subr.mxu0 %v5392_v16  ;;  %v13233_v57 = vpop.permute.xlu1 %5743  ;;  %v5726_v20 = vsel %vm95_vm3, %v13157_v27, %v5725_v5  ;;  %v5572_v16 = vld [vmem:[%s13839_s3 + $0x1b00] sm:$0xff]  ;;  %v5803_v27 = vld [vmem:[%s13839_s3 + $0x1cf0] sm:$0xff]  ;;  %v5736_v60 = vsel %vm106_vm4, %v13194_v59, %v5735_v1  ;;  %v5802_v59 = vld [vmem:[%s13839_s3 + $0x1ce8] sm:$0xff] }
 0x2c7   :  { %7801 = vmatpush3.msra.mxu1 %v5579_v33  ;;  %7770 = vmatpush3.msra.mxu0 %v5376_v15  ;;  %v13245_v51 = vpop.permute.xlu0 %5924  ;;  %v5612_v33 = vcombine.high %v5611_v6, %v5611_v6  ;;  %v5745_v15 = vrot.slane %v13233_v57, 2  ;;  %v5798_v2 = vld [vmem:[%s13839_s3 + $0x1cc8] sm:$0xff]  ;;  %v6000_v23 = vld [vmem:[%s13839_s3 + $0x1dd0] sm:$0xff] }
 0x2c8   :  { %7802 = vmatprep.subr.mxu1 %v5594_v32  ;;  %7771 = vmatprep.subr.mxu0 %v5391_v29  ;;  %v5926_v32 = vrot.slane %v13245_v51, 2  ;;  %v5899_v29 = vadd.f32 %v5897_v0, %v5889_v22  ;;  %v5782_v0 = vld [vmem:[%s13839_s3 + $0x1c48] sm:$0xff] }
 0x2c9   :  { %7803 = vmatpush3.msra.mxu1 %v5578_v45  ;;  %7772 = vmatpush3.msra.mxu0 %v5375_v41  ;;  %v5787_v45 = vld [vmem:[%s13839_s3 + $0x1c70] sm:$0xff]  ;;  %v5728_v41 = vadd.f32 %v5726_v20, %v5718_v17  ;;  %v5999_v17 = vld [vmem:[%s13839_s3 + $0x1dc8] sm:$0xff] }
 0x2ca   :  { %7804 = vmatprep.subr.mxu1 %v5593_v48  ;;  %7773 = vmatprep.subr.mxu0 %v5390_v30  ;;  %v6005_v48 = vld [vmem:[%s13839_s3 + $0x1df8] sm:$0xff] }
 0x2cb   :  { %7805 = vmatpush3.msra.mxu1 %v5577_v40  ;;  %7774 = vmatpush3.msra.mxu0 %v5374_v43  ;;  %v13276_v25 = vpop.permute.xlu1 %5753  ;;  %v5746_v40 = vsel %vm117_vm5, %v13233_v57, %v5745_v15  ;;  %v5738_v31 = vadd.f32 %v5736_v60, %v5728_v41  ;;  %v5801_v57 = vld [vmem:[%s13839_s3 + $0x1ce0] sm:$0xff]  ;;  %v5795_v41 = vld [vmem:[%s13839_s3 + $0x1cb0] sm:$0xff] }
 0x2cc   :  { %7806 = vmatprep.subr.mxu1 %v5592_v34  ;;  %7775 = vmatprep.subr.mxu0 %v5389_v63  ;;  %v13282_v52 = vpop.permute.xlu0 %5934  ;;  %v5755_v26 = vrot.slane %v13276_v25, 2 }
 0x2cd   :  { %7807 = vmatpush3.msra.mxu1 %v5576_v24  ;;  %7776 = vmatpush3.msra.mxu0 %v5373_v12  ;;  %v5936_v30 = vrot.slane %v13282_v52, 2  ;;  %v5927_v24 = vsel %vm95_vm3, %v13245_v51, %v5926_v32  ;;  %v5983_v32 = vld [vmem:[%s13839_s3 + $0x1d48] sm:$0xff] }
 0x2ce   :  { %7808 = vmatprep.subr.mxu1 %v5591_v42  ;;  %7777 = vmatprep.subr.mxu0 %v5388_v37  ;;  %v5988_v42 = vld [vmem:[%s13839_s3 + $0x1d70] sm:$0xff]  ;;  %v5785_v37 = vld [vmem:[%s13839_s3 + $0x1c60] sm:$0xff]  ;;  %v5756_v51 = vsel %vm128_vm6, %v13276_v25, %v5755_v26  ;;  %v5987_v25 = vld [vmem:[%s13839_s3 + $0x1d68] sm:$0xff] }
 0x2cf   :  { %5478 = vmatprep.mubr.f32.mxu0 %v5411_v13  ;;  %7809 = vmatpush3.msra.mxu1 %v5575_v19  ;;  %v5748_v13 = vadd.f32 %v5746_v40, %v5738_v31  ;;  %v5800_v19 = vld [vmem:[%s13839_s3 + $0x1cd8] sm:$0xff]  ;;  %v5937_v53 = vsel %vm106_vm4, %v13282_v52, %v5936_v30  ;;  %v6002_v52 = vld [vmem:[%s13839_s3 + $0x1de0] sm:$0xff] }
 0x2d0   :  { %7778 = vmatpush3.msra.mxu0 %v5372_v8  ;;  %7810 = vmatprep.subr.mxu1 %v5590_v54  ;;  %v13316_v46 = vpop.permute.xlu1 %5763  ;;  %v5784_v54 = vld [vmem:[%s13839_s3 + $0x1c58] sm:$0xff] }
 0x2d1   :  { %7779 = vmatprep.subr.mxu0 %v5387_v49  ;;  %7811 = vmatpush3.msra.mxu1 %v5574_v58  ;;  %v13327_v11 = vpop.permute.xlu0 %5944  ;;  %v5765_v43 = vrot.slane %v13316_v46, 2  ;;  %v5758_v5 = vadd.f32 %v5756_v51, %v5748_v13  ;;  %v5799_v49 = vld [vmem:[%s13839_s3 + $0x1cd0] sm:$0xff]  ;;  %v5981_v40 = vld [vmem:[%s13839_s3 + $0x1d38] sm:$0xff]  ;;  %v5995_v51 = vld [vmem:[%s13839_s3 + $0x1da8] sm:$0xff] }
 0x2d2   :  { %7780 = vmatpush3.msra.mxu0 %v5371_v10  ;;  %7812 = vmatprep.subr.mxu1 %v5589_v3  ;;  %v5946_v12 = vrot.slane %v13327_v11, 2  ;;  %v6001_v3 = vld [vmem:[%s13839_s3 + $0x1dd8] sm:$0xff] }
 0x2d3   :  { %5479 = vmatmul.mubr.f32.vlgmr.msra.gmra.mxu0 %v13243_v47  ;;  %7813 = vmatpush3.msra.mxu1 %v5573_v4  ;;  %v5909_v47 = vadd.f32 %v5907_v28, %v5899_v29  ;;  %v5766_v35 = vsel %vm139_vm7, %v13316_v46, %v5765_v43  ;;  %v5985_v46 = vld [vmem:[%s13839_s3 + $0x1d58] sm:$0xff]  ;;  %v5778_v43 = vld [vmem:[%s13839_s3 + $0x1c28] sm:$0xff] }
 0x2d4   :  { %7819 = vmatprep.subr.mxu0 %v5804_v39  ;;  %7814 = vmatprep.subr.mxu1 %v5588_v14  ;;  %v5947_v58 = vsel %vm117_vm5, %v13327_v11, %v5946_v12  ;;  %v5768_v22 = vadd.f32 %v5766_v35, %v5758_v5  ;;  %v5770_v39 = vstv %s13368_s23  ;;  %v5797_v11 = vld [vmem:[%s13839_s3 + $0x1cc0] sm:$0xff]  ;;  %v5796_v28 = vld [vmem:[%s13839_s3 + $0x1cb8] sm:$0xff] }
 0x2d5   :  { %7820 = vmatpush3.msra.mxu0 %v5788_v9  ;;  %7815 = vmatpush3.msra.mxu1 %v5572_v16  ;;  %v5919_v61 = vadd.f32 %v5917_v62, %v5909_v47  ;;  %v5984_v9 = vld [vmem:[%s13839_s3 + $0x1d50] sm:$0xff]  ;;  %v5781_v16 = vld [vmem:[%s13839_s3 + $0x1c40] sm:$0xff]  ;;  %v5780_v29 = vld [vmem:[%s13839_s3 + $0x1c38] sm:$0xff]  ;;  %v5971_v47 = vstv %s13428_s26 }
 0x2d6   :  { %5679 = vmatprep.mubr.f32.mxu1 %v5612_v33  ;;  %7821 = vmatprep.subr.mxu0 %v5803_v27  ;;  %v13371_v34 = vpop.permute.xlu1 %5964  ;;  %v5955_v63 = vpop.permute.xlu0 %5954  ;;  %v5771_v15 = vadd.f32 %v5770_v39, %v5768_v22  ;;  %v5792_v13 = vld [vmem:[%s13839_s3 + $0x1c98] sm:$0xff]  ;;  %v5978_v5 = vld [vmem:[%s13839_s3 + $0x1d20] sm:$0xff] }
 0x2d7   :  { %5680 = vmatmul.mubr.f32.vlgmr.msra.gmra.mxu1 %v5611_v6  ;;  %7822 = vmatpush3.msra.mxu0 %v5787_v45  ;;  %v5956_v44 = vrot.slane %v5955_v63, 2  ;;  %v5929_v8 = vadd.f32 %v5927_v24, %v5919_v61  ;;  %v5966_v20 = vrot.slane %v13371_v34, 2  ;;  %v5998_v45 = vld [vmem:[%s13839_s3 + $0x1dc0] sm:$0xff]  ;;  %v5980_v61 = vld [vmem:[%s13839_s3 + $0x1d30] sm:$0xff]  ;;  %v5977_v22 = vld [vmem:[%s13839_s3 + $0x1d18] sm:$0xff] }
 0x2d8   :  { %7854 = vmatprep.subr.mxu1 %v6005_v48  ;;  %7823 = vmatprep.subr.mxu0 %v5802_v59  ;;  %v5982_v48 = vld [vmem:[%s13839_s3 + $0x1d40] sm:$0xff]  ;;  %v5779_v59 = vld [vmem:[%s13839_s3 + $0x1c30] sm:$0xff]  ;;  %v5772_v30 = vmax.f32 %v5771_v15, 0.0 }
 0x2d9   :  { %7855 = vmatpush3.msra.mxu1 %v5989_v7  ;;  %7824 = vmatpush3.msra.mxu0 %v5786_v18  ;;  %v5939_v6 = vadd.f32 %v5937_v53, %v5929_v8  ;;  %v5957_v4 = vsel %vm128_vm6, %v5955_v63, %v5956_v44  ;;  %v5967_v26 = vsel %vm139_vm7, %v13371_v34, %v5966_v20  ;;  %v5997_v7 = vld [vmem:[%s13839_s3 + $0x1db8] sm:$0xff]  ;;  %v5794_v18 = vld [vmem:[%s13839_s3 + $0x1ca8] sm:$0xff]  ;;  %v6089_v34 = vstv %s13440_s7  ;;  %v5793_v24 = vld [vmem:[%s13839_s3 + $0x1ca0] sm:$0xff] }
 0x2da   :  { %7856 = vmatprep.subr.mxu1 %v6004_v55  ;;  %7825 = vmatprep.subr.mxu0 %v5801_v57  ;;  %v5996_v55 = vld [vmem:[%s13839_s3 + $0x1db0] sm:$0xff]  ;;  %v5979_v53 = vld [vmem:[%s13839_s3 + $0x1d28] sm:$0xff]  ;;  %v5776_v44 = vld [vmem:[%s13839_s3 + $0x1c18] sm:$0xff] }
 0x2db   :  { %7857 = vmatpush3.msra.mxu1 %v5988_v42  ;;  %7826 = vmatpush3.msra.mxu0 %v5785_v37  ;;  %v5949_v14 = vadd.f32 %v5947_v58, %v5939_v6  ;;  %v5777_v42 = vld [vmem:[%s13839_s3 + $0x1c20] sm:$0xff]  ;;  %v6090_v37 = vmul.f32 %v13024_v38, %v6089_v34  ;;  %v6189_v34 = vld [vmem:[%s13839_s3 + $0x1e70] sm:$0xff] }
 0x2dc   :  { %7858 = vmatprep.subr.mxu1 %v6003_v56  ;;  %7827 = vmatprep.subr.mxu0 %v5800_v19  ;;  %v13420_v10 = vpop.permute.xlu1 %6105  ;;  %v13526_v56 = vrot.slane %v5772_v30, %v8589_v50  ;;  %v5994_v8 = vld [vmem:[%s13839_s3 + $0x1da0] sm:$0xff] }
 0x2dd   :  { %7859 = vmatpush3.msra.mxu1 %v5987_v25  ;;  %7828 = vmatpush3.msra.mxu0 %v5784_v54  ;;  %v13431_v1 = vpop.permute.xlu0 %6095  ;;  %v5959_v33 = vadd.f32 %v5957_v4, %v5949_v14  ;;  %v5791_v25 = vld [vmem:[%s13839_s3 + $0x1c90] sm:$0xff]  ;;  %v5774_v4 = vld [vmem:[%s13839_s3 + $0x1c08] sm:$0xff]  ;;  %v5789_v39 = vld [vmem:[%s13839_s3 + $0x1c80] sm:$0xff] }
 0x2de   :  { %7860 = vmatprep.subr.mxu1 %v6002_v52  ;;  %7829 = vmatprep.subr.mxu0 %v5799_v49  ;;  %v6097_v63 = vrot.slane %v13431_v1, 2  ;;  %v6107_v52 = vrot.slane %v13420_v10, 2  ;;  %v5775_v49 = vld [vmem:[%s13839_s3 + $0x1c10] sm:$0xff] }
 0x2df   :  { %7861 = vmatpush3.msra.mxu1 %v5986_v36  ;;  %7830 = vmatpush3.msra.mxu0 %v5783_v21  ;;  %v5969_v62 = vadd.f32 %v5967_v26, %v5959_v33  ;;  %v5993_v36 = vld [vmem:[%s13839_s3 + $0x1d98] sm:$0xff]  ;;  %v5790_v21 = vld [vmem:[%s13839_s3 + $0x1c88] sm:$0xff]  ;;  %v5976_v14 = vld [vmem:[%s13839_s3 + $0x1d10] sm:$0xff] }
 0x2e0   :  { %7862 = vmatprep.subr.mxu1 %v6001_v3  ;;  %7831 = vmatprep.subr.mxu0 %v5798_v2  ;;  %v6098_v19 = vsel %vm62_vm0, %v13431_v1, %v6097_v63  ;;  %v5813_v3 = vcombine.high %v13526_v56, %v13526_v56  ;;  %v5992_v1 = vld [vmem:[%s13839_s3 + $0x1d90] sm:$0xff]  ;;  %v5991_v33 = vld [vmem:[%s13839_s3 + $0x1d88] sm:$0xff] }
 0x2e1   :  { %7863 = vmatpush3.msra.mxu1 %v5985_v46  ;;  %7832 = vmatpush3.msra.mxu0 %v5782_v0  ;;  %v13461_v27 = vpop.permute.xlu1 %6115  ;;  %v5972_v12 = vadd.f32 %v5971_v47, %v5969_v62  ;;  %v6100_v6 = vadd.f32 %v6098_v19, %v6090_v37  ;;  %v6108_v46 = vsel %vm73_vm1, %v13420_v10, %v6107_v52  ;;  %v5773_v10 = vld [vmem:[%s13839_s3 + $0x1c00] sm:$0xff]  ;;  %v6190_v62 = vld [vmem:[%s13839_s3 + $0x1e78] sm:$0xff]  ;;  %v6406_v19 = vld [vmem:[%s13839_s3 + $0x1ff0] sm:$0xff] }
 0x2e2   :  { %7864 = vmatprep.subr.mxu1 %v6000_v23  ;;  %7833 = vmatprep.subr.mxu0 %v5797_v11  ;;  %v13469_v60 = vpop.permute.xlu0 %6296  ;;  %v6117_v2 = vrot.slane %v13461_v27, 2  ;;  %v6391_v37 = vld [vmem:[%s13839_s3 + $0x1f78] sm:$0xff] }
 0x2e3   :  { %7865 = vmatpush3.msra.mxu1 %v5984_v9  ;;  %7834 = vmatpush3.msra.mxu0 %v5781_v16  ;;  %v5973_v35 = vmax.f32 %v5972_v12, 0.0  ;;  %v6110_v20 = vadd.f32 %v6108_v46, %v6100_v6  ;;  %v6290_v9 = vstv %s13523_s1  ;;  %v6298_v16 = vrot.slane %v13469_v60, 2  ;;  %v6204_v12 = vld [vmem:[%s13839_s3 + $0x1ee8] sm:$0xff]  ;;  %v6202_v6 = vld [vmem:[%s13839_s3 + $0x1ed8] sm:$0xff] }
 0x2e4   :  { %7866 = vmatprep.subr.mxu1 %v5999_v17  ;;  %7835 = vmatprep.subr.mxu0 %v5796_v28  ;;  %v6118_v17 = vsel %vm84_vm2, %v13461_v27, %v6117_v2  ;;  %v5975_v28 = vld [vmem:[%s13839_s3 + $0x1d08] sm:$0xff]  ;;  %v5990_v27 = vld [vmem:[%s13839_s3 + $0x1d80] sm:$0xff]  ;;  %v6291_v26 = vmul.f32 %v13024_v38, %v6290_v9  ;;  %v6403_v9 = vld [vmem:[%s13839_s3 + $0x1fd8] sm:$0xff] }
 0x2e5   :  { %7867 = vmatpush3.msra.mxu1 %v5983_v32  ;;  %7836 = vmatpush3.msra.mxu0 %v5780_v29  ;;  %v6013_v23 = vrot.slane %v5973_v35, %v8589_v50  ;;  %v6120_v47 = vadd.f32 %v6118_v17, %v6110_v20  ;;  %v6389_v2 = vld [vmem:[%s13839_s3 + $0x1f68] sm:$0xff]  ;;  %v6185_v20 = vld [vmem:[%s13839_s3 + $0x1e50] sm:$0xff]  ;;  %v6387_v17 = vld [vmem:[%s13839_s3 + $0x1f58] sm:$0xff] }
 0x2e6   :  { %7868 = vmatprep.subr.mxu1 %v5998_v45  ;;  %7837 = vmatprep.subr.mxu0 %v5795_v41  ;;  %v13500_v31 = vpop.permute.xlu1 %6125  ;;  %v6206_v45 = vld [vmem:[%s13839_s3 + $0x1ef8] sm:$0xff] }
 0x2e7   :  { %7869 = vmatpush3.msra.mxu1 %v5982_v48  ;;  %7838 = vmatpush3.msra.mxu0 %v5779_v59  ;;  %v13508_v57 = vpop.permute.xlu0 %6306  ;;  %v6127_v0 = vrot.slane %v13500_v31, 2  ;;  %v5974_v48 = vld [vmem:[%s13839_s3 + $0x1d00] sm:$0xff]  ;;  %v6014_v59 = vcombine.high %v6013_v23, %v6013_v23 }
 0x2e8   :  { %7870 = vmatprep.subr.mxu1 %v5997_v7  ;;  %7839 = vmatprep.subr.mxu0 %v5794_v18  ;;  %v6308_v29 = vrot.slane %v13508_v57, 2  ;;  %v6299_v7 = vsel %vm62_vm0, %v13469_v60, %v6298_v16  ;;  %v6205_v18 = vld [vmem:[%s13839_s3 + $0x1ef0] sm:$0xff]  ;;  %v6200_v16 = vld [vmem:[%s13839_s3 + $0x1ec8] sm:$0xff] }
 0x2e9   :  { %7871 = vmatpush3.msra.mxu1 %v5981_v40  ;;  %7840 = vmatpush3.msra.mxu0 %v5778_v43  ;;  %v6128_v41 = vsel %vm95_vm3, %v13500_v31, %v6127_v0 }
 0x2ea   :  { %7872 = vmatprep.subr.mxu1 %v5996_v55  ;;  %7841 = vmatprep.subr.mxu0 %v5793_v24  ;;  %v6130_v31 = vadd.f32 %v6128_v41, %v6120_v47  ;;  %v6309_v55 = vsel %vm73_vm1, %v13508_v57, %v6308_v29  ;;  %v6407_v24 = vld [vmem:[%s13839_s3 + $0x1ff8] sm:$0xff]  ;;  %v6188_v57 = vld [vmem:[%s13839_s3 + $0x1e68] sm:$0xff] }
 0x2eb   :  { %7873 = vmatpush3.msra.mxu1 %v5980_v61  ;;  %7842 = vmatpush3.msra.mxu0 %v5777_v42  ;;  %v13542_v54 = vpop.permute.xlu1 %6135  ;;  %v6301_v42 = vadd.f32 %v6299_v7, %v6291_v26  ;;  %v6199_v26 = vld [vmem:[%s13839_s3 + $0x1ec0] sm:$0xff]  ;;  %v6401_v7 = vld [vmem:[%s13839_s3 + $0x1fc8] sm:$0xff] }
 0x2ec   :  { %7874 = vmatprep.subr.mxu1 %v5995_v51  ;;  %7843 = vmatprep.subr.mxu0 %v5792_v13  ;;  %v13551_v58 = vpop.permute.xlu0 %6316  ;;  %v6137_v32 = vrot.slane %v13542_v54, 2 }
 0x2ed   :  { %7875 = vmatpush3.msra.mxu1 %v5979_v53  ;;  %7844 = vmatpush3.msra.mxu0 %v5776_v44  ;;  %v6318_v38 = vrot.slane %v13551_v58, 2  ;;  %v6203_v53 = vld [vmem:[%s13839_s3 + $0x1ee0] sm:$0xff] }
 0x2ee   :  { %7876 = vmatprep.subr.mxu1 %v5994_v8  ;;  %7845 = vmatprep.subr.mxu0 %v5791_v25  ;;  %v6138_v43 = vsel %vm106_vm4, %v13542_v54, %v6137_v32  ;;  %v6311_v8 = vadd.f32 %v6309_v55, %v6301_v42  ;;  %v6390_v25 = vld [vmem:[%s13839_s3 + $0x1f70] sm:$0xff]  ;;  %v6187_v54 = vld [vmem:[%s13839_s3 + $0x1e60] sm:$0xff]  ;;  %v6172_v32 = vstv %s13641_s21 }
 0x2ef   :  { %7877 = vmatpush3.msra.mxu1 %v5978_v5  ;;  %7846 = vmatpush3.msra.mxu0 %v5775_v49  ;;  %v6140_v13 = vadd.f32 %v6138_v43, %v6130_v31  ;;  %v6182_v43 = vld [vmem:[%s13839_s3 + $0x1e38] sm:$0xff]  ;;  %v6373_v31 = vstv %s13680_s22  ;;  %v6197_v55 = vld [vmem:[%s13839_s3 + $0x1eb0] sm:$0xff] }
 0x2f0   :  { %7878 = vmatprep.subr.mxu1 %v5993_v36  ;;  %7847 = vmatprep.subr.mxu0 %v5790_v21  ;;  %v6146_v11 = vpop.permute.xlu1 %6145 }
 0x2f1   :  { %5880 = vmatprep.mubr.f32.mxu0 %v5813_v3  ;;  %7879 = vmatpush3.msra.mxu1 %v5977_v22  ;;  %v13589_v15 = vpop.permute.xlu0 %6326  ;;  %v6147_v30 = vrot.slane %v6146_v11, 2  ;;  %v6186_v22 = vld [vmem:[%s13839_s3 + $0x1e58] sm:$0xff] }
 0x2f2   :  { %7848 = vmatpush3.msra.mxu0 %v5774_v4  ;;  %7880 = vmatprep.subr.mxu1 %v5992_v1  ;;  %v6328_v61 = vrot.slane %v13589_v15, 2  ;;  %v6404_v1 = vld [vmem:[%s13839_s3 + $0x1fe0] sm:$0xff] }
 0x2f3   :  { %7849 = vmatprep.subr.mxu0 %v5789_v39  ;;  %7881 = vmatpush3.msra.mxu1 %v5976_v14  ;;  %v6148_v51 = vsel %vm117_vm5, %v6146_v11, %v6147_v30  ;;  %v6201_v39 = vld [vmem:[%s13839_s3 + $0x1ed0] sm:$0xff]  ;;  %v6388_v11 = vld [vmem:[%s13839_s3 + $0x1f60] sm:$0xff] }
 0x2f4   :  { %7850 = vmatpush3.msra.mxu0 %v5773_v10  ;;  %7882 = vmatprep.subr.mxu1 %v5991_v33  ;;  %v6150_v5 = vadd.f32 %v6148_v51, %v6140_v13  ;;  %v6329_v49 = vsel %vm95_vm3, %v13589_v15, %v6328_v61  ;;  %v6183_v30 = vld [vmem:[%s13839_s3 + $0x1e40] sm:$0xff]  ;;  %v6181_v61 = vld [vmem:[%s13839_s3 + $0x1e30] sm:$0xff]  ;;  %v6383_v13 = vld [vmem:[%s13839_s3 + $0x1f38] sm:$0xff] }
 0x2f5   :  { %5881 = vmatmul.mubr.f32.vlgmr.msra.gmra.mxu0 %v13526_v56  ;;  %7883 = vmatpush3.msra.mxu1 %v5975_v28  ;;  %v6156_v40 = vpop.permute.xlu1 %6155  ;;  %v6319_v56 = vsel %vm84_vm2, %v13551_v58, %v6318_v38  ;;  %v6405_v58 = vld [vmem:[%s13839_s3 + $0x1fe8] sm:$0xff]  ;;  %v6198_v38 = vld [vmem:[%s13839_s3 + $0x1eb8] sm:$0xff] }
 0x2f6   :  { %7889 = vmatprep.subr.mxu0 %v6206_v45  ;;  %7884 = vmatprep.subr.mxu1 %v5990_v27  ;;  %v6157_v60 = vrot.slane %v6156_v40, 2  ;;  %v6337_v63 = vpop.permute.xlu0 %6336  ;;  %v6321_v3 = vadd.f32 %v6319_v56, %v6311_v8  ;;  %v6184_v28 = vld [vmem:[%s13839_s3 + $0x1e48] sm:$0xff]  ;;  %v6402_v27 = vld [vmem:[%s13839_s3 + $0x1fd0] sm:$0xff]  ;;  %v6179_v8 = vld [vmem:[%s13839_s3 + $0x1e20] sm:$0xff] }
 0x2f7   :  { %7890 = vmatpush3.msra.mxu0 %v6190_v62  ;;  %7885 = vmatpush3.msra.mxu1 %v5974_v48  ;;  %v6338_v44 = vrot.slane %v6337_v63, 2  ;;  %v6180_v56 = vld [vmem:[%s13839_s3 + $0x1e28] sm:$0xff] }
 0x2f8   :  { %6081 = vmatprep.mubr.f32.mxu1 %v6014_v59  ;;  %7891 = vmatprep.subr.mxu0 %v6205_v18  ;;  %v6158_v35 = vsel %vm128_vm6, %v6156_v40, %v6157_v60  ;;  %v6386_v59 = vld [vmem:[%s13839_s3 + $0x1f50] sm:$0xff]  ;;  %v6385_v40 = vld [vmem:[%s13839_s3 + $0x1f48] sm:$0xff]  ;;  %v6400_v60 = vld [vmem:[%s13839_s3 + $0x1fc0] sm:$0xff] }
 0x2f9   :  { %6082 = vmatmul.mubr.f32.vlgmr.msra.gmra.mxu1 %v6013_v23  ;;  %7892 = vmatpush3.msra.mxu0 %v6189_v34  ;;  %v6160_v46 = vadd.f32 %v6158_v35, %v6150_v5  ;;  %v6339_v0 = vsel %vm106_vm4, %v6337_v63, %v6338_v44  ;;  %v6331_v23 = vadd.f32 %v6329_v49, %v6321_v3  ;;  %v6382_v44 = vld [vmem:[%s13839_s3 + $0x1f30] sm:$0xff]  ;;  %v6381_v5 = vld [vmem:[%s13839_s3 + $0x1f28] sm:$0xff]  ;;  %v6178_v49 = vld [vmem:[%s13839_s3 + $0x1e18] sm:$0xff] }
 0x2fa   :  { %7924 = vmatprep.subr.mxu1 %v6407_v24  ;;  %7893 = vmatprep.subr.mxu0 %v6204_v12  ;;  %v6166_v52 = vpop.permute.xlu1 %6165  ;;  %v6384_v12 = vld [vmem:[%s13839_s3 + $0x1f40] sm:$0xff]  ;;  %v6395_v3 = vld [vmem:[%s13839_s3 + $0x1f98] sm:$0xff] }
 0x2fb   :  { %7925 = vmatpush3.msra.mxu1 %v6391_v37  ;;  %7894 = vmatpush3.msra.mxu0 %v6188_v57  ;;  %v6167_v36 = vrot.slane %v6166_v52, 2  ;;  %v6347_v21 = vpop.permute.xlu0 %6346  ;;  %v6341_v15 = vadd.f32 %v6339_v0, %v6331_v23  ;;  %v6399_v37 = vld [vmem:[%s13839_s3 + $0x1fb8] sm:$0xff]  ;;  %v6196_v57 = vld [vmem:[%s13839_s3 + $0x1ea8] sm:$0xff]  ;;  %v6394_v0 = vld [vmem:[%s13839_s3 + $0x1f90] sm:$0xff] }
 0x2fc   :  { %7926 = vmatprep.subr.mxu1 %v6406_v19  ;;  %7895 = vmatprep.subr.mxu0 %v6203_v53  ;;  %v6348_v4 = vrot.slane %v6347_v21, 2  ;;  %v6398_v19 = vld [vmem:[%s13839_s3 + $0x1fb0] sm:$0xff]  ;;  %v6195_v53 = vld [vmem:[%s13839_s3 + $0x1ea0] sm:$0xff]  ;;  %v6393_v23 = vld [vmem:[%s13839_s3 + $0x1f88] sm:$0xff] }
 0x2fd   :  { %7927 = vmatpush3.msra.mxu1 %v6390_v25  ;;  %7896 = vmatpush3.msra.mxu0 %v6187_v54  ;;  %v6168_v14 = vsel %vm139_vm7, %v6166_v52, %v6167_v36  ;;  %v6397_v25 = vld [vmem:[%s13839_s3 + $0x1fa8] sm:$0xff]  ;;  %v6194_v54 = vld [vmem:[%s13839_s3 + $0x1e98] sm:$0xff]  ;;  %v6380_v36 = vld [vmem:[%s13839_s3 + $0x1f20] sm:$0xff] }
 0x2fe   :  { %7928 = vmatprep.subr.mxu1 %v6405_v58  ;;  %7897 = vmatprep.subr.mxu0 %v6202_v6  ;;  %v6170_v10 = vadd.f32 %v6168_v14, %v6160_v46  ;;  %v6349_v33 = vsel %vm117_vm5, %v6347_v21, %v6348_v4  ;;  %v6396_v58 = vld [vmem:[%s13839_s3 + $0x1fa0] sm:$0xff]  ;;  %v6193_v6 = vld [vmem:[%s13839_s3 + $0x1e90] sm:$0xff]  ;;  %v6379_v4 = vld [vmem:[%s13839_s3 + $0x1f18] sm:$0xff] }
 0x2ff   :  { %7929 = vmatpush3.msra.mxu1 %v6389_v2  ;;  %7898 = vmatpush3.msra.mxu0 %v6186_v22  ;;  %v6351_v48 = vadd.f32 %v6349_v33, %v6341_v15  ;;  %v6177_v21 = vld [vmem:[%s13839_s3 + $0x1e10] sm:$0xff]  ;;  %v6192_v2 = vld [vmem:[%s13839_s3 + $0x1e88] sm:$0xff]  ;;  %v6175_v14 = vld [vmem:[%s13839_s3 + $0x1e00] sm:$0xff]  ;;  %v6906_v33 = vpop.f32.mrf.mxu1 }
 0x300   :  { %7930 = vmatprep.subr.mxu1 %v6404_v1  ;;  %7899 = vmatprep.subr.mxu0 %v6201_v39  ;;  %v6367_v29 = vpop.permute.xlu1 %6366  ;;  %v6357_v45 = vpop.permute.xlu0 %6356  ;;  %v6173_v47 = vadd.f32 %v6172_v32, %v6170_v10  ;;  %v6176_v46 = vld [vmem:[%s13839_s3 + $0x1e08] sm:$0xff]  ;;  %v6191_v39 = vld [vmem:[%s13839_s3 + $0x1e80] sm:$0xff] }
 0x301   :  { %7931 = vmatpush3.msra.mxu1 %v6388_v11  ;;  %7900 = vmatpush3.msra.mxu0 %v6185_v20  ;;  %v6368_v41 = vrot.slane %v6367_v29, 2  ;;  %v6358_v62 = vrot.slane %v6357_v45, 2  ;;  %v6377_v11 = vld [vmem:[%s13839_s3 + $0x1f08] sm:$0xff]  ;;  %v6871_v10 = vpop.f32.mrf.mxu0 }
 0x302   :  { %7932 = vmatprep.subr.mxu1 %v6403_v9  ;;  %7901 = vmatprep.subr.mxu0 %v6200_v16  ;;  %v6174_v42 = vmax.f32 %v6173_v47, 0.0  ;;  %v6392_v9 = vld [vmem:[%s13839_s3 + $0x1f80] sm:$0xff] }
 0x303   :  { %7933 = vmatpush3.msra.mxu1 %v6387_v17  ;;  %7902 = vmatpush3.msra.mxu0 %v6184_v28  ;;  %v6359_v18 = vsel %vm128_vm6, %v6357_v45, %v6358_v62  ;;  %v6369_v63 = vsel %vm139_vm7, %v6367_v29, %v6368_v41  ;;  %v6376_v16 = vld [vmem:[%s13839_s3 + $0x1f00] sm:$0xff]  ;;  %v6872_v15 = vpop.f32.mrf.mxu0  ;;  %v6907_v28 = vpop.f32.mrf.mxu1 }
 0x304   :  { %7934 = vmatprep.subr.mxu1 %v6402_v27  ;;  %7903 = vmatprep.subr.mxu0 %v6199_v26  ;;  %v6361_v34 = vadd.f32 %v6359_v18, %v6351_v48  ;;  %v6214_v35 = vrot.slane %v6174_v42, %v8589_v50  ;;  %v6873_v45 = vadd.f32 %v6872_v15, %v6871_v10 }
 0x305   :  { %7935 = vmatpush3.msra.mxu1 %v6386_v59  ;;  %7904 = vmatpush3.msra.mxu0 %v6183_v30  ;;  %v6941_v17 = vpop.f32.mrf.mxu0  ;;  %v6976_v29 = vpop.f32.mrf.mxu1  ;;  %v6908_v27 = vadd.f32 %v6907_v28, %v6906_v33 }
 0x306   :  { %7936 = vmatprep.subr.mxu1 %v6401_v7  ;;  %7905 = vmatprep.subr.mxu0 %v6198_v38  ;;  %v6371_v24 = vadd.f32 %v6369_v63, %v6361_v34  ;;  %v6215_v22 = vcombine.high %v6214_v35, %v6214_v35 }
 0x307   :  { %7937 = vmatpush3.msra.mxu1 %v6385_v40  ;;  %7906 = vmatpush3.msra.mxu0 %v6182_v43  ;;  %v6942_v32 = vpop.f32.mrf.mxu0  ;;  %v6977_v62 = vpop.f32.mrf.mxu1  ;;  %v457_v48 = vadd.f32 %v6908_v27, %v6873_v45 }
 0x308   :  { %7938 = vmatprep.subr.mxu1 %v6400_v60  ;;  %v6374_v51 = vadd.f32 %v6373_v31, %v6371_v24  ;;  %7907 = vmatprep.subr.mxu0 %v6197_v55  ;;  %v6943_v41 = vadd.f32 %v6942_v32, %v6941_v17  ;;  %v6978_v7 = vadd.f32 %v6977_v62, %v6976_v29 }
 0x309   :  { %7939 = vmatpush3.msra.mxu1 %v6384_v12  ;;  %7908 = vmatpush3.msra.mxu0 %v6181_v61  ;;  %v7011_v26 = vpop.f32.mrf.mxu0  ;;  %v7046_v30 = vpop.f32.mrf.mxu1 }
 0x30a   :  { %7940 = vmatprep.subr.mxu1 %v6399_v37  ;;  %7909 = vmatprep.subr.mxu0 %v6196_v57  ;;  %v6375_v52 = vmax.f32 %v6374_v51, 0.0  ;;  %v660_v47 = vadd.f32 %v6943_v41, %v457_v48 }
 0x30b   :  { %7941 = vmatpush3.msra.mxu1 %v6383_v13  ;;  %7910 = vmatpush3.msra.mxu0 %v6180_v56  ;;  %v7012_v59 = vpop.f32.mrf.mxu0  ;;  %v7047_v40 = vpop.f32.mrf.mxu1 }
 0x30c   :  { %7942 = vmatprep.subr.mxu1 %v6398_v19  ;;  %7911 = vmatprep.subr.mxu0 %v6195_v53  ;;  %v6415_v1 = vrot.slane %v6375_v52, %v8589_v50  ;;  %v6378_v50 = vld [vmem:[%s13839_s3 + $0x1f10] sm:$0xff]  ;;  %v7013_v18 = vadd.f32 %v7012_v59, %v7011_v26  ;;  %v861_v43 = vadd.f32 %v6978_v7, %v660_v47 }
 0x30d   :  { %7943 = vmatpush3.msra.mxu1 %v6382_v44  ;;  %7912 = vmatpush3.msra.mxu0 %v6179_v8  ;;  %v7081_v38 = vpop.f32.mrf.mxu0  ;;  %v7116_v60 = vpop.f32.mrf.mxu1  ;;  %v7048_v31 = vadd.f32 %v7047_v40, %v7046_v30 }
 0x30e   :  { %7944 = vmatprep.subr.mxu1 %v6397_v25  ;;  %7913 = vmatprep.subr.mxu0 %v6194_v54  ;;  %v6416_v20 = vcombine.high %v6415_v1, %v6415_v1  ;;  %v1062_v63 = vadd.f32 %v7013_v18, %v861_v43 }
 0x30f   :  { %7945 = vmatpush3.msra.mxu1 %v6381_v5  ;;  %7914 = vmatpush3.msra.mxu0 %v6178_v49  ;;  %v7082_v34 = vpop.f32.mrf.mxu0  ;;  %v7117_v12 = vpop.f32.mrf.mxu1 }
 0x310   :  { %7946 = vmatprep.subr.mxu1 %v6396_v58  ;;  %7915 = vmatprep.subr.mxu0 %v6193_v6  ;;  %v7083_v24 = vadd.f32 %v7082_v34, %v7081_v38  ;;  %v1263_v61 = vadd.f32 %v7048_v31, %v1062_v63  ;;  %v7118_v51 = vadd.f32 %v7117_v12, %v7116_v60 }
 0x311   :  { %7947 = vmatpush3.msra.mxu1 %v6380_v36  ;;  %7916 = vmatpush3.msra.mxu0 %v6177_v21  ;;  %v7151_v55 = vpop.f32.mrf.mxu0  ;;  %v7186_v37 = vpop.f32.mrf.mxu1 }
 0x312   :  { %7948 = vmatprep.subr.mxu1 %v6395_v3  ;;  %7917 = vmatprep.subr.mxu0 %v6192_v2  ;;  %v1464_v57 = vadd.f32 %v7083_v24, %v1263_v61 }
 0x313   :  { %6282 = vmatprep.mubr.f32.mxu0 %v6215_v22  ;;  %7949 = vmatpush3.msra.mxu1 %v6379_v4  ;;  %v7152_v42 = vpop.f32.mrf.mxu0  ;;  %v7187_v19 = vpop.f32.mrf.mxu1 }
 0x314   :  { %7918 = vmatpush3.msra.mxu0 %v6176_v46  ;;  %7950 = vmatprep.subr.mxu1 %v6394_v0  ;;  %v7153_v56 = vadd.f32 %v7152_v42, %v7151_v55  ;;  %v1665_v53 = vadd.f32 %v7118_v51, %v1464_v57  ;;  %v7188_v54 = vadd.f32 %v7187_v19, %v7186_v37 }
 0x315   :  { %7919 = vmatprep.subr.mxu0 %v6191_v39  ;;  %7951 = vmatpush3.msra.mxu1 %v6378_v50  ;;  %v7221_v13 = vpop.f32.mrf.mxu0  ;;  %v7256_v8 = vpop.f32.mrf.mxu1 }
 0x316   :  { %7920 = vmatpush3.msra.mxu0 %v6175_v14  ;;  %7952 = vmatprep.subr.mxu1 %v6393_v23  ;;  %v1866_v25 = vadd.f32 %v7153_v56, %v1665_v53 }
 0x317   :  { %6283 = vmatmul.mubr.f32.vlgmr.msra.gmra.mxu0 %v6214_v35  ;;  %7953 = vmatpush3.msra.mxu1 %v6377_v11  ;;  %v7222_v44 = vpop.f32.mrf.mxu0  ;;  %v7257_v5 = vpop.f32.mrf.mxu1 }
 0x318   :  { %7954 = vmatprep.subr.mxu1 %v6392_v9  ;;  %6483 = vmatprep.mubr.f32.mxu1 %v6416_v20  ;;  %v7223_v52 = vadd.f32 %v7222_v44, %v7221_v13  ;;  %v2067_v49 = vadd.f32 %v7188_v54, %v1866_v25  ;;  %v7258_v21 = vadd.f32 %v7257_v5, %v7256_v8 }
 0x319   :  { %7955 = vmatpush3.msra.mxu1 %v6376_v16  ;;  %v7291_v35 = vpop.f32.mrf.mxu0  ;;  %v7326_v6 = vpop.f32.mrf.mxu1 }
 0x31a   :  { %6484 = vmatmul.mubr.f32.vlgmr.msra.gmra.mxu1 %v6415_v1  ;;  %v2268_v36 = vadd.f32 %v7223_v52, %v2067_v49 }
 0x31b   :  { %v7292_v58 = vpop.f32.mrf.mxu0  ;;  %v7327_v22 = vpop.f32.mrf.mxu1 }
 0x31c   :  { %v7293_v2 = vadd.f32 %v7292_v58, %v7291_v35  ;;  %v2469_v4 = vadd.f32 %v7258_v21, %v2268_v36  ;;  %v7328_v39 = vadd.f32 %v7327_v22, %v7326_v6 }
 0x31d   :  { %v7361_v3 = vpop.f32.mrf.mxu0  ;;  %v7396_v46 = vpop.f32.mrf.mxu1 }
 0x31e   :  { %v2670_v0 = vadd.f32 %v7293_v2, %v2469_v4 }
 0x31f   :  { %v7362_v1 = vpop.f32.mrf.mxu0  ;;  %v7397_v23 = vpop.f32.mrf.mxu1 }
 0x320   :  { %v7363_v14 = vadd.f32 %v7362_v1, %v7361_v3  ;;  %v2871_v11 = vadd.f32 %v7328_v39, %v2670_v0  ;;  %v7398_v10 = vadd.f32 %v7397_v23, %v7396_v46 }
 0x321   :  { %v7431_v50 = vpop.f32.mrf.mxu0  ;;  %v7466_v9 = vpop.f32.mrf.mxu1 }
 0x322   :  { %v3072_v16 = vadd.f32 %v7363_v14, %v2871_v11 }
 0x323   :  { %v7432_v20 = vpop.f32.mrf.mxu0  ;;  %v7467_v17 = vpop.f32.mrf.mxu1 }
 0x324   :  { %v7433_v15 = vadd.f32 %v7432_v20, %v7431_v50  ;;  %v3273_v28 = vadd.f32 %v7398_v10, %v3072_v16  ;;  %v7468_v27 = vadd.f32 %v7467_v17, %v7466_v9  ;;  %v6838_v9 = vld [vmem:[%s13840_s4] ss:$0 sm:$0xff] }
 0x325   :  { %v7501_v33 = vpop.f32.mrf.mxu0  ;;  %v7536_v29 = vpop.f32.mrf.mxu1  ;;  %v6498_v10 = vld [vmem:[%s13841_s5] sm:$0x3] }
 0x326   :  { %v3474_v45 = vadd.f32 %v7433_v15, %v3273_v28 }
 0x327   :  { %v7502_v32 = vpop.f32.mrf.mxu0  ;;  %v7537_v62 = vpop.f32.mrf.mxu1 }
 0x328   :  { %v7503_v41 = vadd.f32 %v7502_v32, %v7501_v33  ;;  %v3675_v48 = vadd.f32 %v7468_v27, %v3474_v45  ;;  %v7538_v7 = vadd.f32 %v7537_v62, %v7536_v29 }
 0x329   :  { %v7571_v26 = vpop.f32.mrf.mxu0  ;;  %v7606_v30 = vpop.f32.mrf.mxu1 }
 0x32a   :  { %v3876_v47 = vadd.f32 %v7503_v41, %v3675_v48 }
 0x32b   :  { %v7572_v59 = vpop.f32.mrf.mxu0  ;;  %v7607_v40 = vpop.f32.mrf.mxu1 }
 0x32c   :  { %v7573_v18 = vadd.f32 %v7572_v59, %v7571_v26  ;;  %v4077_v43 = vadd.f32 %v7538_v7, %v3876_v47  ;;  %v7608_v31 = vadd.f32 %v7607_v40, %v7606_v30 }
 0x32e   :  { %v4278_v63 = vadd.f32 %v7573_v18, %v4077_v43 }
 0x330   :  { %v4479_v61 = vadd.f32 %v7608_v31, %v4278_v63 }
 0x34f   :  { %v7641_v38 = vpop.f32.mrf.mxu0 }
 0x351   :  { %v7642_v34 = vpop.f32.mrf.mxu0 }
 0x352   :  { %v7643_v24 = vadd.f32 %v7642_v34, %v7641_v38 }
 0x353   :  { %v7676_v60 = vpop.f32.mrf.mxu1 }
 0x354   :  { %v4680_v57 = vadd.f32 %v7643_v24, %v4479_v61 }
 0x355   :  { %v7677_v12 = vpop.f32.mrf.mxu1 }
 0x356   :  { %v7678_v51 = vadd.f32 %v7677_v12, %v7676_v60 }
 0x358   :  { %v4881_v53 = vadd.f32 %v7678_v51, %v4680_v57 }
 0x371   :  { %v7711_v55 = vpop.f32.mrf.mxu0 }
 0x373   :  { %v7712_v42 = vpop.f32.mrf.mxu0 }
 0x374   :  { %v7713_v56 = vadd.f32 %v7712_v42, %v7711_v55 }
 0x375   :  { %v7746_v37 = vpop.f32.mrf.mxu1 }
 0x376   :  { %v5082_v25 = vadd.f32 %v7713_v56, %v4881_v53 }
 0x377   :  { %v7747_v19 = vpop.f32.mrf.mxu1 }
 0x378   :  { %v7748_v54 = vadd.f32 %v7747_v19, %v7746_v37 }
 0x37a   :  { %v5283_v49 = vadd.f32 %v7748_v54, %v5082_v25 }
 0x393   :  { %v7781_v13 = vpop.f32.mrf.mxu0 }
 0x395   :  { %v7782_v44 = vpop.f32.mrf.mxu0 }
 0x396   :  { %v7783_v52 = vadd.f32 %v7782_v44, %v7781_v13 }
 0x397   :  { %v7816_v8 = vpop.f32.mrf.mxu1 }
 0x398   :  { %v5484_v36 = vadd.f32 %v7783_v52, %v5283_v49 }
 0x399   :  { %v7817_v5 = vpop.f32.mrf.mxu1 }
 0x39a   :  { %v7818_v21 = vadd.f32 %v7817_v5, %v7816_v8 }
 0x39c   :  { %v5685_v22 = vadd.f32 %v7818_v21, %v5484_v36 }
 0x3b5   :  { %v7851_v35 = vpop.f32.mrf.mxu0 }
 0x3b7   :  { %v7852_v58 = vpop.f32.mrf.mxu0 }
 0x3b8   :  { %v7853_v3 = vadd.f32 %v7852_v58, %v7851_v35 }
 0x3b9   :  { %v7886_v6 = vpop.f32.mrf.mxu1 }
 0x3ba   :  { %v5886_v4 = vadd.f32 %v7853_v3, %v5685_v22 }
 0x3bb   :  { %v7887_v2 = vpop.f32.mrf.mxu1 }
 0x3bc   :  { %v7888_v1 = vadd.f32 %v7887_v2, %v7886_v6 }
 0x3be   :  { %v6087_v39 = vadd.f32 %v7888_v1, %v5886_v4 }
 0x3d7   :  { %v7921_v46 = vpop.f32.mrf.mxu0 }
 0x3d9   :  { %v7922_v0 = vpop.f32.mrf.mxu0 }
 0x3da   :  { %v7923_v50 = vadd.f32 %v7922_v0, %v7921_v46  ;;  %v7956_v14 = vpop.f32.mrf.mxu1 }
 0x3dc   :  { %v6288_v23 = vadd.f32 %v7923_v50, %v6087_v39  ;;  %v7957_v11 = vpop.f32.mrf.mxu1 }
 0x3dd   :  { %v7958_v20 = vadd.f32 %v7957_v11, %v7956_v14 }
 0x3df   :  { %v6489_v16 = vadd.f32 %v7958_v20, %v6288_v23 }
 0x3e1   :  { %v6497_v33 = vadd.f32 %v6838_v9, %v6489_v16 }
 0x3e3   :  { %v6499_v15 = vsub.f32 %v6497_v33, %v6498_v10 }
 0x3e5   :  { %v6500_v17 = vmul.f32 %v6499_v15, %v6499_v15 }
 0x3e7   :  { %v6502_v28 = vsel %vm6501_vm8, %v6500_v17, 0.0 }
 0x3e8   :  { %6503 = vadd.xlane.f32.xlu0 %v6502_v28 }
 0x471   :  { %v6504_v32 = vpop.xlane.xlu0 %6503 }
 0x472   :  { %7972 = vrsqrt.f32 %v6504_v32  ;;  %vm6507_vm10 = vcmp.eq.f32.partialorder %v6504_v32, inf  ;;  %v6510_v27 = vand.u32 2147483648, %v6504_v32  ;;  %vm6509_vm11 = vcmp.eq.f32.partialorder %v6504_v32, 0.0 }
 0x47f   :  { %v7973_v29 = vpop.eup %7972 }
 0x480   :  { %v6506_v45 = vmul.f32 %v7973_v29, %v6504_v32 }
 0x482   :  { %v6508_v26 = vsel %vm6507_vm10, %v6504_v32, %v6506_v45 }
 0x483   :  { %v6511_v41 = vsel %vm6509_vm11, %v6510_v27, %v6508_v26 }
 0x484   :  { %6513 = vst.msk [vmem:[%s13842_s6] sm:$0x3] %vm6512_vm9, %v6511_v41 }
 0x485   :  { %6518 = vsyncpa [#allocation3], 1 }
 0x486   :  { %6519 = vsyncpa [#allocation5], 1 }

</bundles_post_ra>
